<compile_context>
chip_gen: v5e
topology: v5e:2x2
jax: 0.10.0
libtpu: 0.0.40
codegen_flags: <defaults>
</compile_context>

<pallas_src>
import jax
import jax.numpy as jnp
from jax.experimental import pallas as pl
from jax.experimental.pallas import tpu as pltpu

LANES = 128
VMEM_SPEC = pl.BlockSpec(memory_space=pltpu.MemorySpace.VMEM)


# ---------------------------------------------------------------------------
# Fused layer kernel: conv(matmul+bias) -> BN -> ReLU -> maxpool [-> fc]
# ---------------------------------------------------------------------------
def _make_fused_layer_kernel(N, Ho, Wo, C, num_cls=None):
    Hp, Wp = Ho // 2, Wo // 2
    M = N * Ho * Wo
    eps = 1e-5
    fuse_fc = num_cls is not None

    def kernel(*refs):
        if fuse_fc:
            (x_ref, w_ref, b_ref, g_ref, bt_ref, wfc_ref, bfc_ref,
             o_ref, y2_scr, y4_scr) = refs
        else:
            x_ref, w_ref, b_ref, g_ref, bt_ref, o_ref, y2_scr, y4_scr = refs

        # conv as one lane-dense matmul: bf16 operands, f32 accumulation.
        conv = jnp.dot(x_ref[...], w_ref[...],
                       preferred_element_type=jnp.float32) + b_ref[...]    # [M, C]

        # BatchNorm training-mode batch statistics over (N, H, W), single pass.
        s = jnp.sum(conv, axis=0, keepdims=True)                           # [1, C]
        ss = jnp.sum(conv * conv, axis=0, keepdims=True)                   # [1, C]
        mean = s * (1.0 / M)
        var = jnp.maximum(ss * (1.0 / M) - mean * mean, 0.0)               # biased var
        scale = g_ref[...] * jax.lax.rsqrt(var + eps)    # padded lanes: gamma=0 -> 0
        shift = bt_ref[...] - mean * scale

        # BN affine + ReLU applied BEFORE pooling (correct for any gamma sign).
        y2_scr[...] = jnp.maximum(conv * scale + shift, 0.0)               # [M, C]

        # Un-flatten [M, C] -> [N, Ho, Wo, C] via contiguous row-block copies
        # (avoids a retiling value reshape; N*Ho is a small static trip count).
        for n in range(N):
            for h in range(Ho):
                y4_scr[n, h, :, :] = y2_scr[pl.ds((n * Ho + h) * Wo, Wo), :]

        # 2x2 stride-2 max pool (floor): strided sublane loads along W,
        # leading-dim split + max along H.
        w_even = y4_scr[:, :, pl.ds(0, Wp, 2), :]
        w_odd = y4_scr[:, :, pl.ds(1, Wp, 2), :]
        xw = jnp.maximum(w_even, w_odd)                                    # [N, Ho, Wp, C]
        pooled = xw[:, :2 * Hp, :, :].reshape(N, Hp, 2, Wp, C).max(axis=2)

        if fuse_fc:
            # fc over NHWC-flattened pooled features without reshaping: one small
            # [N, C] x [C, num_cls] matmul per pooled spatial position, f32 accum.
            acc = jnp.zeros((N, num_cls), jnp.float32)
            for hp in range(Hp):
                for wp in range(Wp):
                    feat = pooled[:, hp, wp, :].astype(jnp.bfloat16)       # [N, C]
                    acc = acc + jnp.dot(feat, wfc_ref[hp * Wp + wp],
                                        preferred_element_type=jnp.float32)
            o_ref[...] = acc + bfc_ref[...]                                # [N, num_cls]
        else:
            o_ref[...] = pooled                                            # [N,Hp,Wp,C]

    return kernel


def fused_layer(patches, w, b, gamma, beta, *, N, Ho, Wo, wfc=None, bfc=None):
    """One pallas_call for conv+BN+ReLU+pool (and, if wfc is given, the final fc)."""
    C = w.shape[-1]
    Hp, Wp = Ho // 2, Wo // 2
    M = N * Ho * Wo
    fuse_fc = wfc is not None
    num_cls = wfc.shape[-1] if fuse_fc else None

    kernel = _make_fused_layer_kernel(N, Ho, Wo, C, num_cls=num_cls)
    inputs = [patches, w, b, gamma, beta]
    if fuse_fc:
        inputs += [wfc, bfc]
        out_shape = jax.ShapeDtypeStruct((N, num_cls), jnp.float32)
    else:
        out_shape = jax.ShapeDtypeStruct((N, Hp, Wp, C), jnp.float32)

    return pl.pallas_call(
        kernel,
        out_shape=out_shape,
        in_specs=[VMEM_SPEC] * len(inputs),
        out_specs=VMEM_SPEC,
        scratch_shapes=[
            pltpu.VMEM((M, C), jnp.float32),          # BN+ReLU result, 2-D
            pltpu.VMEM((N, Ho, Wo, C), jnp.float32),  # NHWC view for pooling
        ],
    )(*inputs)


# ---------------------------------------------------------------------------
# JAX-side glue: spatial padding + im2col (tiny at these shapes)
# ---------------------------------------------------------------------------
def _im2col(x_nhwc, kh, kw, pad):
    xp = jnp.pad(x_nhwc, ((0, 0), (pad, pad), (pad, pad), (0, 0)))
    N, Hpd, Wpd, C = xp.shape
    Ho, Wo = Hpd - kh + 1, Wpd - kw + 1
    cols = [xp[:, i:i + Ho, j:j + Wo, :] for i in range(kh) for j in range(kw)]
    patches = jnp.concatenate(cols, axis=-1).reshape(N * Ho * Wo, kh * kw * C)
    return patches.astype(jnp.bfloat16), Ho, Wo   # bf16 operands for the MXU


def net1_forward(x_nchw, p, num_classes=10):
    x = jnp.transpose(x_nchw, (0, 2, 3, 1)).astype(jnp.float32)   # NCHW -> NHWC
    N = x.shape[0]

    # Layer 1: Conv2d(1, 16, k=4, s=1, p=2) + BN + ReLU + MaxPool(2, 2), fused.
    patches1, Ho1, Wo1 = _im2col(x, 4, 4, 2)
    pooled1 = fused_layer(patches1, p["w1"], p["b1"], p["g1"], p["bt1"],
                          N=N, Ho=Ho1, Wo=Wo1)                    # [N, 8, 8, 128]

    # Layer 2 + fc: Conv2d(16, 32, k=4, s=1, p=2) + BN + ReLU + MaxPool + Linear.
    patches2, Ho2, Wo2 = _im2col(pooled1, 4, 4, 2)
    logits_pad = fused_layer(patches2, p["w2"], p["b2"], p["g2"], p["bt2"],
                             N=N, Ho=Ho2, Wo=Wo2,
                             wfc=p["wfc"], bfc=p["bfc"])          # [N, 128]
    return logits_pad[:, :num_classes]


# ---------------------------------------------------------------------------
# Deterministic synthetic parameters (lane-padded, fc pre-permuted to NHWC order)
# ---------------------------------------------------------------------------
def _pad_last(x, target):
    return jnp.pad(x, [(0, 0)] * (x.ndim - 1) + [(0, target - x.shape[-1])])


def init_params(key, num_classes=10):
    ks = jax.random.split(key, 6)

    def conv_w(k, cout, cin, kh, kw, cin_pad):
        bound = 1.0 / (cin * kh * kw) ** 0.5
        w = jax.random.uniform(k, (cout, cin, kh, kw), jnp.float32, -bound, bound)
        w = jnp.transpose(w, (2, 3, 1, 0))                         # (kh, kw, cin, cout)
        if cin_pad > cin:                                          # match padded patches
            w = jnp.pad(w, ((0, 0), (0, 0), (0, cin_pad - cin), (0, 0)))
        w = w.reshape(kh * kw * cin_pad, cout)
        return _pad_last(w, LANES).astype(jnp.bfloat16)            # [K, 128]

    def bias(k, cout, fan_in):
        bound = 1.0 / fan_in ** 0.5
        b = jax.random.uniform(k, (1, cout), jnp.float32, -bound, bound)
        return _pad_last(b, LANES)                                 # zero on padded lanes

    def bn(cout):
        gamma = _pad_last(jnp.ones((1, cout), jnp.float32), LANES) # gamma=0 on padding
        beta = jnp.zeros((1, LANES), jnp.float32)
        return gamma, beta

    g1, bt1 = bn(16)
    g2, bt2 = bn(32)

    # fc: conceptually Linear(32*4*4, 10) applied to NCHW-flattened features
    # (PyTorch's out.reshape(-1, C*H*W)).  Pre-permute its rows to the NHWC
    # (hp, wp, c) order + lane padding consumed by the kernel -> no runtime
    # transpose of activations.
    fc_in = 32 * 4 * 4
    fbound = 1.0 / fc_in ** 0.5
    wfc = jax.random.uniform(ks[4], (fc_in, num_classes), jnp.float32, -fbound, fbound)
    wfc = wfc.reshape(32, 4, 4, num_classes)                       # (c, hp, wp, cls)
    wfc = jnp.transpose(wfc, (1, 2, 0, 3))                         # (hp, wp, c, cls)
    wfc = jnp.pad(wfc, ((0, 0), (0, 0), (0, LANES - 32), (0, LANES - num_classes)))
    wfc = wfc.reshape(4 * 4, LANES, LANES).astype(jnp.bfloat16)    # [16, 128, 128]
    bfc = _pad_last(
        jax.random.uniform(ks[5], (1, num_classes), jnp.float32, -fbound, fbound), LANES)

    return {
        "w1": conv_w(ks[0], 16, 1, 4, 4, cin_pad=1),
        "b1": bias(ks[1], 16, 1 * 4 * 4),
        "g1": g1, "bt1": bt1,
        "w2": conv_w(ks[2], 32, 16, 4, 4, cin_pad=LANES),
        "b2": bias(ks[3], 32, 16 * 4 * 4),
        "g2": g2, "bt2": bt2,
        "wfc": wfc,
        "bfc": bfc,
    }


if __name__ == "__main__":
    key = jax.random.PRNGKey(0)
    pkey, xkey = jax.random.split(key)
    params = init_params(pkey)
    # Small NCHW input consistent with Conv2d(1, 16, ...): [N=2, C=1, H=16, W=16]
    x = jax.random.normal(xkey, (2, 1, 16, 16), jnp.float32)
    out = jax.jit(net1_forward)(x, params)
    jax.block_until_ready(out)
    assert out.shape == (2, 10) and out.dtype == jnp.float32
    print("KERNEL_OK")
</pallas_src>

<mosaic_0001>
module attributes {stable_mosaic.version = 11 : i64} {
  func.func @kernel(%arg0: memref<578x16xbf16, #tpu.memory_space<vmem>>, %arg1: memref<16x128xbf16, #tpu.memory_space<vmem>>, %arg2: memref<1x128xf32, #tpu.memory_space<vmem>>, %arg3: memref<1x128xf32, #tpu.memory_space<vmem>>, %arg4: memref<1x128xf32, #tpu.memory_space<vmem>>, %arg5: memref<2x8x8x128xf32, #tpu.memory_space<vmem>>, %arg6: memref<578x128xf32, #tpu.memory_space<vmem>>, %arg7: memref<2x17x17x128xf32, #tpu.memory_space<vmem>>) attributes {dimension_semantics = [], scalar_prefetch = 0 : i64, scratch_operands = 2 : i64, tpu.core_type = #tpu.core_type<tc>} {
    %c0 = arith.constant 0 : index
    %c0_0 = arith.constant 0 : index
    %0 = vector.load %arg0[%c0, %c0_0] : memref<578x16xbf16, #tpu.memory_space<vmem>>, vector<578x16xbf16>
    %c0_1 = arith.constant 0 : index
    %c0_2 = arith.constant 0 : index
    %1 = vector.load %arg1[%c0_1, %c0_2] : memref<16x128xbf16, #tpu.memory_space<vmem>>, vector<16x128xbf16>
    %cst = arith.constant dense<0.000000e+00> : vector<578x128xf32>
    %2 = tpu.matmul %0, %1, %cst {dimension_numbers = #tpu.dot_dimension_numbers<[1], [0], [0], [1], [0, 0, 1, 1], [], []>} : vector<578x16xbf16>, vector<16x128xbf16>, vector<578x128xf32> -> vector<578x128xf32>
    %c0_3 = arith.constant 0 : index
    %c0_4 = arith.constant 0 : index
    %3 = vector.load %arg2[%c0_3, %c0_4] : memref<1x128xf32, #tpu.memory_space<vmem>>, vector<1x128xf32>
    %4 = vector.broadcast %3 : vector<1x128xf32> to vector<578x128xf32>
    %5 = arith.addf %2, %4 : vector<578x128xf32>
    %cst_5 = arith.constant dense<0.000000e+00> : vector<128xf32>
    %6 = vector.multi_reduction <add>, %5, %cst_5 [0] : vector<578x128xf32> to vector<128xf32>
    %7 = vector.shape_cast %6 : vector<128xf32> to vector<1x128xf32>
    %8 = arith.mulf %5, %5 : vector<578x128xf32>
    %cst_6 = arith.constant dense<0.000000e+00> : vector<128xf32>
    %9 = vector.multi_reduction <add>, %8, %cst_6 [0] : vector<578x128xf32> to vector<128xf32>
    %10 = vector.shape_cast %9 : vector<128xf32> to vector<1x128xf32>
    %cst_7 = arith.constant 0.00173010386 : f32
    %11 = vector.broadcast %cst_7 : f32 to vector<1x128xf32>
    %12 = arith.mulf %7, %11 : vector<1x128xf32>
    %cst_8 = arith.constant 0.00173010386 : f32
    %13 = vector.broadcast %cst_8 : f32 to vector<1x128xf32>
    %14 = arith.mulf %10, %13 : vector<1x128xf32>
    %15 = arith.mulf %12, %12 : vector<1x128xf32>
    %16 = arith.subf %14, %15 : vector<1x128xf32>
    %cst_9 = arith.constant 0.000000e+00 : f32
    %17 = vector.broadcast %cst_9 : f32 to vector<1x128xf32>
    %18 = arith.maximumf %16, %17 : vector<1x128xf32>
    %c0_10 = arith.constant 0 : index
    %c0_11 = arith.constant 0 : index
    %19 = vector.load %arg3[%c0_10, %c0_11] : memref<1x128xf32, #tpu.memory_space<vmem>>, vector<1x128xf32>
    %cst_12 = arith.constant 9.99999974E-6 : f32
    %20 = vector.broadcast %cst_12 : f32 to vector<1x128xf32>
    %21 = arith.addf %18, %20 : vector<1x128xf32>
    %22 = math.rsqrt %21 : vector<1x128xf32>
    %23 = arith.mulf %19, %22 : vector<1x128xf32>
    %c0_13 = arith.constant 0 : index
    %c0_14 = arith.constant 0 : index
    %24 = vector.load %arg4[%c0_13, %c0_14] : memref<1x128xf32, #tpu.memory_space<vmem>>, vector<1x128xf32>
    %25 = arith.mulf %12, %23 : vector<1x128xf32>
    %26 = arith.subf %24, %25 : vector<1x128xf32>
    %27 = vector.broadcast %23 : vector<1x128xf32> to vector<578x128xf32>
    %28 = arith.mulf %5, %27 : vector<578x128xf32>
    %29 = vector.broadcast %26 : vector<1x128xf32> to vector<578x128xf32>
    %30 = arith.addf %28, %29 : vector<578x128xf32>
    %cst_15 = arith.constant 0.000000e+00 : f32
    %31 = vector.broadcast %cst_15 : f32 to vector<578x128xf32>
    %32 = arith.maximumf %30, %31 : vector<578x128xf32>
    %c0_16 = arith.constant 0 : index
    %c0_17 = arith.constant 0 : index
    %33 = vector.load %arg6[%c0_16, %c0_17] : memref<578x128xf32, #tpu.memory_space<vmem>>, vector<578x128xf32>
    tpu.vector_store %arg6[%c0_16, %c0_17], %32 {strides = array<i32>} : memref<578x128xf32, #tpu.memory_space<vmem>>, vector<578x128xf32>,
    %c0_18 = arith.constant 0 : index
    %c0_19 = arith.constant 0 : index
    %34 = vector.load %arg6[%c0_18, %c0_19] : memref<578x128xf32, #tpu.memory_space<vmem>>, vector<17x128xf32>
    %c0_20 = arith.constant 0 : index
    %c0_21 = arith.constant 0 : index
    %c0_22 = arith.constant 0 : index
    %c0_23 = arith.constant 0 : index
    %35 = vector.load %arg7[%c0_20, %c0_21, %c0_22, %c0_23] : memref<2x17x17x128xf32, #tpu.memory_space<vmem>>, vector<1x1x17x128xf32>
    %36 = vector.shape_cast %35 : vector<1x1x17x128xf32> to vector<17x128xf32>
    %37 = vector.shape_cast %34 : vector<17x128xf32> to vector<1x1x17x128xf32>
    tpu.vector_store %arg7[%c0_20, %c0_21, %c0_22, %c0_23], %37 {strides = array<i32>} : memref<2x17x17x128xf32, #tpu.memory_space<vmem>>, vector<1x1x17x128xf32>,
    %c17 = arith.constant 17 : index
    %c0_24 = arith.constant 0 : index
    %38 = vector.load %arg6[%c17, %c0_24] : memref<578x128xf32, #tpu.memory_space<vmem>>, vector<17x128xf32>
    %c0_25 = arith.constant 0 : index
    %c1 = arith.constant 1 : index
    %c0_26 = arith.constant 0 : index
    %c0_27 = arith.constant 0 : index
    %39 = vector.load %arg7[%c0_25, %c1, %c0_26, %c0_27] : memref<2x17x17x128xf32, #tpu.memory_space<vmem>>, vector<1x1x17x128xf32>
    %40 = vector.shape_cast %39 : vector<1x1x17x128xf32> to vector<17x128xf32>
    %41 = vector.shape_cast %38 : vector<17x128xf32> to vector<1x1x17x128xf32>
    tpu.vector_store %arg7[%c0_25, %c1, %c0_26, %c0_27], %41 {strides = array<i32>} : memref<2x17x17x128xf32, #tpu.memory_space<vmem>>, vector<1x1x17x128xf32>,
    %c34 = arith.constant 34 : index
    %c0_28 = arith.constant 0 : index
    %42 = vector.load %arg6[%c34, %c0_28] : memref<578x128xf32, #tpu.memory_space<vmem>>, vector<17x128xf32>
    %c0_29 = arith.constant 0 : index
    %c2 = arith.constant 2 : index
    %c0_30 = arith.constant 0 : index
    %c0_31 = arith.constant 0 : index
    %43 = vector.load %arg7[%c0_29, %c2, %c0_30, %c0_31] : memref<2x17x17x128xf32, #tpu.memory_space<vmem>>, vector<1x1x17x128xf32>
    %44 = vector.shape_cast %43 : vector<1x1x17x128xf32> to vector<17x128xf32>
    %45 = vector.shape_cast %42 : vector<17x128xf32> to vector<1x1x17x128xf32>
    tpu.vector_store %arg7[%c0_29, %c2, %c0_30, %c0_31], %45 {strides = array<i32>} : memref<2x17x17x128xf32, #tpu.memory_space<vmem>>, vector<1x1x17x128xf32>,
    %c51 = arith.constant 51 : index
    %c0_32 = arith.constant 0 : index
    %46 = vector.load %arg6[%c51, %c0_32] : memref<578x128xf32, #tpu.memory_space<vmem>>, vector<17x128xf32>
    %c0_33 = arith.constant 0 : index
    %c3 = arith.constant 3 : index
    %c0_34 = arith.constant 0 : index
    %c0_35 = arith.constant 0 : index
    %47 = vector.load %arg7[%c0_33, %c3, %c0_34, %c0_35] : memref<2x17x17x128xf32, #tpu.memory_space<vmem>>, vector<1x1x17x128xf32>
    %48 = vector.shape_cast %47 : vector<1x1x17x128xf32> to vector<17x128xf32>
    %49 = vector.shape_cast %46 : vector<17x128xf32> to vector<1x1x17x128xf32>
    tpu.vector_store %arg7[%c0_33, %c3, %c0_34, %c0_35], %49 {strides = array<i32>} : memref<2x17x17x128xf32, #tpu.memory_space<vmem>>, vector<1x1x17x128xf32>,
    %c68 = arith.constant 68 : index
    %c0_36 = arith.constant 0 : index
    %50 = vector.load %arg6[%c68, %c0_36] : memref<578x128xf32, #tpu.memory_space<vmem>>, vector<17x128xf32>
    %c0_37 = arith.constant 0 : index
    %c4 = arith.constant 4 : index
    %c0_38 = arith.constant 0 : index
    %c0_39 = arith.constant 0 : index
    %51 = vector.load %arg7[%c0_37, %c4, %c0_38, %c0_39] : memref<2x17x17x128xf32, #tpu.memory_space<vmem>>, vector<1x1x17x128xf32>
    %52 = vector.shape_cast %51 : vector<1x1x17x128xf32> to vector<17x128xf32>
    %53 = vector.shape_cast %50 : vector<17x128xf32> to vector<1x1x17x128xf32>
    tpu.vector_store %arg7[%c0_37, %c4, %c0_38, %c0_39], %53 {strides = array<i32>} : memref<2x17x17x128xf32, #tpu.memory_space<vmem>>, vector<1x1x17x128xf32>,
    %c85 = arith.constant 85 : index
    %c0_40 = arith.constant 0 : index
    %54 = vector.load %arg6[%c85, %c0_40] : memref<578x128xf32, #tpu.memory_space<vmem>>, vector<17x128xf32>
    %c0_41 = arith.constant 0 : index
    %c5 = arith.constant 5 : index
    %c0_42 = arith.constant 0 : index
    %c0_43 = arith.constant 0 : index
    %55 = vector.load %arg7[%c0_41, %c5, %c0_42, %c0_43] : memref<2x17x17x128xf32, #tpu.memory_space<vmem>>, vector<1x1x17x128xf32>
    %56 = vector.shape_cast %55 : vector<1x1x17x128xf32> to vector<17x128xf32>
    %57 = vector.shape_cast %54 : vector<17x128xf32> to vector<1x1x17x128xf32>
    tpu.vector_store %arg7[%c0_41, %c5, %c0_42, %c0_43], %57 {strides = array<i32>} : memref<2x17x17x128xf32, #tpu.memory_space<vmem>>, vector<1x1x17x128xf32>,
    %c102 = arith.constant 102 : index
    %c0_44 = arith.constant 0 : index
    %58 = vector.load %arg6[%c102, %c0_44] : memref<578x128xf32, #tpu.memory_space<vmem>>, vector<17x128xf32>
    %c0_45 = arith.constant 0 : index
    %c6 = arith.constant 6 : index
    %c0_46 = arith.constant 0 : index
    %c0_47 = arith.constant 0 : index
    %59 = vector.load %arg7[%c0_45, %c6, %c0_46, %c0_47] : memref<2x17x17x128xf32, #tpu.memory_space<vmem>>, vector<1x1x17x128xf32>
    %60 = vector.shape_cast %59 : vector<1x1x17x128xf32> to vector<17x128xf32>
    %61 = vector.shape_cast %58 : vector<17x128xf32> to vector<1x1x17x128xf32>
    tpu.vector_store %arg7[%c0_45, %c6, %c0_46, %c0_47], %61 {strides = array<i32>} : memref<2x17x17x128xf32, #tpu.memory_space<vmem>>, vector<1x1x17x128xf32>,
    %c119 = arith.constant 119 : index
    %c0_48 = arith.constant 0 : index
    %62 = vector.load %arg6[%c119, %c0_48] : memref<578x128xf32, #tpu.memory_space<vmem>>, vector<17x128xf32>
    %c0_49 = arith.constant 0 : index
    %c7 = arith.constant 7 : index
    %c0_50 = arith.constant 0 : index
    %c0_51 = arith.constant 0 : index
    %63 = vector.load %arg7[%c0_49, %c7, %c0_50, %c0_51] : memref<2x17x17x128xf32, #tpu.memory_space<vmem>>, vector<1x1x17x128xf32>
    %64 = vector.shape_cast %63 : vector<1x1x17x128xf32> to vector<17x128xf32>
    %65 = vector.shape_cast %62 : vector<17x128xf32> to vector<1x1x17x128xf32>
    tpu.vector_store %arg7[%c0_49, %c7, %c0_50, %c0_51], %65 {strides = array<i32>} : memref<2x17x17x128xf32, #tpu.memory_space<vmem>>, vector<1x1x17x128xf32>,
    %c136 = arith.constant 136 : index
    %c0_52 = arith.constant 0 : index
    %66 = vector.load %arg6[%c136, %c0_52] : memref<578x128xf32, #tpu.memory_space<vmem>>, vector<17x128xf32>
    %c0_53 = arith.constant 0 : index
    %c8 = arith.constant 8 : index
    %c0_54 = arith.constant 0 : index
    %c0_55 = arith.constant 0 : index
    %67 = vector.load %arg7[%c0_53, %c8, %c0_54, %c0_55] : memref<2x17x17x128xf32, #tpu.memory_space<vmem>>, vector<1x1x17x128xf32>
    %68 = vector.shape_cast %67 : vector<1x1x17x128xf32> to vector<17x128xf32>
    %69 = vector.shape_cast %66 : vector<17x128xf32> to vector<1x1x17x128xf32>
    tpu.vector_store %arg7[%c0_53, %c8, %c0_54, %c0_55], %69 {strides = array<i32>} : memref<2x17x17x128xf32, #tpu.memory_space<vmem>>, vector<1x1x17x128xf32>,
    %c153 = arith.constant 153 : index
    %c0_56 = arith.constant 0 : index
    %70 = vector.load %arg6[%c153, %c0_56] : memref<578x128xf32, #tpu.memory_space<vmem>>, vector<17x128xf32>
    %c0_57 = arith.constant 0 : index
    %c9 = arith.constant 9 : index
    %c0_58 = arith.constant 0 : index
    %c0_59 = arith.constant 0 : index
    %71 = vector.load %arg7[%c0_57, %c9, %c0_58, %c0_59] : memref<2x17x17x128xf32, #tpu.memory_space<vmem>>, vector<1x1x17x128xf32>
    %72 = vector.shape_cast %71 : vector<1x1x17x128xf32> to vector<17x128xf32>
    %73 = vector.shape_cast %70 : vector<17x128xf32> to vector<1x1x17x128xf32>
    tpu.vector_store %arg7[%c0_57, %c9, %c0_58, %c0_59], %73 {strides = array<i32>} : memref<2x17x17x128xf32, #tpu.memory_space<vmem>>, vector<1x1x17x128xf32>,
    %c170 = arith.constant 170 : index
    %c0_60 = arith.constant 0 : index
    %74 = vector.load %arg6[%c170, %c0_60] : memref<578x128xf32, #tpu.memory_space<vmem>>, vector<17x128xf32>
    %c0_61 = arith.constant 0 : index
    %c10 = arith.constant 10 : index
    %c0_62 = arith.constant 0 : index
    %c0_63 = arith.constant 0 : index
    %75 = vector.load %arg7[%c0_61, %c10, %c0_62, %c0_63] : memref<2x17x17x128xf32, #tpu.memory_space<vmem>>, vector<1x1x17x128xf32>
    %76 = vector.shape_cast %75 : vector<1x1x17x128xf32> to vector<17x128xf32>
    %77 = vector.shape_cast %74 : vector<17x128xf32> to vector<1x1x17x128xf32>
    tpu.vector_store %arg7[%c0_61, %c10, %c0_62, %c0_63], %77 {strides = array<i32>} : memref<2x17x17x128xf32, #tpu.memory_space<vmem>>, vector<1x1x17x128xf32>,
    %c187 = arith.constant 187 : index
    %c0_64 = arith.constant 0 : index
    %78 = vector.load %arg6[%c187, %c0_64] : memref<578x128xf32, #tpu.memory_space<vmem>>, vector<17x128xf32>
    %c0_65 = arith.constant 0 : index
    %c11 = arith.constant 11 : index
    %c0_66 = arith.constant 0 : index
    %c0_67 = arith.constant 0 : index
    %79 = vector.load %arg7[%c0_65, %c11, %c0_66, %c0_67] : memref<2x17x17x128xf32, #tpu.memory_space<vmem>>, vector<1x1x17x128xf32>
    %80 = vector.shape_cast %79 : vector<1x1x17x128xf32> to vector<17x128xf32>
    %81 = vector.shape_cast %78 : vector<17x128xf32> to vector<1x1x17x128xf32>
    tpu.vector_store %arg7[%c0_65, %c11, %c0_66, %c0_67], %81 {strides = array<i32>} : memref<2x17x17x128xf32, #tpu.memory_space<vmem>>, vector<1x1x17x128xf32>,
    %c204 = arith.constant 204 : index
    %c0_68 = arith.constant 0 : index
    %82 = vector.load %arg6[%c204, %c0_68] : memref<578x128xf32, #tpu.memory_space<vmem>>, vector<17x128xf32>
    %c0_69 = arith.constant 0 : index
    %c12 = arith.constant 12 : index
    %c0_70 = arith.constant 0 : index
    %c0_71 = arith.constant 0 : index
    %83 = vector.load %arg7[%c0_69, %c12, %c0_70, %c0_71] : memref<2x17x17x128xf32, #tpu.memory_space<vmem>>, vector<1x1x17x128xf32>
    %84 = vector.shape_cast %83 : vector<1x1x17x128xf32> to vector<17x128xf32>
    %85 = vector.shape_cast %82 : vector<17x128xf32> to vector<1x1x17x128xf32>
    tpu.vector_store %arg7[%c0_69, %c12, %c0_70, %c0_71], %85 {strides = array<i32>} : memref<2x17x17x128xf32, #tpu.memory_space<vmem>>, vector<1x1x17x128xf32>,
    %c221 = arith.constant 221 : index
    %c0_72 = arith.constant 0 : index
    %86 = vector.load %arg6[%c221, %c0_72] : memref<578x128xf32, #tpu.memory_space<vmem>>, vector<17x128xf32>
    %c0_73 = arith.constant 0 : index
    %c13 = arith.constant 13 : index
    %c0_74 = arith.constant 0 : index
    %c0_75 = arith.constant 0 : index
    %87 = vector.load %arg7[%c0_73, %c13, %c0_74, %c0_75] : memref<2x17x17x128xf32, #tpu.memory_space<vmem>>, vector<1x1x17x128xf32>
    %88 = vector.shape_cast %87 : vector<1x1x17x128xf32> to vector<17x128xf32>
    %89 = vector.shape_cast %86 : vector<17x128xf32> to vector<1x1x17x128xf32>
    tpu.vector_store %arg7[%c0_73, %c13, %c0_74, %c0_75], %89 {strides = array<i32>} : memref<2x17x17x128xf32, #tpu.memory_space<vmem>>, vector<1x1x17x128xf32>,
    %c238 = arith.constant 238 : index
    %c0_76 = arith.constant 0 : index
    %90 = vector.load %arg6[%c238, %c0_76] : memref<578x128xf32, #tpu.memory_space<vmem>>, vector<17x128xf32>
    %c0_77 = arith.constant 0 : index
    %c14 = arith.constant 14 : index
    %c0_78 = arith.constant 0 : index
    %c0_79 = arith.constant 0 : index
    %91 = vector.load %arg7[%c0_77, %c14, %c0_78, %c0_79] : memref<2x17x17x128xf32, #tpu.memory_space<vmem>>, vector<1x1x17x128xf32>
    %92 = vector.shape_cast %91 : vector<1x1x17x128xf32> to vector<17x128xf32>
    %93 = vector.shape_cast %90 : vector<17x128xf32> to vector<1x1x17x128xf32>
    tpu.vector_store %arg7[%c0_77, %c14, %c0_78, %c0_79], %93 {strides = array<i32>} : memref<2x17x17x128xf32, #tpu.memory_space<vmem>>, vector<1x1x17x128xf32>,
    %c255 = arith.constant 255 : index
    %c0_80 = arith.constant 0 : index
    %94 = vector.load %arg6[%c255, %c0_80] : memref<578x128xf32, #tpu.memory_space<vmem>>, vector<17x128xf32>
    %c0_81 = arith.constant 0 : index
    %c15 = arith.constant 15 : index
    %c0_82 = arith.constant 0 : index
    %c0_83 = arith.constant 0 : index
    %95 = vector.load %arg7[%c0_81, %c15, %c0_82, %c0_83] : memref<2x17x17x128xf32, #tpu.memory_space<vmem>>, vector<1x1x17x128xf32>
    %96 = vector.shape_cast %95 : vector<1x1x17x128xf32> to vector<17x128xf32>
    %97 = vector.shape_cast %94 : vector<17x128xf32> to vector<1x1x17x128xf32>
    tpu.vector_store %arg7[%c0_81, %c15, %c0_82, %c0_83], %97 {strides = array<i32>} : memref<2x17x17x128xf32, #tpu.memory_space<vmem>>, vector<1x1x17x128xf32>,
    %c272 = arith.constant 272 : index
    %c0_84 = arith.constant 0 : index
    %98 = vector.load %arg6[%c272, %c0_84] : memref<578x128xf32, #tpu.memory_space<vmem>>, vector<17x128xf32>
    %c0_85 = arith.constant 0 : index
    %c16 = arith.constant 16 : index
    %c0_86 = arith.constant 0 : index
    %c0_87 = arith.constant 0 : index
    %99 = vector.load %arg7[%c0_85, %c16, %c0_86, %c0_87] : memref<2x17x17x128xf32, #tpu.memory_space<vmem>>, vector<1x1x17x128xf32>
    %100 = vector.shape_cast %99 : vector<1x1x17x128xf32> to vector<17x128xf32>
    %101 = vector.shape_cast %98 : vector<17x128xf32> to vector<1x1x17x128xf32>
    tpu.vector_store %arg7[%c0_85, %c16, %c0_86, %c0_87], %101 {strides = array<i32>} : memref<2x17x17x128xf32, #tpu.memory_space<vmem>>, vector<1x1x17x128xf32>,
    %c289 = arith.constant 289 : index
    %c0_88 = arith.constant 0 : index
    %102 = vector.load %arg6[%c289, %c0_88] : memref<578x128xf32, #tpu.memory_space<vmem>>, vector<17x128xf32>
    %c1_89 = arith.constant 1 : index
    %c0_90 = arith.constant 0 : index
    %c0_91 = arith.constant 0 : index
    %c0_92 = arith.constant 0 : index
    %103 = vector.load %arg7[%c1_89, %c0_90, %c0_91, %c0_92] : memref<2x17x17x128xf32, #tpu.memory_space<vmem>>, vector<1x1x17x128xf32>
    %104 = vector.shape_cast %103 : vector<1x1x17x128xf32> to vector<17x128xf32>
    %105 = vector.shape_cast %102 : vector<17x128xf32> to vector<1x1x17x128xf32>
    tpu.vector_store %arg7[%c1_89, %c0_90, %c0_91, %c0_92], %105 {strides = array<i32>} : memref<2x17x17x128xf32, #tpu.memory_space<vmem>>, vector<1x1x17x128xf32>,
    %c306 = arith.constant 306 : index
    %c0_93 = arith.constant 0 : index
    %106 = vector.load %arg6[%c306, %c0_93] : memref<578x128xf32, #tpu.memory_space<vmem>>, vector<17x128xf32>
    %c1_94 = arith.constant 1 : index
    %c1_95 = arith.constant 1 : index
    %c0_96 = arith.constant 0 : index
    %c0_97 = arith.constant 0 : index
    %107 = vector.load %arg7[%c1_94, %c1_95, %c0_96, %c0_97] : memref<2x17x17x128xf32, #tpu.memory_space<vmem>>, vector<1x1x17x128xf32>
    %108 = vector.shape_cast %107 : vector<1x1x17x128xf32> to vector<17x128xf32>
    %109 = vector.shape_cast %106 : vector<17x128xf32> to vector<1x1x17x128xf32>
    tpu.vector_store %arg7[%c1_94, %c1_95, %c0_96, %c0_97], %109 {strides = array<i32>} : memref<2x17x17x128xf32, #tpu.memory_space<vmem>>, vector<1x1x17x128xf32>,
    %c323 = arith.constant 323 : index
    %c0_98 = arith.constant 0 : index
    %110 = vector.load %arg6[%c323, %c0_98] : memref<578x128xf32, #tpu.memory_space<vmem>>, vector<17x128xf32>
    %c1_99 = arith.constant 1 : index
    %c2_100 = arith.constant 2 : index
    %c0_101 = arith.constant 0 : index
    %c0_102 = arith.constant 0 : index
    %111 = vector.load %arg7[%c1_99, %c2_100, %c0_101, %c0_102] : memref<2x17x17x128xf32, #tpu.memory_space<vmem>>, vector<1x1x17x128xf32>
    %112 = vector.shape_cast %111 : vector<1x1x17x128xf32> to vector<17x128xf32>
    %113 = vector.shape_cast %110 : vector<17x128xf32> to vector<1x1x17x128xf32>
    tpu.vector_store %arg7[%c1_99, %c2_100, %c0_101, %c0_102], %113 {strides = array<i32>} : memref<2x17x17x128xf32, #tpu.memory_space<vmem>>, vector<1x1x17x128xf32>,
    %c340 = arith.constant 340 : index
    %c0_103 = arith.constant 0 : index
    %114 = vector.load %arg6[%c340, %c0_103] : memref<578x128xf32, #tpu.memory_space<vmem>>, vector<17x128xf32>
    %c1_104 = arith.constant 1 : index
    %c3_105 = arith.constant 3 : index
    %c0_106 = arith.constant 0 : index
    %c0_107 = arith.constant 0 : index
    %115 = vector.load %arg7[%c1_104, %c3_105, %c0_106, %c0_107] : memref<2x17x17x128xf32, #tpu.memory_space<vmem>>, vector<1x1x17x128xf32>
    %116 = vector.shape_cast %115 : vector<1x1x17x128xf32> to vector<17x128xf32>
    %117 = vector.shape_cast %114 : vector<17x128xf32> to vector<1x1x17x128xf32>
    tpu.vector_store %arg7[%c1_104, %c3_105, %c0_106, %c0_107], %117 {strides = array<i32>} : memref<2x17x17x128xf32, #tpu.memory_space<vmem>>, vector<1x1x17x128xf32>,
    %c357 = arith.constant 357 : index
    %c0_108 = arith.constant 0 : index
    %118 = vector.load %arg6[%c357, %c0_108] : memref<578x128xf32, #tpu.memory_space<vmem>>, vector<17x128xf32>
    %c1_109 = arith.constant 1 : index
    %c4_110 = arith.constant 4 : index
    %c0_111 = arith.constant 0 : index
    %c0_112 = arith.constant 0 : index
    %119 = vector.load %arg7[%c1_109, %c4_110, %c0_111, %c0_112] : memref<2x17x17x128xf32, #tpu.memory_space<vmem>>, vector<1x1x17x128xf32>
    %120 = vector.shape_cast %119 : vector<1x1x17x128xf32> to vector<17x128xf32>
    %121 = vector.shape_cast %118 : vector<17x128xf32> to vector<1x1x17x128xf32>
    tpu.vector_store %arg7[%c1_109, %c4_110, %c0_111, %c0_112], %121 {strides = array<i32>} : memref<2x17x17x128xf32, #tpu.memory_space<vmem>>, vector<1x1x17x128xf32>,
    %c374 = arith.constant 374 : index
    %c0_113 = arith.constant 0 : index
    %122 = vector.load %arg6[%c374, %c0_113] : memref<578x128xf32, #tpu.memory_space<vmem>>, vector<17x128xf32>
    %c1_114 = arith.constant 1 : index
    %c5_115 = arith.constant 5 : index
    %c0_116 = arith.constant 0 : index
    %c0_117 = arith.constant 0 : index
    %123 = vector.load %arg7[%c1_114, %c5_115, %c0_116, %c0_117] : memref<2x17x17x128xf32, #tpu.memory_space<vmem>>, vector<1x1x17x128xf32>
    %124 = vector.shape_cast %123 : vector<1x1x17x128xf32> to vector<17x128xf32>
    %125 = vector.shape_cast %122 : vector<17x128xf32> to vector<1x1x17x128xf32>
    tpu.vector_store %arg7[%c1_114, %c5_115, %c0_116, %c0_117], %125 {strides = array<i32>} : memref<2x17x17x128xf32, #tpu.memory_space<vmem>>, vector<1x1x17x128xf32>,
    %c391 = arith.constant 391 : index
    %c0_118 = arith.constant 0 : index
    %126 = vector.load %arg6[%c391, %c0_118] : memref<578x128xf32, #tpu.memory_space<vmem>>, vector<17x128xf32>
    %c1_119 = arith.constant 1 : index
    %c6_120 = arith.constant 6 : index
    %c0_121 = arith.constant 0 : index
    %c0_122 = arith.constant 0 : index
    %127 = vector.load %arg7[%c1_119, %c6_120, %c0_121, %c0_122] : memref<2x17x17x128xf32, #tpu.memory_space<vmem>>, vector<1x1x17x128xf32>
    %128 = vector.shape_cast %127 : vector<1x1x17x128xf32> to vector<17x128xf32>
    %129 = vector.shape_cast %126 : vector<17x128xf32> to vector<1x1x17x128xf32>
    tpu.vector_store %arg7[%c1_119, %c6_120, %c0_121, %c0_122], %129 {strides = array<i32>} : memref<2x17x17x128xf32, #tpu.memory_space<vmem>>, vector<1x1x17x128xf32>,
    %c408 = arith.constant 408 : index
    %c0_123 = arith.constant 0 : index
    %130 = vector.load %arg6[%c408, %c0_123] : memref<578x128xf32, #tpu.memory_space<vmem>>, vector<17x128xf32>
    %c1_124 = arith.constant 1 : index
    %c7_125 = arith.constant 7 : index
    %c0_126 = arith.constant 0 : index
    %c0_127 = arith.constant 0 : index
    %131 = vector.load %arg7[%c1_124, %c7_125, %c0_126, %c0_127] : memref<2x17x17x128xf32, #tpu.memory_space<vmem>>, vector<1x1x17x128xf32>
    %132 = vector.shape_cast %131 : vector<1x1x17x128xf32> to vector<17x128xf32>
    %133 = vector.shape_cast %130 : vector<17x128xf32> to vector<1x1x17x128xf32>
    tpu.vector_store %arg7[%c1_124, %c7_125, %c0_126, %c0_127], %133 {strides = array<i32>} : memref<2x17x17x128xf32, #tpu.memory_space<vmem>>, vector<1x1x17x128xf32>,
    %c425 = arith.constant 425 : index
    %c0_128 = arith.constant 0 : index
    %134 = vector.load %arg6[%c425, %c0_128] : memref<578x128xf32, #tpu.memory_space<vmem>>, vector<17x128xf32>
    %c1_129 = arith.constant 1 : index
    %c8_130 = arith.constant 8 : index
    %c0_131 = arith.constant 0 : index
    %c0_132 = arith.constant 0 : index
    %135 = vector.load %arg7[%c1_129, %c8_130, %c0_131, %c0_132] : memref<2x17x17x128xf32, #tpu.memory_space<vmem>>, vector<1x1x17x128xf32>
    %136 = vector.shape_cast %135 : vector<1x1x17x128xf32> to vector<17x128xf32>
    %137 = vector.shape_cast %134 : vector<17x128xf32> to vector<1x1x17x128xf32>
    tpu.vector_store %arg7[%c1_129, %c8_130, %c0_131, %c0_132], %137 {strides = array<i32>} : memref<2x17x17x128xf32, #tpu.memory_space<vmem>>, vector<1x1x17x128xf32>,
    %c442 = arith.constant 442 : index
    %c0_133 = arith.constant 0 : index
    %138 = vector.load %arg6[%c442, %c0_133] : memref<578x128xf32, #tpu.memory_space<vmem>>, vector<17x128xf32>
    %c1_134 = arith.constant 1 : index
    %c9_135 = arith.constant 9 : index
    %c0_136 = arith.constant 0 : index
    %c0_137 = arith.constant 0 : index
    %139 = vector.load %arg7[%c1_134, %c9_135, %c0_136, %c0_137] : memref<2x17x17x128xf32, #tpu.memory_space<vmem>>, vector<1x1x17x128xf32>
    %140 = vector.shape_cast %139 : vector<1x1x17x128xf32> to vector<17x128xf32>
    %141 = vector.shape_cast %138 : vector<17x128xf32> to vector<1x1x17x128xf32>
    tpu.vector_store %arg7[%c1_134, %c9_135, %c0_136, %c0_137], %141 {strides = array<i32>} : memref<2x17x17x128xf32, #tpu.memory_space<vmem>>, vector<1x1x17x128xf32>,
    %c459 = arith.constant 459 : index
    %c0_138 = arith.constant 0 : index
    %142 = vector.load %arg6[%c459, %c0_138] : memref<578x128xf32, #tpu.memory_space<vmem>>, vector<17x128xf32>
    %c1_139 = arith.constant 1 : index
    %c10_140 = arith.constant 10 : index
    %c0_141 = arith.constant 0 : index
    %c0_142 = arith.constant 0 : index
    %143 = vector.load %arg7[%c1_139, %c10_140, %c0_141, %c0_142] : memref<2x17x17x128xf32, #tpu.memory_space<vmem>>, vector<1x1x17x128xf32>
    %144 = vector.shape_cast %143 : vector<1x1x17x128xf32> to vector<17x128xf32>
    %145 = vector.shape_cast %142 : vector<17x128xf32> to vector<1x1x17x128xf32>
    tpu.vector_store %arg7[%c1_139, %c10_140, %c0_141, %c0_142], %145 {strides = array<i32>} : memref<2x17x17x128xf32, #tpu.memory_space<vmem>>, vector<1x1x17x128xf32>,
    %c476 = arith.constant 476 : index
    %c0_143 = arith.constant 0 : index
    %146 = vector.load %arg6[%c476, %c0_143] : memref<578x128xf32, #tpu.memory_space<vmem>>, vector<17x128xf32>
    %c1_144 = arith.constant 1 : index
    %c11_145 = arith.constant 11 : index
    %c0_146 = arith.constant 0 : index
    %c0_147 = arith.constant 0 : index
    %147 = vector.load %arg7[%c1_144, %c11_145, %c0_146, %c0_147] : memref<2x17x17x128xf32, #tpu.memory_space<vmem>>, vector<1x1x17x128xf32>
    %148 = vector.shape_cast %147 : vector<1x1x17x128xf32> to vector<17x128xf32>
    %149 = vector.shape_cast %146 : vector<17x128xf32> to vector<1x1x17x128xf32>
    tpu.vector_store %arg7[%c1_144, %c11_145, %c0_146, %c0_147], %149 {strides = array<i32>} : memref<2x17x17x128xf32, #tpu.memory_space<vmem>>, vector<1x1x17x128xf32>,
    %c493 = arith.constant 493 : index
    %c0_148 = arith.constant 0 : index
    %150 = vector.load %arg6[%c493, %c0_148] : memref<578x128xf32, #tpu.memory_space<vmem>>, vector<17x128xf32>
    %c1_149 = arith.constant 1 : index
    %c12_150 = arith.constant 12 : index
    %c0_151 = arith.constant 0 : index
    %c0_152 = arith.constant 0 : index
    %151 = vector.load %arg7[%c1_149, %c12_150, %c0_151, %c0_152] : memref<2x17x17x128xf32, #tpu.memory_space<vmem>>, vector<1x1x17x128xf32>
    %152 = vector.shape_cast %151 : vector<1x1x17x128xf32> to vector<17x128xf32>
    %153 = vector.shape_cast %150 : vector<17x128xf32> to vector<1x1x17x128xf32>
    tpu.vector_store %arg7[%c1_149, %c12_150, %c0_151, %c0_152], %153 {strides = array<i32>} : memref<2x17x17x128xf32, #tpu.memory_space<vmem>>, vector<1x1x17x128xf32>,
    %c510 = arith.constant 510 : index
    %c0_153 = arith.constant 0 : index
    %154 = vector.load %arg6[%c510, %c0_153] : memref<578x128xf32, #tpu.memory_space<vmem>>, vector<17x128xf32>
    %c1_154 = arith.constant 1 : index
    %c13_155 = arith.constant 13 : index
    %c0_156 = arith.constant 0 : index
    %c0_157 = arith.constant 0 : index
    %155 = vector.load %arg7[%c1_154, %c13_155, %c0_156, %c0_157] : memref<2x17x17x128xf32, #tpu.memory_space<vmem>>, vector<1x1x17x128xf32>
    %156 = vector.shape_cast %155 : vector<1x1x17x128xf32> to vector<17x128xf32>
    %157 = vector.shape_cast %154 : vector<17x128xf32> to vector<1x1x17x128xf32>
    tpu.vector_store %arg7[%c1_154, %c13_155, %c0_156, %c0_157], %157 {strides = array<i32>} : memref<2x17x17x128xf32, #tpu.memory_space<vmem>>, vector<1x1x17x128xf32>,
    %c527 = arith.constant 527 : index
    %c0_158 = arith.constant 0 : index
    %158 = vector.load %arg6[%c527, %c0_158] : memref<578x128xf32, #tpu.memory_space<vmem>>, vector<17x128xf32>
    %c1_159 = arith.constant 1 : index
    %c14_160 = arith.constant 14 : index
    %c0_161 = arith.constant 0 : index
    %c0_162 = arith.constant 0 : index
    %159 = vector.load %arg7[%c1_159, %c14_160, %c0_161, %c0_162] : memref<2x17x17x128xf32, #tpu.memory_space<vmem>>, vector<1x1x17x128xf32>
    %160 = vector.shape_cast %159 : vector<1x1x17x128xf32> to vector<17x128xf32>
    %161 = vector.shape_cast %158 : vector<17x128xf32> to vector<1x1x17x128xf32>
    tpu.vector_store %arg7[%c1_159, %c14_160, %c0_161, %c0_162], %161 {strides = array<i32>} : memref<2x17x17x128xf32, #tpu.memory_space<vmem>>, vector<1x1x17x128xf32>,
    %c544 = arith.constant 544 : index
    %c0_163 = arith.constant 0 : index
    %162 = vector.load %arg6[%c544, %c0_163] : memref<578x128xf32, #tpu.memory_space<vmem>>, vector<17x128xf32>
    %c1_164 = arith.constant 1 : index
    %c15_165 = arith.constant 15 : index
    %c0_166 = arith.constant 0 : index
    %c0_167 = arith.constant 0 : index
    %163 = vector.load %arg7[%c1_164, %c15_165, %c0_166, %c0_167] : memref<2x17x17x128xf32, #tpu.memory_space<vmem>>, vector<1x1x17x128xf32>
    %164 = vector.shape_cast %163 : vector<1x1x17x128xf32> to vector<17x128xf32>
    %165 = vector.shape_cast %162 : vector<17x128xf32> to vector<1x1x17x128xf32>
    tpu.vector_store %arg7[%c1_164, %c15_165, %c0_166, %c0_167], %165 {strides = array<i32>} : memref<2x17x17x128xf32, #tpu.memory_space<vmem>>, vector<1x1x17x128xf32>,
    %c561 = arith.constant 561 : index
    %c0_168 = arith.constant 0 : index
    %166 = vector.load %arg6[%c561, %c0_168] : memref<578x128xf32, #tpu.memory_space<vmem>>, vector<17x128xf32>
    %c1_169 = arith.constant 1 : index
    %c16_170 = arith.constant 16 : index
    %c0_171 = arith.constant 0 : index
    %c0_172 = arith.constant 0 : index
    %167 = vector.load %arg7[%c1_169, %c16_170, %c0_171, %c0_172] : memref<2x17x17x128xf32, #tpu.memory_space<vmem>>, vector<1x1x17x128xf32>
    %168 = vector.shape_cast %167 : vector<1x1x17x128xf32> to vector<17x128xf32>
    %169 = vector.shape_cast %166 : vector<17x128xf32> to vector<1x1x17x128xf32>
    tpu.vector_store %arg7[%c1_169, %c16_170, %c0_171, %c0_172], %169 {strides = array<i32>} : memref<2x17x17x128xf32, #tpu.memory_space<vmem>>, vector<1x1x17x128xf32>,
    %c0_173 = arith.constant 0 : index
    %c0_174 = arith.constant 0 : index
    %c0_175 = arith.constant 0 : index
    %c0_176 = arith.constant 0 : index
    %170 = tpu.strided_load %arg7[%c0_173, %c0_174, %c0_175, %c0_176] {strides = array<i32: 1, 1, 2, 1>} : memref<2x17x17x128xf32, #tpu.memory_space<vmem>>, vector<2x17x8x128xf32>
    %c0_177 = arith.constant 0 : index
    %c0_178 = arith.constant 0 : index
    %c1_179 = arith.constant 1 : index
    %c0_180 = arith.constant 0 : index
    %171 = tpu.strided_load %arg7[%c0_177, %c0_178, %c1_179, %c0_180] {strides = array<i32: 1, 1, 2, 1>} : memref<2x17x17x128xf32, #tpu.memory_space<vmem>>, vector<2x17x8x128xf32>
    %172 = arith.maximumf %170, %171 : vector<2x17x8x128xf32>
    %173 = vector.extract_strided_slice %172 {offsets = [0, 0, 0, 0], sizes = [2, 16, 8, 128], strides = [1, 1, 1, 1]} : vector<2x17x8x128xf32> to vector<2x16x8x128xf32>
    %174 = vector.shape_cast %173 : vector<2x16x8x128xf32> to vector<2x8x2x8x128xf32>
    %cst_181 = arith.constant dense<0xFF800000> : vector<2x8x8x128xf32>
    %175 = vector.multi_reduction <maximumf>, %174, %cst_181 [2] : vector<2x8x2x8x128xf32> to vector<2x8x8x128xf32>
    %c0_182 = arith.constant 0 : index
    %c0_183 = arith.constant 0 : index
    %c0_184 = arith.constant 0 : index
    %c0_185 = arith.constant 0 : index
    %176 = vector.load %arg5[%c0_182, %c0_183, %c0_184, %c0_185] : memref<2x8x8x128xf32, #tpu.memory_space<vmem>>, vector<2x8x8x128xf32>
    tpu.vector_store %arg5[%c0_182, %c0_183, %c0_184, %c0_185], %175 {strides = array<i32>} : memref<2x8x8x128xf32, #tpu.memory_space<vmem>>, vector<2x8x8x128xf32>,
    return
  }
}

module attributes {stable_mosaic.version = 11 : i64} {
  func.func @kernel(%arg0: memref<162x2048xbf16, #tpu.memory_space<vmem>>, %arg1: memref<2048x128xbf16, #tpu.memory_space<vmem>>, %arg2: memref<1x128xf32, #tpu.memory_space<vmem>>, %arg3: memref<1x128xf32, #tpu.memory_space<vmem>>, %arg4: memref<1x128xf32, #tpu.memory_space<vmem>>, %arg5: memref<16x128x128xbf16, #tpu.memory_space<vmem>>, %arg6: memref<1x128xf32, #tpu.memory_space<vmem>>, %arg7: memref<2x128xf32, #tpu.memory_space<vmem>>, %arg8: memref<162x128xf32, #tpu.memory_space<vmem>>, %arg9: memref<2x9x9x128xf32, #tpu.memory_space<vmem>>) attributes {dimension_semantics = [], scalar_prefetch = 0 : i64, scratch_operands = 2 : i64, tpu.core_type = #tpu.core_type<tc>} {
    %c0 = arith.constant 0 : index
    %c0_0 = arith.constant 0 : index
    %0 = vector.load %arg0[%c0, %c0_0] : memref<162x2048xbf16, #tpu.memory_space<vmem>>, vector<162x2048xbf16>
    %c0_1 = arith.constant 0 : index
    %c0_2 = arith.constant 0 : index
    %1 = vector.load %arg1[%c0_1, %c0_2] : memref<2048x128xbf16, #tpu.memory_space<vmem>>, vector<2048x128xbf16>
    %cst = arith.constant dense<0.000000e+00> : vector<162x128xf32>
    %2 = tpu.matmul %0, %1, %cst {dimension_numbers = #tpu.dot_dimension_numbers<[1], [0], [0], [1], [0, 0, 1, 1], [], []>} : vector<162x2048xbf16>, vector<2048x128xbf16>, vector<162x128xf32> -> vector<162x128xf32>
    %c0_3 = arith.constant 0 : index
    %c0_4 = arith.constant 0 : index
    %3 = vector.load %arg2[%c0_3, %c0_4] : memref<1x128xf32, #tpu.memory_space<vmem>>, vector<1x128xf32>
    %4 = vector.broadcast %3 : vector<1x128xf32> to vector<162x128xf32>
    %5 = arith.addf %2, %4 : vector<162x128xf32>
    %cst_5 = arith.constant dense<0.000000e+00> : vector<128xf32>
    %6 = vector.multi_reduction <add>, %5, %cst_5 [0] : vector<162x128xf32> to vector<128xf32>
    %7 = vector.shape_cast %6 : vector<128xf32> to vector<1x128xf32>
    %8 = arith.mulf %5, %5 : vector<162x128xf32>
    %cst_6 = arith.constant dense<0.000000e+00> : vector<128xf32>
    %9 = vector.multi_reduction <add>, %8, %cst_6 [0] : vector<162x128xf32> to vector<128xf32>
    %10 = vector.shape_cast %9 : vector<128xf32> to vector<1x128xf32>
    %cst_7 = arith.constant 0.00617283955 : f32
    %11 = vector.broadcast %cst_7 : f32 to vector<1x128xf32>
    %12 = arith.mulf %7, %11 : vector<1x128xf32>
    %cst_8 = arith.constant 0.00617283955 : f32
    %13 = vector.broadcast %cst_8 : f32 to vector<1x128xf32>
    %14 = arith.mulf %10, %13 : vector<1x128xf32>
    %15 = arith.mulf %12, %12 : vector<1x128xf32>
    %16 = arith.subf %14, %15 : vector<1x128xf32>
    %cst_9 = arith.constant 0.000000e+00 : f32
    %17 = vector.broadcast %cst_9 : f32 to vector<1x128xf32>
    %18 = arith.maximumf %16, %17 : vector<1x128xf32>
    %c0_10 = arith.constant 0 : index
    %c0_11 = arith.constant 0 : index
    %19 = vector.load %arg3[%c0_10, %c0_11] : memref<1x128xf32, #tpu.memory_space<vmem>>, vector<1x128xf32>
    %cst_12 = arith.constant 9.99999974E-6 : f32
    %20 = vector.broadcast %cst_12 : f32 to vector<1x128xf32>
    %21 = arith.addf %18, %20 : vector<1x128xf32>
    %22 = math.rsqrt %21 : vector<1x128xf32>
    %23 = arith.mulf %19, %22 : vector<1x128xf32>
    %c0_13 = arith.constant 0 : index
    %c0_14 = arith.constant 0 : index
    %24 = vector.load %arg4[%c0_13, %c0_14] : memref<1x128xf32, #tpu.memory_space<vmem>>, vector<1x128xf32>
    %25 = arith.mulf %12, %23 : vector<1x128xf32>
    %26 = arith.subf %24, %25 : vector<1x128xf32>
    %27 = vector.broadcast %23 : vector<1x128xf32> to vector<162x128xf32>
    %28 = arith.mulf %5, %27 : vector<162x128xf32>
    %29 = vector.broadcast %26 : vector<1x128xf32> to vector<162x128xf32>
    %30 = arith.addf %28, %29 : vector<162x128xf32>
    %cst_15 = arith.constant 0.000000e+00 : f32
    %31 = vector.broadcast %cst_15 : f32 to vector<162x128xf32>
    %32 = arith.maximumf %30, %31 : vector<162x128xf32>
    %c0_16 = arith.constant 0 : index
    %c0_17 = arith.constant 0 : index
    %33 = vector.load %arg8[%c0_16, %c0_17] : memref<162x128xf32, #tpu.memory_space<vmem>>, vector<162x128xf32>
    tpu.vector_store %arg8[%c0_16, %c0_17], %32 {strides = array<i32>} : memref<162x128xf32, #tpu.memory_space<vmem>>, vector<162x128xf32>,
    %c0_18 = arith.constant 0 : index
    %c0_19 = arith.constant 0 : index
    %34 = vector.load %arg8[%c0_18, %c0_19] : memref<162x128xf32, #tpu.memory_space<vmem>>, vector<9x128xf32>
    %c0_20 = arith.constant 0 : index
    %c0_21 = arith.constant 0 : index
    %c0_22 = arith.constant 0 : index
    %c0_23 = arith.constant 0 : index
    %35 = vector.load %arg9[%c0_20, %c0_21, %c0_22, %c0_23] : memref<2x9x9x128xf32, #tpu.memory_space<vmem>>, vector<1x1x9x128xf32>
    %36 = vector.shape_cast %35 : vector<1x1x9x128xf32> to vector<9x128xf32>
    %37 = vector.shape_cast %34 : vector<9x128xf32> to vector<1x1x9x128xf32>
    tpu.vector_store %arg9[%c0_20, %c0_21, %c0_22, %c0_23], %37 {strides = array<i32>} : memref<2x9x9x128xf32, #tpu.memory_space<vmem>>, vector<1x1x9x128xf32>,
    %c9 = arith.constant 9 : index
    %c0_24 = arith.constant 0 : index
    %38 = vector.load %arg8[%c9, %c0_24] : memref<162x128xf32, #tpu.memory_space<vmem>>, vector<9x128xf32>
    %c0_25 = arith.constant 0 : index
    %c1 = arith.constant 1 : index
    %c0_26 = arith.constant 0 : index
    %c0_27 = arith.constant 0 : index
    %39 = vector.load %arg9[%c0_25, %c1, %c0_26, %c0_27] : memref<2x9x9x128xf32, #tpu.memory_space<vmem>>, vector<1x1x9x128xf32>
    %40 = vector.shape_cast %39 : vector<1x1x9x128xf32> to vector<9x128xf32>
    %41 = vector.shape_cast %38 : vector<9x128xf32> to vector<1x1x9x128xf32>
    tpu.vector_store %arg9[%c0_25, %c1, %c0_26, %c0_27], %41 {strides = array<i32>} : memref<2x9x9x128xf32, #tpu.memory_space<vmem>>, vector<1x1x9x128xf32>,
    %c18 = arith.constant 18 : index
    %c0_28 = arith.constant 0 : index
    %42 = vector.load %arg8[%c18, %c0_28] : memref<162x128xf32, #tpu.memory_space<vmem>>, vector<9x128xf32>
    %c0_29 = arith.constant 0 : index
    %c2 = arith.constant 2 : index
    %c0_30 = arith.constant 0 : index
    %c0_31 = arith.constant 0 : index
    %43 = vector.load %arg9[%c0_29, %c2, %c0_30, %c0_31] : memref<2x9x9x128xf32, #tpu.memory_space<vmem>>, vector<1x1x9x128xf32>
    %44 = vector.shape_cast %43 : vector<1x1x9x128xf32> to vector<9x128xf32>
    %45 = vector.shape_cast %42 : vector<9x128xf32> to vector<1x1x9x128xf32>
    tpu.vector_store %arg9[%c0_29, %c2, %c0_30, %c0_31], %45 {strides = array<i32>} : memref<2x9x9x128xf32, #tpu.memory_space<vmem>>, vector<1x1x9x128xf32>,
    %c27 = arith.constant 27 : index
    %c0_32 = arith.constant 0 : index
    %46 = vector.load %arg8[%c27, %c0_32] : memref<162x128xf32, #tpu.memory_space<vmem>>, vector<9x128xf32>
    %c0_33 = arith.constant 0 : index
    %c3 = arith.constant 3 : index
    %c0_34 = arith.constant 0 : index
    %c0_35 = arith.constant 0 : index
    %47 = vector.load %arg9[%c0_33, %c3, %c0_34, %c0_35] : memref<2x9x9x128xf32, #tpu.memory_space<vmem>>, vector<1x1x9x128xf32>
    %48 = vector.shape_cast %47 : vector<1x1x9x128xf32> to vector<9x128xf32>
    %49 = vector.shape_cast %46 : vector<9x128xf32> to vector<1x1x9x128xf32>
    tpu.vector_store %arg9[%c0_33, %c3, %c0_34, %c0_35], %49 {strides = array<i32>} : memref<2x9x9x128xf32, #tpu.memory_space<vmem>>, vector<1x1x9x128xf32>,
    %c36 = arith.constant 36 : index
    %c0_36 = arith.constant 0 : index
    %50 = vector.load %arg8[%c36, %c0_36] : memref<162x128xf32, #tpu.memory_space<vmem>>, vector<9x128xf32>
    %c0_37 = arith.constant 0 : index
    %c4 = arith.constant 4 : index
    %c0_38 = arith.constant 0 : index
    %c0_39 = arith.constant 0 : index
    %51 = vector.load %arg9[%c0_37, %c4, %c0_38, %c0_39] : memref<2x9x9x128xf32, #tpu.memory_space<vmem>>, vector<1x1x9x128xf32>
    %52 = vector.shape_cast %51 : vector<1x1x9x128xf32> to vector<9x128xf32>
    %53 = vector.shape_cast %50 : vector<9x128xf32> to vector<1x1x9x128xf32>
    tpu.vector_store %arg9[%c0_37, %c4, %c0_38, %c0_39], %53 {strides = array<i32>} : memref<2x9x9x128xf32, #tpu.memory_space<vmem>>, vector<1x1x9x128xf32>,
    %c45 = arith.constant 45 : index
    %c0_40 = arith.constant 0 : index
    %54 = vector.load %arg8[%c45, %c0_40] : memref<162x128xf32, #tpu.memory_space<vmem>>, vector<9x128xf32>
    %c0_41 = arith.constant 0 : index
    %c5 = arith.constant 5 : index
    %c0_42 = arith.constant 0 : index
    %c0_43 = arith.constant 0 : index
    %55 = vector.load %arg9[%c0_41, %c5, %c0_42, %c0_43] : memref<2x9x9x128xf32, #tpu.memory_space<vmem>>, vector<1x1x9x128xf32>
    %56 = vector.shape_cast %55 : vector<1x1x9x128xf32> to vector<9x128xf32>
    %57 = vector.shape_cast %54 : vector<9x128xf32> to vector<1x1x9x128xf32>
    tpu.vector_store %arg9[%c0_41, %c5, %c0_42, %c0_43], %57 {strides = array<i32>} : memref<2x9x9x128xf32, #tpu.memory_space<vmem>>, vector<1x1x9x128xf32>,
    %c54 = arith.constant 54 : index
    %c0_44 = arith.constant 0 : index
    %58 = vector.load %arg8[%c54, %c0_44] : memref<162x128xf32, #tpu.memory_space<vmem>>, vector<9x128xf32>
    %c0_45 = arith.constant 0 : index
    %c6 = arith.constant 6 : index
    %c0_46 = arith.constant 0 : index
    %c0_47 = arith.constant 0 : index
    %59 = vector.load %arg9[%c0_45, %c6, %c0_46, %c0_47] : memref<2x9x9x128xf32, #tpu.memory_space<vmem>>, vector<1x1x9x128xf32>
    %60 = vector.shape_cast %59 : vector<1x1x9x128xf32> to vector<9x128xf32>
    %61 = vector.shape_cast %58 : vector<9x128xf32> to vector<1x1x9x128xf32>
    tpu.vector_store %arg9[%c0_45, %c6, %c0_46, %c0_47], %61 {strides = array<i32>} : memref<2x9x9x128xf32, #tpu.memory_space<vmem>>, vector<1x1x9x128xf32>,
    %c63 = arith.constant 63 : index
    %c0_48 = arith.constant 0 : index
    %62 = vector.load %arg8[%c63, %c0_48] : memref<162x128xf32, #tpu.memory_space<vmem>>, vector<9x128xf32>
    %c0_49 = arith.constant 0 : index
    %c7 = arith.constant 7 : index
    %c0_50 = arith.constant 0 : index
    %c0_51 = arith.constant 0 : index
    %63 = vector.load %arg9[%c0_49, %c7, %c0_50, %c0_51] : memref<2x9x9x128xf32, #tpu.memory_space<vmem>>, vector<1x1x9x128xf32>
    %64 = vector.shape_cast %63 : vector<1x1x9x128xf32> to vector<9x128xf32>
    %65 = vector.shape_cast %62 : vector<9x128xf32> to vector<1x1x9x128xf32>
    tpu.vector_store %arg9[%c0_49, %c7, %c0_50, %c0_51], %65 {strides = array<i32>} : memref<2x9x9x128xf32, #tpu.memory_space<vmem>>, vector<1x1x9x128xf32>,
    %c72 = arith.constant 72 : index
    %c0_52 = arith.constant 0 : index
    %66 = vector.load %arg8[%c72, %c0_52] : memref<162x128xf32, #tpu.memory_space<vmem>>, vector<9x128xf32>
    %c0_53 = arith.constant 0 : index
    %c8 = arith.constant 8 : index
    %c0_54 = arith.constant 0 : index
    %c0_55 = arith.constant 0 : index
    %67 = vector.load %arg9[%c0_53, %c8, %c0_54, %c0_55] : memref<2x9x9x128xf32, #tpu.memory_space<vmem>>, vector<1x1x9x128xf32>
    %68 = vector.shape_cast %67 : vector<1x1x9x128xf32> to vector<9x128xf32>
    %69 = vector.shape_cast %66 : vector<9x128xf32> to vector<1x1x9x128xf32>
    tpu.vector_store %arg9[%c0_53, %c8, %c0_54, %c0_55], %69 {strides = array<i32>} : memref<2x9x9x128xf32, #tpu.memory_space<vmem>>, vector<1x1x9x128xf32>,
    %c81 = arith.constant 81 : index
    %c0_56 = arith.constant 0 : index
    %70 = vector.load %arg8[%c81, %c0_56] : memref<162x128xf32, #tpu.memory_space<vmem>>, vector<9x128xf32>
    %c1_57 = arith.constant 1 : index
    %c0_58 = arith.constant 0 : index
    %c0_59 = arith.constant 0 : index
    %c0_60 = arith.constant 0 : index
    %71 = vector.load %arg9[%c1_57, %c0_58, %c0_59, %c0_60] : memref<2x9x9x128xf32, #tpu.memory_space<vmem>>, vector<1x1x9x128xf32>
    %72 = vector.shape_cast %71 : vector<1x1x9x128xf32> to vector<9x128xf32>
    %73 = vector.shape_cast %70 : vector<9x128xf32> to vector<1x1x9x128xf32>
    tpu.vector_store %arg9[%c1_57, %c0_58, %c0_59, %c0_60], %73 {strides = array<i32>} : memref<2x9x9x128xf32, #tpu.memory_space<vmem>>, vector<1x1x9x128xf32>,
    %c90 = arith.constant 90 : index
    %c0_61 = arith.constant 0 : index
    %74 = vector.load %arg8[%c90, %c0_61] : memref<162x128xf32, #tpu.memory_space<vmem>>, vector<9x128xf32>
    %c1_62 = arith.constant 1 : index
    %c1_63 = arith.constant 1 : index
    %c0_64 = arith.constant 0 : index
    %c0_65 = arith.constant 0 : index
    %75 = vector.load %arg9[%c1_62, %c1_63, %c0_64, %c0_65] : memref<2x9x9x128xf32, #tpu.memory_space<vmem>>, vector<1x1x9x128xf32>
    %76 = vector.shape_cast %75 : vector<1x1x9x128xf32> to vector<9x128xf32>
    %77 = vector.shape_cast %74 : vector<9x128xf32> to vector<1x1x9x128xf32>
    tpu.vector_store %arg9[%c1_62, %c1_63, %c0_64, %c0_65], %77 {strides = array<i32>} : memref<2x9x9x128xf32, #tpu.memory_space<vmem>>, vector<1x1x9x128xf32>,
    %c99 = arith.constant 99 : index
    %c0_66 = arith.constant 0 : index
    %78 = vector.load %arg8[%c99, %c0_66] : memref<162x128xf32, #tpu.memory_space<vmem>>, vector<9x128xf32>
    %c1_67 = arith.constant 1 : index
    %c2_68 = arith.constant 2 : index
    %c0_69 = arith.constant 0 : index
    %c0_70 = arith.constant 0 : index
    %79 = vector.load %arg9[%c1_67, %c2_68, %c0_69, %c0_70] : memref<2x9x9x128xf32, #tpu.memory_space<vmem>>, vector<1x1x9x128xf32>
    %80 = vector.shape_cast %79 : vector<1x1x9x128xf32> to vector<9x128xf32>
    %81 = vector.shape_cast %78 : vector<9x128xf32> to vector<1x1x9x128xf32>
    tpu.vector_store %arg9[%c1_67, %c2_68, %c0_69, %c0_70], %81 {strides = array<i32>} : memref<2x9x9x128xf32, #tpu.memory_space<vmem>>, vector<1x1x9x128xf32>,
    %c108 = arith.constant 108 : index
    %c0_71 = arith.constant 0 : index
    %82 = vector.load %arg8[%c108, %c0_71] : memref<162x128xf32, #tpu.memory_space<vmem>>, vector<9x128xf32>
    %c1_72 = arith.constant 1 : index
    %c3_73 = arith.constant 3 : index
    %c0_74 = arith.constant 0 : index
    %c0_75 = arith.constant 0 : index
    %83 = vector.load %arg9[%c1_72, %c3_73, %c0_74, %c0_75] : memref<2x9x9x128xf32, #tpu.memory_space<vmem>>, vector<1x1x9x128xf32>
    %84 = vector.shape_cast %83 : vector<1x1x9x128xf32> to vector<9x128xf32>
    %85 = vector.shape_cast %82 : vector<9x128xf32> to vector<1x1x9x128xf32>
    tpu.vector_store %arg9[%c1_72, %c3_73, %c0_74, %c0_75], %85 {strides = array<i32>} : memref<2x9x9x128xf32, #tpu.memory_space<vmem>>, vector<1x1x9x128xf32>,
    %c117 = arith.constant 117 : index
    %c0_76 = arith.constant 0 : index
    %86 = vector.load %arg8[%c117, %c0_76] : memref<162x128xf32, #tpu.memory_space<vmem>>, vector<9x128xf32>
    %c1_77 = arith.constant 1 : index
    %c4_78 = arith.constant 4 : index
    %c0_79 = arith.constant 0 : index
    %c0_80 = arith.constant 0 : index
    %87 = vector.load %arg9[%c1_77, %c4_78, %c0_79, %c0_80] : memref<2x9x9x128xf32, #tpu.memory_space<vmem>>, vector<1x1x9x128xf32>
    %88 = vector.shape_cast %87 : vector<1x1x9x128xf32> to vector<9x128xf32>
    %89 = vector.shape_cast %86 : vector<9x128xf32> to vector<1x1x9x128xf32>
    tpu.vector_store %arg9[%c1_77, %c4_78, %c0_79, %c0_80], %89 {strides = array<i32>} : memref<2x9x9x128xf32, #tpu.memory_space<vmem>>, vector<1x1x9x128xf32>,
    %c126 = arith.constant 126 : index
    %c0_81 = arith.constant 0 : index
    %90 = vector.load %arg8[%c126, %c0_81] : memref<162x128xf32, #tpu.memory_space<vmem>>, vector<9x128xf32>
    %c1_82 = arith.constant 1 : index
    %c5_83 = arith.constant 5 : index
    %c0_84 = arith.constant 0 : index
    %c0_85 = arith.constant 0 : index
    %91 = vector.load %arg9[%c1_82, %c5_83, %c0_84, %c0_85] : memref<2x9x9x128xf32, #tpu.memory_space<vmem>>, vector<1x1x9x128xf32>
    %92 = vector.shape_cast %91 : vector<1x1x9x128xf32> to vector<9x128xf32>
    %93 = vector.shape_cast %90 : vector<9x128xf32> to vector<1x1x9x128xf32>
    tpu.vector_store %arg9[%c1_82, %c5_83, %c0_84, %c0_85], %93 {strides = array<i32>} : memref<2x9x9x128xf32, #tpu.memory_space<vmem>>, vector<1x1x9x128xf32>,
    %c135 = arith.constant 135 : index
    %c0_86 = arith.constant 0 : index
    %94 = vector.load %arg8[%c135, %c0_86] : memref<162x128xf32, #tpu.memory_space<vmem>>, vector<9x128xf32>
    %c1_87 = arith.constant 1 : index
    %c6_88 = arith.constant 6 : index
    %c0_89 = arith.constant 0 : index
    %c0_90 = arith.constant 0 : index
    %95 = vector.load %arg9[%c1_87, %c6_88, %c0_89, %c0_90] : memref<2x9x9x128xf32, #tpu.memory_space<vmem>>, vector<1x1x9x128xf32>
    %96 = vector.shape_cast %95 : vector<1x1x9x128xf32> to vector<9x128xf32>
    %97 = vector.shape_cast %94 : vector<9x128xf32> to vector<1x1x9x128xf32>
    tpu.vector_store %arg9[%c1_87, %c6_88, %c0_89, %c0_90], %97 {strides = array<i32>} : memref<2x9x9x128xf32, #tpu.memory_space<vmem>>, vector<1x1x9x128xf32>,
    %c144 = arith.constant 144 : index
    %c0_91 = arith.constant 0 : index
    %98 = vector.load %arg8[%c144, %c0_91] : memref<162x128xf32, #tpu.memory_space<vmem>>, vector<9x128xf32>
    %c1_92 = arith.constant 1 : index
    %c7_93 = arith.constant 7 : index
    %c0_94 = arith.constant 0 : index
    %c0_95 = arith.constant 0 : index
    %99 = vector.load %arg9[%c1_92, %c7_93, %c0_94, %c0_95] : memref<2x9x9x128xf32, #tpu.memory_space<vmem>>, vector<1x1x9x128xf32>
    %100 = vector.shape_cast %99 : vector<1x1x9x128xf32> to vector<9x128xf32>
    %101 = vector.shape_cast %98 : vector<9x128xf32> to vector<1x1x9x128xf32>
    tpu.vector_store %arg9[%c1_92, %c7_93, %c0_94, %c0_95], %101 {strides = array<i32>} : memref<2x9x9x128xf32, #tpu.memory_space<vmem>>, vector<1x1x9x128xf32>,
    %c153 = arith.constant 153 : index
    %c0_96 = arith.constant 0 : index
    %102 = vector.load %arg8[%c153, %c0_96] : memref<162x128xf32, #tpu.memory_space<vmem>>, vector<9x128xf32>
    %c1_97 = arith.constant 1 : index
    %c8_98 = arith.constant 8 : index
    %c0_99 = arith.constant 0 : index
    %c0_100 = arith.constant 0 : index
    %103 = vector.load %arg9[%c1_97, %c8_98, %c0_99, %c0_100] : memref<2x9x9x128xf32, #tpu.memory_space<vmem>>, vector<1x1x9x128xf32>
    %104 = vector.shape_cast %103 : vector<1x1x9x128xf32> to vector<9x128xf32>
    %105 = vector.shape_cast %102 : vector<9x128xf32> to vector<1x1x9x128xf32>
    tpu.vector_store %arg9[%c1_97, %c8_98, %c0_99, %c0_100], %105 {strides = array<i32>} : memref<2x9x9x128xf32, #tpu.memory_space<vmem>>, vector<1x1x9x128xf32>,
    %c0_101 = arith.constant 0 : index
    %c0_102 = arith.constant 0 : index
    %c0_103 = arith.constant 0 : index
    %c0_104 = arith.constant 0 : index
    %106 = tpu.strided_load %arg9[%c0_101, %c0_102, %c0_103, %c0_104] {strides = array<i32: 1, 1, 2, 1>} : memref<2x9x9x128xf32, #tpu.memory_space<vmem>>, vector<2x9x4x128xf32>
    %c0_105 = arith.constant 0 : index
    %c0_106 = arith.constant 0 : index
    %c1_107 = arith.constant 1 : index
    %c0_108 = arith.constant 0 : index
    %107 = tpu.strided_load %arg9[%c0_105, %c0_106, %c1_107, %c0_108] {strides = array<i32: 1, 1, 2, 1>} : memref<2x9x9x128xf32, #tpu.memory_space<vmem>>, vector<2x9x4x128xf32>
    %108 = arith.maximumf %106, %107 : vector<2x9x4x128xf32>
    %109 = vector.extract_strided_slice %108 {offsets = [0, 0, 0, 0], sizes = [2, 8, 4, 128], strides = [1, 1, 1, 1]} : vector<2x9x4x128xf32> to vector<2x8x4x128xf32>
    %110 = vector.shape_cast %109 : vector<2x8x4x128xf32> to vector<2x4x2x4x128xf32>
    %cst_109 = arith.constant dense<0xFF800000> : vector<2x4x4x128xf32>
    %111 = vector.multi_reduction <maximumf>, %110, %cst_109 [2] : vector<2x4x2x4x128xf32> to vector<2x4x4x128xf32>
    %cst_110 = arith.constant 0.000000e+00 : f32
    %112 = vector.broadcast %cst_110 : f32 to vector<2x128xf32>
    %113 = vector.extract_strided_slice %111 {offsets = [0, 0, 0, 0], sizes = [2, 1, 1, 128], strides = [1, 1, 1, 1]} : vector<2x4x4x128xf32> to vector<2x1x1x128xf32>
    %114 = vector.shape_cast %113 : vector<2x1x1x128xf32> to vector<2x128xf32>
    %115 = arith.truncf %114 : vector<2x128xf32> to vector<2x128xbf16>
    %c0_111 = arith.constant 0 : index
    %c0_112 = arith.constant 0 : index
    %c0_113 = arith.constant 0 : index
    %116 = vector.load %arg5[%c0_111, %c0_112, %c0_113] : memref<16x128x128xbf16, #tpu.memory_space<vmem>>, vector<1x128x128xbf16>
    %117 = vector.shape_cast %116 : vector<1x128x128xbf16> to vector<128x128xbf16>
    %cst_114 = arith.constant dense<0.000000e+00> : vector<2x128xf32>
    %118 = tpu.matmul %115, %117, %cst_114 {dimension_numbers = #tpu.dot_dimension_numbers<[1], [0], [0], [1], [0, 0, 1, 1], [], []>} : vector<2x128xbf16>, vector<128x128xbf16>, vector<2x128xf32> -> vector<2x128xf32>
    %119 = arith.addf %112, %118 : vector<2x128xf32>
    %120 = vector.extract_strided_slice %111 {offsets = [0, 0, 1, 0], sizes = [2, 1, 1, 128], strides = [1, 1, 1, 1]} : vector<2x4x4x128xf32> to vector<2x1x1x128xf32>
    %121 = vector.shape_cast %120 : vector<2x1x1x128xf32> to vector<2x128xf32>
    %122 = arith.truncf %121 : vector<2x128xf32> to vector<2x128xbf16>
    %c1_115 = arith.constant 1 : index
    %c0_116 = arith.constant 0 : index
    %c0_117 = arith.constant 0 : index
    %123 = vector.load %arg5[%c1_115, %c0_116, %c0_117] : memref<16x128x128xbf16, #tpu.memory_space<vmem>>, vector<1x128x128xbf16>
    %124 = vector.shape_cast %123 : vector<1x128x128xbf16> to vector<128x128xbf16>
    %cst_118 = arith.constant dense<0.000000e+00> : vector<2x128xf32>
    %125 = tpu.matmul %122, %124, %cst_118 {dimension_numbers = #tpu.dot_dimension_numbers<[1], [0], [0], [1], [0, 0, 1, 1], [], []>} : vector<2x128xbf16>, vector<128x128xbf16>, vector<2x128xf32> -> vector<2x128xf32>
    %126 = arith.addf %119, %125 : vector<2x128xf32>
    %127 = vector.extract_strided_slice %111 {offsets = [0, 0, 2, 0], sizes = [2, 1, 1, 128], strides = [1, 1, 1, 1]} : vector<2x4x4x128xf32> to vector<2x1x1x128xf32>
    %128 = vector.shape_cast %127 : vector<2x1x1x128xf32> to vector<2x128xf32>
    %129 = arith.truncf %128 : vector<2x128xf32> to vector<2x128xbf16>
    %c2_119 = arith.constant 2 : index
    %c0_120 = arith.constant 0 : index
    %c0_121 = arith.constant 0 : index
    %130 = vector.load %arg5[%c2_119, %c0_120, %c0_121] : memref<16x128x128xbf16, #tpu.memory_space<vmem>>, vector<1x128x128xbf16>
    %131 = vector.shape_cast %130 : vector<1x128x128xbf16> to vector<128x128xbf16>
    %cst_122 = arith.constant dense<0.000000e+00> : vector<2x128xf32>
    %132 = tpu.matmul %129, %131, %cst_122 {dimension_numbers = #tpu.dot_dimension_numbers<[1], [0], [0], [1], [0, 0, 1, 1], [], []>} : vector<2x128xbf16>, vector<128x128xbf16>, vector<2x128xf32> -> vector<2x128xf32>
    %133 = arith.addf %126, %132 : vector<2x128xf32>
    %134 = vector.extract_strided_slice %111 {offsets = [0, 0, 3, 0], sizes = [2, 1, 1, 128], strides = [1, 1, 1, 1]} : vector<2x4x4x128xf32> to vector<2x1x1x128xf32>
    %135 = vector.shape_cast %134 : vector<2x1x1x128xf32> to vector<2x128xf32>
    %136 = arith.truncf %135 : vector<2x128xf32> to vector<2x128xbf16>
    %c3_123 = arith.constant 3 : index
    %c0_124 = arith.constant 0 : index
    %c0_125 = arith.constant 0 : index
    %137 = vector.load %arg5[%c3_123, %c0_124, %c0_125] : memref<16x128x128xbf16, #tpu.memory_space<vmem>>, vector<1x128x128xbf16>
    %138 = vector.shape_cast %137 : vector<1x128x128xbf16> to vector<128x128xbf16>
    %cst_126 = arith.constant dense<0.000000e+00> : vector<2x128xf32>
    %139 = tpu.matmul %136, %138, %cst_126 {dimension_numbers = #tpu.dot_dimension_numbers<[1], [0], [0], [1], [0, 0, 1, 1], [], []>} : vector<2x128xbf16>, vector<128x128xbf16>, vector<2x128xf32> -> vector<2x128xf32>
    %140 = arith.addf %133, %139 : vector<2x128xf32>
    %141 = vector.extract_strided_slice %111 {offsets = [0, 1, 0, 0], sizes = [2, 1, 1, 128], strides = [1, 1, 1, 1]} : vector<2x4x4x128xf32> to vector<2x1x1x128xf32>
    %142 = vector.shape_cast %141 : vector<2x1x1x128xf32> to vector<2x128xf32>
    %143 = arith.truncf %142 : vector<2x128xf32> to vector<2x128xbf16>
    %c4_127 = arith.constant 4 : index
    %c0_128 = arith.constant 0 : index
    %c0_129 = arith.constant 0 : index
    %144 = vector.load %arg5[%c4_127, %c0_128, %c0_129] : memref<16x128x128xbf16, #tpu.memory_space<vmem>>, vector<1x128x128xbf16>
    %145 = vector.shape_cast %144 : vector<1x128x128xbf16> to vector<128x128xbf16>
    %cst_130 = arith.constant dense<0.000000e+00> : vector<2x128xf32>
    %146 = tpu.matmul %143, %145, %cst_130 {dimension_numbers = #tpu.dot_dimension_numbers<[1], [0], [0], [1], [0, 0, 1, 1], [], []>} : vector<2x128xbf16>, vector<128x128xbf16>, vector<2x128xf32> -> vector<2x128xf32>
    %147 = arith.addf %140, %146 : vector<2x128xf32>
    %148 = vector.extract_strided_slice %111 {offsets = [0, 1, 1, 0], sizes = [2, 1, 1, 128], strides = [1, 1, 1, 1]} : vector<2x4x4x128xf32> to vector<2x1x1x128xf32>
    %149 = vector.shape_cast %148 : vector<2x1x1x128xf32> to vector<2x128xf32>
    %150 = arith.truncf %149 : vector<2x128xf32> to vector<2x128xbf16>
    %c5_131 = arith.constant 5 : index
    %c0_132 = arith.constant 0 : index
    %c0_133 = arith.constant 0 : index
    %151 = vector.load %arg5[%c5_131, %c0_132, %c0_133] : memref<16x128x128xbf16, #tpu.memory_space<vmem>>, vector<1x128x128xbf16>
    %152 = vector.shape_cast %151 : vector<1x128x128xbf16> to vector<128x128xbf16>
    %cst_134 = arith.constant dense<0.000000e+00> : vector<2x128xf32>
    %153 = tpu.matmul %150, %152, %cst_134 {dimension_numbers = #tpu.dot_dimension_numbers<[1], [0], [0], [1], [0, 0, 1, 1], [], []>} : vector<2x128xbf16>, vector<128x128xbf16>, vector<2x128xf32> -> vector<2x128xf32>
    %154 = arith.addf %147, %153 : vector<2x128xf32>
    %155 = vector.extract_strided_slice %111 {offsets = [0, 1, 2, 0], sizes = [2, 1, 1, 128], strides = [1, 1, 1, 1]} : vector<2x4x4x128xf32> to vector<2x1x1x128xf32>
    %156 = vector.shape_cast %155 : vector<2x1x1x128xf32> to vector<2x128xf32>
    %157 = arith.truncf %156 : vector<2x128xf32> to vector<2x128xbf16>
    %c6_135 = arith.constant 6 : index
    %c0_136 = arith.constant 0 : index
    %c0_137 = arith.constant 0 : index
    %158 = vector.load %arg5[%c6_135, %c0_136, %c0_137] : memref<16x128x128xbf16, #tpu.memory_space<vmem>>, vector<1x128x128xbf16>
    %159 = vector.shape_cast %158 : vector<1x128x128xbf16> to vector<128x128xbf16>
    %cst_138 = arith.constant dense<0.000000e+00> : vector<2x128xf32>
    %160 = tpu.matmul %157, %159, %cst_138 {dimension_numbers = #tpu.dot_dimension_numbers<[1], [0], [0], [1], [0, 0, 1, 1], [], []>} : vector<2x128xbf16>, vector<128x128xbf16>, vector<2x128xf32> -> vector<2x128xf32>
    %161 = arith.addf %154, %160 : vector<2x128xf32>
    %162 = vector.extract_strided_slice %111 {offsets = [0, 1, 3, 0], sizes = [2, 1, 1, 128], strides = [1, 1, 1, 1]} : vector<2x4x4x128xf32> to vector<2x1x1x128xf32>
    %163 = vector.shape_cast %162 : vector<2x1x1x128xf32> to vector<2x128xf32>
    %164 = arith.truncf %163 : vector<2x128xf32> to vector<2x128xbf16>
    %c7_139 = arith.constant 7 : index
    %c0_140 = arith.constant 0 : index
    %c0_141 = arith.constant 0 : index
    %165 = vector.load %arg5[%c7_139, %c0_140, %c0_141] : memref<16x128x128xbf16, #tpu.memory_space<vmem>>, vector<1x128x128xbf16>
    %166 = vector.shape_cast %165 : vector<1x128x128xbf16> to vector<128x128xbf16>
    %cst_142 = arith.constant dense<0.000000e+00> : vector<2x128xf32>
    %167 = tpu.matmul %164, %166, %cst_142 {dimension_numbers = #tpu.dot_dimension_numbers<[1], [0], [0], [1], [0, 0, 1, 1], [], []>} : vector<2x128xbf16>, vector<128x128xbf16>, vector<2x128xf32> -> vector<2x128xf32>
    %168 = arith.addf %161, %167 : vector<2x128xf32>
    %169 = vector.extract_strided_slice %111 {offsets = [0, 2, 0, 0], sizes = [2, 1, 1, 128], strides = [1, 1, 1, 1]} : vector<2x4x4x128xf32> to vector<2x1x1x128xf32>
    %170 = vector.shape_cast %169 : vector<2x1x1x128xf32> to vector<2x128xf32>
    %171 = arith.truncf %170 : vector<2x128xf32> to vector<2x128xbf16>
    %c8_143 = arith.constant 8 : index
    %c0_144 = arith.constant 0 : index
    %c0_145 = arith.constant 0 : index
    %172 = vector.load %arg5[%c8_143, %c0_144, %c0_145] : memref<16x128x128xbf16, #tpu.memory_space<vmem>>, vector<1x128x128xbf16>
    %173 = vector.shape_cast %172 : vector<1x128x128xbf16> to vector<128x128xbf16>
    %cst_146 = arith.constant dense<0.000000e+00> : vector<2x128xf32>
    %174 = tpu.matmul %171, %173, %cst_146 {dimension_numbers = #tpu.dot_dimension_numbers<[1], [0], [0], [1], [0, 0, 1, 1], [], []>} : vector<2x128xbf16>, vector<128x128xbf16>, vector<2x128xf32> -> vector<2x128xf32>
    %175 = arith.addf %168, %174 : vector<2x128xf32>
    %176 = vector.extract_strided_slice %111 {offsets = [0, 2, 1, 0], sizes = [2, 1, 1, 128], strides = [1, 1, 1, 1]} : vector<2x4x4x128xf32> to vector<2x1x1x128xf32>
    %177 = vector.shape_cast %176 : vector<2x1x1x128xf32> to vector<2x128xf32>
    %178 = arith.truncf %177 : vector<2x128xf32> to vector<2x128xbf16>
    %c9_147 = arith.constant 9 : index
    %c0_148 = arith.constant 0 : index
    %c0_149 = arith.constant 0 : index
    %179 = vector.load %arg5[%c9_147, %c0_148, %c0_149] : memref<16x128x128xbf16, #tpu.memory_space<vmem>>, vector<1x128x128xbf16>
    %180 = vector.shape_cast %179 : vector<1x128x128xbf16> to vector<128x128xbf16>
    %cst_150 = arith.constant dense<0.000000e+00> : vector<2x128xf32>
    %181 = tpu.matmul %178, %180, %cst_150 {dimension_numbers = #tpu.dot_dimension_numbers<[1], [0], [0], [1], [0, 0, 1, 1], [], []>} : vector<2x128xbf16>, vector<128x128xbf16>, vector<2x128xf32> -> vector<2x128xf32>
    %182 = arith.addf %175, %181 : vector<2x128xf32>
    %183 = vector.extract_strided_slice %111 {offsets = [0, 2, 2, 0], sizes = [2, 1, 1, 128], strides = [1, 1, 1, 1]} : vector<2x4x4x128xf32> to vector<2x1x1x128xf32>
    %184 = vector.shape_cast %183 : vector<2x1x1x128xf32> to vector<2x128xf32>
    %185 = arith.truncf %184 : vector<2x128xf32> to vector<2x128xbf16>
    %c10 = arith.constant 10 : index
    %c0_151 = arith.constant 0 : index
    %c0_152 = arith.constant 0 : index
    %186 = vector.load %arg5[%c10, %c0_151, %c0_152] : memref<16x128x128xbf16, #tpu.memory_space<vmem>>, vector<1x128x128xbf16>
    %187 = vector.shape_cast %186 : vector<1x128x128xbf16> to vector<128x128xbf16>
    %cst_153 = arith.constant dense<0.000000e+00> : vector<2x128xf32>
    %188 = tpu.matmul %185, %187, %cst_153 {dimension_numbers = #tpu.dot_dimension_numbers<[1], [0], [0], [1], [0, 0, 1, 1], [], []>} : vector<2x128xbf16>, vector<128x128xbf16>, vector<2x128xf32> -> vector<2x128xf32>
    %189 = arith.addf %182, %188 : vector<2x128xf32>
    %190 = vector.extract_strided_slice %111 {offsets = [0, 2, 3, 0], sizes = [2, 1, 1, 128], strides = [1, 1, 1, 1]} : vector<2x4x4x128xf32> to vector<2x1x1x128xf32>
    %191 = vector.shape_cast %190 : vector<2x1x1x128xf32> to vector<2x128xf32>
    %192 = arith.truncf %191 : vector<2x128xf32> to vector<2x128xbf16>
    %c11 = arith.constant 11 : index
    %c0_154 = arith.constant 0 : index
    %c0_155 = arith.constant 0 : index
    %193 = vector.load %arg5[%c11, %c0_154, %c0_155] : memref<16x128x128xbf16, #tpu.memory_space<vmem>>, vector<1x128x128xbf16>
    %194 = vector.shape_cast %193 : vector<1x128x128xbf16> to vector<128x128xbf16>
    %cst_156 = arith.constant dense<0.000000e+00> : vector<2x128xf32>
    %195 = tpu.matmul %192, %194, %cst_156 {dimension_numbers = #tpu.dot_dimension_numbers<[1], [0], [0], [1], [0, 0, 1, 1], [], []>} : vector<2x128xbf16>, vector<128x128xbf16>, vector<2x128xf32> -> vector<2x128xf32>
    %196 = arith.addf %189, %195 : vector<2x128xf32>
    %197 = vector.extract_strided_slice %111 {offsets = [0, 3, 0, 0], sizes = [2, 1, 1, 128], strides = [1, 1, 1, 1]} : vector<2x4x4x128xf32> to vector<2x1x1x128xf32>
    %198 = vector.shape_cast %197 : vector<2x1x1x128xf32> to vector<2x128xf32>
    %199 = arith.truncf %198 : vector<2x128xf32> to vector<2x128xbf16>
    %c12 = arith.constant 12 : index
    %c0_157 = arith.constant 0 : index
    %c0_158 = arith.constant 0 : index
    %200 = vector.load %arg5[%c12, %c0_157, %c0_158] : memref<16x128x128xbf16, #tpu.memory_space<vmem>>, vector<1x128x128xbf16>
    %201 = vector.shape_cast %200 : vector<1x128x128xbf16> to vector<128x128xbf16>
    %cst_159 = arith.constant dense<0.000000e+00> : vector<2x128xf32>
    %202 = tpu.matmul %199, %201, %cst_159 {dimension_numbers = #tpu.dot_dimension_numbers<[1], [0], [0], [1], [0, 0, 1, 1], [], []>} : vector<2x128xbf16>, vector<128x128xbf16>, vector<2x128xf32> -> vector<2x128xf32>
    %203 = arith.addf %196, %202 : vector<2x128xf32>
    %204 = vector.extract_strided_slice %111 {offsets = [0, 3, 1, 0], sizes = [2, 1, 1, 128], strides = [1, 1, 1, 1]} : vector<2x4x4x128xf32> to vector<2x1x1x128xf32>
    %205 = vector.shape_cast %204 : vector<2x1x1x128xf32> to vector<2x128xf32>
    %206 = arith.truncf %205 : vector<2x128xf32> to vector<2x128xbf16>
    %c13 = arith.constant 13 : index
    %c0_160 = arith.constant 0 : index
    %c0_161 = arith.constant 0 : index
    %207 = vector.load %arg5[%c13, %c0_160, %c0_161] : memref<16x128x128xbf16, #tpu.memory_space<vmem>>, vector<1x128x128xbf16>
    %208 = vector.shape_cast %207 : vector<1x128x128xbf16> to vector<128x128xbf16>
    %cst_162 = arith.constant dense<0.000000e+00> : vector<2x128xf32>
    %209 = tpu.matmul %206, %208, %cst_162 {dimension_numbers = #tpu.dot_dimension_numbers<[1], [0], [0], [1], [0, 0, 1, 1], [], []>} : vector<2x128xbf16>, vector<128x128xbf16>, vector<2x128xf32> -> vector<2x128xf32>
    %210 = arith.addf %203, %209 : vector<2x128xf32>
    %211 = vector.extract_strided_slice %111 {offsets = [0, 3, 2, 0], sizes = [2, 1, 1, 128], strides = [1, 1, 1, 1]} : vector<2x4x4x128xf32> to vector<2x1x1x128xf32>
    %212 = vector.shape_cast %211 : vector<2x1x1x128xf32> to vector<2x128xf32>
    %213 = arith.truncf %212 : vector<2x128xf32> to vector<2x128xbf16>
    %c14 = arith.constant 14 : index
    %c0_163 = arith.constant 0 : index
    %c0_164 = arith.constant 0 : index
    %214 = vector.load %arg5[%c14, %c0_163, %c0_164] : memref<16x128x128xbf16, #tpu.memory_space<vmem>>, vector<1x128x128xbf16>
    %215 = vector.shape_cast %214 : vector<1x128x128xbf16> to vector<128x128xbf16>
    %cst_165 = arith.constant dense<0.000000e+00> : vector<2x128xf32>
    %216 = tpu.matmul %213, %215, %cst_165 {dimension_numbers = #tpu.dot_dimension_numbers<[1], [0], [0], [1], [0, 0, 1, 1], [], []>} : vector<2x128xbf16>, vector<128x128xbf16>, vector<2x128xf32> -> vector<2x128xf32>
    %217 = arith.addf %210, %216 : vector<2x128xf32>
    %218 = vector.extract_strided_slice %111 {offsets = [0, 3, 3, 0], sizes = [2, 1, 1, 128], strides = [1, 1, 1, 1]} : vector<2x4x4x128xf32> to vector<2x1x1x128xf32>
    %219 = vector.shape_cast %218 : vector<2x1x1x128xf32> to vector<2x128xf32>
    %220 = arith.truncf %219 : vector<2x128xf32> to vector<2x128xbf16>
    %c15 = arith.constant 15 : index
    %c0_166 = arith.constant 0 : index
    %c0_167 = arith.constant 0 : index
    %221 = vector.load %arg5[%c15, %c0_166, %c0_167] : memref<16x128x128xbf16, #tpu.memory_space<vmem>>, vector<1x128x128xbf16>
    %222 = vector.shape_cast %221 : vector<1x128x128xbf16> to vector<128x128xbf16>
    %cst_168 = arith.constant dense<0.000000e+00> : vector<2x128xf32>
    %223 = tpu.matmul %220, %222, %cst_168 {dimension_numbers = #tpu.dot_dimension_numbers<[1], [0], [0], [1], [0, 0, 1, 1], [], []>} : vector<2x128xbf16>, vector<128x128xbf16>, vector<2x128xf32> -> vector<2x128xf32>
    %224 = arith.addf %217, %223 : vector<2x128xf32>
    %c0_169 = arith.constant 0 : index
    %c0_170 = arith.constant 0 : index
    %225 = vector.load %arg6[%c0_169, %c0_170] : memref<1x128xf32, #tpu.memory_space<vmem>>, vector<1x128xf32>
    %226 = vector.broadcast %225 : vector<1x128xf32> to vector<2x128xf32>
    %227 = arith.addf %224, %226 : vector<2x128xf32>
    %c0_171 = arith.constant 0 : index
    %c0_172 = arith.constant 0 : index
    %228 = vector.load %arg7[%c0_171, %c0_172] : memref<2x128xf32, #tpu.memory_space<vmem>>, vector<2x128xf32>
    tpu.vector_store %arg7[%c0_171, %c0_172], %227 {strides = array<i32>} : memref<2x128xf32, #tpu.memory_space<vmem>>, vector<2x128xf32>,
    return
  }
}

</mosaic_0001>

<bundles_post_ra>
// kernel: net1_forward.2
= control target key start
LH: loop header
LB: loop body
LE: loop exit
PB: predicated region body
PF: predicated region fallthrough
CT: control target
= control target key end

     0   :  { %10 = vsyncpa [#allocation5], 0  ;;  %s3111_s0 = inlined_call_operand.vmem [shape: bf16[578,16], index: 0, kind: input, shape index: {}]   ;;  %s3112_s1 = inlined_call_operand.hbm [shape: bf16[16,128], index: 1, kind: input, shape index: {}]   ;;  %s3113_s2 = inlined_call_operand.hbm [shape: f32[1,128], index: 2, kind: input, shape index: {}]   ;;  %s3114_s3 = inlined_call_operand.hbm [shape: f32[1,128], index: 3, kind: input, shape index: {}]   ;;  %s3115_s4 = inlined_call_operand.hbm [shape: f32[1,128], index: 4, kind: input, shape index: {}]   ;;  %s3116_s5 = inlined_call_operand.vmem [shape: f32[2,8,8,128], index: 5, kind: output, shape index: {}]  }
   0x1   :  { %11 = vsyncpa [#allocation7], 0  ;;  %s33_s20 = sshll.u32 %s3113_s2, 4  ;;  %s34_s20 = int_to_ptr.hbm [resolvable:$true] %s33_s20 }
   0x2   :  { %12 = vsyncpa [#allocation10], 0  ;;  %s1973_s21 = smov [#allocation6]   ;;  %s19_s25 = sshll.u32 %s3112_s1, 4  ;;  %s20_s25 = int_to_ptr.hbm [resolvable:$true] %s19_s25 }
   0x3   :  { %s35_s22 = sshll.u32 %s1973_s21, 4  ;;  %s1974_s26 = smov [#allocation4]   ;;  %s36_s22 = int_to_ptr.vmem [resolvable:$true] %s35_s22 }
   0x4   :  { %38 = dma.hbm_to_vmem [thread:$0]  %s34_s20, 16, %s36_s22, [#allocation7]  }
   0x5   :  { %s21_s27 = sshll.u32 %s1974_s26, 4  ;;  %s1975_s28 = smov 64   ;;  %s22_s27 = int_to_ptr.vmem [resolvable:$true] %s21_s27 }
   0x6   :  { %s1976_s29 = smov 4   ;;  %s44_s2 = sshll.u32 %s3114_s3, 4  ;;  %s45_s2 = int_to_ptr.hbm [resolvable:$true] %s44_s2 }
   0x7   :  { %27 = dma.hbm_to_vmem [thread:$0]  %s20_s25, 128, %s22_s27, [#allocation5], %s1975_s28, %s1975_s28, %s1976_s29  }
   0x8   :  { %s1977_s7 = smov [#allocation8]   ;;  %s55_s1 = sshll.u32 %s3115_s4, 4  ;;  %s56_s1 = int_to_ptr.hbm [resolvable:$true] %s55_s1 }
   0x9   :  { %s46_s8 = sshll.u32 %s1977_s7, 4  ;;  %s1978_s11 = smov [#allocation9]   ;;  %s47_s8 = int_to_ptr.vmem [resolvable:$true] %s46_s8 }
   0xa   :  { %49 = dma.hbm_to_vmem [thread:$0]  %s45_s2, 16, %s47_s8, [#allocation7]  }
   0xb   :  { %s57_s12 = sshll.u32 %s1978_s11, 4  ;;  %s58_s12 = int_to_ptr.vmem [resolvable:$true] %s57_s12 }
   0xc   :  { %60 = dma.hbm_to_vmem [thread:$0]  %s56_s1, 16, %s58_s12, [#allocation10]  }
   0xd   :  { %1967 = dma.done.wait [#allocation5], 128  }
   0xe   :  { %1968 = vsyncadd [#allocation5], 4294967168 }
   0xf   :  { %1969 = dma.done.wait [#allocation7], 32  }
  0x10   :  { %1970 = vsyncadd [#allocation7], 4294967264 }
  0x11   :  { %1971 = dma.done.wait [#allocation10], 16  }
  0x12   :  { %1972 = vsyncadd [#allocation10], 4294967280  ;;  %v1858_v0 = vld [vmem:[#allocation4] sm:$0xff]  ;;  %v1822_v1 = vld [vmem:[%s3111_s0] sm:$0xff]  ;;  %vm346_vm0 = vcmask 130048   ;;  %vm722_vm1 = vcmask 1041408  }
  0x13   :  { %465 = vmatpush.bf16.msra.mxu0 %v1858_v0  ;;  %1859 = vmatpush.bf16.msra.mxu1 %v1858_v0  ;;  %v1832_v2 = vld [vmem:[%s3111_s0 + $0x50] sm:$0xff]  ;;  %v1823_v3 = vld [vmem:[%s3111_s0 + $0x8] sm:$0xff]  ;;  %v1833_v4 = vld [vmem:[%s3111_s0 + $0x58] sm:$0xff] }
  0x14   :  { %1860 = vmatpush.bf16.msra.mxu2 %v1858_v0  ;;  %1861 = vmatpush.bf16.msra.mxu3 %v1858_v0  ;;  %v1824_v5 = vld [vmem:[%s3111_s0 + $0x10] sm:$0xff]  ;;  %v1834_v6 = vld [vmem:[%s3111_s0 + $0x60] sm:$0xff]  ;;  %v1825_v8 = vld [vmem:[%s3111_s0 + $0x18] sm:$0xff] }
  0x15   :  { %v1842_v7 = vld [vmem:[%s3111_s0 + $0xa0] sm:$0xff]  ;;  %v1835_v9 = vld [vmem:[%s3111_s0 + $0x68] sm:$0xff]  ;;  %v1836_v12 = vld [vmem:[%s3111_s0 + $0x70] sm:$0xff] }
  0x16   :  { %1785 = vmatmul.msk.bf16.vlgmr.msra.gmra.mxu0 %vm346_vm0, %v1822_v1  ;;  %1795 = vmatmul.msk.bf16.vlgmr.msra.gmra.mxu1 %vm346_vm0, %v1832_v2  ;;  %v1843_v10 = vld [vmem:[%s3111_s0 + $0xa8] sm:$0xff]  ;;  %v1826_v11 = vld [vmem:[%s3111_s0 + $0x20] sm:$0xff]  ;;  %v1844_v13 = vld [vmem:[%s3111_s0 + $0xb0] sm:$0xff] }
  0x17   :  { %1805 = vmatmul.msk.bf16.vlgmr.msra.gmra.mxu2 %vm346_vm0, %v1842_v7  ;;  %v1827_v14 = vld [vmem:[%s3111_s0 + $0x28] sm:$0xff]  ;;  %v1837_v15 = vld [vmem:[%s3111_s0 + $0x78] sm:$0xff]  ;;  %v1828_v17 = vld [vmem:[%s3111_s0 + $0x30] sm:$0xff] }
  0x18   :  { %v1845_v16 = vld [vmem:[%s3111_s0 + $0xb8] sm:$0xff]  ;;  %v1838_v18 = vld [vmem:[%s3111_s0 + $0x80] sm:$0xff]  ;;  %v1839_v21 = vld [vmem:[%s3111_s0 + $0x88] sm:$0xff] }
  0x19   :  { %v1846_v19 = vld [vmem:[%s3111_s0 + $0xc0] sm:$0xff]  ;;  %v1829_v20 = vld [vmem:[%s3111_s0 + $0x38] sm:$0xff]  ;;  %v1847_v22 = vld [vmem:[%s3111_s0 + $0xc8] sm:$0xff] }
  0x1a   :  { %v1852_v23 = vld [vmem:[%s3111_s0 + $0xf0] sm:$0xff]  ;;  %v1830_v24 = vld [vmem:[%s3111_s0 + $0x40] sm:$0xff]  ;;  %v1853_v29 = vld [vmem:[%s3111_s0 + $0xf8] sm:$0xff] }
  0x1b   :  { %1815 = vmatmul.msk.bf16.vlgmr.msra.gmra.mxu3 %vm346_vm0, %v1852_v23  ;;  %v1840_v27 = vld [vmem:[%s3111_s0 + $0x90] sm:$0xff]  ;;  %v1831_v32 = vld [vmem:[%s3111_s0 + $0x48] sm:$0xff]  ;;  %v1841_v35 = vld [vmem:[%s3111_s0 + $0x98] sm:$0xff] }
  0x1c   :  { %v1848_v28 = vld [vmem:[%s3111_s0 + $0xd0] sm:$0xff]  ;;  %v1849_v36 = vld [vmem:[%s3111_s0 + $0xd8] sm:$0xff]  ;;  %v1854_v37 = vld [vmem:[%s3111_s0 + $0x100] sm:$0xff] }
  0x1d   :  { %v1850_v41 = vld [vmem:[%s3111_s0 + $0xe0] sm:$0xff]  ;;  %v1855_v42 = vld [vmem:[%s3111_s0 + $0x108] sm:$0xff]  ;;  %v1856_v50 = vld [vmem:[%s3111_s0 + $0x110] sm:$0xff] }
  0x1e   :  { %v1851_v49 = vld [vmem:[%s3111_s0 + $0xe8] sm:$0xff]  ;;  %v1857_v57 = vld [vmem:[%s3111_s0 + $0x118] sm:$0xff]  ;;  %v150_v62 = vld [vmem:[%s3111_s0 + $0x120] sm:$0x1] }
  0x1f   :  { %v302_v63 = vunpack.c.l.b16 %v150_v62 }
  0x21   :  { %v339_v0 = vpack.c.b16 %v302_v63, %v302_v63 }
  0x26   :  { %1786 = vmatmul.msk.bf16.gmra.mxu0 %vm346_vm0, %v1823_v3  ;;  %1796 = vmatmul.msk.bf16.gmra.mxu1 %vm346_vm0, %v1833_v4 }
  0x27   :  { %1806 = vmatmul.msk.bf16.gmra.mxu2 %vm346_vm0, %v1843_v10  ;;  %v2211_v10 = vld [vmem:[#allocation6] ss:$0 sm:$0xff] }
  0x2b   :  { %1816 = vmatmul.msk.bf16.gmra.mxu3 %vm346_vm0, %v1853_v29 }
  0x36   :  { %1787 = vmatmul.msk.bf16.gmra.mxu0 %vm346_vm0, %v1824_v5  ;;  %1797 = vmatmul.msk.bf16.gmra.mxu1 %vm346_vm0, %v1834_v6 }
  0x37   :  { %1807 = vmatmul.msk.bf16.gmra.mxu2 %vm346_vm0, %v1844_v13 }
  0x3b   :  { %1817 = vmatmul.msk.bf16.gmra.mxu3 %vm346_vm0, %v1854_v37 }
  0x46   :  { %1788 = vmatmul.msk.bf16.gmra.mxu0 %vm346_vm0, %v1825_v8  ;;  %1798 = vmatmul.msk.bf16.gmra.mxu1 %vm346_vm0, %v1835_v9 }
  0x47   :  { %1808 = vmatmul.msk.bf16.gmra.mxu2 %vm346_vm0, %v1845_v16 }
  0x4b   :  { %1818 = vmatmul.msk.bf16.gmra.mxu3 %vm346_vm0, %v1855_v42 }
  0x56   :  { %1789 = vmatmul.msk.bf16.gmra.mxu0 %vm346_vm0, %v1826_v11  ;;  %1799 = vmatmul.msk.bf16.gmra.mxu1 %vm346_vm0, %v1836_v12 }
  0x57   :  { %1809 = vmatmul.msk.bf16.gmra.mxu2 %vm346_vm0, %v1846_v19 }
  0x5b   :  { %1819 = vmatmul.msk.bf16.gmra.mxu3 %vm346_vm0, %v1856_v50 }
  0x66   :  { %1790 = vmatmul.msk.bf16.gmra.mxu0 %vm346_vm0, %v1827_v14  ;;  %1800 = vmatmul.msk.bf16.gmra.mxu1 %vm346_vm0, %v1837_v15 }
  0x67   :  { %1810 = vmatmul.msk.bf16.gmra.mxu2 %vm346_vm0, %v1847_v22 }
  0x6b   :  { %1820 = vmatmul.msk.bf16.gmra.mxu3 %vm346_vm0, %v1857_v57 }
  0x76   :  { %1791 = vmatmul.msk.bf16.gmra.mxu0 %vm346_vm0, %v1828_v17  ;;  %1801 = vmatmul.msk.bf16.gmra.mxu1 %vm346_vm0, %v1838_v18 }
  0x77   :  { %1811 = vmatmul.msk.bf16.gmra.mxu2 %vm346_vm0, %v1848_v28 }
  0x7b   :  { %1821 = vmatmul.msk.bf16.gmra.mxu3 %vm346_vm0, %v339_v0 }
  0x86   :  { %1792 = vmatmul.msk.bf16.gmra.mxu0 %vm346_vm0, %v1829_v20  ;;  %1802 = vmatmul.msk.bf16.gmra.mxu1 %vm346_vm0, %v1839_v21 }
  0x87   :  { %1812 = vmatmul.msk.bf16.gmra.mxu2 %vm346_vm0, %v1849_v36 }
  0x93   :  { %v2116_v25 = vpop.f32.mrf.mxu0  ;;  %v2118_v26 = vpop.f32.mrf.mxu1 }
  0x94   :  { %v2218_v13 = vadd.f32 %v2211_v10, %v2116_v25 }
  0x96   :  { %1793 = vmatmul.msk.bf16.gmra.mxu0 %vm346_vm0, %v1830_v24  ;;  %1803 = vmatmul.msk.bf16.gmra.mxu1 %vm346_vm0, %v1840_v27  ;;  %v731_v19 = vmul.f32 %v2218_v13, %v2218_v13 }
  0x97   :  { %1813 = vmatmul.msk.bf16.gmra.mxu2 %vm346_vm0, %v1850_v41 }
  0x9a   :  { %v2165_v45 = vpop.f32.mrf.mxu2 }
  0x9b   :  { %v469_v30 = vpop.f32.mrf.mxu0  ;;  %v2133_v31 = vpop.f32.mrf.mxu1 }
  0x9c   :  { %v2214_v12 = vadd.f32 %v2211_v10, %v469_v30 }
  0x9e   :  { %v732_v15 = vmul.f32 %v2214_v12, %v2214_v12  ;;  %v651_v20 = vadd.f32 %v2214_v12, %v2218_v13  ;;  %v2247_v29 = vpop.f32.mrf.mxu3 }
  0xa0   :  { %v804_v24 = vadd.f32 %v732_v15, %v731_v19 }
  0xa2   :  { %v2169_v48 = vpop.f32.mrf.mxu2 }
  0xa3   :  { %v472_v33 = vpop.f32.mrf.mxu0  ;;  %v2138_v34 = vpop.f32.mrf.mxu1 }
  0xa4   :  { %v2221_v14 = vadd.f32 %v2211_v10, %v472_v33 }
  0xa6   :  { %1794 = vmatmul.msk.bf16.gmra.mxu0 %vm346_vm0, %v1831_v32  ;;  %1804 = vmatmul.msk.bf16.gmra.mxu1 %vm346_vm0, %v1841_v35  ;;  %v733_v21 = vmul.f32 %v2221_v14, %v2221_v14  ;;  %v652_v25 = vadd.f32 %v651_v20, %v2221_v14  ;;  %v2277_v15 = vpop.f32.mrf.mxu3 }
  0xa7   :  { %1814 = vmatmul.msk.bf16.gmra.mxu2 %vm346_vm0, %v1851_v49 }
  0xa8   :  { %v805_v30 = vadd.f32 %v804_v24, %v733_v21 }
  0xaa   :  { %v2181_v53 = vpop.f32.mrf.mxu2 }
  0xab   :  { %v474_v38 = vpop.f32.mrf.mxu0  ;;  %v2153_v39 = vpop.f32.mrf.mxu1 }
  0xac   :  { %v2226_v16 = vadd.f32 %v2211_v10, %v474_v38 }
  0xae   :  { %v734_v27 = vmul.f32 %v2226_v16, %v2226_v16  ;;  %v653_v32 = vadd.f32 %v652_v25, %v2226_v16 }
  0xb0   :  { %v806_v36 = vadd.f32 %v805_v30, %v734_v27 }
  0xb2   :  { %v2185_v56 = vpop.f32.mrf.mxu2 }
  0xb3   :  { %v477_v40 = vpop.f32.mrf.mxu0  ;;  %v2161_v43 = vpop.f32.mrf.mxu1 }
  0xb4   :  { %v2239_v22 = vadd.f32 %v2211_v10, %v477_v40 }
  0xb6   :  { %v735_v33 = vmul.f32 %v2239_v22, %v2239_v22  ;;  %v654_v37 = vadd.f32 %v653_v32, %v2239_v22 }
  0xb8   :  { %v807_v41 = vadd.f32 %v806_v36, %v735_v33 }
  0xba   :  { %v2193_v60 = vpop.f32.mrf.mxu2 }
  0xbb   :  { %v479_v44 = vpop.f32.mrf.mxu0  ;;  %v2167_v46 = vpop.f32.mrf.mxu1 }
  0xbc   :  { %v2245_v28 = vadd.f32 %v2211_v10, %v479_v44 }
  0xbe   :  { %v736_v38 = vmul.f32 %v2245_v28, %v2245_v28  ;;  %v655_v42 = vadd.f32 %v654_v37, %v2245_v28 }
  0xc0   :  { %v808_v62 = vadd.f32 %v807_v41, %v736_v38 }
  0xc2   :  { %v2201_v3 = vpop.f32.mrf.mxu2 }
  0xc3   :  { %v482_v47 = vpop.f32.mrf.mxu0  ;;  %v2179_v52 = vpop.f32.mrf.mxu1 }
  0xc4   :  { %v2253_v35 = vadd.f32 %v2211_v10, %v482_v47 }
  0xc6   :  { %v737_v44 = vmul.f32 %v2253_v35, %v2253_v35  ;;  %v656_v63 = vadd.f32 %v655_v42, %v2253_v35 }
  0xc8   :  { %v809_v19 = vadd.f32 %v808_v62, %v737_v44 }
  0xca   :  { %v2205_v6 = vpop.f32.mrf.mxu2 }
  0xcb   :  { %v484_v51 = vpop.f32.mrf.mxu0  ;;  %v2183_v55 = vpop.f32.mrf.mxu1 }
  0xcc   :  { %v2259_v40 = vadd.f32 %v2211_v10, %v484_v51 }
  0xce   :  { %v738_v51 = vmul.f32 %v2259_v40, %v2259_v40 }
  0xd0   :  { %v810_v24 = vadd.f32 %v809_v19, %v738_v51 }
  0xd2   :  { %v2209_v9 = vpop.f32.mrf.mxu2 }
  0xd3   :  { %v487_v54 = vpop.f32.mrf.mxu0  ;;  %v2191_v59 = vpop.f32.mrf.mxu1 }
  0xd4   :  { %v2265_v49 = vadd.f32 %v2211_v10, %v487_v54  ;;  %v657_v54 = vadd.f32 %v656_v63, %v2259_v40 }
  0xd6   :  { %v739_v20 = vmul.f32 %v2265_v49, %v2265_v49  ;;  %v658_v25 = vadd.f32 %v657_v54, %v2265_v49 }
  0xd8   :  { %v811_v30 = vadd.f32 %v810_v24, %v739_v20 }
  0xda   :  { %v2230_v18 = vpop.f32.mrf.mxu2 }
  0xdb   :  { %v489_v58 = vpop.f32.mrf.mxu0  ;;  %v2199_v1 = vpop.f32.mrf.mxu1 }
  0xdc   :  { %v2275_v0 = vadd.f32 %v2211_v10, %v489_v58 }
  0xde   :  { %v740_v27 = vmul.f32 %v2275_v0, %v2275_v0  ;;  %v659_v32 = vadd.f32 %v658_v25, %v2275_v0 }
  0xe0   :  { %v812_v37 = vadd.f32 %v811_v30, %v740_v27 }
  0xe2   :  { %v2269_v57 = vpop.f32.mrf.mxu2 }
  0xe3   :  { %v492_v61 = vpop.f32.mrf.mxu0  ;;  %v2203_v5 = vpop.f32.mrf.mxu1 }
  0xe4   :  { %v2283_v21 = vadd.f32 %v2211_v10, %v492_v61 }
  0xe6   :  { %v741_v33 = vmul.f32 %v2283_v21, %v2283_v21  ;;  %v660_v38 = vadd.f32 %v659_v32, %v2283_v21 }
  0xe8   :  { %v813_v63 = vadd.f32 %v812_v37, %v741_v33 }
  0xea   :  { %v2307_v62 = vpop.f32.mrf.mxu2 }
  0xeb   :  { %v494_v2 = vpop.f32.mrf.mxu0  ;;  %v2207_v8 = vpop.f32.mrf.mxu1 }
  0xec   :  { %v2289_v58 = vadd.f32 %v2211_v10, %v494_v2  ;;  %v2303_v2 = vpop.f32.mrf.mxu3 }
  0xee   :  { %v742_v41 = vmul.f32 %v2289_v58, %v2289_v58 }
  0xf0   :  { %v814_v54 = vadd.f32 %v813_v63, %v742_v41 }
  0xf3   :  { %v497_v4 = vpop.f32.mrf.mxu0  ;;  %v2228_v17 = vpop.f32.mrf.mxu1 }
  0xf4   :  { %v2295_v36 = vadd.f32 %v2211_v10, %v497_v4  ;;  %v661_v4 = vadd.f32 %v660_v38, %v2289_v58 }
  0xf6   :  { %v743_v51 = vmul.f32 %v2295_v36, %v2295_v36  ;;  %v662_v20 = vadd.f32 %v661_v4, %v2295_v36 }
  0xf8   :  { %v815_v25 = vadd.f32 %v814_v54, %v743_v51 }
  0xfb   :  { %v499_v7 = vpop.f32.mrf.mxu0  ;;  %v2267_v47 = vpop.f32.mrf.mxu1 }
  0xfc   :  { %v2301_v42 = vadd.f32 %v2211_v10, %v499_v7 }
  0xfe   :  { %v744_v7 = vmul.f32 %v2301_v42, %v2301_v42  ;;  %v663_v27 = vadd.f32 %v662_v20, %v2301_v42  ;;  %v2343_v20 = vpop.f32.mrf.mxu2 }
 0x100   :  { %v816_v33 = vadd.f32 %v815_v25, %v744_v7 }
 0x103   :  { %v502_v11 = vpop.f32.mrf.mxu0  ;;  %v2305_v44 = vpop.f32.mrf.mxu1 }
 0x104   :  { %v2313_v19 = vadd.f32 %v2211_v10, %v502_v11 }
 0x106   :  { %3149 = vst [vmem:[#allocation14_spill] sm:$0xff] %v2313_v19  ;;  %v745_v30 = vmul.f32 %v2313_v19, %v2313_v19  ;;  %v664_v37 = vadd.f32 %v663_v27, %v2313_v19 }
 0x108   :  { %v817_v63 = vadd.f32 %v816_v33, %v745_v30 }
 0x10b   :  { %v504_v23 = vpop.f32.mrf.mxu0  ;;  %v2341_v54 = vpop.f32.mrf.mxu1 }
 0x10c   :  { %v2319_v24 = vadd.f32 %v2211_v10, %v504_v23  ;;  %v2333_v23 = vpop.f32.mrf.mxu3 }
 0x10e   :  { %3150 = vst [vmem:[#allocation15_spill] sm:$0xff] %v2319_v24  ;;  %v746_v38 = vmul.f32 %v2319_v24, %v2319_v24  ;;  %v665_v4 = vadd.f32 %v664_v37, %v2319_v24 }
 0x110   :  { %v818_v7 = vadd.f32 %v817_v63, %v746_v38 }
 0x113   :  { %v507_v50 = vpop.f32.mrf.mxu0 }
 0x114   :  { %v2325_v32 = vadd.f32 %v2211_v10, %v507_v50  ;;  %v2359_v63 = vpop.f32.mrf.mxu3 }
 0x116   :  { %v747_v51 = vmul.f32 %v2325_v32, %v2325_v32  ;;  %v666_v25 = vadd.f32 %v665_v4, %v2325_v32  ;;  %v2363_v4 = vadd.f32 %v2211_v10, %v2133_v31  ;;  %v2377_v31 = vpop.f32.mrf.mxu2 }
 0x118   :  { %v819_v27 = vadd.f32 %v818_v7, %v747_v51 }
 0x11b   :  { %v509_v61 = vpop.f32.mrf.mxu0 }
 0x11c   :  { %v2331_v41 = vadd.f32 %v2211_v10, %v509_v61 }
 0x11e   :  { %v748_v61 = vmul.f32 %v2331_v41, %v2331_v41  ;;  %v667_v30 = vadd.f32 %v666_v25, %v2331_v41 }
 0x120   :  { %v820_v24 = vadd.f32 %v819_v27, %v748_v61  ;;  %v2372_v61 = vadd.f32 %v2211_v10, %v2138_v34 }
 0x122   :  { %3154 = vst [vmem:[#allocation19_spill] sm:$0xff] %v2372_v61  ;;  %v753_v34 = vmul.f32 %v2372_v61, %v2372_v61 }
 0x123   :  { %v512_v11 = vpop.f32.mrf.mxu0 }
 0x124   :  { %v2339_v50 = vadd.f32 %v2211_v10, %v512_v11  ;;  %v2353_v11 = vadd.f32 %v2211_v10, %v2118_v26 }
 0x126   :  { %3151 = vst [vmem:[#allocation16_spill] sm:$0xff] %v2339_v50  ;;  %v749_v33 = vmul.f32 %v2339_v50, %v2339_v50  ;;  %v668_v19 = vadd.f32 %v667_v30, %v2339_v50  ;;  %v751_v26 = vmul.f32 %v2353_v11, %v2353_v11 }
 0x127   :  { %3152 = vst [vmem:[#allocation17_spill] sm:$0xff] %v2353_v11 }
 0x128   :  { %v821_v51 = vadd.f32 %v820_v24, %v749_v33  ;;  %v2383_v24 = vadd.f32 %v2211_v10, %v2153_v39  ;;  %v2399_v39 = vadd.f32 %v2211_v10, %v2167_v46  ;;  %v2413_v46 = vadd.f32 %v2211_v10, %v2183_v55 }
 0x12a   :  { %3155 = vst [vmem:[#allocation20_spill] sm:$0xff] %v2383_v24  ;;  %v754_v50 = vmul.f32 %v2383_v24, %v2383_v24  ;;  %v758_v55 = vmul.f32 %v2413_v46, %v2413_v46 }
 0x12b   :  { %v514_v37 = vpop.f32.mrf.mxu0  ;;  %3157 = vst [vmem:[#allocation22_spill] sm:$0xff] %v2399_v39 }
 0x12c   :  { %v2357_v38 = vadd.f32 %v2211_v10, %v514_v37  ;;  %v2375_v37 = vpop.f32.mrf.mxu1  ;;  %3159 = vst [vmem:[#allocation24_spill] sm:$0xff] %v2413_v46 }
 0x12e   :  { %3153 = vst [vmem:[#allocation18_spill] sm:$0xff] %v2357_v38  ;;  %v669_v7 = vadd.f32 %v668_v19, %v2357_v38  ;;  %v750_v25 = vmul.f32 %v2357_v38, %v2357_v38  ;;  %v752_v19 = vmul.f32 %v2363_v4, %v2363_v4 }
 0x130   :  { %v670_v27 = vadd.f32 %v669_v7, %v2353_v11  ;;  %v822_v30 = vadd.f32 %v821_v51, %v750_v25  ;;  %v2390_v51 = vadd.f32 %v2211_v10, %v2161_v43  ;;  %v2393_v11 = vpop.f32.mrf.mxu3  ;;  %v2406_v43 = vadd.f32 %v2211_v10, %v2179_v52 }
 0x132   :  { %v671_v33 = vadd.f32 %v670_v27, %v2363_v4  ;;  %v823_v38 = vadd.f32 %v822_v30, %v751_v26  ;;  %3156 = vst [vmem:[#allocation21_spill] sm:$0xff] %v2390_v51  ;;  %v755_v30 = vmul.f32 %v2390_v51, %v2390_v51  ;;  %v757_v52 = vmul.f32 %v2406_v43, %v2406_v43 }
 0x133   :  { %3158 = vst [vmem:[#allocation23_spill] sm:$0xff] %v2406_v43 }
 0x134   :  { %v672_v7 = vadd.f32 %v671_v33, %v2372_v61  ;;  %v824_v25 = vadd.f32 %v823_v38, %v752_v19  ;;  %v756_v33 = vmul.f32 %v2399_v39, %v2399_v39 }
 0x136   :  { %v673_v26 = vadd.f32 %v672_v7, %v2383_v24  ;;  %v825_v27 = vadd.f32 %v824_v25, %v753_v34  ;;  %v559_v25 = vpop.f32.mrf.mxu1  ;;  %v2416_v24 = vpop.f32.mrf.mxu2 }
 0x138   :  { %v674_v38 = vadd.f32 %v673_v26, %v2390_v51  ;;  %v826_v19 = vadd.f32 %v825_v27, %v754_v50  ;;  %v2422_v26 = vadd.f32 %v2211_v10, %v2191_v59  ;;  %v2425_v51 = vpop.f32.mrf.mxu3  ;;  %v2438_v59 = vadd.f32 %v2211_v10, %v2203_v5 }
 0x139   :  { %v2452_v5 = vadd.f32 %v2211_v10, %v2228_v17 }
 0x13a   :  { %v675_v7 = vadd.f32 %v674_v38, %v2399_v39  ;;  %v827_v34 = vadd.f32 %v826_v19, %v755_v30  ;;  %3160 = vst [vmem:[#allocation25_spill] sm:$0xff] %v2422_v26  ;;  %v2431_v30 = vadd.f32 %v2211_v10, %v2199_v1  ;;  %v759_v39 = vmul.f32 %v2422_v26, %v2422_v26 }
 0x13b   :  { %3162 = vst [vmem:[#allocation27_spill] sm:$0xff] %v2438_v59  ;;  %v2445_v1 = vadd.f32 %v2211_v10, %v2207_v8  ;;  %v763_v17 = vmul.f32 %v2452_v5, %v2452_v5 }
 0x13c   :  { %v676_v50 = vadd.f32 %v675_v7, %v2406_v43  ;;  %v828_v27 = vadd.f32 %v827_v34, %v756_v33  ;;  %3161 = vst [vmem:[#allocation26_spill] sm:$0xff] %v2431_v30  ;;  %v760_v34 = vmul.f32 %v2431_v30, %v2431_v30 }
 0x13d   :  { %3163 = vst [vmem:[#allocation28_spill] sm:$0xff] %v2445_v1  ;;  %v762_v8 = vmul.f32 %v2445_v1, %v2445_v1 }
 0x13e   :  { %v829_v38 = vadd.f32 %v828_v27, %v757_v52  ;;  %v677_v19 = vadd.f32 %v676_v50, %v2413_v46  ;;  %v761_v27 = vmul.f32 %v2438_v59, %v2438_v59  ;;  %3164 = vst [vmem:[#allocation29_spill] sm:$0xff] %v2452_v5  ;;  %v2457_v46 = vpop.f32.mrf.mxu2 }
 0x140   :  { %v678_v33 = vadd.f32 %v677_v19, %v2422_v26  ;;  %v830_v7 = vadd.f32 %v829_v38, %v758_v55  ;;  %v2455_v38 = vpop.f32.mrf.mxu3  ;;  %v562_v26 = vpop.f32.mrf.mxu1 }
 0x142   :  { %v679_v52 = vadd.f32 %v678_v33, %v2431_v30  ;;  %v831_v50 = vadd.f32 %v830_v7, %v759_v39  ;;  %v2463_v39 = vadd.f32 %v2211_v10, %v2267_v47  ;;  %v555_v30 = vadd.f32 %v2211_v10, %v2341_v54 }
 0x144   :  { %v680_v19 = vadd.f32 %v679_v52, %v2438_v59  ;;  %v832_v55 = vadd.f32 %v831_v50, %v760_v34  ;;  %v553_v34 = vadd.f32 %v2211_v10, %v2305_v44  ;;  %v764_v59 = vmul.f32 %v2463_v39, %v2463_v39 }
 0x146   :  { %v681_v33 = vadd.f32 %v680_v19, %v2445_v1  ;;  %v833_v7 = vadd.f32 %v832_v55, %v761_v27  ;;  %v765_v19 = vmul.f32 %v553_v34, %v553_v34  ;;  %v2478_v1 = vadd.f32 %v2211_v10, %v2375_v37  ;;  %v2485_v54 = vpop.f32.mrf.mxu2 }
 0x147   :  { %v2491_v37 = vadd.f32 %v2211_v10, %v562_v26 }
 0x148   :  { %v682_v52 = vadd.f32 %v681_v33, %v2452_v5  ;;  %v834_v50 = vadd.f32 %v833_v7, %v762_v8  ;;  %v2480_v44 = vpop.f32.mrf.mxu3  ;;  %v766_v8 = vmul.f32 %v555_v30, %v555_v30  ;;  %v2483_v5 = vadd.f32 %v2211_v10, %v559_v25  ;;  %v564_v61 = vpop.f32.mrf.mxu1 }
 0x149   :  { %v2497_v25 = vadd.f32 %v2211_v10, %v564_v61  ;;  %v769_v26 = vmul.f32 %v2491_v37, %v2491_v37 }
 0x14a   :  { %v683_v47 = vadd.f32 %v682_v52, %v2463_v39  ;;  %v835_v43 = vadd.f32 %v834_v50, %v763_v17  ;;  %v2501_v50 = vadd.f32 %v2211_v10, %v2165_v45 }
 0x14c   :  { %v684_v27 = vadd.f32 %v683_v47, %v553_v34  ;;  %v836_v55 = vadd.f32 %v835_v43, %v764_v59  ;;  %v767_v43 = vmul.f32 %v2478_v1, %v2478_v1  ;;  %v771_v45 = vmul.f32 %v2501_v50, %v2501_v50 }
 0x14e   :  { %v685_v33 = vadd.f32 %v684_v27, %v555_v30  ;;  %v837_v7 = vadd.f32 %v836_v55, %v765_v19  ;;  %v768_v30 = vmul.f32 %v2483_v5, %v2483_v5  ;;  %v2510_v55 = vadd.f32 %v2211_v10, %v2169_v48 }
 0x150   :  { %v838_v52 = vadd.f32 %v837_v7, %v766_v8  ;;  %v686_v17 = vadd.f32 %v685_v33, %v2478_v1  ;;  %v2506_v27 = vpop.f32.mrf.mxu3  ;;  %v770_v8 = vmul.f32 %v2497_v25, %v2497_v25  ;;  %v2519_v7 = vadd.f32 %v2211_v10, %v2181_v53 }
 0x151   :  { %v772_v48 = vmul.f32 %v2510_v55, %v2510_v55  ;;  %v2533_v53 = vadd.f32 %v2211_v10, %v2193_v60  ;;  %v2549_v60 = vadd.f32 %v2211_v10, %v2205_v6  ;;  %v2563_v6 = vadd.f32 %v2211_v10, %v2230_v18 }
 0x152   :  { %v839_v59 = vadd.f32 %v838_v52, %v767_v43  ;;  %v687_v34 = vadd.f32 %v686_v17, %v2483_v5  ;;  %v607_v43 = vpop.f32.mrf.mxu2  ;;  %v2579_v18 = vadd.f32 %v2211_v10, %v2307_v62  ;;  %v2593_v62 = vadd.f32 %v2211_v10, %v2377_v31 }
 0x153   :  { %3166 = vst [vmem:[#allocation31_spill] sm:$0xff] %v2563_v6 }
 0x154   :  { %v840_v47 = vadd.f32 %v839_v59, %v768_v30  ;;  %v688_v19 = vadd.f32 %v687_v34, %v2491_v37  ;;  %v2526_v59 = vadd.f32 %v2211_v10, %v2185_v56  ;;  %v2542_v56 = vadd.f32 %v2211_v10, %v2201_v3  ;;  %3168 = vst [vmem:[#allocation33_spill] sm:$0xff] %v2579_v18 }
 0x155   :  { %v2556_v3 = vadd.f32 %v2211_v10, %v2209_v9  ;;  %3170 = vst [vmem:[#allocation35_spill] sm:$0xff] %v2593_v62  ;;  %v783_v31 = vmul.f32 %v2593_v62, %v2593_v62 }
 0x156   :  { %v841_v33 = vadd.f32 %v840_v47, %v769_v26  ;;  %v689_v61 = vadd.f32 %v688_v19, %v2497_v25  ;;  %v773_v47 = vmul.f32 %v2519_v7, %v2519_v7  ;;  %3165 = vst [vmem:[#allocation30_spill] sm:$0xff] %v2542_v56 }
 0x157   :  { %v778_v9 = vmul.f32 %v2556_v3, %v2556_v3 }
 0x158   :  { %v690_v52 = vadd.f32 %v689_v61, %v2501_v50  ;;  %v842_v17 = vadd.f32 %v841_v33, %v770_v8  ;;  %v2536_v33 = vpop.f32.mrf.mxu3  ;;  %v774_v61 = vmul.f32 %v2526_v59, %v2526_v59 }
 0x15a   :  { %v691_v34 = vadd.f32 %v690_v52, %v2510_v55  ;;  %v843_v30 = vadd.f32 %v842_v17, %v771_v45  ;;  %v775_v52 = vmul.f32 %v2533_v53, %v2533_v53 }
 0x15c   :  { %v692_v19 = vadd.f32 %v691_v34, %v2519_v7  ;;  %v844_v26 = vadd.f32 %v843_v30, %v772_v48  ;;  %v776_v34 = vmul.f32 %v2542_v56, %v2542_v56 }
 0x15e   :  { %v693_v8 = vadd.f32 %v692_v19, %v2526_v59  ;;  %v845_v45 = vadd.f32 %v844_v26, %v773_v47  ;;  %v609_v19 = vpop.f32.mrf.mxu2  ;;  %v777_v26 = vmul.f32 %v2549_v60, %v2549_v60 }
 0x160   :  { %v694_v17 = vadd.f32 %v693_v8, %v2533_v53  ;;  %v846_v48 = vadd.f32 %v845_v45, %v774_v61  ;;  %v2566_v45 = vpop.f32.mrf.mxu3 }
 0x162   :  { %v695_v30 = vadd.f32 %v694_v17, %v2542_v56  ;;  %v847_v47 = vadd.f32 %v846_v48, %v775_v52  ;;  %v2572_v17 = vadd.f32 %v2211_v10, %v2269_v57  ;;  %v779_v56 = vmul.f32 %v2563_v6, %v2563_v6 }
 0x163   :  { %v2586_v57 = vadd.f32 %v2211_v10, %v2343_v20 }
 0x164   :  { %v696_v61 = vadd.f32 %v695_v30, %v2549_v60  ;;  %v848_v8 = vadd.f32 %v847_v47, %v776_v34  ;;  %3167 = vst [vmem:[#allocation32_spill] sm:$0xff] %v2572_v17  ;;  %v780_v47 = vmul.f32 %v2572_v17, %v2572_v17 }
 0x165   :  { %3169 = vst [vmem:[#allocation34_spill] sm:$0xff] %v2586_v57  ;;  %v782_v20 = vmul.f32 %v2586_v57, %v2586_v57 }
 0x166   :  { %v849_v52 = vadd.f32 %v848_v8, %v777_v26  ;;  %v697_v48 = vadd.f32 %v696_v61, %v2556_v3  ;;  %v781_v8 = vmul.f32 %v2579_v18, %v2579_v18 }
 0x168   :  { %v698_v34 = vadd.f32 %v697_v48, %v2563_v6  ;;  %v850_v30 = vadd.f32 %v849_v52, %v778_v9  ;;  %v2596_v52 = vpop.f32.mrf.mxu3  ;;  %v612_v6 = vpop.f32.mrf.mxu2 }
 0x16a   :  { %v699_v26 = vadd.f32 %v698_v34, %v2572_v17  ;;  %v851_v61 = vadd.f32 %v850_v30, %v779_v56  ;;  %v2602_v34 = vadd.f32 %v2211_v10, %v2416_v24 }
 0x16c   :  { %v700_v48 = vadd.f32 %v699_v26, %v2579_v18  ;;  %v852_v9 = vadd.f32 %v851_v61, %v780_v47  ;;  %3171 = vst [vmem:[#allocation36_spill] sm:$0xff] %v2602_v34  ;;  %v2609_v26 = vadd.f32 %v2211_v10, %v2457_v46  ;;  %v784_v18 = vmul.f32 %v2602_v34, %v2602_v34 }
 0x16e   :  { %v701_v56 = vadd.f32 %v700_v48, %v2586_v57  ;;  %v853_v30 = vadd.f32 %v852_v9, %v781_v8  ;;  %3172 = vst [vmem:[#allocation37_spill] sm:$0xff] %v2609_v26  ;;  %v2617_v48 = vadd.f32 %v2211_v10, %v2485_v54  ;;  %v785_v9 = vmul.f32 %v2609_v26, %v2609_v26 }
 0x16f   :  { %v2623_v57 = vadd.f32 %v2211_v10, %v607_v43  ;;  %v2635_v43 = vadd.f32 %v2211_v10, %v612_v6 }
 0x170   :  { %v702_v47 = vadd.f32 %v701_v56, %v2593_v62  ;;  %v854_v61 = vadd.f32 %v853_v30, %v782_v20  ;;  %3173 = vst [vmem:[#allocation38_spill] sm:$0xff] %v2617_v48  ;;  %v649_v20 = vpop.f32.mrf.mxu3  ;;  %v614_v54 = vpop.f32.mrf.mxu2 }
 0x171   :  { %3174 = vst [vmem:[#allocation39_spill] sm:$0xff] %v2623_v57  ;;  %v789_v6 = vmul.f32 %v2635_v43, %v2635_v43 }
 0x172   :  { %v703_v17 = vadd.f32 %v702_v47, %v2602_v34  ;;  %v855_v24 = vadd.f32 %v854_v61, %v783_v31  ;;  %v786_v31 = vmul.f32 %v2617_v48, %v2617_v48  ;;  %v2629_v47 = vadd.f32 %v2211_v10, %v609_v19  ;;  %3176 = vst [vmem:[#allocation41_spill] sm:$0xff] %v2635_v43 }
 0x173   :  { %v2645_v19 = vadd.f32 %v2211_v10, %v2247_v29 }
 0x174   :  { %v704_v8 = vadd.f32 %v703_v17, %v2609_v26  ;;  %v856_v46 = vadd.f32 %v855_v24, %v784_v18  ;;  %3175 = vst [vmem:[#allocation40_spill] sm:$0xff] %v2629_v47  ;;  %v787_v18 = vmul.f32 %v2623_v57, %v2623_v57 }
 0x175   :  { %3178 = vst [vmem:[#allocation43_spill] sm:$0xff] %v2645_v19  ;;  %v791_v29 = vmul.f32 %v2645_v19, %v2645_v19 }
 0x176   :  { %v857_v56 = vadd.f32 %v856_v46, %v785_v9  ;;  %v705_v30 = vadd.f32 %v704_v8, %v2617_v48  ;;  %v788_v8 = vmul.f32 %v2629_v47, %v2629_v47  ;;  %v2641_v46 = vadd.f32 %v2211_v10, %v614_v54 }
 0x178   :  { %v858_v61 = vadd.f32 %v857_v56, %v786_v31  ;;  %v706_v17 = vadd.f32 %v705_v30, %v2623_v57  ;;  %3177 = vst [vmem:[#allocation42_spill] sm:$0xff] %v2641_v46  ;;  %v2652_v30 = vadd.f32 %v2211_v10, %v2277_v15  ;;  %v790_v54 = vmul.f32 %v2641_v46, %v2641_v46 }
 0x17a   :  { %v859_v24 = vadd.f32 %v858_v61, %v787_v18  ;;  %v707_v9 = vadd.f32 %v706_v17, %v2629_v47  ;;  %3179 = vst [vmem:[#allocation44_spill] sm:$0xff] %v2652_v30  ;;  %v2661_v17 = vadd.f32 %v2211_v10, %v2303_v2  ;;  %v792_v15 = vmul.f32 %v2652_v30, %v2652_v30 }
 0x17b   :  { %v2675_v2 = vadd.f32 %v2211_v10, %v2359_v63  ;;  %v2689_v63 = vadd.f32 %v2211_v10, %v2425_v51  ;;  %v2703_v51 = vadd.f32 %v2211_v10, %v2480_v44 }
 0x17c   :  { %v860_v20 = vadd.f32 %v859_v24, %v788_v8  ;;  %v708_v56 = vadd.f32 %v707_v9, %v2635_v43  ;;  %3180 = vst [vmem:[#allocation45_spill] sm:$0xff] %v2661_v17  ;;  %v2668_v9 = vadd.f32 %v2211_v10, %v2333_v23  ;;  %v2682_v23 = vadd.f32 %v2211_v10, %v2393_v11 }
 0x17d   :  { %v2696_v11 = vadd.f32 %v2211_v10, %v2455_v38  ;;  %v799_v44 = vmul.f32 %v2703_v51, %v2703_v51 }
 0x17e   :  { %v861_v31 = vadd.f32 %v860_v20, %v789_v6  ;;  %v709_v61 = vadd.f32 %v708_v56, %v2641_v46  ;;  %v793_v56 = vmul.f32 %v2661_v17, %v2661_v17 }
 0x17f   :  { %v798_v38 = vmul.f32 %v2696_v11, %v2696_v11 }
 0x180   :  { %v710_v18 = vadd.f32 %v709_v61, %v2645_v19  ;;  %v862_v24 = vadd.f32 %v861_v31, %v790_v54  ;;  %v794_v61 = vmul.f32 %v2668_v9, %v2668_v9 }
 0x182   :  { %v711_v8 = vadd.f32 %v710_v18, %v2652_v30  ;;  %v863_v20 = vadd.f32 %v862_v24, %v791_v29  ;;  %v795_v18 = vmul.f32 %v2675_v2, %v2675_v2 }
 0x184   :  { %v712_v6 = vadd.f32 %v711_v8, %v2661_v17  ;;  %v864_v31 = vadd.f32 %v863_v20, %v792_v15  ;;  %v796_v8 = vmul.f32 %v2682_v23, %v2682_v23 }
 0x186   :  { %v713_v54 = vadd.f32 %v712_v6, %v2668_v9  ;;  %v865_v29 = vadd.f32 %v864_v31, %v793_v56  ;;  %v797_v6 = vmul.f32 %v2689_v63, %v2689_v63 }
 0x188   :  { %v866_v24 = vadd.f32 %v865_v29, %v794_v61  ;;  %v714_v15 = vadd.f32 %v713_v54, %v2675_v2  ;;  %v2708_v54 = vadd.f32 %v2211_v10, %v2506_v27  ;;  %v2722_v27 = vadd.f32 %v2211_v10, %v2536_v33 }
 0x18a   :  { %v715_v20 = vadd.f32 %v714_v15, %v2682_v23  ;;  %v867_v56 = vadd.f32 %v866_v24, %v795_v18  ;;  %v2715_v24 = vadd.f32 %v2211_v10, %v2596_v52  ;;  %v2729_v52 = vadd.f32 %v2211_v10, %v2566_v45 }
 0x18b   :  { %v801_v33 = vmul.f32 %v2722_v27, %v2722_v27 }
 0x18c   :  { %v716_v31 = vadd.f32 %v715_v20, %v2689_v63  ;;  %v868_v61 = vadd.f32 %v867_v56, %v796_v8  ;;  %v800_v20 = vmul.f32 %v2708_v54, %v2708_v54 }
 0x18e   :  { %v717_v29 = vadd.f32 %v716_v31, %v2696_v11  ;;  %v869_v18 = vadd.f32 %v868_v61, %v797_v6  ;;  %v803_v31 = vmul.f32 %v2715_v24, %v2715_v24 }
 0x190   :  { %v718_v15 = vadd.f32 %v717_v29, %v2703_v51  ;;  %v870_v8 = vadd.f32 %v869_v18, %v798_v38  ;;  %v723_v29 = vsel %vm722_vm1, %v2715_v24, 0.0  ;;  %v875_v10 = vsel %vm722_vm1, %v803_v31, 0.0 }
 0x192   :  { %v719_v56 = vadd.f32 %v718_v15, %v2708_v54  ;;  %v871_v6 = vadd.f32 %v870_v8, %v799_v44  ;;  %v802_v44 = vmul.f32 %v2729_v52, %v2729_v52 }
 0x194   :  { %v872_v61 = vadd.f32 %v871_v6, %v800_v20  ;;  %v720_v38 = vadd.f32 %v719_v56, %v2722_v27 }
 0x196   :  { %v873_v18 = vadd.f32 %v872_v61, %v801_v33  ;;  %v721_v15 = vadd.f32 %v720_v38, %v2729_v52 }
 0x198   :  { %v874_v45 = vadd.f32 %v873_v18, %v802_v44  ;;  %v724_v8 = vadd.f32 %v723_v29, %v721_v15 }
 0x19a   :  { %v725_v17 = vrot.slane %v724_v8, 4  ;;  %v876_v30 = vadd.f32 %v875_v10, %v874_v45 }
 0x19c   :  { %v726_v19 = vadd.f32 %v725_v17, %v724_v8  ;;  %v877_v20 = vrot.slane %v876_v30, 4 }
 0x19e   :  { %v727_v6 = vrot.slane %v726_v19, 2  ;;  %v878_v56 = vadd.f32 %v877_v20, %v876_v30 }
 0x1a0   :  { %v728_v46 = vadd.f32 %v727_v6, %v726_v19  ;;  %v879_v43 = vrot.slane %v878_v56, 2 }
 0x1a2   :  { %v729_v47 = vrot.slane %v728_v46, 1  ;;  %v880_v57 = vadd.f32 %v879_v43, %v878_v56  ;;  %v888_v43 = vld [vmem:[#allocation8] sm:$0x1] }
 0x1a4   :  { %v730_v48 = vadd.f32 %v729_v47, %v728_v46  ;;  %v881_v61 = vrot.slane %v880_v57, 1 }
 0x1a6   :  { %v882_v33 = vadd.f32 %v881_v61, %v880_v57  ;;  %v883_v38 = vmul.f32 0.0017301039, %v730_v48  ;;  %v901_v48 = vld [vmem:[#allocation9] sm:$0x1] }
 0x1a8   :  { %v884_v26 = vmul.f32 0.0017301039, %v882_v33  ;;  %v885_v34 = vmul.f32 %v883_v38, %v883_v38 }
 0x1aa   :  { %v886_v62 = vsub.f32 %v884_v26, %v885_v34 }
 0x1ac   :  { %v887_v31 = vmax.f32 %v886_v62, 0.0 }
 0x1ae   :  { %v889_v18 = vadd.f32 1e-05, %v887_v31 }
 0x1b0   :  { %1869 = vrsqrt.f32 %v889_v18  ;;  %vm896_vm3 = vweird.f32 %v889_v18 }
 0x1b6   :  { %v1870_v29 = vpop.eup %1869 }
 0x1b7   :  { %v891_v15 = vmul.f32 %v1870_v29, %v889_v18  ;;  %vm897_vm2 = vweird.f32 %v1870_v29 }
 0x1b8   :  { %vm898_vm4 = vmor %vm896_vm3, %vm897_vm2 }
 0x1b9   :  { %v892_v17 = vmul.f32 %v1870_v29, %v891_v15 }
 0x1bb   :  { %v893_v44 = vmul.f32 0.5, %v892_v17 }
 0x1bd   :  { %v894_v10 = vsub.f32 1.5, %v893_v44 }
 0x1bf   :  { %v895_v30 = vmul.f32 %v1870_v29, %v894_v10 }
 0x1c1   :  { %v899_v47 = vsel %vm898_vm4, %v1870_v29, %v895_v30 }
 0x1c2   :  { %v900_v46 = vmul.f32 %v899_v47, %v888_v43 }
 0x1c4   :  { %v902_v57 = vmul.f32 %v900_v46, %v883_v38  ;;  %v2740_v19 = vperm.slane %v900_v46, 0 }
 0x1c6   :  { %v903_v34 = vsub.f32 %v901_v48, %v902_v57  ;;  %v907_v62 = vmul.f32 %v2740_v19, %v2218_v13  ;;  %v908_v26 = vmul.f32 %v2740_v19, %v2214_v12  ;;  %v909_v45 = vmul.f32 %v2740_v19, %v2221_v14 }
 0x1c7   :  { %v910_v8 = vmul.f32 %v2740_v19, %v2226_v16  ;;  %v911_v20 = vmul.f32 %v2740_v19, %v2239_v22  ;;  %v912_v6 = vmul.f32 %v2740_v19, %v2245_v28  ;;  %v913_v56 = vmul.f32 %v2740_v19, %v2253_v35 }
 0x1c8   :  { %v2756_v61 = vperm.slane %v903_v34, 0  ;;  %v914_v12 = vmul.f32 %v2740_v19, %v2259_v40  ;;  %v915_v13 = vmul.f32 %v2740_v19, %v2265_v49  ;;  %v970_v14 = vmul.f32 %v2740_v19, %v2668_v9 }
 0x1c9   :  { %v971_v16 = vmul.f32 %v2740_v19, %v2675_v2  ;;  %v972_v22 = vmul.f32 %v2740_v19, %v2682_v23  ;;  %v973_v28 = vmul.f32 %v2740_v19, %v2689_v63  ;;  %v974_v35 = vmul.f32 %v2740_v19, %v2696_v11 }
 0x1ca   :  { %v975_v40 = vmul.f32 %v2740_v19, %v2703_v51  ;;  %v976_v49 = vmul.f32 %v2740_v19, %v2708_v54  ;;  %v977_v9 = vmul.f32 %v2740_v19, %v2722_v27  ;;  %v978_v2 = vmul.f32 %v2740_v19, %v2729_v52 }
 0x1cb   :  { %v979_v23 = vmul.f32 %v2740_v19, %v2715_v24  ;;  %v2783_v63 = vadd.f32 %v2756_v61, %v907_v62  ;;  %v2786_v11 = vadd.f32 %v2756_v61, %v908_v26  ;;  %v985_v51 = vadd.f32 %v2756_v61, %v909_v45 }
 0x1cc   :  { %v986_v33 = vadd.f32 %v2756_v61, %v910_v8  ;;  %v987_v54 = vadd.f32 %v2756_v61, %v911_v20  ;;  %v988_v27 = vadd.f32 %v2756_v61, %v912_v6  ;;  %v989_v38 = vadd.f32 %v2756_v61, %v913_v56 }
 0x1cd   :  { %v2794_v52 = vadd.f32 %v2756_v61, %v970_v14  ;;  %v2797_v24 = vadd.f32 %v2756_v61, %v971_v16  ;;  %v2800_v31 = vadd.f32 %v2756_v61, %v972_v22  ;;  %v2803_v18 = vadd.f32 %v2756_v61, %v973_v28  ;;  %v3181_v16 = vld [vmem:[#allocation14_spill] sm:$0xff] }
 0x1ce   :  { %v2806_v29 = vadd.f32 %v2756_v61, %v974_v35  ;;  %v2809_v15 = vadd.f32 %v2756_v61, %v975_v40  ;;  %v2812_v17 = vadd.f32 %v2756_v61, %v976_v49  ;;  %v2815_v44 = vadd.f32 %v2756_v61, %v977_v9  ;;  %v3182_v35 = vld [vmem:[#allocation15_spill] sm:$0xff] }
 0x1cf   :  { %v2818_v10 = vadd.f32 %v2756_v61, %v978_v2  ;;  %v2821_v30 = vadd.f32 %v2756_v61, %v979_v23  ;;  %v1056_v43 = vmax.f32 %v2783_v63, 0.0  ;;  %v1057_v47 = vmax.f32 %v2786_v11, 0.0 }
 0x1d0   :  { %v1058_v46 = vmax.f32 %v985_v51, 0.0  ;;  %v916_v57 = vmul.f32 %v2740_v19, %v2275_v0  ;;  %v990_v48 = vadd.f32 %v2756_v61, %v914_v12  ;;  %v1059_v34 = vmax.f32 %v986_v33, 0.0 }
 0x1d1   :  { %v917_v62 = vmul.f32 %v2740_v19, %v2283_v21  ;;  %v991_v26 = vadd.f32 %v2756_v61, %v915_v13  ;;  %v1060_v45 = vmax.f32 %v987_v54, 0.0  ;;  %v918_v8 = vmul.f32 %v2740_v19, %v2289_v58  ;;  %v3183_v54 = vld [vmem:[#allocation16_spill] sm:$0xff]  ;;  %1205 = vst [vmem:[#allocation3] sm:$0xff] %v1056_v43 }
 0x1d2   :  { %v992_v20 = vadd.f32 %v2756_v61, %v916_v57  ;;  %v1061_v6 = vmax.f32 %v988_v27, 0.0  ;;  %v919_v56 = vmul.f32 %v2740_v19, %v2295_v36  ;;  %v1062_v14 = vmax.f32 %v989_v38, 0.0  ;;  %1131 = vst [vmem:[#allocation2 + $0x10] sm:$0xff] %v1058_v46  ;;  %v3184_v57 = vld [vmem:[#allocation18_spill] sm:$0xff] }
 0x1d3   :  { %v993_v0 = vadd.f32 %v2756_v61, %v917_v62  ;;  %v920_v12 = vmul.f32 %v2740_v19, %v2301_v42  ;;  %v994_v21 = vadd.f32 %v2756_v61, %v918_v8  ;;  %v1063_v13 = vmax.f32 %v990_v48, 0.0  ;;  %1132 = vst [vmem:[#allocation2 + $0x18] sm:$0xff] %v1059_v34 }
 0x1d4   :  { %v921_v58 = vmul.f32 %v2740_v19, %v3181_v16  ;;  %v995_v22 = vadd.f32 %v2756_v61, %v919_v56  ;;  %v1064_v28 = vmax.f32 %v991_v26, 0.0  ;;  %1133 = vst [vmem:[#allocation2 + $0x20] sm:$0xff] %v1060_v45  ;;  %v922_v36 = vmul.f32 %v2740_v19, %v3182_v35  ;;  %v3186_v56 = vld [vmem:[#allocation19_spill] sm:$0xff] }
 0x1d5   :  { %v996_v40 = vadd.f32 %v2756_v61, %v920_v12  ;;  %v1065_v49 = vmax.f32 %v992_v20, 0.0  ;;  %1134 = vst [vmem:[#allocation2 + $0x28] sm:$0xff] %v1061_v6  ;;  %v923_v42 = vmul.f32 %v2740_v19, %v2325_v32  ;;  %v1066_v2 = vmax.f32 %v993_v0, 0.0 }
 0x1d6   :  { %v997_v9 = vadd.f32 %v2756_v61, %v921_v58  ;;  %1135 = vst [vmem:[#allocation2 + $0x30] sm:$0xff] %v1062_v14  ;;  %v924_v23 = vmul.f32 %v2740_v19, %v2331_v41  ;;  %v998_v51 = vadd.f32 %v2756_v61, %v922_v36  ;;  %v1067_v33 = vmax.f32 %v994_v21, 0.0  ;;  %v3185_v41 = vld [vmem:[#allocation17_spill] sm:$0xff]  ;;  %v3187_v21 = vld [vmem:[#allocation20_spill] sm:$0xff]  ;;  %v3189_v36 = vld [vmem:[#allocation22_spill] sm:$0xff] }
 0x1d7   :  { %1136 = vst [vmem:[#allocation2 + $0x38] sm:$0xff] %v1063_v13  ;;  %v925_v27 = vmul.f32 %v2740_v19, %v3183_v54  ;;  %v999_v38 = vadd.f32 %v2756_v61, %v923_v42  ;;  %v1068_v46 = vmax.f32 %v995_v22, 0.0  ;;  %v926_v32 = vmul.f32 %v2740_v19, %v3184_v57 }
 0x1d8   :  { %1137 = vst [vmem:[#allocation2 + $0x40] sm:$0xff] %v1064_v28  ;;  %v2858_v48 = vadd.f32 %v2756_v61, %v924_v23  ;;  %v1069_v34 = vmax.f32 %v996_v40, 0.0  ;;  %v927_v62 = vmul.f32 %v2740_v19, %v3185_v41  ;;  %v1070_v45 = vmax.f32 %v997_v9, 0.0  ;;  %v3190_v9 = vld [vmem:[#allocation23_spill] sm:$0xff]  ;;  %v3193_v41 = vld [vmem:[#allocation26_spill] sm:$0xff] }
 0x1d9   :  { %1138 = vst [vmem:[#allocation2 + $0x48] sm:$0xff] %v1065_v49  ;;  %v2863_v26 = vadd.f32 %v2756_v61, %v925_v27  ;;  %v928_v8 = vmul.f32 %v2740_v19, %v2363_v4  ;;  %v1002_v20 = vadd.f32 %v2756_v61, %v926_v32  ;;  %v1071_v6 = vmax.f32 %v998_v51, 0.0  ;;  %v3188_v4 = vld [vmem:[#allocation21_spill] sm:$0xff] }
 0x1da   :  { %1139 = vst [vmem:[#allocation2 + $0x50] sm:$0xff] %v1066_v2  ;;  %v929_v0 = vmul.f32 %v2740_v19, %v3186_v56  ;;  %v1003_v14 = vadd.f32 %v2756_v61, %v927_v62  ;;  %v1072_v12 = vmax.f32 %v999_v38, 0.0  ;;  %v930_v13 = vmul.f32 %v2740_v19, %v3187_v21 }
 0x1db   :  { %1140 = vst [vmem:[#allocation2 + $0x58] sm:$0xff] %v1067_v33  ;;  %v1004_v16 = vadd.f32 %v2756_v61, %v928_v8  ;;  %v1073_v58 = vmax.f32 %v2858_v48, 0.0  ;;  %v931_v22 = vmul.f32 %v2740_v19, %v3188_v4  ;;  %v1074_v35 = vmax.f32 %v2863_v26, 0.0  ;;  %v3191_v33 = vld [vmem:[#allocation24_spill] sm:$0xff] }
 0x1dc   :  { %1141 = vst [vmem:[#allocation2 + $0x60] sm:$0xff] %v1068_v46  ;;  %v1005_v28 = vadd.f32 %v2756_v61, %v929_v0  ;;  %v932_v40 = vmul.f32 %v2740_v19, %v3189_v36  ;;  %v1006_v49 = vadd.f32 %v2756_v61, %v930_v13  ;;  %v1075_v42 = vmax.f32 %v1002_v20, 0.0  ;;  %v3192_v46 = vld [vmem:[#allocation25_spill] sm:$0xff]  ;;  %v3194_v20 = vld [vmem:[#allocation27_spill] sm:$0xff] }
 0x1dd   :  { %1142 = vst [vmem:[#allocation2 + $0x68] sm:$0xff] %v1069_v34  ;;  %v933_v2 = vmul.f32 %v2740_v19, %v3190_v9  ;;  %v1007_v23 = vadd.f32 %v2756_v61, %v931_v22  ;;  %v1076_v51 = vmax.f32 %v1003_v14, 0.0  ;;  %v934_v54 = vmul.f32 %v2740_v19, %v3191_v33  ;;  %v3195_v14 = vld [vmem:[#allocation28_spill] sm:$0xff] }
 0x1de   :  { %1143 = vst [vmem:[#allocation2 + $0x70] sm:$0xff] %v1070_v45  ;;  %v1008_v27 = vadd.f32 %v2756_v61, %v932_v40  ;;  %v1077_v38 = vmax.f32 %v1004_v16, 0.0  ;;  %v935_v57 = vmul.f32 %v2740_v19, %v3192_v46  ;;  %v1078_v34 = vmax.f32 %v1005_v28, 0.0  ;;  %v3196_v16 = vld [vmem:[#allocation29_spill] sm:$0xff] }
 0x1df   :  { %1144 = vst [vmem:[#allocation2 + $0x78] sm:$0xff] %v1071_v6  ;;  %v1009_v32 = vadd.f32 %v2756_v61, %v933_v2  ;;  %v936_v62 = vmul.f32 %v2740_v19, %v3193_v41  ;;  %v1010_v45 = vadd.f32 %v2756_v61, %v934_v54  ;;  %v1079_v8 = vmax.f32 %v1006_v49, 0.0 }
 0x1e0   :  { %1145 = vst [vmem:[#allocation2 + $0x80] sm:$0xff] %v1072_v12  ;;  %v937_v6 = vmul.f32 %v2740_v19, %v3194_v20  ;;  %v1011_v56 = vadd.f32 %v2756_v61, %v935_v57  ;;  %v1080_v0 = vmax.f32 %v1007_v23, 0.0  ;;  %v938_v12 = vmul.f32 %v2740_v19, %v3195_v14 }
 0x1e1   :  { %1148 = vst [vmem:[#allocation2 + $0x98] sm:$0xff] %v1075_v42  ;;  %v1012_v21 = vadd.f32 %v2756_v61, %v936_v62  ;;  %v1081_v13 = vmax.f32 %v1008_v27, 0.0  ;;  %v939_v4 = vmul.f32 %v2740_v19, %v3196_v16  ;;  %v1082_v28 = vmax.f32 %v1009_v32, 0.0 }
 0x1e2   :  { %1149 = vst [vmem:[#allocation2 + $0xa0] sm:$0xff] %v1076_v51  ;;  %v1013_v22 = vadd.f32 %v2756_v61, %v937_v6  ;;  %v940_v36 = vmul.f32 %v2740_v19, %v2463_v39  ;;  %v1014_v40 = vadd.f32 %v2756_v61, %v938_v12  ;;  %v1083_v49 = vmax.f32 %v1010_v45, 0.0  ;;  %v1236_v63 = vld [vmem:[#allocation2 + $0x55] sm:$0xff] }
 0x1e3   :  { %1150 = vst [vmem:[#allocation2 + $0xa8] sm:$0xff] %v1077_v38  ;;  %v1015_v42 = vadd.f32 %v2756_v61, %v939_v4  ;;  %v1084_v9 = vmax.f32 %v1011_v56, 0.0  ;;  %v1085_v23 = vmax.f32 %v1012_v21, 0.0  ;;  %v943_v51 = vmul.f32 %v2740_v19, %v2478_v1  ;;  %v1237_v43 = vld [vmem:[#allocation2 + $0x5d] sm:$0xff] }
 0x1e4   :  { %1151 = vst [vmem:[#allocation2 + $0xb0] sm:$0xff] %v1078_v34  ;;  %v1016_v2 = vadd.f32 %v2756_v61, %v940_v36  ;;  %v1086_v33 = vmax.f32 %v1013_v22, 0.0  ;;  %v944_v39 = vmul.f32 %v2740_v19, %v2483_v5  ;;  %v1087_v54 = vmax.f32 %v1014_v40, 0.0  ;;  %v3198_v22 = vld [vmem:[#allocation31_spill] sm:$0xff]  ;;  %v1243_v11 = vld [vmem:[#allocation2 + $0x66] sm:$0xff] }
 0x1e5   :  { %1152 = vst [vmem:[#allocation2 + $0xb8] sm:$0xff] %v1079_v8  ;;  %v945_v27 = vmul.f32 %v2740_v19, %v2491_v37  ;;  %v1019_v38 = vadd.f32 %v2756_v61, %v943_v51  ;;  %v1088_v46 = vmax.f32 %v1015_v42, 0.0  ;;  %v946_v57 = vmul.f32 %v2740_v19, %v2497_v25 }
 0x1e6   :  { %1153 = vst [vmem:[#allocation2 + $0xc0] sm:$0xff] %v1080_v0  ;;  %v1020_v32 = vadd.f32 %v2756_v61, %v944_v39  ;;  %v1089_v1 = vmax.f32 %v1016_v2, 0.0  ;;  %v947_v34 = vmul.f32 %v2740_v19, %v2501_v50  ;;  %v948_v37 = vmul.f32 %v2740_v19, %v2510_v55  ;;  %v3197_v0 = vld [vmem:[#allocation30_spill] sm:$0xff]  ;;  %v3200_v2 = vld [vmem:[#allocation33_spill] sm:$0xff] }
 0x1e7   :  { %1154 = vst [vmem:[#allocation2 + $0xc8] sm:$0xff] %v1081_v13  ;;  %v1021_v5 = vadd.f32 %v2756_v61, %v945_v27  ;;  %v1022_v41 = vadd.f32 %v2756_v61, %v946_v57  ;;  %v949_v62 = vmul.f32 %v2740_v19, %v2519_v7  ;;  %v1092_v45 = vmax.f32 %v1019_v38, 0.0  ;;  %v3202_v38 = vld [vmem:[#allocation35_spill] sm:$0xff] }
 0x1e8   :  { %1155 = vst [vmem:[#allocation2 + $0xd0] sm:$0xff] %v1082_v28  ;;  %v1023_v25 = vadd.f32 %v2756_v61, %v947_v34  ;;  %v950_v8 = vmul.f32 %v2740_v19, %v2526_v59  ;;  %v1024_v50 = vadd.f32 %v2756_v61, %v948_v37  ;;  %v1093_v20 = vmax.f32 %v1020_v32, 0.0 }
 0x1e9   :  { %1156 = vst [vmem:[#allocation2 + $0xd8] sm:$0xff] %v1083_v49  ;;  %v951_v55 = vmul.f32 %v2740_v19, %v2533_v53  ;;  %v1025_v6 = vadd.f32 %v2756_v61, %v949_v62  ;;  %v1094_v56 = vmax.f32 %v1021_v5, 0.0  ;;  %v952_v7 = vmul.f32 %v2740_v19, %v3197_v0  ;;  %v3199_v49 = vld [vmem:[#allocation32_spill] sm:$0xff] }
 0x1ea   :  { %1157 = vst [vmem:[#allocation2 + $0xe0] sm:$0xff] %v1084_v9  ;;  %v1026_v14 = vadd.f32 %v2756_v61, %v950_v8  ;;  %v1095_v12 = vmax.f32 %v1022_v41, 0.0  ;;  %v953_v21 = vmul.f32 %v2740_v19, %v2549_v60  ;;  %v1096_v13 = vmax.f32 %v1023_v25, 0.0  ;;  %v3204_v41 = vld [vmem:[#allocation37_spill] sm:$0xff]  ;;  %v3205_v8 = vld [vmem:[#allocation38_spill] sm:$0xff] }
 0x1eb   :  { %1158 = vst [vmem:[#allocation2 + $0xe8] sm:$0xff] %v1085_v23  ;;  %v1027_v59 = vadd.f32 %v2756_v61, %v951_v55  ;;  %v954_v16 = vmul.f32 %v2740_v19, %v2556_v3  ;;  %v1028_v53 = vadd.f32 %v2756_v61, %v952_v7  ;;  %v1097_v4 = vmax.f32 %v1024_v50, 0.0 }
 0x1ec   :  { %1159 = vst [vmem:[#allocation2 + $0xf0] sm:$0xff] %v1086_v33  ;;  %v955_v28 = vmul.f32 %v2740_v19, %v3198_v22  ;;  %v1029_v36 = vadd.f32 %v2756_v61, %v953_v21  ;;  %v1098_v40 = vmax.f32 %v1025_v6, 0.0  ;;  %v956_v60 = vmul.f32 %v2740_v19, %v3199_v49  ;;  %v3201_v33 = vld [vmem:[#allocation34_spill] sm:$0xff]  ;;  %v3206_v6 = vld [vmem:[#allocation39_spill] sm:$0xff] }
 0x1ed   :  { %1160 = vst [vmem:[#allocation2 + $0xf8] sm:$0xff] %v1087_v54  ;;  %v1030_v42 = vadd.f32 %v2756_v61, %v954_v16  ;;  %v1099_v9 = vmax.f32 %v1026_v14, 0.0  ;;  %v957_v3 = vmul.f32 %v2740_v19, %v3200_v2  ;;  %v1100_v51 = vmax.f32 %v1027_v59, 0.0  ;;  %v3207_v14 = vld [vmem:[#allocation40_spill] sm:$0xff]  ;;  %v3209_v22 = vld [vmem:[#allocation42_spill] sm:$0xff]  ;;  %v3210_v49 = vld [vmem:[#allocation43_spill] sm:$0xff] }
 0x1ee   :  { %1161 = vst [vmem:[#allocation2 + $0x100] sm:$0xff] %v1088_v46  ;;  %v1031_v23 = vadd.f32 %v2756_v61, %v955_v28  ;;  %v958_v39 = vmul.f32 %v2740_v19, %v3201_v33  ;;  %v1032_v54 = vadd.f32 %v2756_v61, %v956_v60  ;;  %v1101_v27 = vmax.f32 %v1028_v53, 0.0  ;;  %v3211_v2 = vld [vmem:[#allocation44_spill] sm:$0xff]  ;;  %v3212_v33 = vld [vmem:[#allocation45_spill] sm:$0xff] }
 0x1ef   :  { %1162 = vst [vmem:[#allocation2 + $0x108] sm:$0xff] %v1089_v1  ;;  %v959_v46 = vmul.f32 %v2740_v19, %v3202_v38  ;;  %v1033_v57 = vadd.f32 %v2756_v61, %v957_v3  ;;  %v1102_v32 = vmax.f32 %v1029_v36, 0.0  ;;  %v3203_v1 = vld [vmem:[#allocation36_spill] sm:$0xff]  ;;  %v1103_v37 = vmax.f32 %v1030_v42, 0.0 }
 0x1f0   :  { %1165 = vst [vmem:[#allocation2 + $0x120] sm:$0xff] %v1092_v45  ;;  %v960_v34 = vmul.f32 %v2740_v19, %v3203_v1  ;;  %v2960_v5 = vadd.f32 %v2756_v61, %v958_v39  ;;  %v961_v62 = vmul.f32 %v2740_v19, %v3204_v41  ;;  %v1104_v45 = vmax.f32 %v1031_v23, 0.0 }
 0x1f1   :  { %1166 = vst [vmem:[#allocation2 + $0x128] sm:$0xff] %v1093_v20  ;;  %v2965_v25 = vadd.f32 %v2756_v61, %v959_v46  ;;  %v962_v50 = vmul.f32 %v2740_v19, %v3205_v8  ;;  %v1105_v55 = vmax.f32 %v1032_v54, 0.0  ;;  %v1106_v7 = vmax.f32 %v1033_v57, 0.0  ;;  %v1292_v48 = vld [vmem:[#allocation2 + $0xdd] sm:$0xff] }
 0x1f2   :  { %1167 = vst [vmem:[#allocation2 + $0x130] sm:$0xff] %v1094_v56  ;;  %v1036_v20 = vadd.f32 %v2756_v61, %v960_v34  ;;  %v963_v56 = vmul.f32 %v2740_v19, %v3206_v6  ;;  %v1037_v0 = vadd.f32 %v2756_v61, %v961_v62  ;;  %v1107_v59 = vmax.f32 %v2960_v5, 0.0  ;;  %v1223_v6 = vld [vmem:[#allocation2 + $0x3b] sm:$0xff] }
 0x1f3   :  { %1168 = vst [vmem:[#allocation2 + $0x138] sm:$0xff] %v1095_v12  ;;  %v964_v12 = vmul.f32 %v2740_v19, %v3207_v14  ;;  %v1038_v21 = vadd.f32 %v2756_v61, %v962_v50  ;;  %v966_v28 = vmul.f32 %v2740_v19, %v3209_v22  ;;  %v967_v60 = vmul.f32 %v2740_v19, %v3210_v49  ;;  %v1264_v14 = vld [vmem:[#allocation2 + $0x99] sm:$0xff]  ;;  %v1285_v22 = vld [vmem:[#allocation2 + $0xcc] sm:$0xff] }
 0x1f4   :  { %1169 = vst [vmem:[#allocation2 + $0x140] sm:$0xff] %v1096_v13  ;;  %v3208_v13 = vld [vmem:[#allocation41_spill] sm:$0xff]  ;;  %v1039_v53 = vadd.f32 %v2756_v61, %v963_v56  ;;  %v968_v3 = vmul.f32 %v2740_v19, %v3211_v2  ;;  %v969_v39 = vmul.f32 %v2740_v19, %v3212_v33  ;;  %v1120_v62 = vmax.f32 %v2797_v24, 0.0  ;;  %v1230_v56 = vld [vmem:[#allocation2 + $0x4c] sm:$0xff] }
 0x1f5   :  { %1170 = vst [vmem:[#allocation2 + $0x148] sm:$0xff] %v1097_v4  ;;  %v965_v16 = vmul.f32 %v2740_v19, %v3208_v13  ;;  %v1108_v4 = vmax.f32 %v2965_v25, 0.0  ;;  %v1040_v36 = vadd.f32 %v2756_v61, %v964_v12  ;;  %v1042_v23 = vadd.f32 %v2756_v61, %v966_v28  ;;  %v1265_v12 = vld [vmem:[#allocation2 + $0xa1] sm:$0xff]  ;;  %v1272_v13 = vld [vmem:[#allocation2 + $0xb2] sm:$0xff] }
 0x1f6   :  { %1171 = vst [vmem:[#allocation2 + $0x150] sm:$0xff] %v1098_v40  ;;  %v1109_v40 = vmax.f32 %v1036_v20, 0.0  ;;  %v1043_v54 = vadd.f32 %v2756_v61, %v967_v60  ;;  %v1044_v38 = vadd.f32 %v2756_v61, %v968_v3  ;;  %v1045_v57 = vadd.f32 %v2756_v61, %v969_v39  ;;  %v1286_v28 = vld [vmem:[#allocation2 + $0xd4] sm:$0xff] }
 0x1f7   :  { %1172 = vst [vmem:[#allocation2 + $0x158] sm:$0xff] %v1099_v9  ;;  %v1041_v42 = vadd.f32 %v2756_v61, %v965_v16  ;;  %v1110_v9 = vmax.f32 %v1037_v0, 0.0  ;;  %v1113_v46 = vmax.f32 %v1040_v36, 0.0  ;;  %v1115_v1 = vmax.f32 %v1042_v23, 0.0  ;;  %v1250_v0 = vld [vmem:[#allocation2 + $0x77] sm:$0xff]  ;;  %v1299_v26 = vld [vmem:[#allocation2 + $0xee] sm:$0xff] }
 0x1f8   :  { %1173 = vst [vmem:[#allocation2 + $0x160] sm:$0xff] %v1100_v51  ;;  %v1111_v51 = vmax.f32 %v1038_v21, 0.0  ;;  %v1116_v34 = vmax.f32 %v1043_v54, 0.0  ;;  %v1118_v41 = vmax.f32 %v1045_v57, 0.0  ;;  %v1119_v19 = vmax.f32 %v2794_v52, 0.0  ;;  %v1271_v21 = vld [vmem:[#allocation2 + $0xaa] sm:$0xff] }
 0x1f9   :  { %1174 = vst [vmem:[#allocation2 + $0x168] sm:$0xff] %v1101_v27  ;;  %v1112_v27 = vmax.f32 %v1039_v53, 0.0  ;;  %v1122_v61 = vmax.f32 %v2803_v18, 0.0  ;;  %v1123_v8 = vmax.f32 %v2806_v29, 0.0  ;;  %v1124_v50 = vmax.f32 %v2809_v15, 0.0  ;;  %v1208_v18 = vld [vmem:[#allocation2 + $0x11] sm:$0xff] }
 0x1fa   :  { %1175 = vst [vmem:[#allocation2 + $0x170] sm:$0xff] %v1102_v32  ;;  %v1114_v32 = vmax.f32 %v1041_v42, 0.0  ;;  %v1125_v20 = vmax.f32 %v2812_v17, 0.0  ;;  %v1126_v52 = vmax.f32 %v2815_v44, 0.0  ;;  %v1127_v24 = vmax.f32 %v2818_v10, 0.0  ;;  %v1209_v29 = vld [vmem:[#allocation2 + $0x19] sm:$0xff] }
 0x1fb   :  { %1176 = vst [vmem:[#allocation2 + $0x178] sm:$0xff] %v1103_v37  ;;  %v1117_v37 = vmax.f32 %v1044_v38, 0.0  ;;  %v1216_v44 = vld [vmem:[#allocation2 + $0x2a] sm:$0xff]  ;;  %v1222_v10 = vld [vmem:[#allocation2 + $0x33] sm:$0xff]  ;;  %v1278_v16 = vld [vmem:[#allocation2 + $0xbb] sm:$0xff] }
 0x1fc   :  { %1177 = vst [vmem:[#allocation2 + $0x180] sm:$0xff] %v1104_v45  ;;  %v1121_v45 = vmax.f32 %v2800_v31, 0.0  ;;  %v1128_v31 = vmax.f32 %v2821_v30, 0.0  ;;  %v1229_v30 = vld [vmem:[#allocation2 + $0x44] sm:$0xff]  ;;  %v1327_v42 = vld [vmem:[#allocation2 + $0x132] sm:$0xff] }
 0x1fd   :  { %1178 = vst [vmem:[#allocation2 + $0x188] sm:$0xff] %v1105_v55  ;;  %v1215_v55 = vld [vmem:[#allocation2 + $0x22] sm:$0xff]  ;;  %v1335_v3 = vld [vmem:[#allocation2 + $0x14b] sm:$0xff] }
 0x1fe   :  { %1179 = vst [vmem:[#allocation2 + $0x190] sm:$0xff] %v1106_v7  ;;  %v1251_v7 = vld [vmem:[#allocation2 + $0x7f] sm:$0xff]  ;;  %v1321_v60 = vld [vmem:[#allocation2 + $0x129] sm:$0xff]  ;;  %v1341_v23 = vld [vmem:[#allocation2 + $0x154] sm:$0xff] }
 0x1ff   :  { %1182 = vst [vmem:[#allocation2 + $0x1a8] sm:$0xff] %v1109_v40  ;;  %v1279_v53 = vld [vmem:[#allocation2 + $0xc3] sm:$0xff] }
 0x200   :  { %1183 = vst [vmem:[#allocation2 + $0x1b0] sm:$0xff] %v1110_v9  ;;  %v1306_v36 = vld [vmem:[#allocation2 + $0xff] sm:$0xff]  ;;  %v1307_v40 = vld [vmem:[#allocation2 + $0x107] sm:$0xff] }
 0x201   :  { %1184 = vst [vmem:[#allocation2 + $0x1b8] sm:$0xff] %v1111_v51  ;;  %v1320_v49 = vld [vmem:[#allocation2 + $0x121] sm:$0xff]  ;;  %v1349_v39 = vld [vmem:[#allocation2 + $0x16d] sm:$0xff] }
 0x202   :  { %1185 = vst [vmem:[#allocation2 + $0x1c0] sm:$0xff] %v1112_v27  ;;  %v1328_v9 = vld [vmem:[#allocation2 + $0x13a] sm:$0xff]  ;;  %v1334_v2 = vld [vmem:[#allocation2 + $0x143] sm:$0xff] }
 0x203   :  { %1186 = vst [vmem:[#allocation2 + $0x1c8] sm:$0xff] %v1113_v46  ;;  %v1342_v51 = vld [vmem:[#allocation2 + $0x15c] sm:$0xff]  ;;  %v1348_v33 = vld [vmem:[#allocation2 + $0x165] sm:$0xff] }
 0x204   :  { %1187 = vst [vmem:[#allocation2 + $0x1d0] sm:$0xff] %v1114_v32  ;;  %v1355_v54 = vld [vmem:[#allocation2 + $0x176] sm:$0xff]  ;;  %v1356_v27 = vld [vmem:[#allocation2 + $0x17e] sm:$0xff]  ;;  %v1362_v38 = vld [vmem:[#allocation2 + $0x187] sm:$0xff] }
 0x205   :  { %1188 = vst [vmem:[#allocation2 + $0x1d8] sm:$0xff] %v1115_v1  ;;  %v1363_v46 = vld [vmem:[#allocation2 + $0x18f] sm:$0xff] }
 0x206   :  { %1189 = vst [vmem:[#allocation2 + $0x1e0] sm:$0xff] %v1116_v34 }
 0x207   :  { %1190 = vst [vmem:[#allocation2 + $0x1e8] sm:$0xff] %v1117_v37  ;;  %v1376_v57 = vld [vmem:[#allocation2 + $0x1a9] sm:$0xff] }
 0x208   :  { %1191 = vst [vmem:[#allocation2 + $0x1f0] sm:$0xff] %v1118_v41  ;;  %v1377_v32 = vld [vmem:[#allocation2 + $0x1b1] sm:$0xff] }
 0x209   :  { %1192 = vst [vmem:[#allocation2 + $0x1f8] sm:$0xff] %v1119_v19  ;;  %v1383_v1 = vld [vmem:[#allocation2 + $0x1ba] sm:$0xff] }
 0x20a   :  { %1193 = vst [vmem:[#allocation2 + $0x200] sm:$0xff] %v1120_v62  ;;  %v1384_v34 = vld [vmem:[#allocation2 + $0x1c2] sm:$0xff] }
 0x20b   :  { %1194 = vst [vmem:[#allocation2 + $0x208] sm:$0xff] %v1121_v45  ;;  %v1390_v37 = vld [vmem:[#allocation2 + $0x1cb] sm:$0xff] }
 0x20c   :  { %1195 = vst [vmem:[#allocation2 + $0x210] sm:$0xff] %v1122_v61  ;;  %v1391_v41 = vld [vmem:[#allocation2 + $0x1d3] sm:$0xff] }
 0x20d   :  { %1196 = vst [vmem:[#allocation2 + $0x218] sm:$0xff] %v1123_v8  ;;  %v1397_v19 = vld [vmem:[#allocation2 + $0x1dc] sm:$0xff] }
 0x20e   :  { %1199 = vst [vmem:[#allocation2 + $0x230] sm:$0xff] %v1126_v52  ;;  %v1398_v62 = vld [vmem:[#allocation2 + $0x1e4] sm:$0xff] }
 0x20f   :  { %1200 = vst [vmem:[#allocation2 + $0x238] sm:$0xff] %v1127_v24  ;;  %v1404_v5 = vld [vmem:[#allocation2 + $0x1ed] sm:$0xff] }
 0x210   :  { %1201 = vst [vmem:[#allocation2 + $0x240] sm:$0x3] %v1128_v31 }
 0x211   :  { %1206 = vst [vmem:[#allocation3 + $0x8] sm:$0xff] %v1057_v47  ;;  %v1244_v47 = vld [vmem:[#allocation2 + $0x6e] sm:$0xff]  ;;  %v1411_v25 = vld [vmem:[#allocation2 + $0x1fe] sm:$0xff] }
 0x212   :  { %1212 = vst [vmem:[#allocation3 + $0x18] sm:$0xff] %v1208_v18 }
 0x213   :  { %1213 = vst [vmem:[#allocation3 + $0x20] sm:$0xff] %v1209_v29  ;;  %v1418_v61 = vld [vmem:[#allocation2 + $0x20f] sm:$0xff] }
 0x214   :  { %1219 = vst [vmem:[#allocation3 + $0x30] sm:$0xff] %v1215_v55  ;;  %v1419_v24 = vld [vmem:[#allocation2 + $0x217] sm:$0xff] }
 0x215   :  { %1220 = vst [vmem:[#allocation3 + $0x38] sm:$0xff] %v1216_v44 }
 0x216   :  { %1226 = vst [vmem:[#allocation3 + $0x48] sm:$0xff] %v1222_v10 }
 0x217   :  { %1227 = vst [vmem:[#allocation3 + $0x50] sm:$0xff] %v1223_v6 }
 0x218   :  { %1233 = vst [vmem:[#allocation3 + $0x60] sm:$0xff] %v1229_v30  ;;  %v1439_v31 = vld [vmem:[#allocation3] ss:$2 sm:$0xff]  ;;  %v1503_v55 = vld [vmem:[#allocation3 + $0x1] ss:$2 sm:$0xff] }
 0x219   :  { %1234 = vst [vmem:[#allocation3 + $0x68] sm:$0xff] %v1230_v56 }
 0x21a   :  { %1240 = vst [vmem:[#allocation3 + $0x78] sm:$0xff] %v1236_v63  ;;  %v1441_v45 = vld [vmem:[#allocation3 + $0x18] ss:$2 sm:$0xff]  ;;  %v1505_v44 = vld [vmem:[#allocation3 + $0x19] ss:$2 sm:$0xff] }
 0x21b   :  { %1241 = vst [vmem:[#allocation3 + $0x80] sm:$0xff] %v1237_v43 }
 0x21c   :  { %1247 = vst [vmem:[#allocation3 + $0x90] sm:$0xff] %v1243_v11  ;;  %v1443_v8 = vld [vmem:[#allocation3 + $0x30] ss:$2 sm:$0xff]  ;;  %v1507_v30 = vld [vmem:[#allocation3 + $0x31] ss:$2 sm:$0xff] }
 0x21d   :  { %1248 = vst [vmem:[#allocation3 + $0x98] sm:$0xff] %v1244_v47 }
 0x21e   :  { %1254 = vst [vmem:[#allocation3 + $0xa8] sm:$0xff] %v1250_v0  ;;  %v1445_v52 = vld [vmem:[#allocation3 + $0x48] ss:$2 sm:$0xff]  ;;  %v1509_v56 = vld [vmem:[#allocation3 + $0x49] ss:$2 sm:$0xff] }
 0x21f   :  { %1255 = vst [vmem:[#allocation3 + $0xb0] sm:$0xff] %v1251_v7 }
 0x220   :  { %1261 = vst [vmem:[#allocation3 + $0xc0] sm:$0xff] %v1073_v58  ;;  %v1293_v58 = vld [vmem:[#allocation2 + $0xe5] sm:$0xff] }
 0x221   :  { %1262 = vst [vmem:[#allocation3 + $0xc8] sm:$0xff] %v1074_v35  ;;  %v1300_v35 = vld [vmem:[#allocation2 + $0xf6] sm:$0xff] }
 0x222   :  { %1268 = vst [vmem:[#allocation3 + $0xd8] sm:$0xff] %v1264_v14  ;;  %v1447_v18 = vld [vmem:[#allocation3 + $0x60] ss:$2 sm:$0xff]  ;;  %v1511_v43 = vld [vmem:[#allocation3 + $0x61] ss:$2 sm:$0xff] }
 0x223   :  { %1269 = vst [vmem:[#allocation3 + $0xe0] sm:$0xff] %v1265_v12  ;;  %v1449_v29 = vld [vmem:[#allocation3 + $0x78] ss:$2 sm:$0xff]  ;;  %v1513_v11 = vld [vmem:[#allocation3 + $0x79] ss:$2 sm:$0xff]  ;;  %v1567_v12 = vmax.f32 %v1441_v45, %v1505_v44 }
 0x224   :  { %1275 = vst [vmem:[#allocation3 + $0xf0] sm:$0xff] %v1271_v21  ;;  %v3017_v10 = vld [vmem:[#allocation3 + $0x90] ss:$2 sm:$0xff]  ;;  %v1515_v7 = vld [vmem:[#allocation3 + $0x91] ss:$2 sm:$0xff] }
 0x225   :  { %1276 = vst [vmem:[#allocation3 + $0xf8] sm:$0xff] %v1272_v13  ;;  %v1572_v15 = vmax.f32 %v3017_v10, %v1515_v7 }
 0x226   :  { %1282 = vst [vmem:[#allocation3 + $0x108] sm:$0xff] %v1278_v16  ;;  %v1453_v6 = vld [vmem:[#allocation3 + $0xa8] ss:$2 sm:$0xff]  ;;  %v1517_v14 = vld [vmem:[#allocation3 + $0xa9] ss:$2 sm:$0xff] }
 0x227   :  { %1283 = vst [vmem:[#allocation3 + $0x110] sm:$0xff] %v1279_v53 }
 0x228   :  { %1289 = vst [vmem:[#allocation3 + $0x120] sm:$0xff] %v1285_v22  ;;  %v1455_v21 = vld [vmem:[#allocation3 + $0xc0] ss:$2 sm:$0xff]  ;;  %v1519_v53 = vld [vmem:[#allocation3 + $0xc1] ss:$2 sm:$0xff] }
 0x229   :  { %1290 = vst [vmem:[#allocation3 + $0x128] sm:$0xff] %v1286_v28  ;;  %v1568_v28 = vmax.f32 %v1443_v8, %v1507_v30 }
 0x22a   :  { %1296 = vst [vmem:[#allocation3 + $0x138] sm:$0xff] %v1292_v48  ;;  %v3019_v63 = vld [vmem:[#allocation3 + $0xd8] ss:$2 sm:$0xff]  ;;  %v1521_v22 = vld [vmem:[#allocation3 + $0xd9] ss:$2 sm:$0xff]  ;;  %v1569_v48 = vmax.f32 %v1445_v52, %v1509_v56 }
 0x22b   :  { %1297 = vst [vmem:[#allocation3 + $0x140] sm:$0xff] %v1293_v58 }
 0x22c   :  { %1303 = vst [vmem:[#allocation3 + $0x150] sm:$0xff] %v1299_v26  ;;  %v3021_v47 = vld [vmem:[#allocation3 + $0xf0] ss:$2 sm:$0xff] }
 0x22d   :  { %1304 = vst [vmem:[#allocation3 + $0x158] sm:$0xff] %v1300_v35  ;;  %v1523_v35 = vld [vmem:[#allocation3 + $0xf1] ss:$2 sm:$0xff] }
 0x22e   :  { %1310 = vst [vmem:[#allocation3 + $0x168] sm:$0xff] %v1306_v36  ;;  %v3023_v0 = vld [vmem:[#allocation3 + $0x108] ss:$2 sm:$0xff]  ;;  %v1525_v36 = vld [vmem:[#allocation3 + $0x109] ss:$2 sm:$0xff] }
 0x22f   :  { %1311 = vst [vmem:[#allocation3 + $0x170] sm:$0xff] %v1307_v40  ;;  %v1566_v40 = vmax.f32 %v1439_v31, %v1503_v55 }
 0x230   :  { %1324 = vst [vmem:[#allocation3 + $0x198] sm:$0xff] %v1320_v49  ;;  %v3025_v13 = vld [vmem:[#allocation3 + $0x120] ss:$2 sm:$0xff]  ;;  %v1570_v49 = vmax.f32 %v1447_v18, %v1511_v43 }
 0x231   :  { %1325 = vst [vmem:[#allocation3 + $0x1a0] sm:$0xff] %v1321_v60  ;;  %v1571_v60 = vmax.f32 %v1449_v29, %v1513_v11 }
 0x232   :  { %1331 = vst [vmem:[#allocation3 + $0x1b0] sm:$0xff] %v1327_v42  ;;  %v3027_v16 = vld [vmem:[#allocation3 + $0x138] ss:$2 sm:$0xff] }
 0x233   :  { %1332 = vst [vmem:[#allocation3 + $0x1b8] sm:$0xff] %v1328_v9 }
 0x234   :  { %1338 = vst [vmem:[#allocation3 + $0x1c8] sm:$0xff] %v1334_v2  ;;  %v3031_v58 = vld [vmem:[#allocation3 + $0x150] ss:$2 sm:$0xff]  ;;  %v1527_v2 = vld [vmem:[#allocation3 + $0x121] ss:$2 sm:$0xff] }
 0x235   :  { %1339 = vst [vmem:[#allocation3 + $0x1d0] sm:$0xff] %v1335_v3  ;;  %v1529_v3 = vld [vmem:[#allocation3 + $0x139] ss:$2 sm:$0xff] }
 0x236   :  { %1345 = vst [vmem:[#allocation3 + $0x1e0] sm:$0xff] %v1341_v23  ;;  %v3033_v26 = vld [vmem:[#allocation3 + $0x168] ss:$2 sm:$0xff] }
 0x237   :  { %1346 = vst [vmem:[#allocation3 + $0x1e8] sm:$0xff] %v1342_v51 }
 0x238   :  { %1352 = vst [vmem:[#allocation3 + $0x1f8] sm:$0xff] %v1348_v33  ;;  %v3037_v42 = vld [vmem:[#allocation3 + $0x198] ss:$2 sm:$0xff]  ;;  %v1531_v33 = vld [vmem:[#allocation3 + $0x151] ss:$2 sm:$0xff] }
 0x239   :  { %1353 = vst [vmem:[#allocation3 + $0x200] sm:$0xff] %v1349_v39  ;;  %v1533_v39 = vld [vmem:[#allocation3 + $0x169] ss:$2 sm:$0xff]  ;;  %v1580_v8 = vmax.f32 %v3031_v58, %v1531_v33 }
 0x23a   :  { %1359 = vst [vmem:[#allocation3 + $0x210] sm:$0xff] %v1355_v54  ;;  %v3039_v9 = vld [vmem:[#allocation3 + $0x1b0] ss:$2 sm:$0xff]  ;;  %v1575_v54 = vmax.f32 %v3019_v63, %v1521_v22  ;;  %v1581_v52 = vmax.f32 %v3033_v26, %v1533_v39 }
 0x23b   :  { %1360 = vst [vmem:[#allocation3 + $0x218] sm:$0xff] %v1356_v27  ;;  %v1598_v27 = vmax.f32 %v1566_v40, %v1567_v12 }
 0x23c   :  { %1366 = vst [vmem:[#allocation3 + $0x228] sm:$0xff] %v1362_v38  ;;  %v3042_v23 = vld [vmem:[#allocation3 + $0x1c8] ss:$2 sm:$0xff]  ;;  %v1535_v38 = vld [vmem:[#allocation3 + $0x199] ss:$2 sm:$0xff] }
 0x23d   :  { %1367 = vst [vmem:[#allocation3 + $0x230] sm:$0xff] %v1363_v46  ;;  %v1537_v46 = vld [vmem:[#allocation3 + $0x1b1] ss:$2 sm:$0xff] }
 0x23e   :  { %1373 = vst [vmem:[#allocation3 + $0x240] sm:$0xff] %v1107_v59  ;;  %v1405_v59 = vld [vmem:[#allocation2 + $0x1f5] sm:$0xff]  ;;  %v1583_v30 = vmax.f32 %v3039_v9, %v1537_v46 }
 0x23f   :  { %1374 = vst [vmem:[#allocation3 + $0x248] sm:$0xff] %v1108_v4  ;;  %v1412_v4 = vld [vmem:[#allocation2 + $0x206] sm:$0xff] }
 0x240   :  { %1380 = vst [vmem:[#allocation3 + $0x258] sm:$0xff] %v1376_v57  ;;  %v3044_v51 = vld [vmem:[#allocation3 + $0x1e0] ss:$2 sm:$0xff]  ;;  %v1576_v57 = vmax.f32 %v3021_v47, %v1523_v35  ;;  %v1543_v45 = vld [vmem:[#allocation3 + $0x1f9] ss:$2 sm:$0xff] }
 0x241   :  { %1381 = vst [vmem:[#allocation3 + $0x260] sm:$0xff] %v1377_v32  ;;  %v3047_v17 = vld [vmem:[#allocation3 + $0x1f8] ss:$2 sm:$0xff]  ;;  %v1577_v32 = vmax.f32 %v3023_v0, %v1525_v36 }
 0x242   :  { %1387 = vst [vmem:[#allocation3 + $0x270] sm:$0xff] %v1383_v1  ;;  %v1599_v1 = vmax.f32 %v1568_v28, %v1569_v48  ;;  %v1605_v48 = vmax.f32 %v1580_v8, %v1581_v52 }
 0x243   :  { %1388 = vst [vmem:[#allocation3 + $0x278] sm:$0xff] %v1384_v34  ;;  %v1603_v7 = vmax.f32 %v1576_v57, %v1577_v32 }
 0x244   :  { %1394 = vst [vmem:[#allocation3 + $0x288] sm:$0xff] %v1390_v37  ;;  %v1483_v34 = vld [vmem:[#allocation3 + $0x228] ss:$2 sm:$0xff]  ;;  %v1539_v37 = vld [vmem:[#allocation3 + $0x1c9] ss:$2 sm:$0xff] }
 0x245   :  { %1395 = vst [vmem:[#allocation3 + $0x290] sm:$0xff] %v1391_v41  ;;  %v1541_v41 = vld [vmem:[#allocation3 + $0x1e1] ss:$2 sm:$0xff]  ;;  %v1584_v47 = vmax.f32 %v3042_v23, %v1539_v37 }
 0x246   :  { %1401 = vst [vmem:[#allocation3 + $0x2a0] sm:$0xff] %v1397_v19  ;;  %v1574_v19 = vmax.f32 %v1455_v21, %v1519_v53  ;;  %v1485_v31 = vld [vmem:[#allocation3 + $0x240] ss:$2 sm:$0xff]  ;;  %v1547_v55 = vld [vmem:[#allocation3 + $0x229] ss:$2 sm:$0xff]  ;;  %v1585_v0 = vmax.f32 %v3044_v51, %v1541_v41  ;;  %v1586_v21 = vmax.f32 %v3047_v17, %v1543_v45 }
 0x247   :  { %1402 = vst [vmem:[#allocation3 + $0x2a8] sm:$0xff] %v1398_v62  ;;  %v1578_v62 = vmax.f32 %v3025_v13, %v1527_v2  ;;  %v1549_v44 = vld [vmem:[#allocation3 + $0x241] ss:$2 sm:$0xff]  ;;  %v1588_v28 = vmax.f32 %v1483_v34, %v1547_v55 }
 0x248   :  { %1408 = vst [vmem:[#allocation3 + $0x2b8] sm:$0xff] %v1404_v5  ;;  %v1579_v5 = vmax.f32 %v3027_v16, %v1529_v3  ;;  %v1551_v10 = vld [vmem:[#allocation3 + $0x259] ss:$2 sm:$0xff]  ;;  %v1602_v56 = vmax.f32 %v1574_v19, %v1575_v54  ;;  %v1607_v9 = vmax.f32 %v1584_v47, %v1585_v0 }
 0x249   :  { %1409 = vst [vmem:[#allocation3 + $0x2c0] sm:$0xff] %v1405_v59  ;;  %v1600_v59 = vmax.f32 %v1570_v49, %v1571_v60  ;;  %v1589_v49 = vmax.f32 %v1485_v31, %v1549_v44 }
 0x24a   :  { %1415 = vst [vmem:[#allocation3 + $0x2d0] sm:$0xff] %v1411_v25  ;;  %v1487_v25 = vld [vmem:[#allocation3 + $0x258] ss:$2 sm:$0xff]  ;;  %v1553_v43 = vld [vmem:[#allocation3 + $0x271] ss:$2 sm:$0xff]  ;;  %v1604_v16 = vmax.f32 %v1578_v62, %v1579_v5 }
 0x24b   :  { %1416 = vst [vmem:[#allocation3 + $0x2d8] sm:$0xff] %v1412_v4  ;;  %v1489_v4 = vld [vmem:[#allocation3 + $0x270] ss:$2 sm:$0xff]  ;;  %v1590_v35 = vmax.f32 %v1487_v25, %v1551_v10  ;;  %v1609_v33 = vmax.f32 %v1588_v28, %v1589_v49 }
 0x24c   :  { %1422 = vst [vmem:[#allocation3 + $0x2e8] sm:$0xff] %v1418_v61  ;;  %v1545_v61 = vld [vmem:[#allocation3 + $0x211] ss:$2 sm:$0xff]  ;;  %v1491_v18 = vld [vmem:[#allocation3 + $0x288] ss:$2 sm:$0xff]  ;;  %v1591_v36 = vmax.f32 %v1489_v4, %v1553_v43 }
 0x24d   :  { %1423 = vst [vmem:[#allocation3 + $0x2f0] sm:$0xff] %v1419_v24  ;;  %v1555_v11 = vld [vmem:[#allocation3 + $0x289] ss:$2 sm:$0xff] }
 0x24e   :  { %1429 = vst [vmem:[#allocation3 + $0x300] sm:$0xff] %v1124_v50  ;;  %v1573_v50 = vmax.f32 %v1453_v6, %v1517_v14  ;;  %v1493_v29 = vld [vmem:[#allocation3 + $0x2a0] ss:$2 sm:$0xff]  ;;  %v1582_v6 = vmax.f32 %v3037_v42, %v1535_v38  ;;  %v1557_v14 = vld [vmem:[#allocation3 + $0x2a1] ss:$2 sm:$0xff]  ;;  %v1592_v60 = vmax.f32 %v1491_v18, %v1555_v11  ;;  %v1610_v39 = vmax.f32 %v1590_v35, %v1591_v36 }
 0x24f   :  { %1430 = vst [vmem:[#allocation3 + $0x308] sm:$0xff] %v1125_v20  ;;  %v3049_v20 = vld [vmem:[#allocation3 + $0x210] ss:$2 sm:$0xff]  ;;  %v1593_v42 = vmax.f32 %v1493_v29, %v1557_v14 }
 0x250   :  { %v1601_v24 = vmax.f32 %v1572_v15, %v1573_v50  ;;  %1614 = vst [vmem:[%s3116_s5] sm:$0xff] %v1598_v27  ;;  %v1495_v63 = vld [vmem:[#allocation3 + $0x2b8] ss:$2 sm:$0xff]  ;;  %v1559_v12 = vld [vmem:[#allocation3 + $0x2b9] ss:$2 sm:$0xff]  ;;  %v1587_v13 = vmax.f32 %v3049_v20, %v1545_v61  ;;  %v1606_v40 = vmax.f32 %v1582_v6, %v1583_v30 }
 0x251   :  { %1615 = vst [vmem:[%s3116_s5 + $0x8] sm:$0xff] %v1599_v1  ;;  %v1594_v15 = vmax.f32 %v1495_v63, %v1559_v12  ;;  %v1611_v27 = vmax.f32 %v1592_v60, %v1593_v42 }
 0x252   :  { %1616 = vst [vmem:[%s3116_s5 + $0x10] sm:$0xff] %v1600_v59  ;;  %v1497_v53 = vld [vmem:[#allocation3 + $0x2d0] ss:$2 sm:$0xff]  ;;  %v1561_v22 = vld [vmem:[#allocation3 + $0x2d1] ss:$2 sm:$0xff]  ;;  %v1608_v23 = vmax.f32 %v1586_v21, %v1587_v13 }
 0x253   :  { %1617 = vst [vmem:[%s3116_s5 + $0x18] sm:$0xff] %v1601_v24  ;;  %v1595_v50 = vmax.f32 %v1497_v53, %v1561_v22 }
 0x254   :  { %v1499_v58 = vld [vmem:[#allocation3 + $0x2e8] ss:$2 sm:$0xff]  ;;  %v1563_v26 = vld [vmem:[#allocation3 + $0x2e9] ss:$2 sm:$0xff]  ;;  %1618 = vst [vmem:[%s3116_s5 + $0x20] sm:$0xff] %v1602_v56 }
 0x255   :  { %1619 = vst [vmem:[%s3116_s5 + $0x28] sm:$0xff] %v1603_v7  ;;  %v1596_v51 = vmax.f32 %v1499_v58, %v1563_v26  ;;  %v1612_v17 = vmax.f32 %v1594_v15, %v1595_v50 }
 0x256   :  { %v1501_v2 = vld [vmem:[#allocation3 + $0x300] ss:$2 sm:$0xff]  ;;  %v1565_v3 = vld [vmem:[#allocation3 + $0x301] ss:$2 sm:$0xff]  ;;  %1620 = vst [vmem:[%s3116_s5 + $0x30] sm:$0xff] %v1604_v16 }
 0x257   :  { %1621 = vst [vmem:[%s3116_s5 + $0x38] sm:$0xff] %v1605_v48  ;;  %v1597_v54 = vmax.f32 %v1501_v2, %v1565_v3 }
 0x258   :  { %1622 = vst [vmem:[%s3116_s5 + $0x40] sm:$0xff] %v1606_v40 }
 0x259   :  { %1623 = vst [vmem:[%s3116_s5 + $0x48] sm:$0xff] %v1607_v9  ;;  %v1613_v20 = vmax.f32 %v1596_v51, %v1597_v54 }
 0x25a   :  { %1624 = vst [vmem:[%s3116_s5 + $0x50] sm:$0xff] %v1608_v23 }
 0x25b   :  { %1625 = vst [vmem:[%s3116_s5 + $0x58] sm:$0xff] %v1609_v33 }
 0x25c   :  { %1626 = vst [vmem:[%s3116_s5 + $0x60] sm:$0xff] %v1610_v39 }
 0x25d   :  { %1627 = vst [vmem:[%s3116_s5 + $0x68] sm:$0xff] %v1611_v27 }
 0x25e   :  { %1628 = vst [vmem:[%s3116_s5 + $0x70] sm:$0xff] %v1612_v17 }
 0x25f   :  { %1629 = vst [vmem:[%s3116_s5 + $0x78] sm:$0xff] %v1613_v20 }
 0x260   :  { %1634 = vsyncpa [#allocation5], 1 }
 0x261   :  { %1635 = vsyncpa [#allocation7], 1 }
 0x262   :  { %1636 = vsyncpa [#allocation10], 1 }

// kernel: net1_forward.3
= control target key start
LH: loop header
LB: loop body
LE: loop exit
PB: predicated region body
PF: predicated region fallthrough
CT: control target
= control target key end

     0   :  { %s9564_s0 = inlined_call_operand.vmem [shape: bf16[162,2048], index: 0, kind: input, shape index: {}]   ;;  %s9565_s1 = inlined_call_operand.vmem [shape: bf16[2048,128], index: 1, kind: input, shape index: {}]   ;;  %s9566_s2 = inlined_call_operand.vmem [shape: f32[1,128], index: 2, kind: input, shape index: {}]   ;;  %s9567_s3 = inlined_call_operand.vmem [shape: f32[1,128], index: 3, kind: input, shape index: {}]   ;;  %s9568_s4 = inlined_call_operand.vmem [shape: f32[1,128], index: 4, kind: input, shape index: {}]   ;;  %s9569_s5 = inlined_call_operand.vmem [shape: bf16[16,128,128], index: 5, kind: input, shape index: {}]   ;;  %s9570_s6 = inlined_call_operand.vmem [shape: f32[1,128], index: 6, kind: input, shape index: {}]   ;;  %s9571_s7 = inlined_call_operand.hbm [shape: f32[2,128], index: 7, kind: output, shape index: {}]  }
   0x1   :  { %v6918_v0 = vld [vmem:[%s9565_s1 + $0x38] sm:$0xff]  ;;  %v6917_v4 = vld [vmem:[%s9565_s1 + $0x30] sm:$0xff]  ;;  %v6916_v8 = vld [vmem:[%s9565_s1 + $0x28] sm:$0xff] }
   0x2   :  { %v6926_v1 = vld [vmem:[%s9565_s1 + $0x78] sm:$0xff]  ;;  %2079 = vmatpush.bf16.msra.mxu0 %v6918_v0  ;;  %v6925_v5 = vld [vmem:[%s9565_s1 + $0x70] sm:$0xff]  ;;  %v6924_v9 = vld [vmem:[%s9565_s1 + $0x68] sm:$0xff] }
   0x3   :  { %v6934_v2 = vld [vmem:[%s9565_s1 + $0xb8] sm:$0xff]  ;;  %2142 = vmatpush.bf16.msra.mxu1 %v6926_v1  ;;  %v6933_v6 = vld [vmem:[%s9565_s1 + $0xb0] sm:$0xff]  ;;  %v6932_v10 = vld [vmem:[%s9565_s1 + $0xa8] sm:$0xff] }
   0x4   :  { %v6942_v3 = vld [vmem:[%s9565_s1 + $0xf8] sm:$0xff]  ;;  %2205 = vmatpush.bf16.msra.mxu2 %v6934_v2  ;;  %v6941_v7 = vld [vmem:[%s9565_s1 + $0xf0] sm:$0xff]  ;;  %v6940_v11 = vld [vmem:[%s9565_s1 + $0xe8] sm:$0xff] }
   0x5   :  { %2268 = vmatpush.bf16.msra.mxu3 %v6942_v3  ;;  %v6915_v12 = vld [vmem:[%s9565_s1 + $0x20] sm:$0xff]  ;;  %v6914_v16 = vld [vmem:[%s9565_s1 + $0x18] sm:$0xff] }
   0x6   :  { %2080 = vmatpush.bf16.msra.mxu0 %v6917_v4  ;;  %v6923_v13 = vld [vmem:[%s9565_s1 + $0x60] sm:$0xff]  ;;  %v6922_v17 = vld [vmem:[%s9565_s1 + $0x58] sm:$0xff] }
   0x7   :  { %2143 = vmatpush.bf16.msra.mxu1 %v6925_v5  ;;  %v6931_v14 = vld [vmem:[%s9565_s1 + $0xa0] sm:$0xff]  ;;  %v6930_v18 = vld [vmem:[%s9565_s1 + $0x98] sm:$0xff] }
   0x8   :  { %2206 = vmatpush.bf16.msra.mxu2 %v6933_v6  ;;  %v6939_v15 = vld [vmem:[%s9565_s1 + $0xe0] sm:$0xff]  ;;  %v6938_v19 = vld [vmem:[%s9565_s1 + $0xd8] sm:$0xff] }
   0x9   :  { %2269 = vmatpush.bf16.msra.mxu3 %v6941_v7 }
   0xa   :  { %2081 = vmatpush.bf16.msra.mxu0 %v6916_v8 }
   0xb   :  { %2144 = vmatpush.bf16.msra.mxu1 %v6924_v9 }
   0xc   :  { %2207 = vmatpush.bf16.msra.mxu2 %v6932_v10 }
   0xd   :  { %2270 = vmatpush.bf16.msra.mxu3 %v6940_v11 }
   0xe   :  { %2082 = vmatpush.bf16.msra.mxu0 %v6915_v12 }
   0xf   :  { %2145 = vmatpush.bf16.msra.mxu1 %v6923_v13 }
  0x10   :  { %2208 = vmatpush.bf16.msra.mxu2 %v6931_v14 }
  0x11   :  { %2271 = vmatpush.bf16.msra.mxu3 %v6939_v15 }
  0x12   :  { %12 = vsyncpa [#allocation5], 0  ;;  %2083 = vmatpush.bf16.msra.mxu0 %v6914_v16  ;;  %v6913_v20 = vld [vmem:[%s9565_s1 + $0x10] sm:$0xff]  ;;  %v6912_v24 = vld [vmem:[%s9565_s1 + $0x8] sm:$0xff]  ;;  %vm3106_vm0 = vcmask 1041408   ;;  %vm3442_vm4 = vcmask 1043456  }
  0x13   :  { %2146 = vmatpush.bf16.msra.mxu1 %v6922_v17  ;;  %v6921_v21 = vld [vmem:[%s9565_s1 + $0x50] sm:$0xff]  ;;  %v6920_v25 = vld [vmem:[%s9565_s1 + $0x48] sm:$0xff]  ;;  %v6911_v28 = vld [vmem:[%s9565_s1] sm:$0xff]  ;;  %vm3507_vm5 = vcmask 1041409   ;;  %s7198_s19 = smov [#allocation4]   ;;  %s4838_s23 = sshll.u32 %s9571_s7, 4  ;;  %s4839_s23 = int_to_ptr.hbm [resolvable:$true] %s4838_s23 }
  0x14   :  { %2209 = vmatpush.bf16.msra.mxu2 %v6930_v18  ;;  %v6929_v22 = vld [vmem:[%s9565_s1 + $0x90] sm:$0xff]  ;;  %v6928_v26 = vld [vmem:[%s9565_s1 + $0x88] sm:$0xff]  ;;  %v6919_v29 = vld [vmem:[%s9565_s1 + $0x40] sm:$0xff]  ;;  %s4836_s20 = sshll.u32 %s7198_s19, 4  ;;  %s4837_s20 = int_to_ptr.vmem [resolvable:$true] %s4836_s20 }
  0x15   :  { %2272 = vmatpush.bf16.msra.mxu3 %v6938_v19  ;;  %v6937_v23 = vld [vmem:[%s9565_s1 + $0xd0] sm:$0xff]  ;;  %v6936_v27 = vld [vmem:[%s9565_s1 + $0xc8] sm:$0xff]  ;;  %v6927_v30 = vld [vmem:[%s9565_s1 + $0x80] sm:$0xff] }
  0x16   :  { %2084 = vmatpush.bf16.msra.mxu0 %v6913_v20  ;;  %v6935_v31 = vld [vmem:[%s9565_s1 + $0xc0] sm:$0xff]  ;;  %v4857_v36 = vld [vmem:[%s9564_s0 + $0x8] sm:$0xf]  ;;  %v6752_v38 = vld [vmem:[%s9564_s0 + $0xc] sm:$0xf] }
  0x17   :  { %2147 = vmatpush.bf16.msra.mxu1 %v6921_v21  ;;  %v4849_v32 = vld [vmem:[%s9564_s0] sm:$0xf]  ;;  %v6751_v34 = vld [vmem:[%s9564_s0 + $0x4] sm:$0xf]  ;;  %v6760_v37 = vld [vmem:[%s9564_s0 + $0x44] sm:$0xf0] }
  0x18   :  { %2210 = vmatpush.bf16.msra.mxu2 %v6929_v22  ;;  %v6759_v33 = vld [vmem:[%s9564_s0 + $0x3c] sm:$0xf0]  ;;  %v4851_v35 = vld [vmem:[%s9564_s0 + $0x40] sm:$0xf0]  ;;  %v4859_v39 = vld [vmem:[%s9564_s0 + $0x48] sm:$0xf0]  ;;  %v4858_v44 = vor.u32 %v6760_v37, %v4857_v36 }
  0x19   :  { %2273 = vmatpush.bf16.msra.mxu3 %v6937_v23  ;;  %v6966_v40 = vld [vmem:[%s9565_s1 + $0x1b8] sm:$0xff]  ;;  %v4850_v42 = vor.u32 %v6759_v33, %v4849_v32  ;;  %v4854_v43 = vor.u32 %v6751_v34, %v4851_v35  ;;  %v4862_v45 = vor.u32 %v6752_v38, %v4859_v39  ;;  %v6965_v48 = vld [vmem:[%s9565_s1 + $0x1b0] sm:$0xff]  ;;  %v4913_v52 = vld [vmem:[%s9564_s0 + $0x80] sm:$0xf] }
  0x1a   :  { %2085 = vmatpush.bf16.msra.mxu0 %v6912_v24  ;;  %v6950_v41 = vld [vmem:[%s9565_s1 + $0x138] sm:$0xff]  ;;  %v6949_v49 = vld [vmem:[%s9565_s1 + $0x130] sm:$0xff]  ;;  %v6775_v53 = vld [vmem:[%s9564_s0 + $0xbc] sm:$0xf0] }
  0x1b   :  { %2148 = vmatpush.bf16.msra.mxu1 %v6920_v25  ;;  %v6974_v46 = vld [vmem:[%s9565_s1 + $0x1f8] sm:$0xff]  ;;  %v6973_v50 = vld [vmem:[%s9565_s1 + $0x1f0] sm:$0xff]  ;;  %v6767_v54 = vld [vmem:[%s9564_s0 + $0x84] sm:$0xf]  ;;  %v4914_v60 = vor.u32 %v6775_v53, %v4913_v52 }
  0x1c   :  { %2211 = vmatpush.bf16.msra.mxu2 %v6928_v26  ;;  %v6958_v47 = vld [vmem:[%s9565_s1 + $0x178] sm:$0xff]  ;;  %v6957_v51 = vld [vmem:[%s9565_s1 + $0x170] sm:$0xff]  ;;  %v4915_v55 = vld [vmem:[%s9564_s0 + $0xc0] sm:$0xf0] }
  0x1d   :  { %2274 = vmatpush.bf16.msra.mxu3 %v6936_v27  ;;  %v4921_v56 = vld [vmem:[%s9564_s0 + $0x88] sm:$0xf]  ;;  %v6768_v58 = vld [vmem:[%s9564_s0 + $0x8c] sm:$0xf]  ;;  %v4918_v61 = vor.u32 %v6767_v54, %v4915_v55  ;;  %v4977_v4 = vld [vmem:[%s9564_s0 + $0x100] sm:$0xf] }
  0x1e   :  { %2086 = vmatpush.bf16.msra.mxu0 %v6911_v28  ;;  %v6776_v57 = vld [vmem:[%s9564_s0 + $0xc4] sm:$0xf0]  ;;  %v4923_v59 = vld [vmem:[%s9564_s0 + $0xc8] sm:$0xf0]  ;;  %v6791_v5 = vld [vmem:[%s9564_s0 + $0x13c] sm:$0xf0] }
  0x1f   :  { %2149 = vmatpush.bf16.msra.mxu1 %v6919_v29  ;;  %v4922_v62 = vor.u32 %v6776_v57, %v4921_v56  ;;  %v4926_v63 = vor.u32 %v6768_v58, %v4923_v59  ;;  %v6964_v0 = vld [vmem:[%s9565_s1 + $0x1a8] sm:$0xff]  ;;  %v6783_v6 = vld [vmem:[%s9564_s0 + $0x104] sm:$0xf]  ;;  %v4978_v12 = vor.u32 %v6791_v5, %v4977_v4  ;;  %v5041_v17 = vld [vmem:[%s9564_s0 + $0x180] sm:$0xf] }
  0x20   :  { %2212 = vmatpush.bf16.msra.mxu2 %v6927_v30  ;;  %v6948_v1 = vld [vmem:[%s9565_s1 + $0x128] sm:$0xff]  ;;  %v4979_v7 = vld [vmem:[%s9564_s0 + $0x140] sm:$0xf0]  ;;  %v6807_v18 = vld [vmem:[%s9564_s0 + $0x1bc] sm:$0xf0] }
  0x21   :  { %2275 = vmatpush.bf16.msra.mxu3 %v6935_v31  ;;  %2087 = vmatmul.bf16.vlgmr.msra.gmra.mxu0 %v4850_v42  ;;  %v6972_v2 = vld [vmem:[%s9565_s1 + $0x1e8] sm:$0xff]  ;;  %v4982_v13 = vor.u32 %v6783_v6, %v4979_v7  ;;  %v6963_v16 = vld [vmem:[%s9565_s1 + $0x1a0] sm:$0xff]  ;;  %v5042_v25 = vor.u32 %v6807_v18, %v5041_v17 }
  0x22   :  { %2331 = vmatpush.bf16.msrb.mxu0 %v6950_v41  ;;  %2150 = vmatmul.bf16.vlgmr.msra.gmra.mxu1 %v4854_v43  ;;  %v6956_v3 = vld [vmem:[%s9565_s1 + $0x168] sm:$0xff]  ;;  %v6799_v19 = vld [vmem:[%s9564_s0 + $0x184] sm:$0xf]  ;;  %v5105_v32 = vld [vmem:[%s9564_s0 + $0x200] sm:$0xf] }
  0x23   :  { %2213 = vmatmul.bf16.vlgmr.msra.gmra.mxu2 %v4858_v44  ;;  %2394 = vmatpush.bf16.msrb.mxu1 %v6958_v47  ;;  %v4985_v8 = vld [vmem:[%s9564_s0 + $0x108] sm:$0xf]  ;;  %v6784_v10 = vld [vmem:[%s9564_s0 + $0x10c] sm:$0xf]  ;;  %v5043_v20 = vld [vmem:[%s9564_s0 + $0x1c0] sm:$0xf0] }
  0x24   :  { %2457 = vmatpush.bf16.msrb.mxu2 %v6966_v40  ;;  %2276 = vmatmul.bf16.vlgmr.msra.gmra.mxu3 %v4862_v45  ;;  %v6792_v9 = vld [vmem:[%s9564_s0 + $0x144] sm:$0xf0]  ;;  %v4987_v11 = vld [vmem:[%s9564_s0 + $0x148] sm:$0xf0]  ;;  %v5046_v26 = vor.u32 %v6799_v19, %v5043_v20  ;;  %v6947_v29 = vld [vmem:[%s9565_s1 + $0x120] sm:$0xff] }
  0x25   :  { %2520 = vmatpush.bf16.msrb.mxu3 %v6974_v46  ;;  %v4986_v14 = vor.u32 %v6792_v9, %v4985_v8  ;;  %v4990_v15 = vor.u32 %v6784_v10, %v4987_v11  ;;  %v5049_v21 = vld [vmem:[%s9564_s0 + $0x188] sm:$0xf]  ;;  %v6800_v23 = vld [vmem:[%s9564_s0 + $0x18c] sm:$0xf]  ;;  %v6971_v30 = vld [vmem:[%s9565_s1 + $0x1e0] sm:$0xff] }
  0x26   :  { %2332 = vmatpush.bf16.msrb.mxu0 %v6949_v49  ;;  %v6808_v22 = vld [vmem:[%s9564_s0 + $0x1c4] sm:$0xf0]  ;;  %v5051_v24 = vld [vmem:[%s9564_s0 + $0x1c8] sm:$0xf0]  ;;  %v6955_v31 = vld [vmem:[%s9565_s1 + $0x160] sm:$0xff] }
  0x27   :  { %2395 = vmatpush.bf16.msrb.mxu1 %v6957_v51  ;;  %v5050_v27 = vor.u32 %v6808_v22, %v5049_v21  ;;  %v5054_v28 = vor.u32 %v6800_v23, %v5051_v24  ;;  %v6823_v33 = vld [vmem:[%s9564_s0 + $0x23c] sm:$0xf0]  ;;  %v6815_v34 = vld [vmem:[%s9564_s0 + $0x204] sm:$0xf]  ;;  %v5113_v36 = vld [vmem:[%s9564_s0 + $0x208] sm:$0xf] }
  0x28   :  { %2458 = vmatpush.bf16.msrb.mxu2 %v6965_v48  ;;  %v5107_v35 = vld [vmem:[%s9564_s0 + $0x240] sm:$0xf0]  ;;  %v6824_v37 = vld [vmem:[%s9564_s0 + $0x244] sm:$0xf0]  ;;  %v6816_v38 = vld [vmem:[%s9564_s0 + $0x20c] sm:$0xf]  ;;  %v5106_v40 = vor.u32 %v6823_v33, %v5105_v32 }
  0x29   :  { %2521 = vmatpush.bf16.msrb.mxu3 %v6973_v50  ;;  %v5115_v39 = vld [vmem:[%s9564_s0 + $0x248] sm:$0xf0]  ;;  %v5110_v41 = vor.u32 %v6815_v34, %v5107_v35  ;;  %v5114_v42 = vor.u32 %v6824_v37, %v5113_v36  ;;  %v6962_v44 = vld [vmem:[%s9565_s1 + $0x198] sm:$0xff]  ;;  %v5169_v48 = vld [vmem:[%s9564_s0 + $0x280] sm:$0xf] }
  0x2a   :  { %2333 = vmatpush.bf16.msrb.mxu0 %v6948_v1  ;;  %v5118_v43 = vor.u32 %v6816_v38, %v5115_v39  ;;  %v6946_v45 = vld [vmem:[%s9565_s1 + $0x118] sm:$0xff]  ;;  %v6839_v49 = vld [vmem:[%s9564_s0 + $0x2bc] sm:$0xf0]  ;;  %v6831_v50 = vld [vmem:[%s9564_s0 + $0x284] sm:$0xf] }
  0x2b   :  { %2396 = vmatpush.bf16.msrb.mxu1 %v6956_v3  ;;  %v6970_v46 = vld [vmem:[%s9565_s1 + $0x1d8] sm:$0xff]  ;;  %v5171_v51 = vld [vmem:[%s9564_s0 + $0x2c0] sm:$0xf0]  ;;  %v5177_v52 = vld [vmem:[%s9564_s0 + $0x288] sm:$0xf]  ;;  %v5170_v56 = vor.u32 %v6839_v49, %v5169_v48 }
  0x2c   :  { %2459 = vmatpush.bf16.msrb.mxu2 %v6964_v0  ;;  %v6954_v47 = vld [vmem:[%s9565_s1 + $0x158] sm:$0xff]  ;;  %v6840_v53 = vld [vmem:[%s9564_s0 + $0x2c4] sm:$0xf0]  ;;  %v6832_v54 = vld [vmem:[%s9564_s0 + $0x28c] sm:$0xf]  ;;  %v5174_v57 = vor.u32 %v6831_v50, %v5171_v51 }
  0x2d   :  { %2522 = vmatpush.bf16.msrb.mxu3 %v6972_v2  ;;  %v5179_v55 = vld [vmem:[%s9564_s0 + $0x2c8] sm:$0xf0]  ;;  %v5178_v58 = vor.u32 %v6840_v53, %v5177_v52  ;;  %v6855_v0 = vld [vmem:[%s9564_s0 + $0x33c] sm:$0xf0]  ;;  %v6847_v1 = vld [vmem:[%s9564_s0 + $0x304] sm:$0xf] }
  0x2e   :  { %2334 = vmatpush.bf16.msrb.mxu0 %v6947_v29  ;;  %v5182_v59 = vor.u32 %v6832_v54, %v5179_v55  ;;  %v5235_v2 = vld [vmem:[%s9564_s0 + $0x340] sm:$0xf0]  ;;  %v5241_v3 = vld [vmem:[%s9564_s0 + $0x308] sm:$0xf]  ;;  %v6848_v5 = vld [vmem:[%s9564_s0 + $0x30c] sm:$0xf] }
  0x2f   :  { %2397 = vmatpush.bf16.msrb.mxu1 %v6955_v31  ;;  %v6856_v4 = vld [vmem:[%s9564_s0 + $0x344] sm:$0xf0]  ;;  %v5243_v6 = vld [vmem:[%s9564_s0 + $0x348] sm:$0xf0]  ;;  %v5238_v8 = vor.u32 %v6847_v1, %v5235_v2  ;;  %v6953_v11 = vld [vmem:[%s9565_s1 + $0x150] sm:$0xff] }
  0x30   :  { %2460 = vmatpush.bf16.msrb.mxu2 %v6963_v16  ;;  %v5242_v9 = vor.u32 %v6856_v4, %v5241_v3  ;;  %v5246_v10 = vor.u32 %v6848_v5, %v5243_v6  ;;  %v5305_v16 = vld [vmem:[%s9564_s0 + $0x388] sm:$0xf]  ;;  %v6864_v18 = vld [vmem:[%s9564_s0 + $0x38c] sm:$0xf]  ;;  %v5361_v29 = vld [vmem:[%s9564_s0 + $0x400] sm:$0xf] }
  0x31   :  { %2092 = vmatmul.bf16.gmra.mxu0 %v4914_v60  ;;  %2523 = vmatpush.bf16.msrb.mxu3 %v6971_v30  ;;  %v6961_v60 = vld [vmem:[%s9565_s1 + $0x190] sm:$0xff]  ;;  %v6872_v17 = vld [vmem:[%s9564_s0 + $0x3c4] sm:$0xf0]  ;;  %v5307_v19 = vld [vmem:[%s9564_s0 + $0x3c8] sm:$0xf0] }
  0x32   :  { %2155 = vmatmul.bf16.gmra.mxu1 %v4918_v61  ;;  %2335 = vmatpush.bf16.msrb.mxu0 %v6946_v45  ;;  %v6945_v61 = vld [vmem:[%s9565_s1 + $0x110] sm:$0xff]  ;;  %v5306_v22 = vor.u32 %v6872_v17, %v5305_v16  ;;  %v5310_v23 = vor.u32 %v6864_v18, %v5307_v19  ;;  %v6960_v24 = vld [vmem:[%s9565_s1 + $0x188] sm:$0xff]  ;;  %v6887_v30 = vld [vmem:[%s9564_s0 + $0x43c] sm:$0xf0] }
  0x33   :  { %2218 = vmatmul.bf16.gmra.mxu2 %v4922_v62  ;;  %2398 = vmatpush.bf16.msrb.mxu1 %v6954_v47  ;;  %v6969_v62 = vld [vmem:[%s9565_s1 + $0x1d0] sm:$0xff]  ;;  %v6879_v31 = vld [vmem:[%s9564_s0 + $0x404] sm:$0xf]  ;;  %v5369_v33 = vld [vmem:[%s9564_s0 + $0x408] sm:$0xf]  ;;  %v5362_v37 = vor.u32 %v6887_v30, %v5361_v29 }
  0x34   :  { %2281 = vmatmul.bf16.gmra.mxu3 %v4926_v63  ;;  %2461 = vmatpush.bf16.msrb.mxu2 %v6962_v44  ;;  %v5233_v63 = vld [vmem:[%s9564_s0 + $0x300] sm:$0xf]  ;;  %v5363_v32 = vld [vmem:[%s9564_s0 + $0x440] sm:$0xf0]  ;;  %v6888_v34 = vld [vmem:[%s9564_s0 + $0x444] sm:$0xf0] }
  0x35   :  { %2524 = vmatpush.bf16.msrb.mxu3 %v6970_v46  ;;  %v5234_v7 = vor.u32 %v6855_v0, %v5233_v63  ;;  %v6880_v35 = vld [vmem:[%s9564_s0 + $0x40c] sm:$0xf]  ;;  %v5366_v38 = vor.u32 %v6879_v31, %v5363_v32  ;;  %v5425_v52 = vld [vmem:[%s9564_s0 + $0x480] sm:$0xf]  ;;  %v6895_v54 = vld [vmem:[%s9564_s0 + $0x484] sm:$0xf] }
  0x36   :  { %2336 = vmatpush.bf16.msrb.mxu0 %v6945_v61  ;;  %v5371_v36 = vld [vmem:[%s9564_s0 + $0x448] sm:$0xf0]  ;;  %v6903_v53 = vld [vmem:[%s9564_s0 + $0x4bc] sm:$0xf0] }
  0x37   :  { %2399 = vmatpush.bf16.msrb.mxu1 %v6953_v11  ;;  %v6951_v61 = vld [vmem:[%s9565_s1 + $0x140] sm:$0xff]  ;;  %v6896_v63 = vld [vmem:[%s9564_s0 + $0x48c] sm:$0xf]  ;;  %v5426_v3 = vor.u32 %v6903_v53, %v5425_v52  ;;  %v4865_v53 = vld [vmem:[%s9564_s0 + $0x10] sm:$0xf] }
  0x38   :  { %2462 = vmatpush.bf16.msrb.mxu2 %v6961_v60  ;;  %v5433_v60 = vld [vmem:[%s9564_s0 + $0x488] sm:$0xf]  ;;  %v5435_v0 = vld [vmem:[%s9564_s0 + $0x4c8] sm:$0xf0]  ;;  %v187_v18 = vld [vmem:[%s9564_s0 + $0x500] sm:$0x11] }
  0x39   :  { %2525 = vmatpush.bf16.msrb.mxu3 %v6969_v62  ;;  %v6904_v62 = vld [vmem:[%s9564_s0 + $0x4c4] sm:$0xf0] }
  0x3c   :  { %2463 = vmatpush.bf16.msrb.mxu2 %v6960_v24  ;;  %v944_v24 = vunpack.c.h.b16 %v187_v18 }
  0x3e   :  { %v1120_v31 = vpack.c.b16 %v944_v24, %v944_v24  ;;  %v6989_v24 = vld [vmem:[%s9565_s1 + $0x270] sm:$0xff] }
  0x41   :  { %2097 = vmatmul.bf16.gmra.mxu0 %v4978_v12  ;;  %v5297_v12 = vld [vmem:[%s9564_s0 + $0x380] sm:$0xf] }
  0x42   :  { %2160 = vmatmul.bf16.gmra.mxu1 %v4982_v13  ;;  %v6871_v13 = vld [vmem:[%s9564_s0 + $0x3bc] sm:$0xf0] }
  0x43   :  { %2223 = vmatmul.bf16.gmra.mxu2 %v4986_v14  ;;  %v6863_v14 = vld [vmem:[%s9564_s0 + $0x384] sm:$0xf]  ;;  %v5298_v20 = vor.u32 %v6871_v13, %v5297_v12 }
  0x44   :  { %2286 = vmatmul.bf16.gmra.mxu3 %v4990_v15  ;;  %v5299_v15 = vld [vmem:[%s9564_s0 + $0x3c0] sm:$0xf0] }
  0x45   :  { %v5302_v21 = vor.u32 %v6863_v14, %v5299_v15 }
  0x51   :  { %2102 = vmatmul.bf16.gmra.mxu0 %v5042_v25  ;;  %v6944_v25 = vld [vmem:[%s9565_s1 + $0x108] sm:$0xff] }
  0x52   :  { %2165 = vmatmul.bf16.gmra.mxu1 %v5046_v26  ;;  %v6968_v26 = vld [vmem:[%s9565_s1 + $0x1c8] sm:$0xff]  ;;  %2337 = vmatpush.bf16.msrb.mxu0 %v6944_v25 }
  0x53   :  { %2228 = vmatmul.bf16.gmra.mxu2 %v5050_v27  ;;  %2526 = vmatpush.bf16.msrb.mxu3 %v6968_v26  ;;  %v6952_v27 = vld [vmem:[%s9565_s1 + $0x148] sm:$0xff] }
  0x54   :  { %2291 = vmatmul.bf16.gmra.mxu3 %v5054_v28  ;;  %v7614_v28 = vld [vmem:[%s9566_s2] ss:$0 sm:$0xff]  ;;  %2400 = vmatpush.bf16.msrb.mxu1 %v6952_v27 }
  0x58   :  { %2401 = vmatpush.bf16.msrb.mxu1 %v6951_v61 }
  0x61   :  { %2107 = vmatmul.bf16.gmra.mxu0 %v5106_v40 }
  0x62   :  { %2170 = vmatmul.bf16.gmra.mxu1 %v5110_v41  ;;  %v5370_v41 = vor.u32 %v6888_v34, %v5369_v33 }
  0x63   :  { %2233 = vmatmul.bf16.gmra.mxu2 %v5114_v42  ;;  %v5374_v42 = vor.u32 %v6880_v35, %v5371_v36 }
  0x64   :  { %2296 = vmatmul.bf16.gmra.mxu3 %v5118_v43 }
  0x71   :  { %2112 = vmatmul.bf16.gmra.mxu0 %v5170_v56  ;;  %v6959_v56 = vld [vmem:[%s9565_s1 + $0x180] sm:$0xff] }
  0x72   :  { %2175 = vmatmul.bf16.gmra.mxu1 %v5174_v57  ;;  %v6943_v57 = vld [vmem:[%s9565_s1 + $0x100] sm:$0xff]  ;;  %2464 = vmatpush.bf16.msrb.mxu2 %v6959_v56  ;;  %v4867_v56 = vld [vmem:[%s9564_s0 + $0x50] sm:$0xf0] }
  0x73   :  { %2238 = vmatmul.bf16.gmra.mxu2 %v5178_v58  ;;  %v6967_v58 = vld [vmem:[%s9565_s1 + $0x1c0] sm:$0xff]  ;;  %2338 = vmatpush.bf16.msrb.mxu0 %v6943_v57  ;;  %v4873_v57 = vld [vmem:[%s9564_s0 + $0x18] sm:$0xf] }
  0x74   :  { %2301 = vmatmul.bf16.gmra.mxu3 %v5182_v59  ;;  %v5427_v59 = vld [vmem:[%s9564_s0 + $0x4c0] sm:$0xf0] }
  0x75   :  { %2527 = vmatpush.bf16.msrb.mxu3 %v6967_v58  ;;  %v5430_v4 = vor.u32 %v6895_v54, %v5427_v59  ;;  %v6761_v54 = vld [vmem:[%s9564_s0 + $0x4c] sm:$0xf0]  ;;  %v6762_v58 = vld [vmem:[%s9564_s0 + $0x54] sm:$0xf0]  ;;  %v6754_v59 = vld [vmem:[%s9564_s0 + $0x1c] sm:$0xf] }
  0x81   :  { %2117 = vmatmul.bf16.gmra.mxu0 %v5234_v7 }
  0x82   :  { %2180 = vmatmul.bf16.gmra.mxu1 %v5238_v8  ;;  %v5434_v8 = vor.u32 %v6904_v62, %v5433_v60  ;;  %v4875_v60 = vld [vmem:[%s9564_s0 + $0x58] sm:$0xf0] }
  0x83   :  { %2243 = vmatmul.bf16.gmra.mxu2 %v5242_v9  ;;  %v5438_v9 = vor.u32 %v6896_v63, %v5435_v0  ;;  %v4866_v63 = vor.u32 %v6761_v54, %v4865_v53  ;;  %v4993_v54 = vld [vmem:[%s9564_s0 + $0x110] sm:$0xf] }
  0x84   :  { %2306 = vmatmul.bf16.gmra.mxu3 %v5246_v10 }
  0x91   :  { %2122 = vmatmul.bf16.gmra.mxu0 %v5298_v20  ;;  %v188_v20 = vld [vmem:[%s9564_s0 + $0x508] sm:$0x11] }
  0x92   :  { %2185 = vmatmul.bf16.gmra.mxu1 %v5302_v21  ;;  %v945_v25 = vunpack.c.l.b16 %v188_v20  ;;  %v946_v26 = vunpack.c.h.b16 %v188_v20 }
  0x93   :  { %2248 = vmatmul.bf16.gmra.mxu2 %v5306_v22 }
  0x94   :  { %2311 = vmatmul.bf16.gmra.mxu3 %v5310_v23  ;;  %v943_v23 = vunpack.c.l.b16 %v187_v18  ;;  %v1121_v35 = vpack.c.b16 %v945_v25, %v945_v25  ;;  %v1122_v36 = vpack.c.b16 %v946_v26, %v946_v26  ;;  %v6981_v18 = vld [vmem:[%s9565_s1 + $0x230] sm:$0xff] }
  0x95   :  { %v6769_v25 = vld [vmem:[%s9564_s0 + $0x94] sm:$0xf] }
  0x96   :  { %v1119_v30 = vpack.c.b16 %v943_v23, %v943_v23  ;;  %v6777_v23 = vld [vmem:[%s9564_s0 + $0xcc] sm:$0xf0]  ;;  %v4931_v26 = vld [vmem:[%s9564_s0 + $0xd0] sm:$0xf0] }
  0x9e   :  { %v2088_v39 = vpop.f32.mrf.mxu0 }
  0x9f   :  { %v2151_v40 = vpop.f32.mrf.mxu1  ;;  %v2089_v43 = vadd.f32 %v7614_v28, %v2088_v39  ;;  %v6998_v39 = vld [vmem:[%s9565_s1 + $0x2b8] sm:$0xff] }
  0xa0   :  { %2709 = vmatpush.bf16.msra.mxu2 %v6998_v39 }
  0xa1   :  { %v2152_v44 = vadd.f32 %v2151_v40, %v2089_v43  ;;  %2127 = vmatmul.bf16.gmra.mxu0 %v5362_v37  ;;  %v6990_v43 = vld [vmem:[%s9565_s1 + $0x278] sm:$0xff] }
  0xa2   :  { %2190 = vmatmul.bf16.gmra.mxu1 %v5366_v38 }
  0xa3   :  { %2253 = vmatmul.bf16.gmra.mxu2 %v5370_v41  ;;  %v6982_v41 = vld [vmem:[%s9565_s1 + $0x238] sm:$0xff]  ;;  %2646 = vmatpush.bf16.msra.mxu1 %v6990_v43 }
  0xa4   :  { %2316 = vmatmul.bf16.gmra.mxu3 %v5374_v42  ;;  %v7006_v42 = vld [vmem:[%s9565_s1 + $0x2f8] sm:$0xff]  ;;  %2583 = vmatpush.bf16.msra.mxu0 %v6982_v41 }
  0xa5   :  { %2772 = vmatpush.bf16.msra.mxu3 %v7006_v42 }
  0xa6   :  { %v2214_v45 = vpop.f32.mrf.mxu2  ;;  %v2090_v48 = vpop.f32.mrf.mxu0 }
  0xa7   :  { %v2277_v46 = vpop.f32.mrf.mxu3  ;;  %v2215_v47 = vadd.f32 %v2214_v45, %v2152_v44  ;;  %v2153_v49 = vpop.f32.mrf.mxu1  ;;  %v2091_v50 = vadd.f32 %v7614_v28, %v2090_v48  ;;  %2647 = vmatpush.bf16.msra.mxu1 %v6989_v24 }
  0xa8   :  { %2584 = vmatpush.bf16.msra.mxu0 %v6981_v18 }
  0xa9   :  { %v7642_v51 = vadd.f32 %v2277_v46, %v2215_v47  ;;  %v2154_v55 = vadd.f32 %v2153_v49, %v2091_v50 }
  0xae   :  { %v2216_v1 = vpop.f32.mrf.mxu2  ;;  %v2093_v6 = vpop.f32.mrf.mxu0 }
  0xaf   :  { %v2279_v2 = vpop.f32.mrf.mxu3  ;;  %v2217_v5 = vadd.f32 %v2216_v1, %v2154_v55  ;;  %v2156_v7 = vpop.f32.mrf.mxu1  ;;  %v2094_v10 = vadd.f32 %v7614_v28, %v2093_v6  ;;  %v6753_v55 = vld [vmem:[%s9564_s0 + $0x14] sm:$0xf] }
  0xb0   :  { %v4870_v0 = vor.u32 %v6753_v55, %v4867_v56  ;;  %v6793_v55 = vld [vmem:[%s9564_s0 + $0x14c] sm:$0xf0] }
  0xb1   :  { %v7681_v11 = vadd.f32 %v2279_v2, %v2217_v5  ;;  %v2157_v12 = vadd.f32 %v2156_v7, %v2094_v10  ;;  %2132 = vmatmul.bf16.gmra.mxu0 %v5426_v3  ;;  %v4878_v5 = vor.u32 %v6754_v59, %v4875_v60  ;;  %v7004_v59 = vld [vmem:[%s9565_s1 + $0x2e8] sm:$0xff]  ;;  %v6785_v60 = vld [vmem:[%s9564_s0 + $0x114] sm:$0xf] }
  0xb2   :  { %2195 = vmatmul.bf16.gmra.mxu1 %v5430_v4  ;;  %v4874_v4 = vor.u32 %v6762_v58, %v4873_v57  ;;  %v6996_v57 = vld [vmem:[%s9565_s1 + $0x2a8] sm:$0xff] }
  0xb3   :  { %2258 = vmatmul.bf16.gmra.mxu2 %v5434_v8  ;;  %v6980_v58 = vld [vmem:[%s9565_s1 + $0x228] sm:$0xff] }
  0xb4   :  { %2321 = vmatmul.bf16.gmra.mxu3 %v5438_v9  ;;  %v6997_v9 = vld [vmem:[%s9565_s1 + $0x2b0] sm:$0xff]  ;;  %2585 = vmatpush.bf16.msra.mxu0 %v6980_v58 }
  0xb5   :  { %2710 = vmatpush.bf16.msra.mxu2 %v6997_v9 }
  0xb6   :  { %v2219_v13 = vpop.f32.mrf.mxu2  ;;  %v2095_v16 = vpop.f32.mrf.mxu0 }
  0xb7   :  { %v2282_v14 = vpop.f32.mrf.mxu3  ;;  %v2220_v15 = vadd.f32 %v2219_v13, %v2157_v12  ;;  %v2158_v17 = vpop.f32.mrf.mxu1  ;;  %v2096_v19 = vadd.f32 %v7614_v28, %v2095_v16 }
  0xb9   :  { %v7690_v21 = vadd.f32 %v2282_v14, %v2220_v15  ;;  %v2159_v22 = vadd.f32 %v2158_v17, %v2096_v19  ;;  %v7005_v19 = vld [vmem:[%s9565_s1 + $0x2f0] sm:$0xff]  ;;  %2711 = vmatpush.bf16.msra.mxu2 %v6996_v57 }
  0xba   :  { %2773 = vmatpush.bf16.msra.mxu3 %v7005_v19 }
  0xbe   :  { %v2221_v27 = vpop.f32.mrf.mxu2  ;;  %v2098_v33 = vpop.f32.mrf.mxu0  ;;  %2774 = vmatpush.bf16.msra.mxu3 %v7004_v59 }
  0xbf   :  { %v2284_v29 = vpop.f32.mrf.mxu3  ;;  %v2222_v32 = vadd.f32 %v2221_v27, %v2159_v22  ;;  %v2161_v34 = vpop.f32.mrf.mxu1  ;;  %v2099_v37 = vadd.f32 %v7614_v28, %v2098_v33  ;;  %v4929_v22 = vld [vmem:[%s9564_s0 + $0x90] sm:$0xf]  ;;  %v4937_v27 = vld [vmem:[%s9564_s0 + $0x98] sm:$0xf] }
  0xc1   :  { %v7693_v38 = vadd.f32 %v2284_v29, %v2222_v32  ;;  %v2162_v40 = vadd.f32 %v2161_v34, %v2099_v37  ;;  %2137 = vmatmul.bf16.gmra.mxu0 %v1119_v30  ;;  %v6778_v29 = vld [vmem:[%s9564_s0 + $0xd4] sm:$0xf0]  ;;  %v6770_v30 = vld [vmem:[%s9564_s0 + $0x9c] sm:$0xf]  ;;  %v4930_v34 = vor.u32 %v6777_v23, %v4929_v22 }
  0xc2   :  { %2200 = vmatmul.bf16.gmra.mxu1 %v1120_v31  ;;  %v4939_v31 = vld [vmem:[%s9564_s0 + $0xd8] sm:$0xf0] }
  0xc3   :  { %2263 = vmatmul.bf16.gmra.mxu2 %v1121_v35  ;;  %v4934_v35 = vor.u32 %v6769_v25, %v4931_v26  ;;  %v4942_v41 = vor.u32 %v6770_v30, %v4939_v31  ;;  %v6801_v30 = vld [vmem:[%s9564_s0 + $0x194] sm:$0xf] }
  0xc4   :  { %2326 = vmatmul.bf16.gmra.mxu3 %v1122_v36  ;;  %v5059_v31 = vld [vmem:[%s9564_s0 + $0x1d0] sm:$0xf0] }
  0xc6   :  { %v2224_v44 = vpop.f32.mrf.mxu2  ;;  %v2100_v47 = vpop.f32.mrf.mxu0 }
  0xc7   :  { %v2287_v45 = vpop.f32.mrf.mxu3  ;;  %v2225_v46 = vadd.f32 %v2224_v44, %v2162_v40  ;;  %v2163_v48 = vpop.f32.mrf.mxu1  ;;  %v2101_v49 = vadd.f32 %v7614_v28, %v2100_v47  ;;  %v4938_v40 = vor.u32 %v6778_v29, %v4937_v27  ;;  %v5057_v27 = vld [vmem:[%s9564_s0 + $0x190] sm:$0xf] }
  0xc8   :  { %v6809_v29 = vld [vmem:[%s9564_s0 + $0x1cc] sm:$0xf0] }
  0xc9   :  { %v7708_v50 = vadd.f32 %v2287_v45, %v2225_v46  ;;  %v2164_v52 = vadd.f32 %v2163_v48, %v2101_v49 }
  0xce   :  { %v2226_v61 = vpop.f32.mrf.mxu2  ;;  %v2103_v2 = vpop.f32.mrf.mxu0 }
  0xcf   :  { %v2289_v62 = vpop.f32.mrf.mxu3  ;;  %v2227_v1 = vadd.f32 %v2226_v61, %v2164_v52  ;;  %v2166_v3 = vpop.f32.mrf.mxu1  ;;  %v2104_v6 = vadd.f32 %v7614_v28, %v2103_v2  ;;  %v4995_v61 = vld [vmem:[%s9564_s0 + $0x150] sm:$0xf0] }
  0xd1   :  { %v7735_v7 = vadd.f32 %v2289_v62, %v2227_v1  ;;  %v2167_v8 = vadd.f32 %v2166_v3, %v2104_v6  ;;  %2339 = vmatmul.bf16.vlgmr.msrb.gmra.mxu0 %v4866_v63  ;;  %v5001_v62 = vld [vmem:[%s9564_s0 + $0x118] sm:$0xf]  ;;  %v5003_v1 = vld [vmem:[%s9564_s0 + $0x158] sm:$0xf0] }
  0xd2   :  { %2402 = vmatmul.bf16.vlgmr.msrb.gmra.mxu1 %v4870_v0  ;;  %v6794_v63 = vld [vmem:[%s9564_s0 + $0x154] sm:$0xf0]  ;;  %v6786_v0 = vld [vmem:[%s9564_s0 + $0x11c] sm:$0xf] }
  0xd3   :  { %2465 = vmatmul.bf16.vlgmr.msrb.gmra.mxu2 %v4874_v4  ;;  %v4994_v4 = vor.u32 %v6793_v55, %v4993_v54  ;;  %v6979_v54 = vld [vmem:[%s9565_s1 + $0x220] sm:$0xff] }
  0xd4   :  { %2528 = vmatmul.bf16.vlgmr.msrb.gmra.mxu3 %v4878_v5  ;;  %v4998_v5 = vor.u32 %v6785_v60, %v4995_v61  ;;  %v7003_v55 = vld [vmem:[%s9565_s1 + $0x2e0] sm:$0xff]  ;;  %2586 = vmatpush.bf16.msra.mxu0 %v6979_v54 }
  0xd5   :  { %2775 = vmatpush.bf16.msra.mxu3 %v7003_v55 }
  0xd6   :  { %v2229_v10 = vpop.f32.mrf.mxu2  ;;  %v2105_v14 = vpop.f32.mrf.mxu0 }
  0xd7   :  { %v2292_v12 = vpop.f32.mrf.mxu3  ;;  %v2230_v13 = vadd.f32 %v2229_v10, %v2167_v8  ;;  %v2168_v15 = vpop.f32.mrf.mxu1  ;;  %v2106_v16 = vadd.f32 %v7614_v28, %v2105_v14  ;;  %v5002_v10 = vor.u32 %v6794_v63, %v5001_v62 }
  0xd9   :  { %v7741_v17 = vadd.f32 %v2292_v12, %v2230_v13  ;;  %v2169_v20 = vadd.f32 %v2168_v15, %v2106_v16  ;;  %v5006_v12 = vor.u32 %v6786_v0, %v5003_v1  ;;  %v6988_v15 = vld [vmem:[%s9565_s1 + $0x268] sm:$0xff]  ;;  %v5121_v1 = vld [vmem:[%s9564_s0 + $0x210] sm:$0xf] }
  0xda   :  { %2648 = vmatpush.bf16.msra.mxu1 %v6988_v15 }
  0xde   :  { %v2231_v32 = vpop.f32.mrf.mxu2  ;;  %v2108_v37 = vpop.f32.mrf.mxu0 }
  0xdf   :  { %v2294_v33 = vpop.f32.mrf.mxu3  ;;  %v2232_v36 = vadd.f32 %v2231_v32, %v2169_v20  ;;  %v2171_v39 = vpop.f32.mrf.mxu1  ;;  %v2109_v42 = vadd.f32 %v7614_v28, %v2108_v37  ;;  %v5065_v32 = vld [vmem:[%s9564_s0 + $0x198] sm:$0xf] }
  0xe1   :  { %v7777_v43 = vadd.f32 %v2294_v33, %v2232_v36  ;;  %v2172_v44 = vadd.f32 %v2171_v39, %v2109_v42  ;;  %2344 = vmatmul.bf16.gmra.mxu0 %v4930_v34  ;;  %v6810_v33 = vld [vmem:[%s9564_s0 + $0x1d4] sm:$0xf0]  ;;  %v6802_v34 = vld [vmem:[%s9564_s0 + $0x19c] sm:$0xf]  ;;  %v5058_v39 = vor.u32 %v6809_v29, %v5057_v27 }
  0xe2   :  { %2407 = vmatmul.bf16.gmra.mxu1 %v4934_v35  ;;  %v5067_v35 = vld [vmem:[%s9564_s0 + $0x1d8] sm:$0xf0] }
  0xe3   :  { %2470 = vmatmul.bf16.gmra.mxu2 %v4938_v40  ;;  %v5062_v40 = vor.u32 %v6801_v30, %v5059_v31 }
  0xe4   :  { %2533 = vmatmul.bf16.gmra.mxu3 %v4942_v41 }
  0xe6   :  { %v2234_v45 = vpop.f32.mrf.mxu2  ;;  %v2110_v48 = vpop.f32.mrf.mxu0 }
  0xe7   :  { %v2297_v46 = vpop.f32.mrf.mxu3  ;;  %v2235_v47 = vadd.f32 %v2234_v45, %v2172_v44  ;;  %v2173_v49 = vpop.f32.mrf.mxu1  ;;  %v2111_v52 = vadd.f32 %v7614_v28, %v2110_v48  ;;  %v5066_v45 = vor.u32 %v6810_v33, %v5065_v32 }
  0xe9   :  { %v7780_v53 = vadd.f32 %v2297_v46, %v2235_v47  ;;  %v2174_v56 = vadd.f32 %v2173_v49, %v2111_v52  ;;  %v5070_v46 = vor.u32 %v6802_v34, %v5067_v35  ;;  %v6995_v52 = vld [vmem:[%s9565_s1 + $0x2a0] sm:$0xff]  ;;  %v5185_v35 = vld [vmem:[%s9564_s0 + $0x290] sm:$0xf] }
  0xea   :  { %2712 = vmatpush.bf16.msra.mxu2 %v6995_v52  ;;  %v5195_v52 = vld [vmem:[%s9564_s0 + $0x2d8] sm:$0xf0] }
  0xee   :  { %v2236_v2 = vpop.f32.mrf.mxu2  ;;  %v2113_v8 = vpop.f32.mrf.mxu0 }
  0xef   :  { %v2299_v3 = vpop.f32.mrf.mxu3  ;;  %v2237_v6 = vadd.f32 %v2236_v2, %v2174_v56  ;;  %v2176_v9 = vpop.f32.mrf.mxu1  ;;  %v2114_v13 = vadd.f32 %v7614_v28, %v2113_v8  ;;  %v6987_v56 = vld [vmem:[%s9565_s1 + $0x260] sm:$0xff]  ;;  %v6825_v2 = vld [vmem:[%s9564_s0 + $0x24c] sm:$0xf0]  ;;  %v6818_v8 = vld [vmem:[%s9564_s0 + $0x21c] sm:$0xf] }
  0xf0   :  { %2649 = vmatpush.bf16.msra.mxu1 %v6987_v56 }
  0xf1   :  { %v7816_v14 = vadd.f32 %v2299_v3, %v2237_v6  ;;  %v2177_v16 = vadd.f32 %v2176_v9, %v2114_v13  ;;  %2349 = vmatmul.bf16.gmra.mxu0 %v4994_v4  ;;  %v6817_v3 = vld [vmem:[%s9564_s0 + $0x214] sm:$0xf]  ;;  %v6826_v6 = vld [vmem:[%s9564_s0 + $0x254] sm:$0xf0]  ;;  %v5131_v9 = vld [vmem:[%s9564_s0 + $0x258] sm:$0xf0]  ;;  %v5122_v13 = vor.u32 %v6825_v2, %v5121_v1 }
  0xf2   :  { %2412 = vmatmul.bf16.gmra.mxu1 %v4998_v5  ;;  %v5123_v4 = vld [vmem:[%s9564_s0 + $0x250] sm:$0xf0]  ;;  %v5129_v5 = vld [vmem:[%s9564_s0 + $0x218] sm:$0xf] }
  0xf3   :  { %2475 = vmatmul.bf16.gmra.mxu2 %v5002_v10  ;;  %v5126_v15 = vor.u32 %v6817_v3, %v5123_v4 }
  0xf4   :  { %2538 = vmatmul.bf16.gmra.mxu3 %v5006_v12 }
  0xf6   :  { %v2239_v18 = vpop.f32.mrf.mxu2  ;;  %v2115_v22 = vpop.f32.mrf.mxu0 }
  0xf7   :  { %v2302_v19 = vpop.f32.mrf.mxu3  ;;  %v2240_v20 = vadd.f32 %v2239_v18, %v2177_v16  ;;  %v2178_v23 = vpop.f32.mrf.mxu1  ;;  %v2116_v24 = vadd.f32 %v7614_v28, %v2115_v22  ;;  %v5134_v22 = vor.u32 %v6818_v8, %v5131_v9 }
  0xf9   :  { %v7822_v25 = vadd.f32 %v2302_v19, %v2240_v20  ;;  %v2179_v26 = vadd.f32 %v2178_v23, %v2116_v24  ;;  %v5130_v20 = vor.u32 %v6826_v6, %v5129_v5 }
  0xfe   :  { %v2241_v36 = vpop.f32.mrf.mxu2  ;;  %v2118_v42 = vpop.f32.mrf.mxu0 }
  0xff   :  { %v2304_v37 = vpop.f32.mrf.mxu3  ;;  %v2242_v41 = vadd.f32 %v2241_v36, %v2179_v26  ;;  %v2181_v44 = vpop.f32.mrf.mxu1  ;;  %v2119_v47 = vadd.f32 %v7614_v28, %v2118_v42  ;;  %v6841_v36 = vld [vmem:[%s9564_s0 + $0x2cc] sm:$0xf0]  ;;  %v6986_v42 = vld [vmem:[%s9565_s1 + $0x258] sm:$0xff] }
 0x100   :  { %2650 = vmatpush.bf16.msra.mxu1 %v6986_v42  ;;  %v5186_v56 = vor.u32 %v6841_v36, %v5185_v35 }
 0x101   :  { %v7849_v48 = vadd.f32 %v2304_v37, %v2242_v41  ;;  %v2182_v49 = vadd.f32 %v2181_v44, %v2119_v47  ;;  %2354 = vmatmul.bf16.gmra.mxu0 %v5058_v39  ;;  %v6994_v37 = vld [vmem:[%s9565_s1 + $0x298] sm:$0xff]  ;;  %v6833_v44 = vld [vmem:[%s9564_s0 + $0x294] sm:$0xf] }
 0x102   :  { %2417 = vmatmul.bf16.gmra.mxu1 %v5062_v40  ;;  %v6978_v40 = vld [vmem:[%s9565_s1 + $0x218] sm:$0xff]  ;;  %2713 = vmatpush.bf16.msra.mxu2 %v6994_v37 }
 0x103   :  { %2480 = vmatmul.bf16.gmra.mxu2 %v5066_v45  ;;  %v7002_v41 = vld [vmem:[%s9565_s1 + $0x2d8] sm:$0xff]  ;;  %v5187_v45 = vld [vmem:[%s9564_s0 + $0x2d0] sm:$0xf0]  ;;  %2587 = vmatpush.bf16.msra.mxu0 %v6978_v40 }
 0x104   :  { %2543 = vmatmul.bf16.gmra.mxu3 %v5070_v46  ;;  %v5193_v46 = vld [vmem:[%s9564_s0 + $0x298] sm:$0xf] }
 0x105   :  { %v6842_v47 = vld [vmem:[%s9564_s0 + $0x2d4] sm:$0xf0]  ;;  %2776 = vmatpush.bf16.msra.mxu3 %v7002_v41 }
 0x106   :  { %v2244_v57 = vpop.f32.mrf.mxu2  ;;  %v2120_v60 = vpop.f32.mrf.mxu0 }
 0x107   :  { %v2307_v58 = vpop.f32.mrf.mxu3  ;;  %v2245_v59 = vadd.f32 %v2244_v57, %v2182_v49  ;;  %v2183_v61 = vpop.f32.mrf.mxu1  ;;  %v2121_v62 = vadd.f32 %v7614_v28, %v2120_v60  ;;  %v6834_v49 = vld [vmem:[%s9564_s0 + $0x29c] sm:$0xf]  ;;  %v5190_v57 = vor.u32 %v6833_v44, %v5187_v45  ;;  %v6985_v45 = vld [vmem:[%s9565_s1 + $0x250] sm:$0xff] }
 0x108   :  { %2651 = vmatpush.bf16.msra.mxu1 %v6985_v45  ;;  %v5387_v45 = vld [vmem:[%s9564_s0 + $0x458] sm:$0xf0] }
 0x109   :  { %v7864_v63 = vadd.f32 %v2307_v58, %v2245_v59  ;;  %v2184_v0 = vadd.f32 %v2183_v61, %v2121_v62  ;;  %v5194_v61 = vor.u32 %v6842_v47, %v5193_v46  ;;  %v5198_v62 = vor.u32 %v6834_v49, %v5195_v52 }
 0x10e   :  { %v2246_v10 = vpop.f32.mrf.mxu2  ;;  %v2123_v18 = vpop.f32.mrf.mxu0 }
 0x10f   :  { %v2309_v12 = vpop.f32.mrf.mxu3  ;;  %v2247_v16 = vadd.f32 %v2246_v10, %v2184_v0  ;;  %v2186_v19 = vpop.f32.mrf.mxu1  ;;  %v2124_v23 = vadd.f32 %v7614_v28, %v2123_v18  ;;  %v6849_v18 = vld [vmem:[%s9564_s0 + $0x314] sm:$0xf] }
 0x111   :  { %v7891_v24 = vadd.f32 %v2309_v12, %v2247_v16  ;;  %v2187_v26 = vadd.f32 %v2186_v19, %v2124_v23  ;;  %2359 = vmatmul.bf16.gmra.mxu0 %v5122_v13  ;;  %v6993_v12 = vld [vmem:[%s9565_s1 + $0x290] sm:$0xff]  ;;  %v6850_v23 = vld [vmem:[%s9564_s0 + $0x31c] sm:$0xf] }
 0x112   :  { %2422 = vmatmul.bf16.gmra.mxu1 %v5126_v15  ;;  %v5249_v15 = vld [vmem:[%s9564_s0 + $0x310] sm:$0xf]  ;;  %v5251_v19 = vld [vmem:[%s9564_s0 + $0x350] sm:$0xf0]  ;;  %2714 = vmatpush.bf16.msra.mxu2 %v6993_v12 }
 0x113   :  { %2485 = vmatmul.bf16.gmra.mxu2 %v5130_v20  ;;  %v6857_v16 = vld [vmem:[%s9564_s0 + $0x34c] sm:$0xf0]  ;;  %v5257_v20 = vld [vmem:[%s9564_s0 + $0x318] sm:$0xf] }
 0x114   :  { %2548 = vmatmul.bf16.gmra.mxu3 %v5134_v22  ;;  %v6858_v22 = vld [vmem:[%s9564_s0 + $0x354] sm:$0xf0] }
 0x116   :  { %v2249_v27 = vpop.f32.mrf.mxu2  ;;  %v2125_v31 = vpop.f32.mrf.mxu0 }
 0x117   :  { %v2312_v29 = vpop.f32.mrf.mxu3  ;;  %v2250_v30 = vadd.f32 %v2249_v27, %v2187_v26  ;;  %v2188_v32 = vpop.f32.mrf.mxu1  ;;  %v2126_v33 = vadd.f32 %v7614_v28, %v2125_v31  ;;  %v5259_v26 = vld [vmem:[%s9564_s0 + $0x358] sm:$0xf0]  ;;  %v5254_v31 = vor.u32 %v6849_v18, %v5251_v19 }
 0x118   :  { %v5262_v40 = vor.u32 %v6850_v23, %v5259_v26  ;;  %v6976_v23 = vld [vmem:[%s9565_s1 + $0x208] sm:$0xff] }
 0x119   :  { %v7894_v34 = vadd.f32 %v2312_v29, %v2250_v30  ;;  %v2189_v39 = vadd.f32 %v2188_v32, %v2126_v33  ;;  %v5250_v30 = vor.u32 %v6857_v16, %v5249_v15  ;;  %v6977_v32 = vld [vmem:[%s9565_s1 + $0x210] sm:$0xff]  ;;  %v7000_v26 = vld [vmem:[%s9565_s1 + $0x2c8] sm:$0xff] }
 0x11a   :  { %v7001_v33 = vld [vmem:[%s9565_s1 + $0x2d0] sm:$0xff]  ;;  %2588 = vmatpush.bf16.msra.mxu0 %v6977_v32 }
 0x11b   :  { %2777 = vmatpush.bf16.msra.mxu3 %v7001_v33  ;;  %v6984_v33 = vld [vmem:[%s9565_s1 + $0x248] sm:$0xff] }
 0x11c   :  { %2652 = vmatpush.bf16.msra.mxu1 %v6984_v33 }
 0x11e   :  { %v2251_v54 = vpop.f32.mrf.mxu2  ;;  %v2128_v59 = vpop.f32.mrf.mxu0  ;;  %2589 = vmatpush.bf16.msra.mxu0 %v6976_v23  ;;  %v5451_v23 = vld [vmem:[%s9564_s0 + $0x4d8] sm:$0xf0] }
 0x11f   :  { %v2314_v55 = vpop.f32.mrf.mxu3  ;;  %v2252_v58 = vadd.f32 %v2251_v54, %v2189_v39  ;;  %v2191_v60 = vpop.f32.mrf.mxu1  ;;  %v2129_v0 = vadd.f32 %v7614_v28, %v2128_v59  ;;  %v5258_v39 = vor.u32 %v6858_v22, %v5257_v20  ;;  %v6873_v59 = vld [vmem:[%s9564_s0 + $0x3cc] sm:$0xf0]  ;;  %v6992_v22 = vld [vmem:[%s9565_s1 + $0x288] sm:$0xff]  ;;  %2778 = vmatpush.bf16.msra.mxu3 %v7000_v26 }
 0x120   :  { %2715 = vmatpush.bf16.msra.mxu2 %v6992_v22  ;;  %v6898_v22 = vld [vmem:[%s9564_s0 + $0x49c] sm:$0xf] }
 0x121   :  { %v7933_v1 = vadd.f32 %v2314_v55, %v2252_v58  ;;  %v2192_v2 = vadd.f32 %v2191_v60, %v2129_v0  ;;  %2364 = vmatmul.bf16.gmra.mxu0 %v5186_v56  ;;  %v5313_v58 = vld [vmem:[%s9564_s0 + $0x390] sm:$0xf]  ;;  %v6865_v60 = vld [vmem:[%s9564_s0 + $0x394] sm:$0xf]  ;;  %v6874_v0 = vld [vmem:[%s9564_s0 + $0x3d4] sm:$0xf0] }
 0x122   :  { %2427 = vmatmul.bf16.gmra.mxu1 %v5190_v57 }
 0x123   :  { %2490 = vmatmul.bf16.gmra.mxu2 %v5194_v61  ;;  %v5315_v61 = vld [vmem:[%s9564_s0 + $0x3d0] sm:$0xf0] }
 0x124   :  { %2553 = vmatmul.bf16.gmra.mxu3 %v5198_v62  ;;  %v5321_v62 = vld [vmem:[%s9564_s0 + $0x398] sm:$0xf] }
 0x125   :  { %v5322_v15 = vor.u32 %v6874_v0, %v5321_v62 }
 0x126   :  { %v2254_v3 = vpop.f32.mrf.mxu2  ;;  %v2130_v6 = vpop.f32.mrf.mxu0 }
 0x127   :  { %v2317_v4 = vpop.f32.mrf.mxu3  ;;  %v2255_v5 = vadd.f32 %v2254_v3, %v2192_v2  ;;  %v2193_v8 = vpop.f32.mrf.mxu1  ;;  %v2131_v9 = vadd.f32 %v7614_v28, %v2130_v6  ;;  %v6866_v2 = vld [vmem:[%s9564_s0 + $0x39c] sm:$0xf]  ;;  %v5314_v6 = vor.u32 %v6873_v59, %v5313_v58 }
 0x128   :  { %v5323_v3 = vld [vmem:[%s9564_s0 + $0x3d8] sm:$0xf0] }
 0x129   :  { %v7936_v10 = vadd.f32 %v2317_v4, %v2255_v5  ;;  %v2194_v13 = vadd.f32 %v2193_v8, %v2131_v9  ;;  %v5318_v8 = vor.u32 %v6865_v60, %v5315_v61  ;;  %v5326_v16 = vor.u32 %v6866_v2, %v5323_v3 }
 0x12e   :  { %v2256_v27 = vpop.f32.mrf.mxu2  ;;  %v2133_v36 = vpop.f32.mrf.mxu0 }
 0x12f   :  { %v2319_v29 = vpop.f32.mrf.mxu3  ;;  %v2257_v35 = vadd.f32 %v2256_v27, %v2194_v13  ;;  %v2196_v37 = vpop.f32.mrf.mxu1  ;;  %v2134_v41 = vadd.f32 %v7614_v28, %v2133_v36  ;;  %v6889_v36 = vld [vmem:[%s9564_s0 + $0x44c] sm:$0xf0] }
 0x131   :  { %v7972_v42 = vadd.f32 %v2319_v29, %v2257_v35  ;;  %v2197_v44 = vadd.f32 %v2196_v37, %v2134_v41  ;;  %2369 = vmatmul.bf16.gmra.mxu0 %v5250_v30  ;;  %v5377_v35 = vld [vmem:[%s9564_s0 + $0x410] sm:$0xf]  ;;  %v6881_v37 = vld [vmem:[%s9564_s0 + $0x414] sm:$0xf]  ;;  %v6890_v41 = vld [vmem:[%s9564_s0 + $0x454] sm:$0xf0] }
 0x132   :  { %2432 = vmatmul.bf16.gmra.mxu1 %v5254_v31 }
 0x133   :  { %2495 = vmatmul.bf16.gmra.mxu2 %v5258_v39  ;;  %v5379_v39 = vld [vmem:[%s9564_s0 + $0x450] sm:$0xf0] }
 0x134   :  { %2558 = vmatmul.bf16.gmra.mxu3 %v5262_v40  ;;  %v5385_v40 = vld [vmem:[%s9564_s0 + $0x418] sm:$0xf] }
 0x136   :  { %v2259_v46 = vpop.f32.mrf.mxu2  ;;  %v2135_v52 = vpop.f32.mrf.mxu0 }
 0x137   :  { %v2322_v47 = vpop.f32.mrf.mxu3  ;;  %v2260_v49 = vadd.f32 %v2259_v46, %v2197_v44  ;;  %v2198_v54 = vpop.f32.mrf.mxu1  ;;  %v2136_v55 = vadd.f32 %v7614_v28, %v2135_v52  ;;  %v6882_v44 = vld [vmem:[%s9564_s0 + $0x41c] sm:$0xf]  ;;  %v5382_v52 = vor.u32 %v6881_v37, %v5379_v39 }
 0x138   :  { %v5390_v58 = vor.u32 %v6882_v44, %v5387_v45 }
 0x139   :  { %v7978_v56 = vadd.f32 %v2322_v47, %v2260_v49  ;;  %v2199_v57 = vadd.f32 %v2198_v54, %v2136_v55  ;;  %v5378_v49 = vor.u32 %v6889_v36, %v5377_v35  ;;  %v5454_v36 = vor.u32 %v6898_v22, %v5451_v23 }
 0x13e   :  { %v2261_v4 = vpop.f32.mrf.mxu2  ;;  %v2138_v12 = vpop.f32.mrf.mxu0 }
 0x13f   :  { %v2324_v5 = vpop.f32.mrf.mxu3  ;;  %v2262_v9 = vadd.f32 %v2261_v4, %v2199_v57  ;;  %v2201_v13 = vpop.f32.mrf.mxu1  ;;  %v2139_v18 = vadd.f32 %v7614_v28, %v2138_v12  ;;  %v5386_v57 = vor.u32 %v6890_v41, %v5385_v40  ;;  %v6991_v12 = vld [vmem:[%s9565_s1 + $0x280] sm:$0xff] }
 0x140   :  { %2716 = vmatpush.bf16.msra.mxu2 %v6991_v12  ;;  %v7030_v12 = vld [vmem:[%s9565_s1 + $0x3b8] sm:$0xff] }
 0x141   :  { %v8005_v19 = vadd.f32 %v2324_v5, %v2262_v9  ;;  %v2202_v20 = vadd.f32 %v2201_v13, %v2139_v18  ;;  %2374 = vmatmul.bf16.gmra.mxu0 %v5314_v6  ;;  %v5441_v6 = vld [vmem:[%s9564_s0 + $0x490] sm:$0xf]  ;;  %v6999_v13 = vld [vmem:[%s9565_s1 + $0x2c0] sm:$0xff] }
 0x142   :  { %2437 = vmatmul.bf16.gmra.mxu1 %v5318_v8  ;;  %v6897_v8 = vld [vmem:[%s9564_s0 + $0x494] sm:$0xf]  ;;  %v6983_v18 = vld [vmem:[%s9565_s1 + $0x240] sm:$0xff]  ;;  %2779 = vmatpush.bf16.msra.mxu3 %v6999_v13  ;;  %v7014_v13 = vld [vmem:[%s9565_s1 + $0x338] sm:$0xff] }
 0x143   :  { %2500 = vmatmul.bf16.gmra.mxu2 %v5322_v15  ;;  %v5443_v15 = vld [vmem:[%s9564_s0 + $0x4d0] sm:$0xf0]  ;;  %2653 = vmatpush.bf16.msra.mxu1 %v6983_v18 }
 0x144   :  { %2563 = vmatmul.bf16.gmra.mxu3 %v5326_v16  ;;  %v5449_v16 = vld [vmem:[%s9564_s0 + $0x498] sm:$0xf]  ;;  %2961 = vmatpush.bf16.msrb.mxu2 %v7030_v12  ;;  %v6771_v12 = vld [vmem:[%s9564_s0 + $0xa4] sm:$0xf] }
 0x146   :  { %v2264_v28 = vpop.f32.mrf.mxu2  ;;  %v2140_v30 = vpop.f32.mrf.mxu0 }
 0x147   :  { %v2327_v27 = vpop.f32.mrf.mxu3  ;;  %v2265_v29 = vadd.f32 %v2264_v28, %v2202_v20  ;;  %v2203_v31 = vpop.f32.mrf.mxu1  ;;  %v6906_v20 = vld [vmem:[%s9564_s0 + $0x4d4] sm:$0xf0] }
 0x148   :  { %v5450_v35 = vor.u32 %v6906_v20, %v5449_v16 }
 0x149   :  { %v8016_v32 = vadd.f32 %v2327_v27, %v2265_v29  ;;  %v5446_v29 = vor.u32 %v6897_v8, %v5443_v15  ;;  %v7038_v15 = vld [vmem:[%s9565_s1 + $0x3f8] sm:$0xff] }
 0x14a   :  { %3024 = vmatpush.bf16.msrb.mxu3 %v7038_v15  ;;  %v6780_v15 = vld [vmem:[%s9564_s0 + $0xe4] sm:$0xf0] }
 0x14e   :  { %v2266_v46 = vpop.f32.mrf.mxu2  ;;  %v2340_v54 = vpop.f32.mrf.mxu0 }
 0x14f   :  { %v2329_v47 = vpop.f32.mrf.mxu3  ;;  %v2403_v55 = vpop.f32.mrf.mxu1  ;;  %v2341_v59 = vadd.f32 %v2340_v54, %v7642_v51  ;;  %v6905_v51 = vld [vmem:[%s9564_s0 + $0x4cc] sm:$0xf0] }
 0x150   :  { %v5442_v27 = vor.u32 %v6905_v51, %v5441_v6 }
 0x151   :  { %v2404_v60 = vadd.f32 %v2403_v55, %v2341_v59  ;;  %2379 = vmatmul.bf16.gmra.mxu0 %v5378_v49  ;;  %v189_v49 = vld [vmem:[%s9564_s0 + $0x510] sm:$0x11] }
 0x152   :  { %2442 = vmatmul.bf16.gmra.mxu1 %v5382_v52 }
 0x153   :  { %2505 = vmatmul.bf16.gmra.mxu2 %v5386_v57  ;;  %v947_v57 = vunpack.c.l.b16 %v189_v49 }
 0x154   :  { %2568 = vmatmul.bf16.gmra.mxu3 %v5390_v58  ;;  %v948_v58 = vunpack.c.h.b16 %v189_v49 }
 0x156   :  { %v2466_v61 = vpop.f32.mrf.mxu2  ;;  %v2342_v2 = vpop.f32.mrf.mxu0 }
 0x157   :  { %v2529_v62 = vpop.f32.mrf.mxu3  ;;  %v2467_v0 = vadd.f32 %v2466_v61, %v2404_v60  ;;  %v2405_v3 = vpop.f32.mrf.mxu1  ;;  %v2343_v4 = vadd.f32 %v2342_v2, %v7681_v11  ;;  %v6975_v11 = vld [vmem:[%s9565_s1 + $0x200] sm:$0xff]  ;;  %v1124_v2 = vpack.c.b16 %v948_v58, %v948_v58 }
 0x158   :  { %2590 = vmatpush.bf16.msra.mxu0 %v6975_v11 }
 0x159   :  { %v8047_v5 = vadd.f32 %v2529_v62, %v2467_v0  ;;  %v2406_v9 = vadd.f32 %v2405_v3, %v2343_v4  ;;  %v1123_v0 = vpack.c.b16 %v947_v57, %v947_v57 }
 0x15c   :  { %2835 = vmatpush.bf16.msrb.mxu0 %v7014_v13  ;;  %v4953_v13 = vld [vmem:[%s9564_s0 + $0xa8] sm:$0xf] }
 0x15e   :  { %v2468_v26 = vpop.f32.mrf.mxu2  ;;  %v2345_v31 = vpop.f32.mrf.mxu0 }
 0x15f   :  { %v2531_v28 = vpop.f32.mrf.mxu3  ;;  %v2469_v30 = vadd.f32 %v2468_v26, %v2406_v9  ;;  %v2408_v33 = vpop.f32.mrf.mxu1  ;;  %v2346_v37 = vadd.f32 %v2345_v31, %v7690_v21  ;;  %v190_v21 = vld [vmem:[%s9564_s0 + $0x518] sm:$0x11]  ;;  %v6755_v31 = vld [vmem:[%s9564_s0 + $0x24] sm:$0xf] }
 0x160   :  { %v949_v59 = vunpack.c.l.b16 %v190_v21  ;;  %v950_v60 = vunpack.c.h.b16 %v190_v21 }
 0x161   :  { %v8086_v39 = vadd.f32 %v2531_v28, %v2469_v30  ;;  %v2409_v40 = vadd.f32 %v2408_v33, %v2346_v37  ;;  %2384 = vmatmul.bf16.gmra.mxu0 %v5442_v27  ;;  %v6763_v30 = vld [vmem:[%s9564_s0 + $0x5c] sm:$0xf0]  ;;  %v4883_v33 = vld [vmem:[%s9564_s0 + $0x60] sm:$0xf0]  ;;  %v4891_v37 = vld [vmem:[%s9564_s0 + $0x68] sm:$0xf0] }
 0x162   :  { %2447 = vmatmul.bf16.gmra.mxu1 %v5446_v29  ;;  %v1125_v51 = vpack.c.b16 %v949_v59, %v949_v59  ;;  %v4881_v29 = vld [vmem:[%s9564_s0 + $0x20] sm:$0xf]  ;;  %v7029_v59 = vld [vmem:[%s9565_s1 + $0x3b0] sm:$0xff] }
 0x163   :  { %2510 = vmatmul.bf16.gmra.mxu2 %v5450_v35  ;;  %v6764_v35 = vld [vmem:[%s9564_s0 + $0x64] sm:$0xf0] }
 0x164   :  { %2573 = vmatmul.bf16.gmra.mxu3 %v5454_v36  ;;  %v6756_v36 = vld [vmem:[%s9564_s0 + $0x2c] sm:$0xf]  ;;  %2962 = vmatpush.bf16.msrb.mxu2 %v7029_v59  ;;  %v5017_v59 = vld [vmem:[%s9564_s0 + $0x128] sm:$0xf] }
 0x165   :  { %v4894_v21 = vor.u32 %v6756_v36, %v4891_v37 }
 0x166   :  { %v2471_v41 = vpop.f32.mrf.mxu2  ;;  %v2347_v46 = vpop.f32.mrf.mxu0 }
 0x167   :  { %v2534_v44 = vpop.f32.mrf.mxu3  ;;  %v2472_v45 = vadd.f32 %v2471_v41, %v2409_v40  ;;  %v2410_v47 = vpop.f32.mrf.mxu1  ;;  %v2348_v52 = vadd.f32 %v2347_v46, %v7693_v38  ;;  %v1126_v38 = vpack.c.b16 %v950_v60, %v950_v60 }
 0x169   :  { %v8095_v54 = vadd.f32 %v2534_v44, %v2472_v45  ;;  %v2411_v55 = vadd.f32 %v2410_v47, %v2348_v52  ;;  %v4882_v44 = vor.u32 %v6763_v30, %v4881_v29  ;;  %v4886_v45 = vor.u32 %v6755_v31, %v4883_v33 }
 0x16a   :  { %v4954_v30 = vor.u32 %v6780_v15, %v4953_v13  ;;  %v7020_v13 = vld [vmem:[%s9565_s1 + $0x368] sm:$0xff] }
 0x16e   :  { %v2473_v61 = vpop.f32.mrf.mxu2  ;;  %v2350_v4 = vpop.f32.mrf.mxu0 }
 0x16f   :  { %v2536_v62 = vpop.f32.mrf.mxu3  ;;  %v2474_v3 = vadd.f32 %v2473_v61, %v2411_v55  ;;  %v2413_v6 = vpop.f32.mrf.mxu1  ;;  %v2351_v8 = vadd.f32 %v2350_v4, %v7708_v50  ;;  %v7022_v50 = vld [vmem:[%s9565_s1 + $0x378] sm:$0xff]  ;;  %v7013_v4 = vld [vmem:[%s9565_s1 + $0x330] sm:$0xff] }
 0x170   :  { %2898 = vmatpush.bf16.msrb.mxu1 %v7022_v50  ;;  %2836 = vmatpush.bf16.msrb.mxu0 %v7013_v4  ;;  %v6772_v50 = vld [vmem:[%s9564_s0 + $0xac] sm:$0xf] }
 0x171   :  { %v8098_v9 = vadd.f32 %v2536_v62, %v2474_v3  ;;  %v2414_v11 = vadd.f32 %v2413_v6, %v2351_v8  ;;  %2389 = vmatmul.bf16.gmra.mxu0 %v1123_v0  ;;  %v7037_v6 = vld [vmem:[%s9565_s1 + $0x3f0] sm:$0xff]  ;;  %v6779_v8 = vld [vmem:[%s9564_s0 + $0xdc] sm:$0xf0] }
 0x172   :  { %2452 = vmatmul.bf16.gmra.mxu1 %v1124_v2  ;;  %3025 = vmatpush.bf16.msrb.mxu3 %v7037_v6 }
 0x173   :  { %2515 = vmatmul.bf16.gmra.mxu2 %v1125_v51 }
 0x174   :  { %2578 = vmatmul.bf16.gmra.mxu3 %v1126_v38  ;;  %v4945_v38 = vld [vmem:[%s9564_s0 + $0xa0] sm:$0xf] }
 0x176   :  { %v2476_v16 = vpop.f32.mrf.mxu2  ;;  %v2352_v22 = vpop.f32.mrf.mxu0 }
 0x177   :  { %v2539_v18 = vpop.f32.mrf.mxu3  ;;  %v2477_v20 = vadd.f32 %v2476_v16, %v2414_v11  ;;  %v2415_v23 = vpop.f32.mrf.mxu1  ;;  %v2353_v26 = vadd.f32 %v2352_v22, %v7735_v7  ;;  %v4889_v7 = vld [vmem:[%s9564_s0 + $0x28] sm:$0xf]  ;;  %v4947_v11 = vld [vmem:[%s9564_s0 + $0xe0] sm:$0xf0]  ;;  %v4955_v16 = vld [vmem:[%s9564_s0 + $0xe8] sm:$0xf0]  ;;  %v4946_v22 = vor.u32 %v6779_v8, %v4945_v38 }
 0x178   :  { %v4890_v52 = vor.u32 %v6764_v35, %v4889_v7  ;;  %v4958_v31 = vor.u32 %v6772_v50, %v4955_v16 }
 0x179   :  { %v8113_v28 = vadd.f32 %v2539_v18, %v2477_v20  ;;  %v2416_v27 = vadd.f32 %v2415_v23, %v2353_v26  ;;  %v4950_v23 = vor.u32 %v6771_v12, %v4947_v11 }
 0x17e   :  { %v2478_v40 = vpop.f32.mrf.mxu2  ;;  %v2355_v47 = vpop.f32.mrf.mxu0 }
 0x17f   :  { %v2541_v41 = vpop.f32.mrf.mxu3  ;;  %v2479_v46 = vadd.f32 %v2478_v40, %v2416_v27  ;;  %v2418_v49 = vpop.f32.mrf.mxu1  ;;  %v2356_v55 = vadd.f32 %v2355_v47, %v7741_v17  ;;  %v6795_v47 = vld [vmem:[%s9564_s0 + $0x15c] sm:$0xf0] }
 0x181   :  { %v8140_v57 = vadd.f32 %v2541_v41, %v2479_v46  ;;  %v2419_v58 = vadd.f32 %v2418_v49, %v2356_v55  ;;  %2591 = vmatmul.bf16.vlgmr.msra.gmra.mxu0 %v4882_v44  ;;  %v6787_v55 = vld [vmem:[%s9564_s0 + $0x124] sm:$0xf] }
 0x182   :  { %2654 = vmatmul.bf16.vlgmr.msra.gmra.mxu1 %v4886_v45 }
 0x183   :  { %2717 = vmatmul.bf16.vlgmr.msra.gmra.mxu2 %v4890_v52  ;;  %v7028_v52 = vld [vmem:[%s9565_s1 + $0x3a8] sm:$0xff] }
 0x184   :  { %2780 = vmatmul.bf16.vlgmr.msra.gmra.mxu3 %v4894_v21  ;;  %v7012_v21 = vld [vmem:[%s9565_s1 + $0x328] sm:$0xff]  ;;  %2963 = vmatpush.bf16.msrb.mxu2 %v7028_v52 }
 0x185   :  { %2837 = vmatpush.bf16.msrb.mxu0 %v7012_v21 }
 0x186   :  { %v2481_v60 = vpop.f32.mrf.mxu2  ;;  %v2357_v0 = vpop.f32.mrf.mxu0 }
 0x187   :  { %v2544_v61 = vpop.f32.mrf.mxu3  ;;  %v2482_v62 = vadd.f32 %v2481_v60, %v2419_v58  ;;  %v2420_v2 = vpop.f32.mrf.mxu1  ;;  %v2358_v3 = vadd.f32 %v2357_v0, %v7777_v43  ;;  %v7021_v43 = vld [vmem:[%s9565_s1 + $0x370] sm:$0xff]  ;;  %v5011_v58 = vld [vmem:[%s9564_s0 + $0x160] sm:$0xf0]  ;;  %v6796_v60 = vld [vmem:[%s9564_s0 + $0x164] sm:$0xf0] }
 0x188   :  { %2899 = vmatpush.bf16.msrb.mxu1 %v7021_v43  ;;  %v5014_v4 = vor.u32 %v6787_v55, %v5011_v58  ;;  %v5018_v8 = vor.u32 %v6796_v60, %v5017_v59  ;;  %v7027_v58 = vld [vmem:[%s9565_s1 + $0x3a0] sm:$0xff] }
 0x189   :  { %v8146_v17 = vadd.f32 %v2544_v61, %v2482_v62  ;;  %v2421_v51 = vadd.f32 %v2420_v2, %v2358_v3  ;;  %v6788_v61 = vld [vmem:[%s9564_s0 + $0x12c] sm:$0xf]  ;;  %v7011_v59 = vld [vmem:[%s9565_s1 + $0x320] sm:$0xff]  ;;  %2964 = vmatpush.bf16.msrb.mxu2 %v7027_v58 }
 0x18a   :  { %v5019_v62 = vld [vmem:[%s9564_s0 + $0x168] sm:$0xf0]  ;;  %v7035_v60 = vld [vmem:[%s9565_s1 + $0x3e0] sm:$0xff]  ;;  %2838 = vmatpush.bf16.msrb.mxu0 %v7011_v59  ;;  %v5209_v59 = vld [vmem:[%s9564_s0 + $0x2a8] sm:$0xf] }
 0x18b   :  { %v5022_v43 = vor.u32 %v6788_v61, %v5019_v62  ;;  %v5203_v58 = vld [vmem:[%s9564_s0 + $0x2e0] sm:$0xf0] }
 0x18c   :  { %2900 = vmatpush.bf16.msrb.mxu1 %v7020_v13  ;;  %v6828_v13 = vld [vmem:[%s9564_s0 + $0x264] sm:$0xf0] }
 0x18e   :  { %v2483_v18 = vpop.f32.mrf.mxu2  ;;  %v2360_v27 = vpop.f32.mrf.mxu0 }
 0x18f   :  { %v2546_v20 = vpop.f32.mrf.mxu3  ;;  %v2484_v26 = vadd.f32 %v2483_v18, %v2421_v51  ;;  %v2423_v29 = vpop.f32.mrf.mxu1  ;;  %v2361_v33 = vadd.f32 %v2360_v27, %v7780_v53  ;;  %v5009_v53 = vld [vmem:[%s9564_s0 + $0x120] sm:$0xf] }
 0x190   :  { %v5010_v3 = vor.u32 %v6795_v47, %v5009_v53  ;;  %v5073_v27 = vld [vmem:[%s9564_s0 + $0x1a0] sm:$0xf] }
 0x191   :  { %v8182_v7 = vadd.f32 %v2546_v20, %v2484_v26  ;;  %v2424_v35 = vadd.f32 %v2423_v29, %v2361_v33  ;;  %2596 = vmatmul.bf16.gmra.mxu0 %v4946_v22  ;;  %v6811_v29 = vld [vmem:[%s9564_s0 + $0x1dc] sm:$0xf0]  ;;  %v6812_v33 = vld [vmem:[%s9564_s0 + $0x1e4] sm:$0xf0] }
 0x192   :  { %2659 = vmatmul.bf16.gmra.mxu1 %v4950_v23 }
 0x193   :  { %2722 = vmatmul.bf16.gmra.mxu2 %v4954_v30  ;;  %v6803_v30 = vld [vmem:[%s9564_s0 + $0x1a4] sm:$0xf] }
 0x194   :  { %2785 = vmatmul.bf16.gmra.mxu3 %v4958_v31  ;;  %v5075_v31 = vld [vmem:[%s9564_s0 + $0x1e0] sm:$0xf0] }
 0x196   :  { %v2486_v36 = vpop.f32.mrf.mxu2  ;;  %v2362_v41 = vpop.f32.mrf.mxu0 }
 0x197   :  { %v2549_v37 = vpop.f32.mrf.mxu3  ;;  %v2487_v40 = vadd.f32 %v2486_v36, %v2424_v35  ;;  %v2425_v44 = vpop.f32.mrf.mxu1  ;;  %v2363_v45 = vadd.f32 %v2362_v41, %v7816_v14  ;;  %v7036_v14 = vld [vmem:[%s9565_s1 + $0x3e8] sm:$0xff]  ;;  %v5074_v41 = vor.u32 %v6811_v29, %v5073_v27 }
 0x198   :  { %3026 = vmatpush.bf16.msrb.mxu3 %v7036_v14  ;;  %v6804_v35 = vld [vmem:[%s9564_s0 + $0x1ac] sm:$0xf] }
 0x199   :  { %v8185_v46 = vadd.f32 %v2549_v37, %v2487_v40  ;;  %v2426_v49 = vadd.f32 %v2425_v44, %v2363_v45  ;;  %v5083_v36 = vld [vmem:[%s9564_s0 + $0x1e8] sm:$0xf0]  ;;  %v5078_v44 = vor.u32 %v6803_v30, %v5075_v31 }
 0x19a   :  { %v5086_v52 = vor.u32 %v6804_v35, %v5083_v36 }
 0x19c   :  { %3027 = vmatpush.bf16.msrb.mxu3 %v7035_v60  ;;  %v6844_v60 = vld [vmem:[%s9564_s0 + $0x2e4] sm:$0xf0] }
 0x19e   :  { %v2488_v0 = vpop.f32.mrf.mxu2  ;;  %v2365_v51 = vpop.f32.mrf.mxu0 }
 0x19f   :  { %v2551_v2 = vpop.f32.mrf.mxu3  ;;  %v2489_v6 = vadd.f32 %v2488_v0, %v2426_v49  ;;  %v2428_v38 = vpop.f32.mrf.mxu1  ;;  %v2366_v12 = vadd.f32 %v2365_v51, %v7822_v25 }
 0x1a1   :  { %v8221_v11 = vadd.f32 %v2551_v2, %v2489_v6  ;;  %v2429_v15 = vadd.f32 %v2428_v38, %v2366_v12  ;;  %2601 = vmatmul.bf16.gmra.mxu0 %v5010_v3  ;;  %v5137_v38 = vld [vmem:[%s9564_s0 + $0x220] sm:$0xf]  ;;  %v5139_v12 = vld [vmem:[%s9564_s0 + $0x260] sm:$0xf0] }
 0x1a2   :  { %2664 = vmatmul.bf16.gmra.mxu1 %v5014_v4 }
 0x1a3   :  { %2727 = vmatmul.bf16.gmra.mxu2 %v5018_v8  ;;  %v6827_v8 = vld [vmem:[%s9564_s0 + $0x25c] sm:$0xf0] }
 0x1a4   :  { %2790 = vmatmul.bf16.gmra.mxu3 %v5022_v43  ;;  %v6819_v43 = vld [vmem:[%s9564_s0 + $0x224] sm:$0xf] }
 0x1a6   :  { %v2491_v50 = vpop.f32.mrf.mxu2  ;;  %v2367_v20 = vpop.f32.mrf.mxu0 }
 0x1a7   :  { %v2554_v16 = vpop.f32.mrf.mxu3  ;;  %v2492_v18 = vadd.f32 %v2491_v50, %v2429_v15  ;;  %v2430_v22 = vpop.f32.mrf.mxu1  ;;  %v2368_v23 = vadd.f32 %v2367_v20, %v7849_v48  ;;  %v5081_v48 = vld [vmem:[%s9564_s0 + $0x1a8] sm:$0xf]  ;;  %v6820_v15 = vld [vmem:[%s9564_s0 + $0x22c] sm:$0xf]  ;;  %v5138_v20 = vor.u32 %v6827_v8, %v5137_v38  ;;  %v5210_v8 = vor.u32 %v6844_v60, %v5209_v59  ;;  %v7017_v60 = vld [vmem:[%s9565_s1 + $0x350] sm:$0xff] }
 0x1a8   :  { %v5082_v49 = vor.u32 %v6812_v33, %v5081_v48  ;;  %v5147_v50 = vld [vmem:[%s9564_s0 + $0x268] sm:$0xf0] }
 0x1a9   :  { %v8227_v25 = vadd.f32 %v2554_v16, %v2492_v18  ;;  %v2431_v26 = vadd.f32 %v2430_v22, %v2368_v23  ;;  %v5142_v22 = vor.u32 %v6819_v43, %v5139_v12  ;;  %v5150_v30 = vor.u32 %v6820_v15, %v5147_v50 }
 0x1ae   :  { %v2493_v37 = vpop.f32.mrf.mxu2  ;;  %v2370_v53 = vpop.f32.mrf.mxu0 }
 0x1af   :  { %v2556_v40 = vpop.f32.mrf.mxu3  ;;  %v2494_v45 = vadd.f32 %v2493_v37, %v2431_v26  ;;  %v2433_v47 = vpop.f32.mrf.mxu1  ;;  %v2371_v21 = vadd.f32 %v2370_v53, %v7864_v63  ;;  %v7019_v63 = vld [vmem:[%s9565_s1 + $0x360] sm:$0xff] }
 0x1b0   :  { %2901 = vmatpush.bf16.msrb.mxu1 %v7019_v63  ;;  %v6843_v53 = vld [vmem:[%s9564_s0 + $0x2dc] sm:$0xf0]  ;;  %v6836_v63 = vld [vmem:[%s9564_s0 + $0x2ac] sm:$0xf] }
 0x1b1   :  { %v8254_v14 = vadd.f32 %v2556_v40, %v2494_v45  ;;  %v2434_v55 = vadd.f32 %v2433_v47, %v2371_v21  ;;  %2606 = vmatmul.bf16.gmra.mxu0 %v5074_v41  ;;  %v7026_v47 = vld [vmem:[%s9565_s1 + $0x398] sm:$0xff] }
 0x1b2   :  { %2669 = vmatmul.bf16.gmra.mxu1 %v5078_v44  ;;  %v7018_v21 = vld [vmem:[%s9565_s1 + $0x358] sm:$0xff]  ;;  %2965 = vmatpush.bf16.msrb.mxu2 %v7026_v47 }
 0x1b3   :  { %2732 = vmatmul.bf16.gmra.mxu2 %v5082_v49 }
 0x1b4   :  { %2795 = vmatmul.bf16.gmra.mxu3 %v5086_v52  ;;  %v7010_v52 = vld [vmem:[%s9565_s1 + $0x318] sm:$0xff]  ;;  %2902 = vmatpush.bf16.msrb.mxu1 %v7018_v21 }
 0x1b5   :  { %2839 = vmatpush.bf16.msrb.mxu0 %v7010_v52 }
 0x1b6   :  { %v2496_v61 = vpop.f32.mrf.mxu2  ;;  %v2372_v2 = vpop.f32.mrf.mxu0 }
 0x1b7   :  { %v2559_v62 = vpop.f32.mrf.mxu3  ;;  %v2497_v0 = vadd.f32 %v2496_v61, %v2434_v55  ;;  %v2435_v3 = vpop.f32.mrf.mxu1  ;;  %v2373_v4 = vadd.f32 %v2372_v2, %v7891_v24  ;;  %v5145_v24 = vld [vmem:[%s9564_s0 + $0x228] sm:$0xf]  ;;  %v6835_v55 = vld [vmem:[%s9564_s0 + $0x2a4] sm:$0xf]  ;;  %v5211_v61 = vld [vmem:[%s9564_s0 + $0x2e8] sm:$0xf0] }
 0x1b8   :  { %v5146_v29 = vor.u32 %v6828_v13, %v5145_v24  ;;  %v5214_v43 = vor.u32 %v6836_v63, %v5211_v61  ;;  %2903 = vmatpush.bf16.msrb.mxu1 %v7017_v60  ;;  %v5403_v60 = vld [vmem:[%s9564_s0 + $0x468] sm:$0xf0] }
 0x1b9   :  { %v8269_v6 = vadd.f32 %v2559_v62, %v2497_v0  ;;  %v2436_v51 = vadd.f32 %v2435_v3, %v2373_v4  ;;  %v5206_v3 = vor.u32 %v6835_v55, %v5203_v58 }
 0x1be   :  { %v2498_v16 = vpop.f32.mrf.mxu2  ;;  %v2375_v26 = vpop.f32.mrf.mxu0 }
 0x1bf   :  { %v2561_v18 = vpop.f32.mrf.mxu3  ;;  %v2499_v23 = vadd.f32 %v2498_v16, %v2436_v51  ;;  %v2438_v27 = vpop.f32.mrf.mxu1  ;;  %v2376_v31 = vadd.f32 %v2375_v26, %v7894_v34  ;;  %v5201_v34 = vld [vmem:[%s9564_s0 + $0x2a0] sm:$0xf] }
 0x1c0   :  { %v5202_v2 = vor.u32 %v6843_v53, %v5201_v34  ;;  %v7009_v34 = vld [vmem:[%s9565_s1 + $0x310] sm:$0xff] }
 0x1c1   :  { %v8296_v48 = vadd.f32 %v2561_v18, %v2499_v23  ;;  %v2439_v33 = vadd.f32 %v2438_v27, %v2376_v31  ;;  %2611 = vmatmul.bf16.gmra.mxu0 %v5138_v20  ;;  %v5265_v27 = vld [vmem:[%s9564_s0 + $0x320] sm:$0xf]  ;;  %v5273_v31 = vld [vmem:[%s9564_s0 + $0x328] sm:$0xf]  ;;  %v7033_v53 = vld [vmem:[%s9565_s1 + $0x3d0] sm:$0xff] }
 0x1c2   :  { %2674 = vmatmul.bf16.gmra.mxu1 %v5142_v22  ;;  %2840 = vmatpush.bf16.msrb.mxu0 %v7009_v34 }
 0x1c3   :  { %2737 = vmatmul.bf16.gmra.mxu2 %v5146_v29  ;;  %v6859_v29 = vld [vmem:[%s9564_s0 + $0x35c] sm:$0xf0] }
 0x1c4   :  { %2800 = vmatmul.bf16.gmra.mxu3 %v5150_v30  ;;  %v6851_v30 = vld [vmem:[%s9564_s0 + $0x324] sm:$0xf] }
 0x1c6   :  { %v2501_v35 = vpop.f32.mrf.mxu2  ;;  %v2377_v40 = vpop.f32.mrf.mxu0 }
 0x1c7   :  { %v2564_v36 = vpop.f32.mrf.mxu3  ;;  %v2502_v37 = vadd.f32 %v2501_v35, %v2439_v33  ;;  %v2440_v41 = vpop.f32.mrf.mxu1  ;;  %v2378_v44 = vadd.f32 %v2377_v40, %v7933_v1  ;;  %v7034_v1 = vld [vmem:[%s9565_s1 + $0x3d8] sm:$0xff]  ;;  %v6860_v33 = vld [vmem:[%s9564_s0 + $0x364] sm:$0xf0]  ;;  %v6852_v35 = vld [vmem:[%s9564_s0 + $0x32c] sm:$0xf] }
 0x1c8   :  { %3028 = vmatpush.bf16.msrb.mxu3 %v7034_v1  ;;  %v5274_v1 = vor.u32 %v6860_v33, %v5273_v31  ;;  %v7024_v33 = vld [vmem:[%s9565_s1 + $0x388] sm:$0xff] }
 0x1c9   :  { %v8299_v45 = vadd.f32 %v2564_v36, %v2502_v37  ;;  %v2441_v49 = vadd.f32 %v2440_v41, %v2378_v44  ;;  %v5275_v36 = vld [vmem:[%s9564_s0 + $0x368] sm:$0xf0]  ;;  %v5266_v41 = vor.u32 %v6859_v29, %v5265_v27 }
 0x1ca   :  { %v5278_v21 = vor.u32 %v6852_v35, %v5275_v36  ;;  %v7008_v35 = vld [vmem:[%s9565_s1 + $0x308] sm:$0xff] }
 0x1cb   :  { %v7032_v36 = vld [vmem:[%s9565_s1 + $0x3c8] sm:$0xff]  ;;  %2841 = vmatpush.bf16.msrb.mxu0 %v7008_v35 }
 0x1cc   :  { %3029 = vmatpush.bf16.msrb.mxu3 %v7033_v53  ;;  %v7016_v53 = vld [vmem:[%s9565_s1 + $0x348] sm:$0xff] }
 0x1cd   :  { %2904 = vmatpush.bf16.msrb.mxu1 %v7016_v53  ;;  %v5467_v35 = vld [vmem:[%s9564_s0 + $0x4e8] sm:$0xf0] }
 0x1ce   :  { %v2503_v62 = vpop.f32.mrf.mxu2  ;;  %v2380_v51 = vpop.f32.mrf.mxu0 }
 0x1cf   :  { %v2566_v0 = vpop.f32.mrf.mxu3  ;;  %v2504_v4 = vadd.f32 %v2503_v62, %v2441_v49  ;;  %v2443_v38 = vpop.f32.mrf.mxu1  ;;  %v2381_v12 = vadd.f32 %v2380_v51, %v7936_v10  ;;  %v7025_v10 = vld [vmem:[%s9565_s1 + $0x390] sm:$0xff]  ;;  %v5329_v51 = vld [vmem:[%s9564_s0 + $0x3a0] sm:$0xf] }
 0x1d0   :  { %2966 = vmatpush.bf16.msrb.mxu2 %v7025_v10  ;;  %3030 = vmatpush.bf16.msrb.mxu3 %v7032_v36 }
 0x1d1   :  { %v8338_v24 = vadd.f32 %v2566_v0, %v2504_v4  ;;  %v2444_v13 = vadd.f32 %v2443_v38, %v2381_v12  ;;  %2616 = vmatmul.bf16.gmra.mxu0 %v5202_v2  ;;  %v6875_v38 = vld [vmem:[%s9564_s0 + $0x3dc] sm:$0xf0]  ;;  %v6876_v12 = vld [vmem:[%s9564_s0 + $0x3e4] sm:$0xf0] }
 0x1d2   :  { %2679 = vmatmul.bf16.gmra.mxu1 %v5206_v3 }
 0x1d3   :  { %2742 = vmatmul.bf16.gmra.mxu2 %v5210_v8  ;;  %v6867_v8 = vld [vmem:[%s9564_s0 + $0x3a4] sm:$0xf] }
 0x1d4   :  { %2805 = vmatmul.bf16.gmra.mxu3 %v5214_v43  ;;  %v5331_v43 = vld [vmem:[%s9564_s0 + $0x3e0] sm:$0xf0]  ;;  %2967 = vmatpush.bf16.msrb.mxu2 %v7024_v33  ;;  %v6900_v33 = vld [vmem:[%s9564_s0 + $0x4ac] sm:$0xf] }
 0x1d6   :  { %v2506_v15 = vpop.f32.mrf.mxu2  ;;  %v2382_v18 = vpop.f32.mrf.mxu0 }
 0x1d7   :  { %v2569_v50 = vpop.f32.mrf.mxu3  ;;  %v2507_v16 = vadd.f32 %v2506_v15, %v2444_v13  ;;  %v2445_v20 = vpop.f32.mrf.mxu1  ;;  %v2383_v22 = vadd.f32 %v2382_v18, %v7972_v42  ;;  %v5267_v42 = vld [vmem:[%s9564_s0 + $0x360] sm:$0xf0]  ;;  %v6868_v13 = vld [vmem:[%s9564_s0 + $0x3ac] sm:$0xf]  ;;  %v5330_v18 = vor.u32 %v6875_v38, %v5329_v51 }
 0x1d8   :  { %v5270_v44 = vor.u32 %v6851_v30, %v5267_v42  ;;  %v5339_v15 = vld [vmem:[%s9564_s0 + $0x3e8] sm:$0xf0] }
 0x1d9   :  { %v8341_v23 = vadd.f32 %v2569_v50, %v2507_v16  ;;  %v2446_v26 = vadd.f32 %v2445_v20, %v2383_v22  ;;  %v5334_v20 = vor.u32 %v6867_v8, %v5331_v43  ;;  %v5342_v29 = vor.u32 %v6868_v13, %v5339_v15 }
 0x1de   :  { %v2508_v37 = vpop.f32.mrf.mxu2  ;;  %v2385_v49 = vpop.f32.mrf.mxu0 }
 0x1df   :  { %v2571_v40 = vpop.f32.mrf.mxu3  ;;  %v2509_v47 = vadd.f32 %v2508_v37, %v2446_v26  ;;  %v2448_v52 = vpop.f32.mrf.mxu1  ;;  %v2386_v55 = vadd.f32 %v2385_v49, %v7978_v56  ;;  %v6891_v49 = vld [vmem:[%s9564_s0 + $0x45c] sm:$0xf0] }
 0x1e1   :  { %v8377_v58 = vadd.f32 %v2571_v40, %v2509_v47  ;;  %v2449_v59 = vadd.f32 %v2448_v52, %v2386_v55  ;;  %2621 = vmatmul.bf16.gmra.mxu0 %v5266_v41  ;;  %v5393_v47 = vld [vmem:[%s9564_s0 + $0x420] sm:$0xf]  ;;  %v6883_v52 = vld [vmem:[%s9564_s0 + $0x424] sm:$0xf]  ;;  %v6892_v55 = vld [vmem:[%s9564_s0 + $0x464] sm:$0xf0] }
 0x1e2   :  { %2684 = vmatmul.bf16.gmra.mxu1 %v5270_v44 }
 0x1e3   :  { %2747 = vmatmul.bf16.gmra.mxu2 %v5274_v1  ;;  %v5395_v1 = vld [vmem:[%s9564_s0 + $0x460] sm:$0xf0] }
 0x1e4   :  { %2810 = vmatmul.bf16.gmra.mxu3 %v5278_v21  ;;  %v5401_v21 = vld [vmem:[%s9564_s0 + $0x428] sm:$0xf] }
 0x1e6   :  { %v2511_v63 = vpop.f32.mrf.mxu2  ;;  %v2387_v0 = vpop.f32.mrf.mxu0 }
 0x1e7   :  { %v2574_v61 = vpop.f32.mrf.mxu3  ;;  %v2512_v62 = vadd.f32 %v2511_v63, %v2449_v59  ;;  %v2450_v2 = vpop.f32.mrf.mxu1  ;;  %v2388_v56 = vadd.f32 %v2387_v0, %v8005_v19  ;;  %v5337_v19 = vld [vmem:[%s9564_s0 + $0x3a8] sm:$0xf]  ;;  %v6884_v59 = vld [vmem:[%s9564_s0 + $0x42c] sm:$0xf]  ;;  %v5398_v0 = vor.u32 %v6883_v52, %v5395_v1 }
 0x1e8   :  { %v5338_v27 = vor.u32 %v6876_v12, %v5337_v19  ;;  %v5406_v51 = vor.u32 %v6884_v59, %v5403_v60 }
 0x1e9   :  { %v8383_v3 = vadd.f32 %v2574_v61, %v2512_v62  ;;  %v2451_v4 = vadd.f32 %v2450_v2, %v2388_v56  ;;  %v5394_v62 = vor.u32 %v6891_v49, %v5393_v47  ;;  %v5470_v49 = vor.u32 %v6900_v33, %v5467_v35 }
 0x1ee   :  { %v2513_v50 = vpop.f32.mrf.mxu2  ;;  %v2390_v10 = vpop.f32.mrf.mxu0 }
 0x1ef   :  { %v2576_v16 = vpop.f32.mrf.mxu3  ;;  %v2514_v22 = vadd.f32 %v2513_v50, %v2451_v4  ;;  %v2453_v26 = vpop.f32.mrf.mxu1  ;;  %v2391_v30 = vadd.f32 %v2390_v10, %v8016_v32  ;;  %v5402_v4 = vor.u32 %v6892_v55, %v5401_v21  ;;  %v7023_v10 = vld [vmem:[%s9565_s1 + $0x380] sm:$0xff] }
 0x1f0   :  { %2968 = vmatpush.bf16.msrb.mxu2 %v7023_v10 }
 0x1f1   :  { %v8410_v42 = vadd.f32 %v2576_v16, %v2514_v22  ;;  %v2454_v31 = vadd.f32 %v2453_v26, %v2391_v30  ;;  %2626 = vmatmul.bf16.gmra.mxu0 %v5330_v18  ;;  %v5457_v18 = vld [vmem:[%s9564_s0 + $0x4a0] sm:$0xf] }
 0x1f2   :  { %2689 = vmatmul.bf16.gmra.mxu1 %v5334_v20  ;;  %v6899_v20 = vld [vmem:[%s9564_s0 + $0x4a4] sm:$0xf] }
 0x1f3   :  { %2752 = vmatmul.bf16.gmra.mxu2 %v5338_v27  ;;  %v7031_v26 = vld [vmem:[%s9565_s1 + $0x3c0] sm:$0xff] }
 0x1f4   :  { %2815 = vmatmul.bf16.gmra.mxu3 %v5342_v29  ;;  %v5459_v27 = vld [vmem:[%s9564_s0 + $0x4e0] sm:$0xf0]  ;;  %v5465_v29 = vld [vmem:[%s9564_s0 + $0x4a8] sm:$0xf] }
 0x1f5   :  { %v7015_v30 = vld [vmem:[%s9565_s1 + $0x340] sm:$0xff]  ;;  %3031 = vmatpush.bf16.msrb.mxu3 %v7031_v26 }
 0x1f6   :  { %v2516_v32 = vpop.f32.mrf.mxu2  ;;  %v2392_v41 = vpop.f32.mrf.mxu0  ;;  %2905 = vmatpush.bf16.msrb.mxu1 %v7015_v30 }
 0x1f7   :  { %v2579_v37 = vpop.f32.mrf.mxu3  ;;  %v2517_v40 = vadd.f32 %v2516_v32, %v2454_v31  ;;  %v2455_v44 = vpop.f32.mrf.mxu1  ;;  %v6908_v31 = vld [vmem:[%s9564_s0 + $0x4e4] sm:$0xf0] }
 0x1f8   :  { %v5466_v47 = vor.u32 %v6908_v31, %v5465_v29 }
 0x1f9   :  { %v8421_v34 = vadd.f32 %v2579_v37, %v2517_v40  ;;  %v5462_v40 = vor.u32 %v6899_v20, %v5459_v27 }
 0x1fe   :  { %v2518_v63 = vpop.f32.mrf.mxu2  ;;  %v2592_v2 = vpop.f32.mrf.mxu0 }
 0x1ff   :  { %v2581_v61 = vpop.f32.mrf.mxu3  ;;  %v2655_v56 = vpop.f32.mrf.mxu1  ;;  %v2593_v38 = vadd.f32 %v2592_v2, %v8047_v5  ;;  %v6907_v5 = vld [vmem:[%s9564_s0 + $0x4dc] sm:$0xf0] }
 0x200   :  { %v5458_v37 = vor.u32 %v6907_v5, %v5457_v18 }
 0x201   :  { %v2656_v8 = vadd.f32 %v2655_v56, %v2593_v38  ;;  %2631 = vmatmul.bf16.gmra.mxu0 %v5394_v62  ;;  %v191_v62 = vld [vmem:[%s9564_s0 + $0x520] sm:$0x11] }
 0x202   :  { %2694 = vmatmul.bf16.gmra.mxu1 %v5398_v0 }
 0x203   :  { %2757 = vmatmul.bf16.gmra.mxu2 %v5402_v4  ;;  %v951_v4 = vunpack.c.l.b16 %v191_v62 }
 0x204   :  { %2820 = vmatmul.bf16.gmra.mxu3 %v5406_v51  ;;  %v952_v51 = vunpack.c.h.b16 %v191_v62 }
 0x206   :  { %v2718_v43 = vpop.f32.mrf.mxu2  ;;  %v2594_v13 = vpop.f32.mrf.mxu0 }
 0x207   :  { %v2781_v19 = vpop.f32.mrf.mxu3  ;;  %v2719_v12 = vadd.f32 %v2718_v43, %v2656_v8  ;;  %v2657_v15 = vpop.f32.mrf.mxu1  ;;  %v2595_v50 = vadd.f32 %v2594_v13, %v8086_v39  ;;  %v7007_v39 = vld [vmem:[%s9565_s1 + $0x300] sm:$0xff]  ;;  %v1128_v13 = vpack.c.b16 %v952_v51, %v952_v51 }
 0x208   :  { %2842 = vmatpush.bf16.msrb.mxu0 %v7007_v39 }
 0x209   :  { %v8452_v16 = vadd.f32 %v2781_v19, %v2719_v12  ;;  %v2658_v22 = vadd.f32 %v2657_v15, %v2595_v50  ;;  %v1127_v12 = vpack.c.b16 %v951_v4, %v951_v4 }
 0x20e   :  { %v2720_v36 = vpop.f32.mrf.mxu2  ;;  %v2597_v44 = vpop.f32.mrf.mxu0 }
 0x20f   :  { %v2783_v32 = vpop.f32.mrf.mxu3  ;;  %v2721_v41 = vadd.f32 %v2720_v36, %v2658_v22  ;;  %v2660_v53 = vpop.f32.mrf.mxu1  ;;  %v2598_v52 = vadd.f32 %v2597_v44, %v8095_v54  ;;  %v192_v54 = vld [vmem:[%s9564_s0 + $0x528] sm:$0x11]  ;;  %v6765_v36 = vld [vmem:[%s9564_s0 + $0x6c] sm:$0xf0]  ;;  %v4907_v44 = vld [vmem:[%s9564_s0 + $0x78] sm:$0xf0] }
 0x210   :  { %v953_v38 = vunpack.c.l.b16 %v192_v54  ;;  %v954_v8 = vunpack.c.h.b16 %v192_v54 }
 0x211   :  { %v8491_v1 = vadd.f32 %v2783_v32, %v2721_v41  ;;  %v2661_v21 = vadd.f32 %v2660_v53, %v2598_v52  ;;  %2636 = vmatmul.bf16.gmra.mxu0 %v5458_v37  ;;  %v6757_v32 = vld [vmem:[%s9564_s0 + $0x34] sm:$0xf]  ;;  %v6758_v41 = vld [vmem:[%s9564_s0 + $0x3c] sm:$0xf] }
 0x212   :  { %2699 = vmatmul.bf16.gmra.mxu1 %v5462_v40  ;;  %v1129_v5 = vpack.c.b16 %v953_v38, %v953_v38  ;;  %v4899_v37 = vld [vmem:[%s9564_s0 + $0x70] sm:$0xf0]  ;;  %v6766_v40 = vld [vmem:[%s9564_s0 + $0x74] sm:$0xf0] }
 0x213   :  { %2762 = vmatmul.bf16.gmra.mxu2 %v5466_v47  ;;  %v4902_v52 = vor.u32 %v6757_v32, %v4899_v37 }
 0x214   :  { %2825 = vmatmul.bf16.gmra.mxu3 %v5470_v49 }
 0x216   :  { %v2723_v55 = vpop.f32.mrf.mxu2  ;;  %v2599_v63 = vpop.f32.mrf.mxu0 }
 0x217   :  { %v2786_v59 = vpop.f32.mrf.mxu3  ;;  %v2724_v60 = vadd.f32 %v2723_v55, %v2661_v21  ;;  %v2662_v61 = vpop.f32.mrf.mxu1  ;;  %v2600_v0 = vadd.f32 %v2599_v63, %v8098_v9  ;;  %v1130_v9 = vpack.c.b16 %v954_v8, %v954_v8  ;;  %v4910_v63 = vor.u32 %v6758_v41, %v4907_v44 }
 0x219   :  { %v8500_v2 = vadd.f32 %v2786_v59, %v2724_v60  ;;  %v2663_v56 = vadd.f32 %v2662_v61, %v2600_v0 }
 0x21e   :  { %v2725_v43 = vpop.f32.mrf.mxu2  ;;  %v2602_v50 = vpop.f32.mrf.mxu0 }
 0x21f   :  { %v2788_v19 = vpop.f32.mrf.mxu3  ;;  %v2726_v15 = vadd.f32 %v2725_v43, %v2663_v56  ;;  %v2665_v18 = vpop.f32.mrf.mxu1  ;;  %v2603_v20 = vadd.f32 %v2602_v50, %v8113_v28  ;;  %v4897_v28 = vld [vmem:[%s9564_s0 + $0x30] sm:$0xf]  ;;  %v6782_v50 = vld [vmem:[%s9564_s0 + $0xf4] sm:$0xf0] }
 0x220   :  { %v4898_v49 = vor.u32 %v6765_v36, %v4897_v28 }
 0x221   :  { %v8503_v22 = vadd.f32 %v2788_v19, %v2726_v15  ;;  %v2666_v10 = vadd.f32 %v2665_v18, %v2603_v20  ;;  %2641 = vmatmul.bf16.gmra.mxu0 %v1127_v12  ;;  %v6781_v12 = vld [vmem:[%s9564_s0 + $0xec] sm:$0xf0]  ;;  %v4963_v15 = vld [vmem:[%s9564_s0 + $0xf0] sm:$0xf0]  ;;  %v6774_v18 = vld [vmem:[%s9564_s0 + $0xbc] sm:$0xf] }
 0x222   :  { %2704 = vmatmul.bf16.gmra.mxu1 %v1128_v13  ;;  %v6773_v13 = vld [vmem:[%s9564_s0 + $0xb4] sm:$0xf] }
 0x223   :  { %2767 = vmatmul.bf16.gmra.mxu2 %v1129_v5  ;;  %v4971_v5 = vld [vmem:[%s9564_s0 + $0xf8] sm:$0xf0] }
 0x224   :  { %2830 = vmatmul.bf16.gmra.mxu3 %v1130_v9 }
 0x226   :  { %v2728_v39 = vpop.f32.mrf.mxu2  ;;  %v2604_v29 = vpop.f32.mrf.mxu0 }
 0x227   :  { %v2791_v26 = vpop.f32.mrf.mxu3  ;;  %v2729_v27 = vadd.f32 %v2728_v39, %v2666_v10  ;;  %v2667_v30 = vpop.f32.mrf.mxu1  ;;  %v2605_v31 = vadd.f32 %v2604_v29, %v8140_v57  ;;  %v4905_v57 = vld [vmem:[%s9564_s0 + $0x38] sm:$0xf]  ;;  %v4966_v39 = vor.u32 %v6773_v13, %v4963_v15 }
 0x228   :  { %v4906_v60 = vor.u32 %v6766_v40, %v4905_v57 }
 0x229   :  { %v8506_v33 = vadd.f32 %v2791_v26, %v2729_v27  ;;  %v2668_v35 = vadd.f32 %v2667_v30, %v2605_v31  ;;  %v4974_v31 = vor.u32 %v6774_v18, %v4971_v5 }
 0x22e   :  { %v2730_v53 = vpop.f32.mrf.mxu2  ;;  %v2607_v55 = vpop.f32.mrf.mxu0 }
 0x22f   :  { %v2793_v47 = vpop.f32.mrf.mxu3  ;;  %v2731_v21 = vadd.f32 %v2730_v53, %v2668_v35  ;;  %v2670_v59 = vpop.f32.mrf.mxu1  ;;  %v2608_v61 = vadd.f32 %v2607_v55, %v8146_v17  ;;  %v4961_v17 = vld [vmem:[%s9564_s0 + $0xb0] sm:$0xf]  ;;  %v6798_v55 = vld [vmem:[%s9564_s0 + $0x174] sm:$0xf0] }
 0x230   :  { %v4962_v10 = vor.u32 %v6781_v12, %v4961_v17 }
 0x231   :  { %v8533_v62 = vadd.f32 %v2793_v47, %v2731_v21  ;;  %v2671_v0 = vadd.f32 %v2670_v59, %v2608_v61  ;;  %2843 = vmatmul.bf16.vlgmr.msrb.gmra.mxu0 %v4898_v49  ;;  %v6797_v49 = vld [vmem:[%s9564_s0 + $0x16c] sm:$0xf0]  ;;  %v5027_v21 = vld [vmem:[%s9564_s0 + $0x170] sm:$0xf0]  ;;  %v6790_v59 = vld [vmem:[%s9564_s0 + $0x13c] sm:$0xf] }
 0x232   :  { %2906 = vmatmul.bf16.vlgmr.msrb.gmra.mxu1 %v4902_v52  ;;  %v6789_v52 = vld [vmem:[%s9564_s0 + $0x134] sm:$0xf] }
 0x233   :  { %2969 = vmatmul.bf16.vlgmr.msrb.gmra.mxu2 %v4906_v60  ;;  %v5035_v60 = vld [vmem:[%s9564_s0 + $0x178] sm:$0xf0] }
 0x234   :  { %3032 = vmatmul.bf16.vlgmr.msrb.gmra.mxu3 %v4910_v63 }
 0x236   :  { %v2733_v54 = vpop.f32.mrf.mxu2  ;;  %v2609_v51 = vpop.f32.mrf.mxu0 }
 0x237   :  { %v2796_v56 = vpop.f32.mrf.mxu3  ;;  %v2734_v4 = vadd.f32 %v2733_v54, %v2671_v0  ;;  %v2672_v38 = vpop.f32.mrf.mxu1  ;;  %v2610_v8 = vadd.f32 %v2609_v51, %v8182_v7  ;;  %v4969_v7 = vld [vmem:[%s9564_s0 + $0xb8] sm:$0xf]  ;;  %v5030_v54 = vor.u32 %v6789_v52, %v5027_v21 }
 0x238   :  { %v4970_v30 = vor.u32 %v6782_v50, %v4969_v7 }
 0x239   :  { %v8536_v43 = vadd.f32 %v2796_v56, %v2734_v4  ;;  %v2673_v19 = vadd.f32 %v2672_v38, %v2610_v8  ;;  %v5038_v8 = vor.u32 %v6790_v59, %v5035_v60 }
 0x23e   :  { %v2735_v9 = vpop.f32.mrf.mxu2  ;;  %v2612_v27 = vpop.f32.mrf.mxu0 }
 0x23f   :  { %v2798_v20 = vpop.f32.mrf.mxu3  ;;  %v2736_v26 = vadd.f32 %v2735_v9, %v2673_v19  ;;  %v2675_v29 = vpop.f32.mrf.mxu1  ;;  %v2613_v35 = vadd.f32 %v2612_v27, %v8185_v46  ;;  %v5025_v46 = vld [vmem:[%s9564_s0 + $0x130] sm:$0xf]  ;;  %v6814_v27 = vld [vmem:[%s9564_s0 + $0x1f4] sm:$0xf0] }
 0x240   :  { %v5026_v0 = vor.u32 %v6797_v49, %v5025_v46 }
 0x241   :  { %v8563_v28 = vadd.f32 %v2798_v20, %v2736_v26  ;;  %v2676_v36 = vadd.f32 %v2675_v29, %v2613_v35  ;;  %2848 = vmatmul.bf16.gmra.mxu0 %v4962_v10  ;;  %v6813_v10 = vld [vmem:[%s9564_s0 + $0x1ec] sm:$0xf0]  ;;  %v5091_v26 = vld [vmem:[%s9564_s0 + $0x1f0] sm:$0xf0]  ;;  %v6806_v29 = vld [vmem:[%s9564_s0 + $0x1bc] sm:$0xf] }
 0x242   :  { %2911 = vmatmul.bf16.gmra.mxu1 %v4966_v39  ;;  %v6805_v39 = vld [vmem:[%s9564_s0 + $0x1b4] sm:$0xf] }
 0x243   :  { %2974 = vmatmul.bf16.gmra.mxu2 %v4970_v30  ;;  %v5099_v30 = vld [vmem:[%s9564_s0 + $0x1f8] sm:$0xf0] }
 0x244   :  { %3037 = vmatmul.bf16.gmra.mxu3 %v4974_v31 }
 0x246   :  { %v2738_v32 = vpop.f32.mrf.mxu2  ;;  %v2614_v40 = vpop.f32.mrf.mxu0 }
 0x247   :  { %v2801_v37 = vpop.f32.mrf.mxu3  ;;  %v2739_v57 = vadd.f32 %v2738_v32, %v2676_v36  ;;  %v2677_v41 = vpop.f32.mrf.mxu1  ;;  %v2615_v44 = vadd.f32 %v2614_v40, %v8221_v11  ;;  %v5033_v11 = vld [vmem:[%s9564_s0 + $0x138] sm:$0xf]  ;;  %v5094_v32 = vor.u32 %v6805_v39, %v5091_v26 }
 0x248   :  { %v5034_v38 = vor.u32 %v6798_v55, %v5033_v11 }
 0x249   :  { %v8566_v53 = vadd.f32 %v2801_v37, %v2739_v57  ;;  %v2678_v47 = vadd.f32 %v2677_v41, %v2615_v44  ;;  %v5102_v44 = vor.u32 %v6806_v29, %v5099_v30 }
 0x24e   :  { %v2740_v63 = vpop.f32.mrf.mxu2  ;;  %v2617_v4 = vpop.f32.mrf.mxu0 }
 0x24f   :  { %v2803_v61 = vpop.f32.mrf.mxu3  ;;  %v2741_v56 = vadd.f32 %v2740_v63, %v2678_v47  ;;  %v2680_v51 = vpop.f32.mrf.mxu1  ;;  %v2618_v19 = vadd.f32 %v2617_v4, %v8227_v25  ;;  %v5089_v25 = vld [vmem:[%s9564_s0 + $0x1b0] sm:$0xf]  ;;  %v6830_v4 = vld [vmem:[%s9564_s0 + $0x274] sm:$0xf0] }
 0x250   :  { %v5090_v36 = vor.u32 %v6813_v10, %v5089_v25 }
 0x251   :  { %v8593_v17 = vadd.f32 %v2803_v61, %v2741_v56  ;;  %v2681_v12 = vadd.f32 %v2680_v51, %v2618_v19  ;;  %2853 = vmatmul.bf16.gmra.mxu0 %v5026_v0  ;;  %v6829_v0 = vld [vmem:[%s9564_s0 + $0x26c] sm:$0xf0]  ;;  %v5155_v56 = vld [vmem:[%s9564_s0 + $0x270] sm:$0xf0]  ;;  %v6822_v51 = vld [vmem:[%s9564_s0 + $0x23c] sm:$0xf] }
 0x252   :  { %2916 = vmatmul.bf16.gmra.mxu1 %v5030_v54  ;;  %v6821_v54 = vld [vmem:[%s9564_s0 + $0x234] sm:$0xf] }
 0x253   :  { %2979 = vmatmul.bf16.gmra.mxu2 %v5034_v38  ;;  %v5163_v38 = vld [vmem:[%s9564_s0 + $0x278] sm:$0xf0] }
 0x254   :  { %3042 = vmatmul.bf16.gmra.mxu3 %v5038_v8 }
 0x256   :  { %v2743_v13 = vpop.f32.mrf.mxu2  ;;  %v2619_v50 = vpop.f32.mrf.mxu0 }
 0x257   :  { %v2806_v15 = vpop.f32.mrf.mxu3  ;;  %v2744_v7 = vadd.f32 %v2743_v13, %v2681_v12  ;;  %v2682_v18 = vpop.f32.mrf.mxu1  ;;  %v2620_v5 = vadd.f32 %v2619_v50, %v8254_v14  ;;  %v5097_v14 = vld [vmem:[%s9564_s0 + $0x1b8] sm:$0xf]  ;;  %v5158_v13 = vor.u32 %v6821_v54, %v5155_v56 }
 0x258   :  { %v5098_v41 = vor.u32 %v6814_v27, %v5097_v14 }
 0x259   :  { %v8596_v9 = vadd.f32 %v2806_v15, %v2744_v7  ;;  %v2683_v20 = vadd.f32 %v2682_v18, %v2620_v5  ;;  %v5166_v5 = vor.u32 %v6822_v51, %v5163_v38 }
 0x25e   :  { %v2745_v31 = vpop.f32.mrf.mxu2  ;;  %v2622_v57 = vpop.f32.mrf.mxu0 }
 0x25f   :  { %v2808_v35 = vpop.f32.mrf.mxu3  ;;  %v2746_v37 = vadd.f32 %v2745_v31, %v2683_v20  ;;  %v2685_v40 = vpop.f32.mrf.mxu1  ;;  %v2623_v47 = vadd.f32 %v2622_v57, %v8269_v6  ;;  %v5153_v6 = vld [vmem:[%s9564_s0 + $0x230] sm:$0xf]  ;;  %v6846_v57 = vld [vmem:[%s9564_s0 + $0x2f4] sm:$0xf0] }
 0x260   :  { %v5154_v12 = vor.u32 %v6829_v0, %v5153_v6 }
 0x261   :  { %v8623_v46 = vadd.f32 %v2808_v35, %v2746_v37  ;;  %v2686_v49 = vadd.f32 %v2685_v40, %v2623_v47  ;;  %2858 = vmatmul.bf16.gmra.mxu0 %v5090_v36  ;;  %v6845_v36 = vld [vmem:[%s9564_s0 + $0x2ec] sm:$0xf0]  ;;  %v5219_v37 = vld [vmem:[%s9564_s0 + $0x2f0] sm:$0xf0]  ;;  %v6838_v40 = vld [vmem:[%s9564_s0 + $0x2bc] sm:$0xf] }
 0x262   :  { %2921 = vmatmul.bf16.gmra.mxu1 %v5094_v32  ;;  %v6837_v32 = vld [vmem:[%s9564_s0 + $0x2b4] sm:$0xf] }
 0x263   :  { %2984 = vmatmul.bf16.gmra.mxu2 %v5098_v41  ;;  %v5227_v41 = vld [vmem:[%s9564_s0 + $0x2f8] sm:$0xf0] }
 0x264   :  { %3047 = vmatmul.bf16.gmra.mxu3 %v5102_v44 }
 0x266   :  { %v2748_v52 = vpop.f32.mrf.mxu2  ;;  %v2624_v55 = vpop.f32.mrf.mxu0 }
 0x267   :  { %v2811_v21 = vpop.f32.mrf.mxu3  ;;  %v2749_v11 = vadd.f32 %v2748_v52, %v2686_v49  ;;  %v2687_v59 = vpop.f32.mrf.mxu1  ;;  %v2625_v60 = vadd.f32 %v2624_v55, %v8296_v48  ;;  %v5161_v48 = vld [vmem:[%s9564_s0 + $0x238] sm:$0xf]  ;;  %v5222_v52 = vor.u32 %v6837_v32, %v5219_v37 }
 0x268   :  { %v5162_v18 = vor.u32 %v6830_v4, %v5161_v48 }
 0x269   :  { %v8626_v63 = vadd.f32 %v2811_v21, %v2749_v11  ;;  %v2688_v61 = vadd.f32 %v2687_v59, %v2625_v60  ;;  %v5230_v60 = vor.u32 %v6838_v40, %v5227_v41 }
 0x26e   :  { %v2750_v8 = vpop.f32.mrf.mxu2  ;;  %v2627_v7 = vpop.f32.mrf.mxu0 }
 0x26f   :  { %v2813_v19 = vpop.f32.mrf.mxu3  ;;  %v2751_v15 = vadd.f32 %v2750_v8, %v2688_v61  ;;  %v2690_v50 = vpop.f32.mrf.mxu1  ;;  %v2628_v20 = vadd.f32 %v2627_v7, %v8299_v45  ;;  %v5217_v45 = vld [vmem:[%s9564_s0 + $0x2b0] sm:$0xf]  ;;  %v6862_v7 = vld [vmem:[%s9564_s0 + $0x374] sm:$0xf0] }
 0x270   :  { %v5218_v49 = vor.u32 %v6845_v36, %v5217_v45 }
 0x271   :  { %v8653_v25 = vadd.f32 %v2813_v19, %v2751_v15  ;;  %v2691_v10 = vadd.f32 %v2690_v50, %v2628_v20  ;;  %2863 = vmatmul.bf16.gmra.mxu0 %v5154_v12  ;;  %v6861_v12 = vld [vmem:[%s9564_s0 + $0x36c] sm:$0xf0]  ;;  %v5283_v15 = vld [vmem:[%s9564_s0 + $0x370] sm:$0xf0]  ;;  %v6854_v50 = vld [vmem:[%s9564_s0 + $0x33c] sm:$0xf] }
 0x272   :  { %2926 = vmatmul.bf16.gmra.mxu1 %v5158_v13  ;;  %v6853_v13 = vld [vmem:[%s9564_s0 + $0x334] sm:$0xf] }
 0x273   :  { %2989 = vmatmul.bf16.gmra.mxu2 %v5162_v18  ;;  %v5291_v18 = vld [vmem:[%s9564_s0 + $0x378] sm:$0xf0] }
 0x274   :  { %3052 = vmatmul.bf16.gmra.mxu3 %v5166_v5 }
 0x276   :  { %v2753_v39 = vpop.f32.mrf.mxu2  ;;  %v2629_v27 = vpop.f32.mrf.mxu0 }
 0x277   :  { %v2816_v26 = vpop.f32.mrf.mxu3  ;;  %v2754_v14 = vadd.f32 %v2753_v39, %v2691_v10  ;;  %v2692_v29 = vpop.f32.mrf.mxu1  ;;  %v2630_v30 = vadd.f32 %v2629_v27, %v8338_v24  ;;  %v5225_v24 = vld [vmem:[%s9564_s0 + $0x2b8] sm:$0xf]  ;;  %v5286_v39 = vor.u32 %v6853_v13, %v5283_v15 }
 0x278   :  { %v5226_v59 = vor.u32 %v6846_v57, %v5225_v24 }
 0x279   :  { %v8656_v31 = vadd.f32 %v2816_v26, %v2754_v14  ;;  %v2693_v35 = vadd.f32 %v2692_v29, %v2630_v30  ;;  %v5294_v30 = vor.u32 %v6854_v50, %v5291_v18 }
 0x27e   :  { %v2755_v44 = vpop.f32.mrf.mxu2  ;;  %v2632_v11 = vpop.f32.mrf.mxu0 }
 0x27f   :  { %v2818_v47 = vpop.f32.mrf.mxu3  ;;  %v2756_v21 = vadd.f32 %v2755_v44, %v2693_v35  ;;  %v2695_v55 = vpop.f32.mrf.mxu1  ;;  %v2633_v61 = vadd.f32 %v2632_v11, %v8341_v23  ;;  %v5281_v23 = vld [vmem:[%s9564_s0 + $0x330] sm:$0xf]  ;;  %v6878_v11 = vld [vmem:[%s9564_s0 + $0x3f4] sm:$0xf0] }
 0x280   :  { %v5282_v10 = vor.u32 %v6861_v12, %v5281_v23 }
 0x281   :  { %v8683_v6 = vadd.f32 %v2818_v47, %v2756_v21  ;;  %v2696_v0 = vadd.f32 %v2695_v55, %v2633_v61  ;;  %2868 = vmatmul.bf16.gmra.mxu0 %v5218_v49  ;;  %v6877_v49 = vld [vmem:[%s9564_s0 + $0x3ec] sm:$0xf0]  ;;  %v5347_v21 = vld [vmem:[%s9564_s0 + $0x3f0] sm:$0xf0]  ;;  %v6870_v55 = vld [vmem:[%s9564_s0 + $0x3bc] sm:$0xf] }
 0x282   :  { %2931 = vmatmul.bf16.gmra.mxu1 %v5222_v52  ;;  %v6869_v52 = vld [vmem:[%s9564_s0 + $0x3b4] sm:$0xf] }
 0x283   :  { %2994 = vmatmul.bf16.gmra.mxu2 %v5226_v59  ;;  %v5355_v59 = vld [vmem:[%s9564_s0 + $0x3f8] sm:$0xf0] }
 0x284   :  { %3057 = vmatmul.bf16.gmra.mxu3 %v5230_v60 }
 0x286   :  { %v2758_v54 = vpop.f32.mrf.mxu2  ;;  %v2634_v4 = vpop.f32.mrf.mxu0 }
 0x287   :  { %v2821_v56 = vpop.f32.mrf.mxu3  ;;  %v2759_v48 = vadd.f32 %v2758_v54, %v2696_v0  ;;  %v2697_v51 = vpop.f32.mrf.mxu1  ;;  %v2635_v38 = vadd.f32 %v2634_v4, %v8377_v58  ;;  %v5289_v58 = vld [vmem:[%s9564_s0 + $0x338] sm:$0xf]  ;;  %v5350_v54 = vor.u32 %v6869_v52, %v5347_v21 }
 0x288   :  { %v5290_v29 = vor.u32 %v6862_v7, %v5289_v58 }
 0x289   :  { %v8686_v8 = vadd.f32 %v2821_v56, %v2759_v48  ;;  %v2698_v19 = vadd.f32 %v2697_v51, %v2635_v38  ;;  %v5358_v38 = vor.u32 %v6870_v55, %v5355_v59  ;;  %v6901_v55 = vld [vmem:[%s9564_s0 + $0x4b4] sm:$0xf] }
 0x28a   :  { %v5475_v59 = vld [vmem:[%s9564_s0 + $0x4f0] sm:$0xf0] }
 0x28e   :  { %v2760_v5 = vpop.f32.mrf.mxu2  ;;  %v2637_v14 = vpop.f32.mrf.mxu0 }
 0x28f   :  { %v2823_v20 = vpop.f32.mrf.mxu3  ;;  %v2761_v26 = vadd.f32 %v2760_v5, %v2698_v19  ;;  %v2700_v27 = vpop.f32.mrf.mxu1  ;;  %v2638_v35 = vadd.f32 %v2637_v14, %v8383_v3  ;;  %v5345_v3 = vld [vmem:[%s9564_s0 + $0x3b0] sm:$0xf]  ;;  %v6886_v14 = vld [vmem:[%s9564_s0 + $0x43c] sm:$0xf] }
 0x290   :  { %v5346_v0 = vor.u32 %v6877_v49, %v5345_v3  ;;  %v5409_v5 = vld [vmem:[%s9564_s0 + $0x430] sm:$0xf] }
 0x291   :  { %v8713_v45 = vadd.f32 %v2823_v20, %v2761_v26  ;;  %v2701_v36 = vadd.f32 %v2700_v27, %v2638_v35  ;;  %2873 = vmatmul.bf16.gmra.mxu0 %v5282_v10  ;;  %v6885_v20 = vld [vmem:[%s9564_s0 + $0x434] sm:$0xf]  ;;  %v6894_v26 = vld [vmem:[%s9564_s0 + $0x474] sm:$0xf0]  ;;  %v5419_v27 = vld [vmem:[%s9564_s0 + $0x478] sm:$0xf0] }
 0x292   :  { %2936 = vmatmul.bf16.gmra.mxu1 %v5286_v39  ;;  %v5411_v10 = vld [vmem:[%s9564_s0 + $0x470] sm:$0xf0]  ;;  %v5417_v39 = vld [vmem:[%s9564_s0 + $0x438] sm:$0xf] }
 0x293   :  { %2999 = vmatmul.bf16.gmra.mxu2 %v5290_v29 }
 0x294   :  { %3062 = vmatmul.bf16.gmra.mxu3 %v5294_v30 }
 0x296   :  { %v2763_v32 = vpop.f32.mrf.mxu2  ;;  %v2639_v57 = vpop.f32.mrf.mxu0 }
 0x297   :  { %v2826_v37 = vpop.f32.mrf.mxu3  ;;  %v2764_v24 = vadd.f32 %v2763_v32, %v2701_v36  ;;  %v2702_v40 = vpop.f32.mrf.mxu1  ;;  %v2640_v41 = vadd.f32 %v2639_v57, %v8410_v42  ;;  %v5353_v42 = vld [vmem:[%s9564_s0 + $0x3b8] sm:$0xf]  ;;  %v5414_v36 = vor.u32 %v6885_v20, %v5411_v10  ;;  %v5422_v57 = vor.u32 %v6886_v14, %v5419_v27  ;;  %v193_v10 = vld [vmem:[%s9564_s0 + $0x530] sm:$0x11] }
 0x298   :  { %v5354_v51 = vor.u32 %v6878_v11, %v5353_v42  ;;  %v5473_v11 = vld [vmem:[%s9564_s0 + $0x4b0] sm:$0xf]  ;;  %v956_v14 = vunpack.c.h.b16 %v193_v10 }
 0x299   :  { %v8716_v44 = vadd.f32 %v2826_v37, %v2764_v24  ;;  %v2703_v47 = vadd.f32 %v2702_v40, %v2640_v41  ;;  %v5418_v24 = vor.u32 %v6894_v26, %v5417_v39  ;;  %v955_v26 = vunpack.c.l.b16 %v193_v10 }
 0x29e   :  { %v2765_v60 = vpop.f32.mrf.mxu2  ;;  %v2642_v48 = vpop.f32.mrf.mxu0 }
 0x29f   :  { %v2828_v61 = vpop.f32.mrf.mxu3  ;;  %v2766_v56 = vadd.f32 %v2765_v60, %v2703_v47  ;;  %v2705_v4 = vpop.f32.mrf.mxu1  ;;  %v2643_v19 = vadd.f32 %v2642_v48, %v8421_v34  ;;  %v6893_v34 = vld [vmem:[%s9564_s0 + $0x46c] sm:$0xf0]  ;;  %v5481_v60 = vld [vmem:[%s9564_s0 + $0x4b8] sm:$0xf] }
 0x2a0   :  { %v5410_v35 = vor.u32 %v6893_v34, %v5409_v5 }
 0x2a1   :  { %v8743_v23 = vadd.f32 %v2828_v61, %v2766_v56  ;;  %v2706_v12 = vadd.f32 %v2705_v4, %v2643_v19  ;;  %2878 = vmatmul.bf16.gmra.mxu0 %v5346_v0  ;;  %v6910_v61 = vld [vmem:[%s9564_s0 + $0x4f4] sm:$0xf0]  ;;  %v6902_v0 = vld [vmem:[%s9564_s0 + $0x4bc] sm:$0xf] }
 0x2a2   :  { %2941 = vmatmul.bf16.gmra.mxu1 %v5350_v54  ;;  %v5483_v54 = vld [vmem:[%s9564_s0 + $0x4f8] sm:$0xf0] }
 0x2a3   :  { %3004 = vmatmul.bf16.gmra.mxu2 %v5354_v51  ;;  %v5478_v51 = vor.u32 %v6901_v55, %v5475_v59 }
 0x2a4   :  { %3067 = vmatmul.bf16.gmra.mxu3 %v5358_v38 }
 0x2a6   :  { %v2768_v13 = vpop.f32.mrf.mxu2  ;;  %v2644_v7 = vpop.f32.mrf.mxu0 }
 0x2a7   :  { %v2831_v15 = vpop.f32.mrf.mxu3  ;;  %v2769_v58 = vadd.f32 %v2768_v13, %v2706_v12  ;;  %v2707_v50 = vpop.f32.mrf.mxu1  ;;  %v5482_v12 = vor.u32 %v6910_v61, %v5481_v60  ;;  %v5486_v13 = vor.u32 %v6902_v0, %v5483_v54 }
 0x2a9   :  { %v8745_v18 = vadd.f32 %v2831_v15, %v2769_v58 }
 0x2ae   :  { %v2770_v29 = vpop.f32.mrf.mxu2  ;;  %v2844_v32 = vpop.f32.mrf.mxu0 }
 0x2af   :  { %v2833_v30 = vpop.f32.mrf.mxu3  ;;  %v2907_v37 = vpop.f32.mrf.mxu1  ;;  %v2845_v40 = vadd.f32 %v2844_v32, %v8452_v16  ;;  %v6909_v16 = vld [vmem:[%s9564_s0 + $0x4ec] sm:$0xf0]  ;;  %v1132_v32 = vpack.c.b16 %v956_v14, %v956_v14 }
 0x2b0   :  { %v5474_v4 = vor.u32 %v6909_v16, %v5473_v11 }
 0x2b1   :  { %v2908_v41 = vadd.f32 %v2907_v37, %v2845_v40  ;;  %2883 = vmatmul.bf16.gmra.mxu0 %v5410_v35 }
 0x2b2   :  { %2946 = vmatmul.bf16.gmra.mxu1 %v5414_v36  ;;  %v1131_v36 = vpack.c.b16 %v955_v26, %v955_v26 }
 0x2b3   :  { %3009 = vmatmul.bf16.gmra.mxu2 %v5418_v24 }
 0x2b4   :  { %3072 = vmatmul.bf16.gmra.mxu3 %v5422_v57 }
 0x2b6   :  { %v2970_v47 = vpop.f32.mrf.mxu2  ;;  %v8772_v52 = vpop.f32.mrf.mxu0 }
 0x2b7   :  { %v3033_v3 = vpop.f32.mrf.mxu3  ;;  %v2971_v49 = vadd.f32 %v2970_v47, %v2908_v41  ;;  %v8774_v21 = vpop.f32.mrf.mxu1 }
 0x2b9   :  { %v8776_v42 = vadd.f32 %v3033_v3, %v2971_v49 }
 0x2be   :  { %v8802_v56 = vpop.f32.mrf.mxu2  ;;  %v2849_v38 = vpop.f32.mrf.mxu0 }
 0x2bf   :  { %v8804_v48 = vpop.f32.mrf.mxu3  ;;  %v2912_v19 = vpop.f32.mrf.mxu1  ;;  %v2850_v15 = vadd.f32 %v2849_v38, %v8500_v2  ;;  %v194_v2 = vld [vmem:[%s9564_s0 + $0x538] sm:$0x11] }
 0x2c0   :  { %v957_v27 = vunpack.c.l.b16 %v194_v2  ;;  %v958_v29 = vunpack.c.h.b16 %v194_v2 }
 0x2c1   :  { %v2913_v58 = vadd.f32 %v2912_v19, %v2850_v15  ;;  %2888 = vmatmul.bf16.gmra.mxu0 %v5474_v4 }
 0x2c2   :  { %2951 = vmatmul.bf16.gmra.mxu1 %v5478_v51  ;;  %v1133_v57 = vpack.c.b16 %v957_v27, %v957_v27  ;;  %v1134_v40 = vpack.c.b16 %v958_v29, %v958_v29 }
 0x2c3   :  { %3014 = vmatmul.bf16.gmra.mxu2 %v5482_v12 }
 0x2c4   :  { %3077 = vmatmul.bf16.gmra.mxu3 %v5486_v13 }
 0x2c6   :  { %v2975_v7 = vpop.f32.mrf.mxu2  ;;  %v8807_v34 = vpop.f32.mrf.mxu0 }
 0x2c7   :  { %v3038_v50 = vpop.f32.mrf.mxu3  ;;  %v2976_v5 = vadd.f32 %v2975_v7, %v2913_v58  ;;  %v8809_v20 = vpop.f32.mrf.mxu1 }
 0x2c9   :  { %v8817_v39 = vadd.f32 %v3038_v50, %v2976_v5  ;;  %v7062_v50 = vld [vmem:[%s9569_s5 + $0xb8] sm:$0xff] }
 0x2ca   :  { %v7070_v5 = vld [vmem:[%s9569_s5 + $0xf8] sm:$0xff]  ;;  %3707 = vmatpush.bf16.msra.mxu2 %v7062_v50  ;;  %v7045_v50 = vld [vmem:[%s9569_s5 + $0x30] sm:$0xff] }
 0x2cb   :  { %3791 = vmatpush.bf16.msra.mxu3 %v7070_v5 }
 0x2ce   :  { %v8819_v30 = vpop.f32.mrf.mxu2  ;;  %v2854_v37 = vpop.f32.mrf.mxu0 }
 0x2cf   :  { %v8821_v35 = vpop.f32.mrf.mxu3  ;;  %v2917_v24 = vpop.f32.mrf.mxu1  ;;  %v2855_v41 = vadd.f32 %v2854_v37, %v8506_v33 }
 0x2d1   :  { %v2918_v47 = vadd.f32 %v2917_v24, %v2855_v41  ;;  %2893 = vmatmul.bf16.gmra.mxu0 %v1131_v36  ;;  %v7054_v36 = vld [vmem:[%s9569_s5 + $0x78] sm:$0xff] }
 0x2d2   :  { %2956 = vmatmul.bf16.gmra.mxu1 %v1132_v32  ;;  %v7046_v32 = vld [vmem:[%s9569_s5 + $0x38] sm:$0xff]  ;;  %3559 = vmatpush.bf16.msra.mxu0 %v7054_v36  ;;  %v7060_v36 = vld [vmem:[%s9569_s5 + $0xa8] sm:$0xff] }
 0x2d3   :  { %3019 = vmatmul.bf16.gmra.mxu2 %v1133_v57  ;;  %3624 = vmatpush.bf16.msra.mxu1 %v7046_v32  ;;  %v7068_v32 = vld [vmem:[%s9569_s5 + $0xe8] sm:$0xff] }
 0x2d4   :  { %3082 = vmatmul.bf16.gmra.mxu3 %v1134_v40 }
 0x2d6   :  { %v2980_v3 = vpop.f32.mrf.mxu2  ;;  %v8824_v16 = vpop.f32.mrf.mxu0 }
 0x2d7   :  { %v3043_v49 = vpop.f32.mrf.mxu3  ;;  %v2981_v11 = vadd.f32 %v2980_v3, %v2918_v47  ;;  %v8826_v55 = vpop.f32.mrf.mxu1  ;;  %3625 = vmatpush.bf16.msra.mxu1 %v7045_v50 }
 0x2d9   :  { %v8828_v59 = vadd.f32 %v3043_v49, %v2981_v11 }
 0x2de   :  { %v8830_v60 = vpop.f32.mrf.mxu2  ;;  %v2859_v0 = vpop.f32.mrf.mxu0 }
 0x2df   :  { %v8832_v61 = vpop.f32.mrf.mxu3  ;;  %v2922_v33 = vpop.f32.mrf.mxu1  ;;  %v2860_v54 = vadd.f32 %v2859_v0, %v8536_v43 }
 0x2e1   :  { %v2923_v4 = vadd.f32 %v2922_v33, %v2860_v54 }
 0x2e6   :  { %v2985_v51 = vpop.f32.mrf.mxu2  ;;  %v2861_v12 = vpop.f32.mrf.mxu0 }
 0x2e7   :  { %v3048_v38 = vpop.f32.mrf.mxu3  ;;  %v2986_v19 = vadd.f32 %v2985_v51, %v2923_v4  ;;  %v2924_v13 = vpop.f32.mrf.mxu1  ;;  %v2862_v15 = vadd.f32 %v2861_v12, %v8563_v28  ;;  %v7053_v12 = vld [vmem:[%s9569_s5 + $0x70] sm:$0xff] }
 0x2e8   :  { %3560 = vmatpush.bf16.msra.mxu0 %v7053_v12 }
 0x2e9   :  { %v8836_v58 = vadd.f32 %v3048_v38, %v2986_v19  ;;  %v2925_v7 = vadd.f32 %v2924_v13, %v2862_v15  ;;  %v7061_v19 = vld [vmem:[%s9569_s5 + $0xb0] sm:$0xff] }
 0x2ea   :  { %3708 = vmatpush.bf16.msra.mxu2 %v7061_v19 }
 0x2ee   :  { %v2987_v43 = vpop.f32.mrf.mxu2  ;;  %v2864_v26 = vpop.f32.mrf.mxu0  ;;  %3709 = vmatpush.bf16.msra.mxu2 %v7060_v36 }
 0x2ef   :  { %v3050_v10 = vpop.f32.mrf.mxu3  ;;  %v2988_v2 = vadd.f32 %v2987_v43, %v2925_v7  ;;  %v2927_v14 = vpop.f32.mrf.mxu1  ;;  %v2865_v28 = vadd.f32 %v2864_v26, %v8566_v53 }
 0x2f1   :  { %v8845_v27 = vadd.f32 %v3050_v10, %v2988_v2  ;;  %v2928_v29 = vadd.f32 %v2927_v14, %v2865_v28 }
 0x2f6   :  { %v2990_v37 = vpop.f32.mrf.mxu2  ;;  %v2866_v40 = vpop.f32.mrf.mxu0 }
 0x2f7   :  { %v3053_v24 = vpop.f32.mrf.mxu3  ;;  %v2991_v57 = vadd.f32 %v2990_v37, %v2928_v29  ;;  %v2929_v41 = vpop.f32.mrf.mxu1  ;;  %v2867_v53 = vadd.f32 %v2866_v40, %v8593_v17  ;;  %v7069_v17 = vld [vmem:[%s9569_s5 + $0xf0] sm:$0xff]  ;;  %v7052_v37 = vld [vmem:[%s9569_s5 + $0x68] sm:$0xff] }
 0x2f8   :  { %3792 = vmatpush.bf16.msra.mxu3 %v7069_v17  ;;  %v7044_v40 = vld [vmem:[%s9569_s5 + $0x28] sm:$0xff]  ;;  %3561 = vmatpush.bf16.msra.mxu0 %v7052_v37 }
 0x2f9   :  { %v8854_v47 = vadd.f32 %v3053_v24, %v2991_v57  ;;  %v2930_v3 = vadd.f32 %v2929_v41, %v2867_v53  ;;  %3626 = vmatpush.bf16.msra.mxu1 %v7044_v40 }
 0x2fc   :  { %3793 = vmatpush.bf16.msra.mxu3 %v7068_v32 }
 0x2fe   :  { %v2992_v49 = vpop.f32.mrf.mxu2  ;;  %v2869_v33 = vpop.f32.mrf.mxu0 }
 0x2ff   :  { %v3055_v11 = vpop.f32.mrf.mxu3  ;;  %v2993_v0 = vadd.f32 %v2992_v49, %v2930_v3  ;;  %v2932_v54 = vpop.f32.mrf.mxu1  ;;  %v2870_v4 = vadd.f32 %v2869_v33, %v8596_v9  ;;  %v2847_v3 = vadd.f32 %v8772_v52, %v8491_v1  ;;  %v2857_v1 = vadd.f32 %v8824_v16, %v8533_v62  ;;  %v7059_v16 = vld [vmem:[%s9569_s5 + $0xa0] sm:$0xff] }
 0x300   :  { %3710 = vmatpush.bf16.msra.mxu2 %v7059_v16 }
 0x301   :  { %v8857_v51 = vadd.f32 %v3055_v11, %v2993_v0  ;;  %v8859_v38 = vadd.f32 %v2932_v54, %v2870_v4  ;;  %v2910_v54 = vadd.f32 %v8774_v21, %v2847_v3  ;;  %v2852_v4 = vadd.f32 %v8807_v34, %v8503_v22 }
 0x302   :  { %v2920_v22 = vadd.f32 %v8826_v55, %v2857_v1  ;;  %v7051_v55 = vld [vmem:[%s9569_s5 + $0x60] sm:$0xff] }
 0x303   :  { %v2973_v19 = vadd.f32 %v8802_v56, %v2910_v54  ;;  %v2915_v17 = vadd.f32 %v8809_v20, %v2852_v4  ;;  %3562 = vmatpush.bf16.msra.mxu0 %v7051_v55 }
 0x304   :  { %v2983_v62 = vadd.f32 %v8830_v60, %v2920_v22 }
 0x305   :  { %v8935_v52 = vadd.f32 %v8804_v48, %v2973_v19  ;;  %v2978_v12 = vadd.f32 %v8819_v30, %v2915_v17  ;;  %v3115_v48 = vmul.f32 %v8776_v42, %v8776_v42  ;;  %v3117_v30 = vmul.f32 %v8817_v39, %v8817_v39  ;;  %v7043_v19 = vld [vmem:[%s9569_s5 + $0x20] sm:$0xff] }
 0x306   :  { %v8870_v13 = vpop.f32.mrf.mxu2  ;;  %v8874_v9 = vpop.f32.mrf.mxu0  ;;  %v8970_v3 = vadd.f32 %v8832_v61, %v2983_v62  ;;  %v3119_v61 = vmul.f32 %v8828_v59, %v8828_v59  ;;  %3627 = vmatpush.bf16.msra.mxu1 %v7043_v19 }
 0x307   :  { %v8872_v15 = vpop.f32.mrf.mxu3  ;;  %v8876_v7 = vpop.f32.mrf.mxu1  ;;  %v3116_v56 = vmul.f32 %v8935_v52, %v8935_v52  ;;  %v8948_v34 = vadd.f32 %v8821_v35, %v2978_v12  ;;  %v3087_v20 = vadd.f32 %v8935_v52, %v8776_v42  ;;  %v7067_v35 = vld [vmem:[%s9569_s5 + $0xe0] sm:$0xff]  ;;  %v2996_v55 = vadd.f32 %v8870_v13, %v8859_v38 }
 0x308   :  { %3794 = vmatpush.bf16.msra.mxu3 %v7067_v35 }
 0x309   :  { %v3136_v60 = vadd.f32 %v3116_v56, %v3115_v48  ;;  %v3088_v37 = vadd.f32 %v3087_v20, %v8817_v39  ;;  %v3118_v40 = vmul.f32 %v8948_v34, %v8948_v34  ;;  %v2872_v56 = vadd.f32 %v8874_v9, %v8623_v46 }
 0x30a   :  { %v3120_v20 = vmul.f32 %v8970_v3, %v8970_v3 }
 0x30b   :  { %v3137_v12 = vadd.f32 %v3136_v60, %v3117_v30  ;;  %v3089_v22 = vadd.f32 %v3088_v37, %v8948_v34  ;;  %v3121_v60 = vmul.f32 %v8836_v58, %v8836_v58  ;;  %v2935_v46 = vadd.f32 %v8876_v7, %v2872_v56 }
 0x30c   :  { %v9012_v56 = vadd.f32 %v8872_v15, %v2996_v55 }
 0x30d   :  { %v3138_v62 = vadd.f32 %v3137_v12, %v3118_v40  ;;  %v3090_v48 = vadd.f32 %v3089_v22, %v8828_v59 }
 0x30e   :  { %v8881_v5 = vpop.f32.mrf.mxu2  ;;  %v8885_v10 = vpop.f32.mrf.mxu0 }
 0x30f   :  { %v8883_v43 = vpop.f32.mrf.mxu3  ;;  %v8887_v2 = vpop.f32.mrf.mxu1  ;;  %v2875_v16 = vadd.f32 %v8885_v10, %v8626_v63  ;;  %v3139_v30 = vadd.f32 %v3138_v62, %v3119_v61  ;;  %v3091_v35 = vadd.f32 %v3090_v48, %v8970_v3  ;;  %v3122_v63 = vmul.f32 %v8845_v27, %v8845_v27 }
 0x310   :  { %v2998_v12 = vadd.f32 %v8881_v5, %v2935_v46 }
 0x311   :  { %v3140_v37 = vadd.f32 %v3139_v30, %v3120_v20  ;;  %v3092_v40 = vadd.f32 %v3091_v35, %v8836_v58  ;;  %v2938_v22 = vadd.f32 %v8887_v2, %v2875_v16  ;;  %v3124_v16 = vmul.f32 %v8857_v51, %v8857_v51 }
 0x313   :  { %v3141_v13 = vadd.f32 %v3140_v37, %v3121_v60  ;;  %v3093_v7 = vadd.f32 %v3092_v40, %v8845_v27 }
 0x315   :  { %v3142_v48 = vadd.f32 %v3141_v13, %v3122_v63  ;;  %v3094_v20 = vadd.f32 %v3093_v7, %v8854_v47 }
 0x316   :  { %v8889_v26 = vpop.f32.mrf.mxu2  ;;  %v8893_v28 = vpop.f32.mrf.mxu0 }
 0x317   :  { %v8891_v14 = vpop.f32.mrf.mxu3  ;;  %v8895_v29 = vpop.f32.mrf.mxu1  ;;  %v2877_v9 = vadd.f32 %v8893_v28, %v8653_v25  ;;  %v3123_v28 = vmul.f32 %v8854_v47, %v8854_v47  ;;  %v3001_v62 = vadd.f32 %v8889_v26, %v2938_v22 }
 0x319   :  { %v2940_v5 = vadd.f32 %v8895_v29, %v2877_v9  ;;  %v3143_v30 = vadd.f32 %v3142_v48, %v3123_v28  ;;  %v3095_v29 = vadd.f32 %v3094_v20, %v8857_v51 }
 0x31e   :  { %v8906_v24 = vpop.f32.mrf.mxu2  ;;  %v8913_v41 = vpop.f32.mrf.mxu0 }
 0x31f   :  { %v8908_v57 = vpop.f32.mrf.mxu3  ;;  %v8915_v53 = vpop.f32.mrf.mxu1  ;;  %v2880_v25 = vadd.f32 %v8913_v41, %v8656_v31  ;;  %v9022_v31 = vadd.f32 %v8883_v43, %v2998_v12  ;;  %v3003_v41 = vadd.f32 %v8906_v24, %v2940_v5 }
 0x321   :  { %v2943_v15 = vadd.f32 %v8915_v53, %v2880_v25  ;;  %v3144_v53 = vadd.f32 %v3143_v30, %v3124_v16  ;;  %v3126_v51 = vmul.f32 %v9022_v31, %v9022_v31 }
 0x326   :  { %v8919_v49 = vpop.f32.mrf.mxu2  ;;  %v8923_v0 = vpop.f32.mrf.mxu0 }
 0x327   :  { %v8921_v11 = vpop.f32.mrf.mxu3  ;;  %v8925_v33 = vpop.f32.mrf.mxu1  ;;  %v2882_v2 = vadd.f32 %v8923_v0, %v8683_v6  ;;  %v3125_v6 = vmul.f32 %v9012_v56, %v9012_v56  ;;  %v9031_v0 = vadd.f32 %v8891_v14, %v3001_v62  ;;  %v3006_v35 = vadd.f32 %v8919_v49, %v2943_v15 }
 0x329   :  { %v2945_v43 = vadd.f32 %v8925_v33, %v2882_v2  ;;  %v3127_v37 = vmul.f32 %v9031_v0, %v9031_v0  ;;  %v9049_v40 = vadd.f32 %v8921_v11, %v3006_v35 }
 0x32e   :  { %v8938_v50 = vpop.f32.mrf.mxu2  ;;  %v2884_v21 = vpop.f32.mrf.mxu0 }
 0x32f   :  { %v8940_v36 = vpop.f32.mrf.mxu3  ;;  %v8942_v32 = vpop.f32.mrf.mxu1  ;;  %v2885_v26 = vadd.f32 %v2884_v21, %v8686_v8  ;;  %v3096_v8 = vadd.f32 %v3095_v29, %v9012_v56  ;;  %v9040_v21 = vadd.f32 %v8908_v57, %v3003_v41  ;;  %v3008_v9 = vadd.f32 %v8938_v50, %v2945_v43 }
 0x331   :  { %v2948_v49 = vadd.f32 %v8942_v32, %v2885_v26  ;;  %v9058_v22 = vadd.f32 %v8940_v36, %v3008_v9 }
 0x336   :  { %v8972_v54 = vpop.f32.mrf.mxu2  ;;  %v2886_v17 = vpop.f32.mrf.mxu0 }
 0x337   :  { %v8974_v4 = vpop.f32.mrf.mxu3  ;;  %v8979_v1 = vpop.f32.mrf.mxu1  ;;  %v2887_v60 = vadd.f32 %v2886_v17, %v8713_v45  ;;  %v3145_v45 = vadd.f32 %v3144_v53, %v3125_v6  ;;  %v3097_v17 = vadd.f32 %v3096_v8, %v9022_v31  ;;  %v3011_v57 = vadd.f32 %v8972_v54, %v2948_v49 }
 0x338   :  { %v3129_v54 = vmul.f32 %v9049_v40, %v9049_v40 }
 0x339   :  { %v2950_v63 = vadd.f32 %v8979_v1, %v2887_v60  ;;  %v3146_v50 = vadd.f32 %v3145_v45, %v3126_v51  ;;  %v3098_v32 = vadd.f32 %v3097_v17, %v9031_v0  ;;  %v9064_v1 = vadd.f32 %v8974_v4, %v3011_v57 }
 0x33b   :  { %v3147_v7 = vadd.f32 %v3146_v50, %v3127_v37  ;;  %v3099_v11 = vadd.f32 %v3098_v32, %v9040_v21  ;;  %v3131_v15 = vmul.f32 %v9064_v1, %v9064_v1 }
 0x33d   :  { %v3100_v36 = vadd.f32 %v3099_v11, %v9049_v40 }
 0x33e   :  { %v3012_v10 = vpop.f32.mrf.mxu2  ;;  %v2889_v61 = vpop.f32.mrf.mxu0 }
 0x33f   :  { %v9002_v19 = vpop.f32.mrf.mxu3  ;;  %v2952_v38 = vpop.f32.mrf.mxu1  ;;  %v2890_v33 = vadd.f32 %v2889_v61, %v8716_v44  ;;  %v3128_v44 = vmul.f32 %v9040_v21, %v9040_v21  ;;  %v3013_v61 = vadd.f32 %v3012_v10, %v2950_v63  ;;  %v3130_v10 = vmul.f32 %v9058_v22, %v9058_v22 }
 0x340   :  { %v3101_v41 = vadd.f32 %v3100_v36, %v9058_v22 }
 0x341   :  { %v2953_v13 = vadd.f32 %v2952_v38, %v2890_v33  ;;  %v3148_v5 = vadd.f32 %v3147_v7, %v3128_v44  ;;  %v9070_v38 = vadd.f32 %v9002_v19, %v3013_v61 }
 0x342   :  { %v3102_v29 = vadd.f32 %v3101_v41, %v9064_v1  ;;  %v7057_v41 = vld [vmem:[%s9569_s5 + $0x90] sm:$0xff] }
 0x343   :  { %v3149_v4 = vadd.f32 %v3148_v5, %v3129_v54  ;;  %v3132_v6 = vmul.f32 %v9070_v38, %v9070_v38  ;;  %v7058_v5 = vld [vmem:[%s9569_s5 + $0x98] sm:$0xff] }
 0x344   :  { %3711 = vmatpush.bf16.msra.mxu2 %v7058_v5 }
 0x345   :  { %v3150_v30 = vadd.f32 %v3149_v4, %v3130_v10 }
 0x346   :  { %v3015_v24 = vpop.f32.mrf.mxu2  ;;  %v2891_v46 = vpop.f32.mrf.mxu0 }
 0x347   :  { %v3078_v55 = vpop.f32.mrf.mxu3  ;;  %v2954_v14 = vpop.f32.mrf.mxu1  ;;  %v2892_v12 = vadd.f32 %v2891_v46, %v8743_v23  ;;  %v3016_v23 = vadd.f32 %v3015_v24, %v2953_v13  ;;  %v3151_v43 = vadd.f32 %v3150_v30, %v3131_v15  ;;  %v7065_v15 = vld [vmem:[%s9569_s5 + $0xd0] sm:$0xff] }
 0x348   :  { %v7049_v30 = vld [vmem:[%s9569_s5 + $0x50] sm:$0xff]  ;;  %3712 = vmatpush.bf16.msra.mxu2 %v7057_v41 }
 0x349   :  { %v2955_v25 = vadd.f32 %v2954_v14, %v2892_v12  ;;  %v9076_v26 = vadd.f32 %v3078_v55, %v3016_v23  ;;  %v3152_v46 = vadd.f32 %v3151_v43, %v3132_v6 }
 0x34b   :  { %v3133_v60 = vmul.f32 %v9076_v26, %v9076_v26 }
 0x34d   :  { %v3153_v33 = vadd.f32 %v3152_v46, %v3133_v60  ;;  %v7040_v60 = vld [vmem:[%s9569_s5 + $0x8] sm:$0xff]  ;;  %v7039_v46 = vld [vmem:[%s9569_s5] sm:$0xff] }
 0x34e   :  { %v3017_v28 = vpop.f32.mrf.mxu2  ;;  %v2894_v48 = vpop.f32.mrf.mxu0 }
 0x34f   :  { %v3080_v62 = vpop.f32.mrf.mxu3  ;;  %v2957_v2 = vpop.f32.mrf.mxu1  ;;  %v3018_v20 = vadd.f32 %v3017_v28, %v2955_v25  ;;  %v2895_v16 = vadd.f32 %v2894_v48, %v8745_v18  ;;  %v3103_v18 = vadd.f32 %v3102_v29, %v9070_v38  ;;  %v7066_v48 = vld [vmem:[%s9569_s5 + $0xd8] sm:$0xff] }
 0x350   :  { %3795 = vmatpush.bf16.msra.mxu3 %v7066_v48  ;;  %v7099_v48 = vld [vmem:[%s9569_s5 + $0x1e0] sm:$0xff] }
 0x351   :  { %v9081_v35 = vadd.f32 %v3080_v62, %v3018_v20  ;;  %v2958_v19 = vadd.f32 %v2957_v2, %v2895_v16  ;;  %v3104_v14 = vadd.f32 %v3103_v18, %v9076_v26  ;;  %v7050_v2 = vld [vmem:[%s9569_s5 + $0x58] sm:$0xff]  ;;  %v7048_v18 = vld [vmem:[%s9569_s5 + $0x48] sm:$0xff] }
 0x352   :  { %v7042_v20 = vld [vmem:[%s9569_s5 + $0x18] sm:$0xff]  ;;  %3563 = vmatpush.bf16.msra.mxu0 %v7050_v2  ;;  %v3168_v2 = vld [vmem:[%s9567_s3] sm:$0x1] }
 0x353   :  { %v3134_v9 = vmul.f32 %v9081_v35, %v9081_v35  ;;  %v3105_v45 = vadd.f32 %v3104_v14, %v9081_v35  ;;  %3628 = vmatpush.bf16.msra.mxu1 %v7042_v20  ;;  %v7055_v14 = vld [vmem:[%s9569_s5 + $0x80] sm:$0xff]  ;;  %v7082_v20 = vld [vmem:[%s9569_s5 + $0x158] sm:$0xff] }
 0x354   :  { %3796 = vmatpush.bf16.msra.mxu3 %v7065_v15  ;;  %v7098_v15 = vld [vmem:[%s9569_s5 + $0x1d8] sm:$0xff] }
 0x355   :  { %v3154_v57 = vadd.f32 %v3153_v33, %v3134_v9  ;;  %v7063_v9 = vld [vmem:[%s9569_s5 + $0xc0] sm:$0xff]  ;;  %v7078_v33 = vld [vmem:[%s9569_s5 + $0x138] sm:$0xff] }
 0x356   :  { %v3020_v24 = vpop.f32.mrf.mxu2  ;;  %v2896_v55 = vpop.f32.mrf.mxu0  ;;  %3564 = vmatpush.bf16.msra.mxu0 %v7049_v30 }
 0x357   :  { %v3083_v53 = vpop.f32.mrf.mxu3  ;;  %v3021_v8 = vadd.f32 %v3020_v24, %v2958_v19  ;;  %v2959_v51 = vpop.f32.mrf.mxu1  ;;  %v7041_v19 = vld [vmem:[%s9569_s5 + $0x10] sm:$0xff]  ;;  %v7056_v24 = vld [vmem:[%s9569_s5 + $0x88] sm:$0xff] }
 0x358   :  { %3629 = vmatpush.bf16.msra.mxu1 %v7041_v19  ;;  %3713 = vmatpush.bf16.msra.mxu2 %v7056_v24  ;;  %v7047_v51 = vld [vmem:[%s9569_s5 + $0x40] sm:$0xff]  ;;  %v7097_v24 = vld [vmem:[%s9569_s5 + $0x1d0] sm:$0xff] }
 0x359   :  { %v9089_v49 = vadd.f32 %v3083_v53, %v3021_v8  ;;  %v7064_v8 = vld [vmem:[%s9569_s5 + $0xc8] sm:$0xff] }
 0x35a   :  { %3565 = vmatpush.bf16.msra.mxu0 %v7048_v18  ;;  %3797 = vmatpush.bf16.msra.mxu3 %v7064_v8  ;;  %v7081_v18 = vld [vmem:[%s9569_s5 + $0x150] sm:$0xff] }
 0x35b   :  { %v3107_v17 = vsel %vm3106_vm0, %v9089_v49, 0.0  ;;  %v3135_v37 = vmul.f32 %v9089_v49, %v9089_v49 }
 0x35c   :  { %v3108_v63 = vadd.f32 %v3107_v17, %v3105_v45  ;;  %3630 = vmatpush.bf16.msra.mxu1 %v7040_v60  ;;  %v7086_v45 = vld [vmem:[%s9569_s5 + $0x178] sm:$0xff]  ;;  %3714 = vmatpush.bf16.msra.mxu2 %v7055_v14  ;;  %v7089_v60 = vld [vmem:[%s9569_s5 + $0x190] sm:$0xff]  ;;  %v7080_v14 = vld [vmem:[%s9569_s5 + $0x148] sm:$0xff] }
 0x35d   :  { %v3155_v12 = vsel %vm3106_vm0, %v3135_v37, 0.0  ;;  %v7094_v17 = vld [vmem:[%s9569_s5 + $0x1b8] sm:$0xff] }
 0x35e   :  { %v3109_v50 = vrot.slane %v3108_v63, 4  ;;  %v3156_v32 = vadd.f32 %v3155_v12, %v3154_v57  ;;  %v3022_v44 = vpop.f32.mrf.mxu2  ;;  %v7102_v37 = vld [vmem:[%s9569_s5 + $0x1f8] sm:$0xff]  ;;  %3566 = vmatpush.bf16.msra.mxu0 %v7047_v51  ;;  %3798 = vmatpush.bf16.msra.mxu3 %v7063_v9  ;;  %v7077_v57 = vld [vmem:[%s9569_s5 + $0x130] sm:$0xff] }
 0x35f   :  { %v3085_v61 = vpop.f32.mrf.mxu3  ;;  %v7093_v12 = vld [vmem:[%s9569_s5 + $0x1b0] sm:$0xff] }
 0x360   :  { %v3110_v13 = vadd.f32 %v3109_v50, %v3108_v63  ;;  %v3157_v7 = vrot.slane %v3156_v32, 4  ;;  %3631 = vmatpush.bf16.msra.mxu1 %v7039_v46  ;;  %4047 = vmatpush.bf16.msrb.mxu2 %v7094_v17  ;;  %v7085_v63 = vld [vmem:[%s9569_s5 + $0x170] sm:$0xff]  ;;  %v7076_v61 = vld [vmem:[%s9569_s5 + $0x128] sm:$0xff] }
 0x361   :  { %v7101_v50 = vld [vmem:[%s9569_s5 + $0x1f0] sm:$0xff] }
 0x362   :  { %v3111_v11 = vrot.slane %v3110_v13, 2  ;;  %v3158_v54 = vadd.f32 %v3157_v7, %v3156_v32  ;;  %3880 = vmatpush.bf16.msrb.mxu0 %v7078_v33  ;;  %4131 = vmatpush.bf16.msrb.mxu3 %v7102_v37  ;;  %v7096_v33 = vld [vmem:[%s9569_s5 + $0x1c8] sm:$0xff] }
 0x364   :  { %v3112_v23 = vadd.f32 %v3111_v11, %v3110_v13  ;;  %v3159_v25 = vrot.slane %v3158_v54, 2  ;;  %3963 = vmatpush.bf16.msrb.mxu1 %v7086_v45  ;;  %4048 = vmatpush.bf16.msrb.mxu2 %v7093_v12  ;;  %v7084_v13 = vld [vmem:[%s9569_s5 + $0x168] sm:$0xff] }
 0x365   :  { %v7092_v11 = vld [vmem:[%s9569_s5 + $0x1a8] sm:$0xff] }
 0x366   :  { %v3113_v28 = vrot.slane %v3112_v23, 1  ;;  %v3160_v62 = vadd.f32 %v3159_v25, %v3158_v54  ;;  %3881 = vmatpush.bf16.msrb.mxu0 %v7077_v57  ;;  %4132 = vmatpush.bf16.msrb.mxu3 %v7101_v50  ;;  %v7100_v54 = vld [vmem:[%s9569_s5 + $0x1e8] sm:$0xff]  ;;  %v7075_v25 = vld [vmem:[%s9569_s5 + $0x120] sm:$0xff] }
 0x368   :  { %v3114_v36 = vadd.f32 %v3113_v28, %v3112_v23  ;;  %v3161_v10 = vrot.slane %v3160_v62, 1  ;;  %3964 = vmatpush.bf16.msrb.mxu1 %v7085_v63  ;;  %4049 = vmatpush.bf16.msrb.mxu2 %v7092_v11  ;;  %v7083_v28 = vld [vmem:[%s9569_s5 + $0x160] sm:$0xff] }
 0x36a   :  { %v3162_v16 = vadd.f32 %v3161_v10, %v3160_v62  ;;  %v9107_v4 = vmul.f32 0.0061728396, %v3114_v36  ;;  %3882 = vmatpush.bf16.msrb.mxu0 %v7076_v61  ;;  %v7091_v62 = vld [vmem:[%s9569_s5 + $0x1a0] sm:$0xff]  ;;  %4133 = vmatpush.bf16.msrb.mxu3 %v7100_v54  ;;  %v7074_v10 = vld [vmem:[%s9569_s5 + $0x118] sm:$0xff] }
 0x36c   :  { %v3164_v29 = vmul.f32 0.0061728396, %v3162_v16  ;;  %v3165_v6 = vmul.f32 %v9107_v4, %v9107_v4  ;;  %3965 = vmatpush.bf16.msrb.mxu1 %v7084_v13  ;;  %4050 = vmatpush.bf16.msrb.mxu2 %v7091_v62  ;;  %v7090_v16 = vld [vmem:[%s9569_s5 + $0x198] sm:$0xff]  ;;  %v7095_v13 = vld [vmem:[%s9569_s5 + $0x1c0] sm:$0xff] }
 0x36e   :  { %v3166_v43 = vsub.f32 %v3164_v29, %v3165_v6  ;;  %3883 = vmatpush.bf16.msrb.mxu0 %v7075_v25  ;;  %4134 = vmatpush.bf16.msrb.mxu3 %v7099_v48  ;;  %v3181_v29 = vld [vmem:[%s9568_s4] sm:$0x1]  ;;  %v7073_v6 = vld [vmem:[%s9569_s5 + $0x110] sm:$0xff] }
 0x370   :  { %v3167_v53 = vmax.f32 %v3166_v43, 0.0  ;;  %3966 = vmatpush.bf16.msrb.mxu1 %v7083_v28  ;;  %4051 = vmatpush.bf16.msrb.mxu2 %v7090_v16 }
 0x372   :  { %v3169_v55 = vadd.f32 1e-05, %v3167_v53  ;;  %3884 = vmatpush.bf16.msrb.mxu0 %v7074_v10  ;;  %4135 = vmatpush.bf16.msrb.mxu3 %v7098_v15 }
 0x374   :  { %7170 = vrsqrt.f32 %v3169_v55  ;;  %vm3176_vm2 = vweird.f32 %v3169_v55  ;;  %3967 = vmatpush.bf16.msrb.mxu1 %v7082_v20  ;;  %4052 = vmatpush.bf16.msrb.mxu2 %v7089_v60 }
 0x376   :  { %3885 = vmatpush.bf16.msrb.mxu0 %v7073_v6  ;;  %4136 = vmatpush.bf16.msrb.mxu3 %v7097_v24 }
 0x378   :  { %3968 = vmatpush.bf16.msrb.mxu1 %v7081_v18 }
 0x37a   :  { %v7171_v32 = vpop.eup %7170  ;;  %4137 = vmatpush.bf16.msrb.mxu3 %v7096_v33 }
 0x37b   :  { %v3171_v44 = vmul.f32 %v7171_v32, %v3169_v55  ;;  %vm3177_vm1 = vweird.f32 %v7171_v32  ;;  %v7072_v55 = vld [vmem:[%s9569_s5 + $0x108] sm:$0xff] }
 0x37c   :  { %vm3178_vm3 = vmor %vm3176_vm2, %vm3177_vm1  ;;  %3886 = vmatpush.bf16.msrb.mxu0 %v7072_v55  ;;  %3969 = vmatpush.bf16.msrb.mxu1 %v7080_v14 }
 0x37d   :  { %v3172_v7 = vmul.f32 %v7171_v32, %v3171_v44  ;;  %v7087_v44 = vld [vmem:[%s9569_s5 + $0x180] sm:$0xff] }
 0x37e   :  { %4138 = vmatpush.bf16.msrb.mxu3 %v7095_v13 }
 0x37f   :  { %v3173_v23 = vmul.f32 0.5, %v3172_v7 }
 0x381   :  { %v3174_v5 = vsub.f32 1.5, %v3173_v23 }
 0x383   :  { %v3175_v36 = vmul.f32 %v7171_v32, %v3174_v5 }
 0x385   :  { %v3179_v41 = vsel %vm3178_vm3, %v7171_v32, %v3175_v36  ;;  %v7079_v32 = vld [vmem:[%s9569_s5 + $0x140] sm:$0xff] }
 0x386   :  { %v3180_v30 = vmul.f32 %v3179_v41, %v3168_v2  ;;  %3970 = vmatpush.bf16.msrb.mxu1 %v7079_v32 }
 0x388   :  { %v3182_v19 = vmul.f32 %v3180_v30, %v9107_v4  ;;  %v9217_v43 = vperm.slane %v3180_v30, 0 }
 0x38a   :  { %v3183_v53 = vsub.f32 %v3181_v29, %v3182_v19  ;;  %v3206_v4 = vmul.f32 %v9217_v43, %v9081_v35  ;;  %v3207_v8 = vmul.f32 %v9217_v43, %v9089_v49  ;;  %v3187_v51 = vmul.f32 %v9217_v43, %v8776_v42  ;;  %v7088_v35 = vld [vmem:[%s9569_s5 + $0x188] sm:$0xff] }
 0x38b   :  { %v3188_v49 = vmul.f32 %v9217_v43, %v8935_v52  ;;  %v3189_v9 = vmul.f32 %v9217_v43, %v8817_v39  ;;  %v3197_v42 = vmul.f32 %v9217_v43, %v9012_v56  ;;  %v3198_v45 = vmul.f32 %v9217_v43, %v9022_v31  ;;  %v7071_v31 = vld [vmem:[%s9569_s5 + $0x100] sm:$0xff]  ;;  %4053 = vmatpush.bf16.msrb.mxu2 %v7088_v35 }
 0x38c   :  { %v9237_v46 = vperm.slane %v3183_v53, 0  ;;  %v3199_v17 = vmul.f32 %v9217_v43, %v9031_v0  ;;  %v3190_v52 = vmul.f32 %v9217_v43, %v8948_v34  ;;  %v3191_v39 = vmul.f32 %v9217_v43, %v8828_v59  ;;  %3887 = vmatpush.bf16.msrb.mxu0 %v7071_v31 }
 0x38d   :  { %v3200_v7 = vmul.f32 %v9217_v43, %v9040_v21  ;;  %v3201_v11 = vmul.f32 %v9217_v43, %v9049_v40  ;;  %v3192_v28 = vmul.f32 %v9217_v43, %v8970_v3  ;;  %v3193_v21 = vmul.f32 %v9217_v43, %v8836_v58 }
 0x38e   :  { %v3230_v37 = vadd.f32 %v9237_v46, %v3206_v4  ;;  %v3231_v56 = vadd.f32 %v9237_v46, %v3207_v8  ;;  %v3211_v57 = vadd.f32 %v9237_v46, %v3187_v51  ;;  %v3212_v63 = vadd.f32 %v9237_v46, %v3188_v49 }
 0x38f   :  { %v3213_v0 = vadd.f32 %v9237_v46, %v3189_v9  ;;  %v3221_v34 = vadd.f32 %v9237_v46, %v3197_v42  ;;  %v3222_v12 = vadd.f32 %v9237_v46, %v3198_v45  ;;  %v3223_v61 = vadd.f32 %v9237_v46, %v3199_v17  ;;  %4054 = vmatpush.bf16.msrb.mxu2 %v7087_v44 }
 0x390   :  { %v3251_v59 = vmax.f32 %v3230_v37, 0.0  ;;  %v3252_v50 = vmax.f32 %v3231_v56, 0.0  ;;  %v3232_v54 = vmax.f32 %v3211_v57, 0.0  ;;  %v3214_v23 = vadd.f32 %v9237_v46, %v3190_v52 }
 0x391   :  { %v3215_v25 = vadd.f32 %v9237_v46, %v3191_v39  ;;  %v3233_v62 = vmax.f32 %v3212_v63, 0.0  ;;  %v3234_v5 = vmax.f32 %v3213_v0, 0.0  ;;  %v3224_v48 = vadd.f32 %v9237_v46, %v3200_v7 }
 0x392   :  { %3272 = vst [vmem:[#allocation2 + $0x98] sm:$0xff] %v3251_v59  ;;  %v3225_v2 = vadd.f32 %v9237_v46, %v3201_v11  ;;  %v3202_v40 = vmul.f32 %v9217_v43, %v9058_v22  ;;  %v3203_v3 = vmul.f32 %v9217_v43, %v9064_v1  ;;  %v3242_v36 = vmax.f32 %v3221_v34, 0.0 }
 0x393   :  { %3273 = vst [vmem:[#allocation2 + $0xa0] sm:$0x3] %v3252_v50  ;;  %v3216_v10 = vadd.f32 %v9237_v46, %v3192_v28  ;;  %v3243_v20 = vmax.f32 %v3222_v12, 0.0  ;;  %v3217_v16 = vadd.f32 %v9237_v46, %v3193_v21  ;;  %v3194_v58 = vmul.f32 %v9217_v43, %v8845_v27 }
 0x394   :  { %v9301_v41 = vadd.f32 %v9237_v46, %v3202_v40  ;;  %v9304_v15 = vadd.f32 %v9237_v46, %v3203_v3  ;;  %3254 = vst [vmem:[#allocation2 + $0x8] sm:$0xff] %v3233_v62  ;;  %v3195_v22 = vmul.f32 %v9217_v43, %v8854_v47  ;;  %v3204_v1 = vmul.f32 %v9217_v43, %v9070_v38  ;;  %v7126_v40 = vld [vmem:[%s9569_s5 + $0x2b8] sm:$0xff] }
 0x395   :  { %v3205_v30 = vmul.f32 %v9217_v43, %v9076_v26  ;;  %3255 = vst [vmem:[#allocation2 + $0x10] sm:$0xff] %v3234_v5  ;;  %v9315_v29 = vadd.f32 %v9237_v46, %v3194_v58  ;;  %v3244_v47 = vmax.f32 %v3223_v61, 0.0  ;;  %v3235_v18 = vmax.f32 %v3214_v23, 0.0 }
 0x396   :  { %3263 = vst [vmem:[#allocation2 + $0x50] sm:$0xff] %v3242_v36  ;;  %v9318_v6 = vadd.f32 %v9237_v46, %v3195_v22  ;;  %v9321_v19 = vadd.f32 %v9237_v46, %v3204_v1  ;;  %v3236_v24 = vmax.f32 %v3215_v25, 0.0  ;;  %v3245_v4 = vmax.f32 %v3224_v48, 0.0  ;;  %v7110_v48 = vld [vmem:[%s9569_s5 + $0x238] sm:$0xff] }
 0x397   :  { %v9324_v27 = vadd.f32 %v9237_v46, %v3205_v30  ;;  %3264 = vst [vmem:[#allocation2 + $0x58] sm:$0xff] %v3243_v20  ;;  %v3246_v14 = vmax.f32 %v3225_v2, 0.0  ;;  %v3237_v35 = vmax.f32 %v3216_v10, 0.0  ;;  %v3238_v17 = vmax.f32 %v3217_v16, 0.0  ;;  %v7118_v2 = vld [vmem:[%s9569_s5 + $0x278] sm:$0xff] }
 0x398   :  { %3265 = vst [vmem:[#allocation2 + $0x60] sm:$0xff] %v3244_v47  ;;  %v3247_v61 = vmax.f32 %v9301_v41, 0.0  ;;  %v3248_v23 = vmax.f32 %v9304_v15, 0.0  ;;  %v7134_v16 = vld [vmem:[%s9569_s5 + $0x2f8] sm:$0xff] }
 0x399   :  { %3276 = vst [vmem:[#allocation3] sm:$0xff] %v3232_v54 }
 0x39a   :  { %3256 = vst [vmem:[#allocation2 + $0x18] sm:$0xff] %v3235_v18 }
 0x39b   :  { %3257 = vst [vmem:[#allocation2 + $0x20] sm:$0xff] %v3236_v24 }
 0x39c   :  { %v3278_v38 = vld [vmem:[#allocation2 + $0x9] sm:$0xff]  ;;  %3266 = vst [vmem:[#allocation2 + $0x68] sm:$0xff] %v3245_v4 }
 0x39d   :  { %3281 = vst [vmem:[#allocation3 + $0x10] sm:$0xff] %v3278_v38  ;;  %v7133_v4 = vld [vmem:[%s9569_s5 + $0x2f0] sm:$0xff] }
 0x39e   :  { %v3318_v26 = vld [vmem:[#allocation2 + $0x51] sm:$0xff]  ;;  %3267 = vst [vmem:[#allocation2 + $0x70] sm:$0xff] %v3246_v14 }
 0x39f   :  { %3321 = vst [vmem:[#allocation3 + $0x90] sm:$0xff] %v3318_v26  ;;  %v3323_v43 = vld [vmem:[#allocation2 + $0x5a] sm:$0xff]  ;;  %v7109_v26 = vld [vmem:[%s9569_s5 + $0x230] sm:$0xff] }
 0x3a0   :  { %3326 = vst [vmem:[#allocation3 + $0xa0] sm:$0xff] %v3323_v43  ;;  %v3363_v60 = vld [vmem:[#allocation3] ss:$2 sm:$0xf]  ;;  %v7117_v43 = vld [vmem:[%s9569_s5 + $0x270] sm:$0xff] }
 0x3a1   :  { %v3395_v53 = vld [vmem:[#allocation3 + $0x1] ss:$2 sm:$0xf]  ;;  %3258 = vst [vmem:[#allocation2 + $0x28] sm:$0xff] %v3237_v35  ;;  %v3283_v0 = vld [vmem:[#allocation2 + $0x12] sm:$0xff] }
 0x3a2   :  { %v3426_v51 = vmax.f32 %v3363_v60, %v3395_v53  ;;  %3259 = vst [vmem:[#allocation2 + $0x30] sm:$0xff] %v3238_v17  ;;  %v3288_v59 = vld [vmem:[#allocation2 + $0x1b] sm:$0xff]  ;;  %v7125_v53 = vld [vmem:[%s9569_s5 + $0x2b0] sm:$0xff] }
 0x3a3   :  { %3286 = vst [vmem:[#allocation3 + $0x20] sm:$0xff] %v3283_v0  ;;  %v3328_v44 = vld [vmem:[#allocation2 + $0x63] sm:$0xff]  ;;  %v3239_v0 = vmax.f32 %v9315_v29, 0.0 }
 0x3a4   :  { %v3365_v8 = vld [vmem:[#allocation3 + $0x10] ss:$2 sm:$0xf]  ;;  %v3397_v55 = vld [vmem:[#allocation3 + $0x11] ss:$2 sm:$0xf] }
 0x3a5   :  { %v3427_v46 = vmax.f32 %v3365_v8, %v3397_v55  ;;  %v3443_v33 = vsel %vm3442_vm4, %v3426_v51, -inf  ;;  %3291 = vst [vmem:[#allocation3 + $0x30] sm:$0xff] %v3288_v59  ;;  %v3333_v54 = vld [vmem:[#allocation2 + $0x6c] sm:$0xff]  ;;  %v3249_v59 = vmax.f32 %v9321_v19, 0.0  ;;  %v7131_v29 = vld [vmem:[%s9569_s5 + $0x2e0] sm:$0xff] }
 0x3a6   :  { %v3379_v49 = vld [vmem:[#allocation3 + $0x90] ss:$2 sm:$0xf]  ;;  %v3411_v9 = vld [vmem:[#allocation3 + $0x91] ss:$2 sm:$0xf] }
 0x3a7   :  { %v3434_v42 = vmax.f32 %v3379_v49, %v3411_v9  ;;  %v3444_v45 = vsel %vm3442_vm4, %v3427_v46, -inf  ;;  %v3381_v52 = vld [vmem:[#allocation3 + $0xa0] ss:$2 sm:$0xf]  ;;  %3331 = vst [vmem:[#allocation3 + $0xb0] sm:$0xff] %v3328_v44 }
 0x3a8   :  { %v3413_v39 = vld [vmem:[#allocation3 + $0xa1] ss:$2 sm:$0xf]  ;;  %v3445_v37 = vmax.f32 %v3443_v33, %v3444_v45  ;;  %3336 = vst [vmem:[#allocation3 + $0xc0] sm:$0xff] %v3333_v54 }
 0x3a9   :  { %v3435_v56 = vmax.f32 %v3381_v52, %v3413_v39  ;;  %v3455_v57 = vsel %vm3442_vm4, %v3434_v42, -inf  ;;  %3268 = vst [vmem:[#allocation2 + $0x78] sm:$0xff] %v3247_v61  ;;  %v3293_v15 = vld [vmem:[#allocation2 + $0x24] sm:$0xff]  ;;  %v3298_v46 = vld [vmem:[#allocation2 + $0x2d] sm:$0xff] }
 0x3aa   :  { %v3467_v31 = vpack.c.bf16 %v3445_v37, %v3445_v37  ;;  %v3367_v3 = vld [vmem:[#allocation3 + $0x20] ss:$2 sm:$0xf]  ;;  %v3399_v41 = vld [vmem:[#allocation3 + $0x21] ss:$2 sm:$0xf] }
 0x3ab   :  { %v3456_v63 = vsel %vm3442_vm4, %v3435_v56, -inf  ;;  %v3428_v38 = vmax.f32 %v3367_v3, %v3399_v41  ;;  %3269 = vst [vmem:[#allocation2 + $0x80] sm:$0xff] %v3248_v23  ;;  %v7108_v9 = vld [vmem:[%s9569_s5 + $0x228] sm:$0xff] }
 0x3ac   :  { %v3457_v34 = vmax.f32 %v3455_v57, %v3456_v63  ;;  %v3504_v12 = vunpack.c.l.b16 %v3467_v31  ;;  %v3369_v30 = vld [vmem:[#allocation3 + $0x30] ss:$2 sm:$0xf]  ;;  %v3401_v47 = vld [vmem:[#allocation3 + $0x31] ss:$2 sm:$0xf] }
 0x3ad   :  { %v3429_v18 = vmax.f32 %v3369_v30, %v3401_v47  ;;  %v3446_v55 = vsel %vm3442_vm4, %v3428_v38, -inf  ;;  %3296 = vst [vmem:[#allocation3 + $0x40] sm:$0xff] %v3293_v15  ;;  %v7116_v52 = vld [vmem:[%s9569_s5 + $0x268] sm:$0xff]  ;;  %v7114_v15 = vld [vmem:[%s9569_s5 + $0x258] sm:$0xff] }
 0x3ae   :  { %v3468_v50 = vpack.c.bf16 %v3457_v34, %v3457_v34  ;;  %v3506_v32 = vrot.slane %v3504_v12, 1  ;;  %v3654_v7 = vrot.slane %v3504_v12, 2  ;;  %v3738_v11 = vrot.slane %v3504_v12, 3  ;;  %v3383_v60 = vld [vmem:[#allocation3 + $0xb0] ss:$2 sm:$0xf] }
 0x3af   :  { %v3415_v24 = vld [vmem:[#allocation3 + $0xb1] ss:$2 sm:$0xf]  ;;  %v3447_v51 = vsel %vm3442_vm4, %v3429_v18, -inf  ;;  %3301 = vst [vmem:[#allocation3 + $0x50] sm:$0xff] %v3298_v46  ;;  %v7124_v39 = vld [vmem:[%s9569_s5 + $0x2a8] sm:$0xff] }
 0x3b0   :  { %v3505_v13 = vunpack.c.l.b16 %v3468_v50  ;;  %v3436_v8 = vmax.f32 %v3383_v60, %v3415_v24  ;;  %v3385_v14 = vld [vmem:[#allocation3 + $0xc0] ss:$2 sm:$0xf]  ;;  %v3417_v35 = vld [vmem:[#allocation3 + $0xc1] ss:$2 sm:$0xf]  ;;  %v3448_v49 = vmax.f32 %v3446_v55, %v3447_v51 }
 0x3b1   :  { %v3437_v42 = vmax.f32 %v3385_v14, %v3417_v35  ;;  %v3338_v17 = vld [vmem:[#allocation2 + $0x75] sm:$0xff]  ;;  %v7132_v56 = vld [vmem:[%s9569_s5 + $0x2e8] sm:$0xff]  ;;  %v7107_v34 = vld [vmem:[%s9569_s5 + $0x220] sm:$0xff]  ;;  %3260 = vst [vmem:[#allocation2 + $0x38] sm:$0xff] %v3239_v0 }
 0x3b2   :  { %v3508_v25 = vsel %vm3507_vm5, %v3505_v13, %v3506_v32  ;;  %v3572_v28 = vrot.slane %v3505_v13, 7  ;;  %v3655_v62 = vrot.slane %v3505_v13, 1  ;;  %v3739_v5 = vrot.slane %v3505_v13, 2  ;;  %3341 = vst [vmem:[#allocation3 + $0xd0] sm:$0xff] %v3338_v17  ;;  %v3343_v63 = vld [vmem:[#allocation2 + $0x7e] sm:$0xff]  ;;  %v7105_v60 = vld [vmem:[%s9569_s5 + $0x210] sm:$0xff] }
 0x3b3   :  { %v3509_v21 = vpack.c.b16 %v3508_v25, %v3508_v25  ;;  %v3458_v33 = vsel %vm3442_vm4, %v3436_v8, -inf  ;;  %v3805_v45 = vpack.c.bf16 %v3448_v49, %v3448_v49  ;;  %v3459_v37 = vsel %vm3442_vm4, %v3437_v42, -inf  ;;  %v7115_v50 = vld [vmem:[%s9569_s5 + $0x260] sm:$0xff]  ;;  %3346 = vst [vmem:[#allocation3 + $0xe0] sm:$0xff] %v3343_v63  ;;  %v7113_v51 = vld [vmem:[%s9569_s5 + $0x250] sm:$0xff]  ;;  %v7104_v42 = vld [vmem:[%s9569_s5 + $0x208] sm:$0xff] }
 0x3b4   :  { %v3573_v36 = vsel %vm3507_vm5, %v3572_v28, %v3504_v12  ;;  %v3656_v10 = vsel %vm3507_vm5, %v3655_v62, %v3654_v7  ;;  %v3740_v20 = vsel %vm3507_vm5, %v3739_v5, %v3738_v11  ;;  %v3460_v57 = vmax.f32 %v3458_v33, %v3459_v37  ;;  %v7123_v32 = vld [vmem:[%s9569_s5 + $0x2a0] sm:$0xff]  ;;  %v3371_v19 = vld [vmem:[#allocation3 + $0x40] ss:$2 sm:$0xf]  ;;  %3270 = vst [vmem:[#allocation2 + $0x88] sm:$0xff] %v3249_v59  ;;  %v7121_v14 = vld [vmem:[%s9569_s5 + $0x290] sm:$0xff] }
 0x3b5   :  { %3567 = vmatmul.bf16.vlgmr.msra.gmra.mxu0 %v3509_v21  ;;  %v3574_v58 = vpack.c.b16 %v3573_v36, %v3573_v36  ;;  %v3657_v22 = vpack.c.b16 %v3656_v10, %v3656_v10  ;;  %v3741_v1 = vpack.c.b16 %v3740_v20, %v3740_v20  ;;  %v3826_v31 = vunpack.c.l.b16 %v3805_v45  ;;  %v3403_v23 = vld [vmem:[#allocation3 + $0x41] ss:$2 sm:$0xf]  ;;  %v7129_v35 = vld [vmem:[%s9569_s5 + $0x2d0] sm:$0xff] }
 0x3b6   :  { %4220 = vmatpush.bf16.msra.mxu0 %v7110_v48  ;;  %v3240_v12 = vmax.f32 %v9318_v6, 0.0  ;;  %v3806_v44 = vpack.c.bf16 %v3460_v57, %v3460_v57  ;;  %v3250_v13 = vmax.f32 %v9324_v27, 0.0  ;;  %v7106_v6 = vld [vmem:[%s9569_s5 + $0x218] sm:$0xff]  ;;  %v3430_v62 = vmax.f32 %v3371_v19, %v3403_v23  ;;  %v7112_v17 = vld [vmem:[%s9569_s5 + $0x248] sm:$0xff]  ;;  %v7103_v27 = vld [vmem:[%s9569_s5 + $0x200] sm:$0xff] }
 0x3b7   :  { %3632 = vmatmul.bf16.vlgmr.msra.gmra.mxu1 %v3574_v58  ;;  %3715 = vmatmul.bf16.vlgmr.msra.gmra.mxu2 %v3657_v22  ;;  %v3911_v61 = vrot.slane %v3826_v31, 1  ;;  %v3994_v11 = vrot.slane %v3826_v31, 2  ;;  %v4078_v54 = vrot.slane %v3826_v31, 3  ;;  %v3373_v25 = vld [vmem:[#allocation3 + $0x50] ss:$2 sm:$0xf] }
 0x3b8   :  { %3799 = vmatmul.bf16.vlgmr.msra.gmra.mxu3 %v3741_v1  ;;  %4303 = vmatpush.bf16.msra.mxu1 %v7118_v2  ;;  %v3827_v7 = vunpack.c.l.b16 %v3806_v44  ;;  %v3405_v28 = vld [vmem:[#allocation3 + $0x51] ss:$2 sm:$0xf]  ;;  %v3449_v1 = vsel %vm3442_vm4, %v3430_v62, -inf  ;;  %3261 = vst [vmem:[#allocation2 + $0x40] sm:$0xff] %v3240_v12  ;;  %v7111_v57 = vld [vmem:[%s9569_s5 + $0x240] sm:$0xff] }
 0x3b9   :  { %4387 = vmatpush.bf16.msra.mxu2 %v7126_v40  ;;  %4471 = vmatpush.bf16.msra.mxu3 %v7134_v16  ;;  %v3387_v3 = vld [vmem:[#allocation3 + $0xd0] ss:$2 sm:$0xf]  ;;  %v3419_v36 = vld [vmem:[#allocation3 + $0xd1] ss:$2 sm:$0xf]  ;;  %v3431_v10 = vmax.f32 %v3373_v25, %v3405_v28 }
 0x3ba   :  { %4221 = vmatpush.bf16.msra.mxu0 %v7109_v26  ;;  %v3828_v5 = vrot.slane %v3827_v7, 7  ;;  %v3912_v48 = vsel %vm3507_vm5, %v3827_v7, %v3911_v61  ;;  %v3995_v2 = vrot.slane %v3827_v7, 1  ;;  %v4079_v21 = vrot.slane %v3827_v7, 2  ;;  %v7122_v58 = vld [vmem:[%s9569_s5 + $0x298] sm:$0xff]  ;;  %3356 = vst [vmem:[#allocation3 + $0x100] sm:$0xff] %v3250_v13  ;;  %v7119_v44 = vld [vmem:[%s9569_s5 + $0x280] sm:$0xff] }
 0x3bb   :  { %v3913_v40 = vpack.c.b16 %v3912_v48, %v3912_v48  ;;  %v7130_v22 = vld [vmem:[%s9569_s5 + $0x2d8] sm:$0xff]  ;;  %v3389_v38 = vld [vmem:[#allocation3 + $0xe0] ss:$2 sm:$0xf]  ;;  %v7127_v61 = vld [vmem:[%s9569_s5 + $0x2c0] sm:$0xff] }
 0x3bc   :  { %4304 = vmatpush.bf16.msra.mxu1 %v7117_v43  ;;  %v3829_v20 = vsel %vm3507_vm5, %v3828_v5, %v3826_v31  ;;  %v3996_v16 = vsel %vm3507_vm5, %v3995_v2, %v3994_v11  ;;  %v4080_v41 = vsel %vm3507_vm5, %v4079_v21, %v4078_v54  ;;  %v3421_v26 = vld [vmem:[#allocation3 + $0xe1] ss:$2 sm:$0xf]  ;;  %v3438_v43 = vmax.f32 %v3387_v3, %v3419_v36  ;;  %v3303_v55 = vld [vmem:[#allocation2 + $0x36] sm:$0xff] }
 0x3bd   :  { %4388 = vmatpush.bf16.msra.mxu2 %v7125_v53  ;;  %4472 = vmatpush.bf16.msra.mxu3 %v7133_v4  ;;  %v3830_v30 = vpack.c.b16 %v3829_v20, %v3829_v20  ;;  %v3997_v47 = vpack.c.b16 %v3996_v16, %v3996_v16  ;;  %v4081_v18 = vpack.c.b16 %v4080_v41, %v4080_v41  ;;  %v3450_v53 = vsel %vm3442_vm4, %v3431_v10, -inf  ;;  %v7142_v31 = vld [vmem:[%s9569_s5 + $0x338] sm:$0xff]  ;;  %v7141_v25 = vld [vmem:[%s9569_s5 + $0x330] sm:$0xff] }
 0x3be   :  { %4222 = vmatpush.bf16.msra.mxu0 %v7108_v9  ;;  %v3439_v24 = vmax.f32 %v3389_v38, %v3421_v26  ;;  %v3451_v4 = vmax.f32 %v3449_v1, %v3450_v53  ;;  %v3461_v8 = vsel %vm3442_vm4, %v3438_v43, -inf  ;;  %3306 = vst [vmem:[#allocation3 + $0x60] sm:$0xff] %v3303_v55  ;;  %v7158_v19 = vld [vmem:[%s9569_s5 + $0x3b8] sm:$0xff]  ;;  %v7149_v10 = vld [vmem:[%s9569_s5 + $0x370] sm:$0xff]  ;;  %v7148_v43 = vld [vmem:[%s9569_s5 + $0x368] sm:$0xff] }
 0x3bf   :  { %v7166_v11 = vld [vmem:[%s9569_s5 + $0x3f8] sm:$0xff]  ;;  %v7157_v20 = vld [vmem:[%s9569_s5 + $0x3b0] sm:$0xff] }
 0x3c0   :  { %4305 = vmatpush.bf16.msra.mxu1 %v7116_v52  ;;  %v3462_v46 = vsel %vm3442_vm4, %v3439_v24, -inf  ;;  %v4145_v9 = vpack.c.bf16 %v3451_v4, %v3451_v4  ;;  %v7120_v52 = vld [vmem:[%s9569_s5 + $0x288] sm:$0xff] }
 0x3c1   :  { %4389 = vmatpush.bf16.msra.mxu2 %v7124_v39  ;;  %4473 = vmatpush.bf16.msra.mxu3 %v7132_v56  ;;  %v3463_v49 = vmax.f32 %v3461_v8, %v3462_v46  ;;  %v7128_v39 = vld [vmem:[%s9569_s5 + $0x2c8] sm:$0xff]  ;;  %v3308_v56 = vld [vmem:[#allocation2 + $0x3f] sm:$0xff] }
 0x3c2   :  { %4223 = vmatpush.bf16.msra.mxu0 %v7107_v34  ;;  %v4166_v45 = vunpack.c.l.b16 %v4145_v9  ;;  %3311 = vst [vmem:[#allocation3 + $0x70] sm:$0xff] %v3308_v56  ;;  %v3393_v5 = vld [vmem:[#allocation3 + $0x100] ss:$2 sm:$0xf]  ;;  %v7147_v46 = vld [vmem:[%s9569_s5 + $0x360] sm:$0xff] }
 0x3c3   :  { %v4146_v33 = vpack.c.bf16 %v3463_v49, %v3463_v49  ;;  %v3425_v48 = vld [vmem:[#allocation3 + $0x101] ss:$2 sm:$0xf]  ;;  %v7163_v9 = vld [vmem:[%s9569_s5 + $0x3e0] sm:$0xff] }
 0x3c4   :  { %4306 = vmatpush.bf16.msra.mxu1 %v7115_v50  ;;  %v4251_v63 = vrot.slane %v4166_v45, 1  ;;  %v4334_v0 = vrot.slane %v4166_v45, 2  ;;  %v4418_v59 = vrot.slane %v4166_v45, 3  ;;  %v7164_v24 = vld [vmem:[%s9569_s5 + $0x3e8] sm:$0xff] }
 0x3c5   :  { %4390 = vmatpush.bf16.msra.mxu2 %v7123_v32  ;;  %4474 = vmatpush.bf16.msra.mxu3 %v7131_v29  ;;  %v4167_v37 = vunpack.c.l.b16 %v4146_v33  ;;  %v3348_v32 = vld [vmem:[#allocation2 + $0x87] sm:$0xff] }
 0x3c6   :  { %4224 = vmatpush.bf16.msra.mxu0 %v7106_v6  ;;  %v3375_v29 = vld [vmem:[#allocation3 + $0x60] ss:$2 sm:$0xf]  ;;  %3351 = vst [vmem:[#allocation3 + $0xf0] sm:$0xff] %v3348_v32  ;;  %v7150_v6 = vld [vmem:[%s9569_s5 + $0x378] sm:$0xff]  ;;  %v7153_v32 = vld [vmem:[%s9569_s5 + $0x390] sm:$0xff] }
 0x3c7   :  { %3971 = vmatmul.bf16.vlgmr.msrb.gmra.mxu1 %v3913_v40  ;;  %3888 = vmatmul.bf16.vlgmr.msrb.gmra.mxu0 %v3830_v30  ;;  %v4168_v34 = vrot.slane %v4167_v37, 7  ;;  %v4335_v12 = vrot.slane %v4167_v37, 1  ;;  %v4419_v50 = vrot.slane %v4167_v37, 2  ;;  %v3407_v13 = vld [vmem:[#allocation3 + $0x61] ss:$2 sm:$0xf]  ;;  %v4252_v54 = vsel %vm3507_vm5, %v4167_v37, %v4251_v63 }
 0x3c8   :  { %4055 = vmatmul.bf16.vlgmr.msrb.gmra.mxu2 %v3997_v47  ;;  %4139 = vmatmul.bf16.vlgmr.msrb.gmra.mxu3 %v4081_v18  ;;  %v3432_v28 = vmax.f32 %v3375_v29, %v3407_v13  ;;  %v4253_v3 = vpack.c.b16 %v4252_v54, %v4252_v54  ;;  %v7140_v47 = vld [vmem:[%s9569_s5 + $0x328] sm:$0xff]  ;;  %v7162_v63 = vld [vmem:[%s9569_s5 + $0x3d8] sm:$0xff]  ;;  %v7161_v29 = vld [vmem:[%s9569_s5 + $0x3d0] sm:$0xff] }
 0x3c9   :  { %4307 = vmatpush.bf16.msra.mxu1 %v7114_v15  ;;  %4391 = vmatpush.bf16.msra.mxu2 %v7122_v58  ;;  %v4169_v7 = vsel %vm3507_vm5, %v4168_v34, %v4166_v45  ;;  %v4336_v23 = vsel %vm3507_vm5, %v4335_v12, %v4334_v0  ;;  %v4420_v62 = vsel %vm3507_vm5, %v4419_v50, %v4418_v59  ;;  %v3377_v21 = vld [vmem:[#allocation3 + $0x70] ss:$2 sm:$0xf]  ;;  %v3409_v40 = vld [vmem:[#allocation3 + $0x71] ss:$2 sm:$0xf] }
 0x3ca   :  { %4475 = vmatpush.bf16.msra.mxu3 %v7130_v22  ;;  %4225 = vmatpush.bf16.msra.mxu0 %v7105_v60  ;;  %v4170_v2 = vpack.c.b16 %v4169_v7, %v4169_v7  ;;  %v4337_v36 = vpack.c.b16 %v4336_v23, %v4336_v23  ;;  %v3433_v16 = vmax.f32 %v3377_v21, %v3409_v40  ;;  %v7165_v15 = vld [vmem:[%s9569_s5 + $0x3f0] sm:$0xff]  ;;  %v3452_v22 = vsel %vm3442_vm4, %v3432_v28, -inf  ;;  %v7156_v18 = vld [vmem:[%s9569_s5 + $0x3a8] sm:$0xff]  ;;  %v7143_v7 = vld [vmem:[%s9569_s5 + $0x340] sm:$0xff] }
 0x3cb   :  { %v4421_v41 = vpack.c.b16 %v4420_v62, %v4420_v62  ;;  %v3441_v58 = vmax.f32 %v3393_v5, %v3425_v48  ;;  %v7137_v59 = vld [vmem:[%s9569_s5 + $0x310] sm:$0xff]  ;;  %v7152_v13 = vld [vmem:[%s9569_s5 + $0x388] sm:$0xff]  ;;  %v7159_v54 = vld [vmem:[%s9569_s5 + $0x3c0] sm:$0xff] }
 0x3cc   :  { %v3453_v26 = vsel %vm3442_vm4, %v3433_v16, -inf  ;;  %v7145_v50 = vld [vmem:[%s9569_s5 + $0x350] sm:$0xff] }
 0x3cd   :  { %4308 = vmatpush.bf16.msra.mxu1 %v7113_v51  ;;  %4392 = vmatpush.bf16.msra.mxu2 %v7121_v14  ;;  %v3391_v1 = vld [vmem:[#allocation3 + $0xf0] ss:$2 sm:$0xf]  ;;  %v3423_v30 = vld [vmem:[#allocation3 + $0xf1] ss:$2 sm:$0xf]  ;;  %v3454_v60 = vmax.f32 %v3452_v22, %v3453_v26 }
 0x3ce   :  { %4476 = vmatpush.bf16.msra.mxu3 %v7129_v35  ;;  %4226 = vmatpush.bf16.msra.mxu0 %v7104_v42  ;;  %v3440_v38 = vmax.f32 %v3391_v1, %v3423_v30  ;;  %v3465_v4 = vsel %vm3442_vm4, %v3441_v58, -inf  ;;  %v7139_v51 = vld [vmem:[%s9569_s5 + $0x320] sm:$0xff] }
 0x3cf   :  { %v4485_v55 = vpack.c.bf16 %v3454_v60, %v3454_v60  ;;  %v7155_v14 = vld [vmem:[%s9569_s5 + $0x3a0] sm:$0xff] }
 0x3d0   :  { %v3464_v53 = vsel %vm3442_vm4, %v3440_v38, -inf }
 0x3d1   :  { %4309 = vmatpush.bf16.msra.mxu1 %v7112_v17  ;;  %4393 = vmatpush.bf16.msra.mxu2 %v7120_v52  ;;  %v3466_v8 = vmax.f32 %v3464_v53, %v3465_v4  ;;  %v4506_v49 = vunpack.c.l.b16 %v4485_v55  ;;  %v7138_v52 = vld [vmem:[%s9569_s5 + $0x318] sm:$0xff] }
 0x3d2   :  { %4477 = vmatpush.bf16.msra.mxu3 %v7128_v39  ;;  %4227 = vmatpush.bf16.msra.mxu0 %v7103_v27  ;;  %v7146_v39 = vld [vmem:[%s9569_s5 + $0x358] sm:$0xff] }
 0x3d3   :  { %v4486_v35 = vpack.c.bf16 %v3466_v8, %v3466_v8  ;;  %v4591_v33 = vrot.slane %v4506_v49, 1  ;;  %v4674_v45 = vrot.slane %v4506_v49, 2  ;;  %v4758_v17 = vrot.slane %v4506_v49, 3  ;;  %v7154_v27 = vld [vmem:[%s9569_s5 + $0x398] sm:$0xff] }
 0x3d5   :  { %4310 = vmatpush.bf16.msra.mxu1 %v7111_v57  ;;  %4394 = vmatpush.bf16.msra.mxu2 %v7119_v44  ;;  %v4507_v42 = vunpack.c.l.b16 %v4486_v35  ;;  %v7136_v44 = vld [vmem:[%s9569_s5 + $0x308] sm:$0xff] }
 0x3d6   :  { %4560 = vmatpush.bf16.msrb.mxu0 %v7142_v31  ;;  %4478 = vmatpush.bf16.msra.mxu3 %v7127_v61  ;;  %v7144_v61 = vld [vmem:[%s9569_s5 + $0x348] sm:$0xff] }
 0x3d7   :  { %4228 = vmatmul.bf16.vlgmr.msra.gmra.mxu0 %v4170_v2  ;;  %v4508_v37 = vrot.slane %v4507_v42, 7  ;;  %v4592_v56 = vsel %vm3507_vm5, %v4507_v42, %v4591_v33  ;;  %v4675_v57 = vrot.slane %v4507_v42, 1  ;;  %v4759_v31 = vrot.slane %v4507_v42, 2 }
 0x3d8   :  { %4311 = vmatmul.bf16.vlgmr.msra.gmra.mxu1 %v4253_v3  ;;  %4395 = vmatmul.bf16.vlgmr.msra.gmra.mxu2 %v4337_v36 }
 0x3d9   :  { %4643 = vmatpush.bf16.msrb.mxu1 %v7150_v6  ;;  %4727 = vmatpush.bf16.msrb.mxu2 %v7158_v19  ;;  %v4509_v0 = vsel %vm3507_vm5, %v4508_v37, %v4506_v49  ;;  %v4676_v34 = vsel %vm3507_vm5, %v4675_v57, %v4674_v45  ;;  %v4760_v12 = vsel %vm3507_vm5, %v4759_v31, %v4758_v17  ;;  %v7160_v6 = vld [vmem:[%s9569_s5 + $0x3c8] sm:$0xff]  ;;  %v7135_v19 = vld [vmem:[%s9569_s5 + $0x300] sm:$0xff] }
 0x3da   :  { %4811 = vmatpush.bf16.msrb.mxu3 %v7166_v11  ;;  %4561 = vmatpush.bf16.msrb.mxu0 %v7141_v25  ;;  %v7151_v11 = vld [vmem:[%s9569_s5 + $0x380] sm:$0xff]  ;;  %v4510_v23 = vpack.c.b16 %v4509_v0, %v4509_v0  ;;  %v4593_v25 = vpack.c.b16 %v4592_v56, %v4592_v56  ;;  %v4677_v28 = vpack.c.b16 %v4676_v34, %v4676_v34 }
 0x3db   :  { %4479 = vmatmul.bf16.vlgmr.msra.gmra.mxu3 %v4421_v41  ;;  %v4761_v62 = vpack.c.b16 %v4760_v12, %v4760_v12  ;;  %v7169_v57 = vld [vmem:[%s9570_s6] ss:$0 sm:$0xff] }
 0x3dd   :  { %4644 = vmatpush.bf16.msrb.mxu1 %v7149_v10  ;;  %4728 = vmatpush.bf16.msrb.mxu2 %v7157_v20 }
 0x3de   :  { %4812 = vmatpush.bf16.msrb.mxu3 %v7165_v15  ;;  %4562 = vmatpush.bf16.msrb.mxu0 %v7140_v47 }
 0x3e1   :  { %4645 = vmatpush.bf16.msrb.mxu1 %v7148_v43  ;;  %4729 = vmatpush.bf16.msrb.mxu2 %v7156_v18 }
 0x3e2   :  { %4813 = vmatpush.bf16.msrb.mxu3 %v7164_v24  ;;  %4563 = vmatpush.bf16.msrb.mxu0 %v7139_v51 }
 0x3e5   :  { %4646 = vmatpush.bf16.msrb.mxu1 %v7147_v46  ;;  %4730 = vmatpush.bf16.msrb.mxu2 %v7155_v14 }
 0x3e6   :  { %4814 = vmatpush.bf16.msrb.mxu3 %v7163_v9  ;;  %4564 = vmatpush.bf16.msrb.mxu0 %v7138_v52 }
 0x3e9   :  { %4647 = vmatpush.bf16.msrb.mxu1 %v7146_v39  ;;  %4731 = vmatpush.bf16.msrb.mxu2 %v7154_v27 }
 0x3ea   :  { %4815 = vmatpush.bf16.msrb.mxu3 %v7162_v63  ;;  %4565 = vmatpush.bf16.msrb.mxu0 %v7137_v59 }
 0x3ed   :  { %4648 = vmatpush.bf16.msrb.mxu1 %v7145_v50  ;;  %4732 = vmatpush.bf16.msrb.mxu2 %v7153_v32 }
 0x3ee   :  { %4816 = vmatpush.bf16.msrb.mxu3 %v7161_v29  ;;  %4566 = vmatpush.bf16.msrb.mxu0 %v7136_v44 }
 0x3f1   :  { %4649 = vmatpush.bf16.msrb.mxu1 %v7144_v61  ;;  %4733 = vmatpush.bf16.msrb.mxu2 %v7152_v13 }
 0x3f2   :  { %4817 = vmatpush.bf16.msrb.mxu3 %v7160_v6  ;;  %4567 = vmatpush.bf16.msrb.mxu0 %v7135_v19 }
 0x3f5   :  { %4650 = vmatpush.bf16.msrb.mxu1 %v7143_v7  ;;  %4734 = vmatpush.bf16.msrb.mxu2 %v7151_v11 }
 0x3f6   :  { %4818 = vmatpush.bf16.msrb.mxu3 %v7159_v54  ;;  %4568 = vmatmul.bf16.vlgmr.msrb.gmra.mxu0 %v4510_v23 }
 0x3f8   :  { %4651 = vmatmul.bf16.vlgmr.msrb.gmra.mxu1 %v4593_v25  ;;  %4735 = vmatmul.bf16.vlgmr.msrb.gmra.mxu2 %v4677_v28 }
 0x3f9   :  { %4819 = vmatmul.bf16.vlgmr.msrb.gmra.mxu3 %v4761_v62 }
 0x432   :  { %v3568_v5 = vpop.f32.mrf.mxu0 }
 0x434   :  { %v3633_v48 = vpop.f32.mrf.mxu1 }
 0x435   :  { %v3634_v30 = vadd.f32 %v3633_v48, %v3568_v5 }
 0x43a   :  { %v3716_v2 = vpop.f32.mrf.mxu2  ;;  %v3570_v21 = vpop.f32.mrf.mxu0 }
 0x43b   :  { %v3800_v40 = vpop.f32.mrf.mxu3  ;;  %v3720_v26 = vadd.f32 %v3716_v2, %v3634_v30 }
 0x43c   :  { %v3635_v3 = vpop.f32.mrf.mxu1 }
 0x43d   :  { %v3804_v18 = vadd.f32 %v3800_v40, %v3720_v26 }
 0x442   :  { %v3718_v36 = vpop.f32.mrf.mxu2 }
 0x443   :  { %v3802_v10 = vpop.f32.mrf.mxu3 }
 0x444   :  { %v3972_v20 = vpop.f32.mrf.mxu1  ;;  %v3889_v16 = vpop.f32.mrf.mxu0 }
 0x445   :  { %v3893_v60 = vadd.f32 %v3889_v16, %v3804_v18 }
 0x447   :  { %v3976_v55 = vadd.f32 %v3972_v20, %v3893_v60 }
 0x44b   :  { %v4056_v41 = vpop.f32.mrf.mxu2  ;;  %v4140_v15 = vpop.f32.mrf.mxu3 }
 0x44c   :  { %v3974_v58 = vpop.f32.mrf.mxu1  ;;  %v3891_v22 = vpop.f32.mrf.mxu0  ;;  %v4060_v51 = vadd.f32 %v4056_v41, %v3976_v55 }
 0x44e   :  { %v4144_v35 = vadd.f32 %v4140_v15, %v4060_v51 }
 0x453   :  { %v4058_v1 = vpop.f32.mrf.mxu2  ;;  %v4142_v47 = vpop.f32.mrf.mxu3 }
 0x454   :  { %v4229_v38 = vpop.f32.mrf.mxu0 }
 0x455   :  { %v4312_v43 = vpop.f32.mrf.mxu1  ;;  %v4233_v49 = vadd.f32 %v4229_v38, %v4144_v35 }
 0x457   :  { %v4316_v9 = vadd.f32 %v4312_v43, %v4233_v49 }
 0x45b   :  { %v4396_v24 = vpop.f32.mrf.mxu2 }
 0x45c   :  { %v4231_v4 = vpop.f32.mrf.mxu0  ;;  %v4400_v42 = vadd.f32 %v4396_v24, %v4316_v9 }
 0x45d   :  { %v4314_v8 = vpop.f32.mrf.mxu1 }
 0x45e   :  { %v4480_v53 = vpop.f32.mrf.mxu3 }
 0x45f   :  { %v4484_v33 = vadd.f32 %v4480_v53, %v4400_v42 }
 0x463   :  { %v4398_v46 = vpop.f32.mrf.mxu2 }
 0x466   :  { %v4482_v14 = vpop.f32.mrf.mxu3 }
 0x473   :  { %v4569_v45 = vpop.f32.mrf.mxu0 }
 0x474   :  { %v4573_v52 = vadd.f32 %v4569_v45, %v4484_v33 }
 0x475   :  { %v4652_v17 = vpop.f32.mrf.mxu1 }
 0x476   :  { %v4656_v39 = vadd.f32 %v4652_v17, %v4573_v52 }
 0x47b   :  { %v4736_v27 = vpop.f32.mrf.mxu2  ;;  %v4571_v31 = vpop.f32.mrf.mxu0 }
 0x47c   :  { %v4740_v37 = vadd.f32 %v4736_v27, %v4656_v39  ;;  %v4820_v56 = vpop.f32.mrf.mxu3 }
 0x47d   :  { %v4654_v63 = vpop.f32.mrf.mxu1 }
 0x47e   :  { %v4824_v0 = vadd.f32 %v4820_v56, %v4740_v37 }
 0x480   :  { %v4829_v34 = vadd.f32 %v7169_v57, %v4824_v0 }
 0x482   :  { %4830 = vst [vmem:[#allocation4] sm:$0x3] %v4829_v34 }
 0x483   :  { %v4738_v12 = vpop.f32.mrf.mxu2  ;;  %4841 = dma.vmem_to_hbm [thread:$0]  %s4837_s20, 32, %s4839_s23, [#allocation5]  }
 0x484   :  { %v4822_v59 = vpop.f32.mrf.mxu3 }
 0x485   :  { %7196 = dma.done.wait [#allocation5], 32  }
 0x486   :  { %7197 = vsyncadd [#allocation5], 4294967264 }
 0x487   :  { %4846 = vsyncpa [#allocation5], 1 }

</bundles_post_ra>
